<compile_context>
chip_gen: v6e
topology: v6e:2x2x1
jax: 0.10.0
libtpu: 0.0.40
codegen_flags: <defaults>
</compile_context>

<pallas_src>
import functools
import math

import jax
import jax.numpy as jnp
from jax.experimental import pallas as pl
from jax.experimental.pallas import tpu as pltpu  # noqa: F401  (kept for CompilerParams if a grid is added)

# ----------------------- synthetic mini-BERT config -------------------------
VOCAB = 1000
D = 64            # hidden size
H = 4             # attention heads
DH = D // H       # head dim
FF = 256          # intermediate (FFN) size
LAYERS = 2
MAX_POS = 64
LN_EPS = 1e-12    # BERT layernorm eps

# rows of the packed per-layer bias/LN block (one (8, 256) slab per layer)
_ROW_BQKV, _ROW_BO, _ROW_BF1, _ROW_BF2 = 0, 1, 2, 3
_ROW_G1, _ROW_BE1, _ROW_G2, _ROW_BE2 = 4, 5, 6, 7
_PACK_W = 256     # lane width of the packed block (>= max(3*D, FF))


# ------------------------------ kernel helpers -------------------------------
def _layernorm(x, g, b):
    mu = jnp.mean(x, axis=-1, keepdims=True)
    var = jnp.mean((x - mu) ** 2, axis=-1, keepdims=True)
    return (x - mu) * jax.lax.rsqrt(var + LN_EPS) * g + b


def _erf(x):
    # Abramowitz & Stegun 7.1.26 (|err| < 1.5e-7): one EUP exp + a few VPU ops.
    # Used instead of lax.erf so the kernel does not depend on an erf lowering.
    a1, a2, a3, a4, a5 = 0.254829592, -0.284496736, 1.421413741, -1.453152027, 1.061405429
    p = 0.3275911
    sgn = jnp.where(x >= 0.0, 1.0, -1.0)
    ax = jnp.abs(x)
    t = 1.0 / (1.0 + p * ax)
    poly = ((((a5 * t + a4) * t + a3) * t + a2) * t + a1) * t
    return sgn * (1.0 - poly * jnp.exp(-ax * ax))


def _gelu(x):
    # erf-based GELU (matches PyTorch/BERT default, unlike the tanh approx).
    return 0.5 * x * (1.0 + _erf(x * (1.0 / math.sqrt(2.0))))


# ------------------------------ fused Pallas kernel ---------------------------
def retriever_fused_kernel(x_ref, mask_ref, bias_ref, wqkv_ref, wo_ref, w1_ref,
                           w2_ref, out_ref, *, span_pos, n_spans, seq_pad):
    """Embedding LN + LAYERS BERT encoder layers + CLS-dot scoring, fused.

    x_ref   : (N*S_pad, D)        f32  summed embeddings (pre-layernorm)
    mask_ref: (1, S_pad)          f32  additive attention bias (0 real / -1e30 pad)
    bias_ref: (LAYERS+1, 8, 256)  f32  packed biases + LN params (slot LAYERS = emb LN)
    wqkv_ref: (LAYERS, D, 3D) bf16 ; wo_ref: (LAYERS, D, D) bf16
    w1_ref  : (LAYERS, D, FF) bf16 ; w2_ref: (LAYERS, FF, D) bf16
    out_ref : (1, N)              f32  lane-dense span scores
    """
    NS = n_spans * seq_pad

    # embedding layernorm (params live in the packed block, slab index LAYERS)
    emb = bias_ref[LAYERS]                                        # (8, 256) f32
    h0 = _layernorm(x_ref[...], emb[0:1, 0:D], emb[1:2, 0:D])     # (NS, D) f32

    # hoisted & materialized once before the layer loop (no per-head re-broadcast)
    attn_bias = jnp.broadcast_to(mask_ref[...].reshape(1, 1, seq_pad),
                                 (n_spans, seq_pad, seq_pad))     # (N, S, S) f32
    scale = 1.0 / math.sqrt(DH)

    def layer_body(l, h):
        bl = bias_ref[l]                                          # (8, 256) f32
        bqkv = bl[_ROW_BQKV:_ROW_BQKV + 1, 0:3 * D]
        bo   = bl[_ROW_BO:_ROW_BO + 1, 0:D]
        bf1  = bl[_ROW_BF1:_ROW_BF1 + 1, 0:FF]
        bf2  = bl[_ROW_BF2:_ROW_BF2 + 1, 0:D]
        g1   = bl[_ROW_G1:_ROW_G1 + 1, 0:D]
        be1  = bl[_ROW_BE1:_ROW_BE1 + 1, 0:D]
        g2   = bl[_ROW_G2:_ROW_G2 + 1, 0:D]
        be2  = bl[_ROW_BE2:_ROW_BE2 + 1, 0:D]

        # fused Q|K|V projection: one (NS, D) x (D, 3D) bf16 MXU matmul
        qkv = jnp.dot(h.astype(jnp.bfloat16), wqkv_ref[l],
                      preferred_element_type=jnp.float32) + bqkv  # (NS, 3D) f32

        wo_l = wo_ref[l]                                          # (D, D) bf16
        attn = jnp.zeros((NS, D), jnp.float32)
        # Per-head loop (H=4, static).  The lane-wise concat of head outputs is
        # replaced by accumulating ctx_h @ wo[hd*DH:(hd+1)*DH, :] on the MXU.
        for hd in range(H):
            qh = qkv[:, hd * DH:(hd + 1) * DH].reshape(n_spans, seq_pad, DH)
            kh = qkv[:, D + hd * DH:D + (hd + 1) * DH].reshape(n_spans, seq_pad, DH)
            vh = qkv[:, 2 * D + hd * DH:2 * D + (hd + 1) * DH].reshape(n_spans, seq_pad, DH)

            s = jnp.einsum('nqd,nkd->nqk', qh.astype(jnp.bfloat16),
                           kh.astype(jnp.bfloat16),
                           preferred_element_type=jnp.float32)    # (N, S, S) f32
            s = s * scale + attn_bias                             # mask padded keys (f32)
            s = s - jnp.max(s, axis=-1, keepdims=True)
            p = jnp.exp(s)
            # approx reciprocal on the EUP; ~1e-3 rel. error in the denominator
            # (fine for ranking; not bit-exact versus an exact softmax).
            p = p * pl.reciprocal(jnp.sum(p, axis=-1, keepdims=True), approx=True)
            ctx = jnp.einsum('nqk,nkd->nqd', p.astype(jnp.bfloat16),
                             vh.astype(jnp.bfloat16),
                             preferred_element_type=jnp.float32)  # (N, S, DH) f32

            attn = attn + jnp.dot(ctx.reshape(NS, DH).astype(jnp.bfloat16),
                                  wo_l[hd * DH:(hd + 1) * DH, :],
                                  preferred_element_type=jnp.float32)

        x1 = _layernorm(h + attn + bo, g1, be1)

        mid = _gelu(jnp.dot(x1.astype(jnp.bfloat16), w1_ref[l],
                            preferred_element_type=jnp.float32) + bf1)
        ffn = jnp.dot(mid.astype(jnp.bfloat16), w2_ref[l],
                      preferred_element_type=jnp.float32) + bf2
        return _layernorm(x1 + ffn, g2, be2)

    # fori_loop over the stacked weights bounds live ranges (vs. static unroll)
    h = jax.lax.fori_loop(0, LAYERS, layer_body, h0)

    # CLS-dot scoring: score_n = dot(h[n, 0], h[n, span_pos]); lane-dense (1, N)
    hfin = h.reshape(n_spans, seq_pad, D)
    prod = hfin[:, 0, :] * hfin[:, span_pos, :]                   # (N, D) f32
    out_ref[...] = jnp.einsum('md,nd->mn', jnp.ones((1, D), jnp.float32), prod,
                              preferred_element_type=jnp.float32)  # (1, N)


# ------------------------------ parameter init --------------------------------
def init_params(key):
    keys = jax.random.split(key, 64)
    it = iter(keys)
    std = 0.02

    def norm(shape):
        return (std * jax.random.normal(next(it), shape)).astype(jnp.float32)

    params = dict(
        word_emb=norm((VOCAB, D)),
        pos_emb=norm((MAX_POS, D)),
        type_emb=norm((2, D)),
        emb_ln_g=jnp.ones((1, D), jnp.float32),
        emb_ln_b=jnp.zeros((1, D), jnp.float32),
        layers=[],
    )
    for _ in range(LAYERS):
        params['layers'].append(dict(
            wqkv=norm((D, 3 * D)), bqkv=jnp.zeros((1, 3 * D), jnp.float32),
            wo=norm((D, D)), bo=jnp.zeros((1, D), jnp.float32),
            g1=jnp.ones((1, D), jnp.float32), be1=jnp.zeros((1, D), jnp.float32),
            w1=norm((D, FF)), bf1=jnp.zeros((1, FF), jnp.float32),
            w2=norm((FF, D)), bf2=jnp.zeros((1, D), jnp.float32),
            g2=jnp.ones((1, D), jnp.float32), be2=jnp.zeros((1, D), jnp.float32),
        ))
    return params


def pack_weights(params):
    """Consolidate ~28 small arrays into 5 kernel operands (fewer prologue DMAs)."""
    def row(v):
        v = jnp.asarray(v, jnp.float32).reshape(-1)
        return jnp.pad(v, (0, _PACK_W - v.shape[0]))

    slabs = []
    for lw in params['layers']:
        slabs.append(jnp.stack([row(lw['bqkv']), row(lw['bo']),
                                row(lw['bf1']), row(lw['bf2']),
                                row(lw['g1']), row(lw['be1']),
                                row(lw['g2']), row(lw['be2'])]))
    zero = jnp.zeros((_PACK_W,), jnp.float32)
    slabs.append(jnp.stack([row(params['emb_ln_g']), row(params['emb_ln_b'])]
                           + [zero] * 6))
    bias_block = jnp.stack(slabs)                       # (LAYERS+1, 8, 256) f32

    # bf16 matmul operands: MXU-native on v6e/v7x, halves VMEM/DMA bytes.
    wqkv_all = jnp.stack([lw['wqkv'] for lw in params['layers']]).astype(jnp.bfloat16)
    wo_all   = jnp.stack([lw['wo']   for lw in params['layers']]).astype(jnp.bfloat16)
    w1_all   = jnp.stack([lw['w1']   for lw in params['layers']]).astype(jnp.bfloat16)
    w2_all   = jnp.stack([lw['w2']   for lw in params['layers']]).astype(jnp.bfloat16)
    return bias_block, wqkv_all, wo_all, w1_all, w2_all


# ------------------------------ forward pass -----------------------------------
@functools.partial(jax.jit, static_argnames=('k',))
def retriever_forward(params, question_ids, spans_ids, k=5):
    # question_ids: (Lq,) int32; spans_ids: (N, Ls) int32
    N, Ls = spans_ids.shape
    Lq = question_ids.shape[0]
    CLS_ID, SEP_ID, PAD_ID = 101, 102, 0

    S_real = Lq + Ls + 3                       # [CLS] q [SEP] span [SEP]
    S_pad = ((S_real + 7) // 8) * 8            # sublane-aligned sequence length
    assert S_pad <= MAX_POS, "sequence length exceeds position-embedding table"

    cls_col = jnp.full((N, 1), CLS_ID, jnp.int32)
    sep_col = jnp.full((N, 1), SEP_ID, jnp.int32)
    pad_cols = jnp.full((N, S_pad - S_real), PAD_ID, jnp.int32)
    q_rows = jnp.broadcast_to(question_ids[None, :], (N, Lq))
    # [CLS] question [SEP] span [SEP] [PAD]*   (same construction as torch forward)
    input_ids = jnp.concatenate(
        [cls_col, q_rows, sep_col, spans_ids, sep_col, pad_cols], axis=1)
    seg = jnp.concatenate(
        [jnp.zeros((N, Lq + 2), jnp.int32),
         jnp.ones((N, Ls + 1 + (S_pad - S_real)), jnp.int32)], axis=1)

    # TODO(synk): embedding gathers stay in XLA; fusing them into the kernel via
    # scalar-prefetched ids only saves fixed dispatch latency at these sizes.
    x = (params['word_emb'][input_ids]
         + params['pos_emb'][None, :S_pad, :]
         + params['type_emb'][seg]).astype(jnp.float32)           # (N, S_pad, D)
    x2 = x.reshape(N * S_pad, D)

    # additive attention bias: 0 on real key positions, -1e30 on padding (f32)
    key_pos = jnp.arange(S_pad)[None, :]
    attn_mask = jnp.where(key_pos < S_real, 0.0, -1e30).astype(jnp.float32)

    bias_block, wqkv_all, wo_all, w1_all, w2_all = pack_weights(params)

    span_pos = Lq + 2                          # matches output[0][len(question)+2]
    kernel = functools.partial(retriever_fused_kernel,
                               span_pos=span_pos, n_spans=N, seq_pad=S_pad)

    # Single fused pallas_call, no grid: 7 operands (<0.3 MB total) live in VMEM.
    # TODO(synk): for large N, add a span-blocked "parallel" grid axis (uses both
    # v7x TensorCores) and set pltpu.CompilerParams(vmem_limit_bytes=...); the
    # single-block headroom on v7x (64 MiB VMEM) is ~half that of v5e/v6e, so
    # blocking must kick in around NS ~ 8-16K rows.
    scores = pl.pallas_call(
        kernel,
        out_shape=jax.ShapeDtypeStruct((1, N), jnp.float32),      # lane-dense scores
    )(x2, attn_mask, bias_block, wqkv_all, wo_all, w1_all, w2_all)[0]   # (N,)

    kk = min(k, N)
    # torch.topk over the score list -> lax.top_k outside the kernel
    top_scores, top_idx = jax.lax.top_k(scores, kk)
    top_spans = spans_ids[top_idx]
    return top_spans, top_scores, top_idx


# ---------------------------------- main ---------------------------------------
if __name__ == "__main__":
    key = jax.random.PRNGKey(0)
    kp, kq, ks = jax.random.split(key, 3)
    params = init_params(kp)

    Lq, Ls, N_SPANS = 8, 6, 7                  # S_real = 17, padded to 24
    question_ids = jax.random.randint(kq, (Lq,), 103, VOCAB, dtype=jnp.int32)
    spans_ids = jax.random.randint(ks, (N_SPANS, Ls), 103, VOCAB, dtype=jnp.int32)

    top_spans, top_scores, top_idx = retriever_forward(
        params, question_ids, spans_ids, k=5)
    jax.block_until_ready((top_spans, top_scores, top_idx))
    print("KERNEL_OK")
</pallas_src>

<mosaic_0001>
module attributes {stable_mosaic.version = 11 : i64} {
  func.func @retriever_fused_kernel(%arg0: memref<168x64xf32, #tpu.memory_space<vmem>>, %arg1: memref<1x24xf32, #tpu.memory_space<vmem>>, %arg2: memref<3x8x256xf32, #tpu.memory_space<vmem>>, %arg3: memref<2x64x192xbf16, #tpu.memory_space<vmem>>, %arg4: memref<2x64x64xbf16, #tpu.memory_space<vmem>>, %arg5: memref<2x64x256xbf16, #tpu.memory_space<vmem>>, %arg6: memref<2x256x64xbf16, #tpu.memory_space<vmem>>, %arg7: memref<1x7xf32, #tpu.memory_space<vmem>>) attributes {dimension_semantics = [], scalar_prefetch = 0 : i64, scratch_operands = 0 : i64, tpu.core_type = #tpu.core_type<tc>} {
    %c2 = arith.constant 2 : index
    %c0 = arith.constant 0 : index
    %c0_0 = arith.constant 0 : index
    %0 = vector.load %arg2[%c2, %c0, %c0_0] : memref<3x8x256xf32, #tpu.memory_space<vmem>>, vector<1x8x256xf32>
    %1 = vector.shape_cast %0 : vector<1x8x256xf32> to vector<8x256xf32>
    %c0_1 = arith.constant 0 : index
    %c0_2 = arith.constant 0 : index
    %2 = vector.load %arg0[%c0_1, %c0_2] : memref<168x64xf32, #tpu.memory_space<vmem>>, vector<168x64xf32>
    %3 = vector.extract_strided_slice %1 {offsets = [0, 0], sizes = [1, 64], strides = [1, 1]} : vector<8x256xf32> to vector<1x64xf32>
    %4 = vector.extract_strided_slice %1 {offsets = [1, 0], sizes = [1, 64], strides = [1, 1]} : vector<8x256xf32> to vector<1x64xf32>
    %cst = arith.constant dense<0.000000e+00> : vector<168xf32>
    %5 = vector.multi_reduction <add>, %2, %cst [1] : vector<168x64xf32> to vector<168xf32>
    %6 = vector.shape_cast %5 : vector<168xf32> to vector<168x1xf32>
    %cst_3 = arith.constant 6.400000e+01 : f32
    %7 = vector.broadcast %cst_3 : f32 to vector<168x1xf32>
    %8 = arith.divf %6, %7 : vector<168x1xf32>
    %9 = vector.broadcast %8 : vector<168x1xf32> to vector<168x64xf32>
    %10 = arith.subf %2, %9 : vector<168x64xf32>
    %11 = arith.mulf %10, %10 : vector<168x64xf32>
    %cst_4 = arith.constant dense<0.000000e+00> : vector<168xf32>
    %12 = vector.multi_reduction <add>, %11, %cst_4 [1] : vector<168x64xf32> to vector<168xf32>
    %13 = vector.shape_cast %12 : vector<168xf32> to vector<168x1xf32>
    %cst_5 = arith.constant 6.400000e+01 : f32
    %14 = vector.broadcast %cst_5 : f32 to vector<168x1xf32>
    %15 = arith.divf %13, %14 : vector<168x1xf32>
    %16 = vector.broadcast %8 : vector<168x1xf32> to vector<168x64xf32>
    %17 = arith.subf %2, %16 : vector<168x64xf32>
    %cst_6 = arith.constant 9.99999996E-13 : f32
    %18 = vector.broadcast %cst_6 : f32 to vector<168x1xf32>
    %19 = arith.addf %15, %18 : vector<168x1xf32>
    %20 = math.rsqrt %19 : vector<168x1xf32>
    %21 = vector.broadcast %20 : vector<168x1xf32> to vector<168x64xf32>
    %22 = arith.mulf %17, %21 : vector<168x64xf32>
    %23 = vector.broadcast %3 : vector<1x64xf32> to vector<168x64xf32>
    %24 = arith.mulf %22, %23 : vector<168x64xf32>
    %25 = vector.broadcast %4 : vector<1x64xf32> to vector<168x64xf32>
    %26 = arith.addf %24, %25 : vector<168x64xf32>
    %c0_7 = arith.constant 0 : index
    %c0_8 = arith.constant 0 : index
    %27 = vector.load %arg1[%c0_7, %c0_8] : memref<1x24xf32, #tpu.memory_space<vmem>>, vector<1x24xf32>
    %28 = vector.shape_cast %27 : vector<1x24xf32> to vector<1x1x24xf32>
    %29 = vector.shape_cast %28 : vector<1x1x24xf32> to vector<1x1x24xf32>
    %30 = vector.broadcast %29 : vector<1x1x24xf32> to vector<7x24x24xf32>
    %c0_i32 = arith.constant 0 : i32
    %c2_i32 = arith.constant 2 : i32
    %31 = arith.addi %c0_i32, %c2_i32 : i32
    %c1_i32 = arith.constant 1 : i32
    %32 = scf.for %arg8 = %c0_i32 to %31 step %c1_i32 iter_args(%arg9 = %26) -> (vector<168x64xf32>)  : i32 {
      %42 = arith.index_cast %arg8 : i32 to index
      %c0_14 = arith.constant 0 : index
      %c0_15 = arith.constant 0 : index
      %43 = vector.load %arg2[%42, %c0_14, %c0_15] : memref<3x8x256xf32, #tpu.memory_space<vmem>>, vector<1x8x256xf32>
      %44 = vector.shape_cast %43 : vector<1x8x256xf32> to vector<8x256xf32>
      %45 = vector.extract_strided_slice %44 {offsets = [0, 0], sizes = [1, 192], strides = [1, 1]} : vector<8x256xf32> to vector<1x192xf32>
      %46 = vector.extract_strided_slice %44 {offsets = [1, 0], sizes = [1, 64], strides = [1, 1]} : vector<8x256xf32> to vector<1x64xf32>
      %47 = vector.extract_strided_slice %44 {offsets = [2, 0], sizes = [1, 256], strides = [1, 1]} : vector<8x256xf32> to vector<1x256xf32>
      %48 = vector.extract_strided_slice %44 {offsets = [3, 0], sizes = [1, 64], strides = [1, 1]} : vector<8x256xf32> to vector<1x64xf32>
      %49 = vector.extract_strided_slice %44 {offsets = [4, 0], sizes = [1, 64], strides = [1, 1]} : vector<8x256xf32> to vector<1x64xf32>
      %50 = vector.extract_strided_slice %44 {offsets = [5, 0], sizes = [1, 64], strides = [1, 1]} : vector<8x256xf32> to vector<1x64xf32>
      %51 = vector.extract_strided_slice %44 {offsets = [6, 0], sizes = [1, 64], strides = [1, 1]} : vector<8x256xf32> to vector<1x64xf32>
      %52 = vector.extract_strided_slice %44 {offsets = [7, 0], sizes = [1, 64], strides = [1, 1]} : vector<8x256xf32> to vector<1x64xf32>
      %53 = arith.truncf %arg9 : vector<168x64xf32> to vector<168x64xbf16>
      %54 = arith.index_cast %arg8 : i32 to index
      %c0_16 = arith.constant 0 : index
      %c0_17 = arith.constant 0 : index
      %55 = vector.load %arg3[%54, %c0_16, %c0_17] : memref<2x64x192xbf16, #tpu.memory_space<vmem>>, vector<1x64x192xbf16>
      %56 = vector.shape_cast %55 : vector<1x64x192xbf16> to vector<64x192xbf16>
      %cst_18 = arith.constant dense<0.000000e+00> : vector<168x192xf32>
      %57 = tpu.matmul %53, %56, %cst_18 {dimension_numbers = #tpu.dot_dimension_numbers<[1], [0], [0], [1], [0, 0, 1, 1], [], []>} : vector<168x64xbf16>, vector<64x192xbf16>, vector<168x192xf32> -> vector<168x192xf32>
      %58 = vector.broadcast %45 : vector<1x192xf32> to vector<168x192xf32>
      %59 = arith.addf %57, %58 : vector<168x192xf32>
      %60 = arith.index_cast %arg8 : i32 to index
      %c0_19 = arith.constant 0 : index
      %c0_20 = arith.constant 0 : index
      %61 = vector.load %arg4[%60, %c0_19, %c0_20] : memref<2x64x64xbf16, #tpu.memory_space<vmem>>, vector<1x64x64xbf16>
      %62 = vector.shape_cast %61 : vector<1x64x64xbf16> to vector<64x64xbf16>
      %cst_21 = arith.constant 0.000000e+00 : f32
      %63 = vector.broadcast %cst_21 : f32 to vector<168x64xf32>
      %64 = vector.extract_strided_slice %59 {offsets = [0, 0], sizes = [168, 16], strides = [1, 1]} : vector<168x192xf32> to vector<168x16xf32>
      %65 = vector.shape_cast %64 : vector<168x16xf32> to vector<7x24x16xf32>
      %66 = vector.extract_strided_slice %59 {offsets = [0, 64], sizes = [168, 16], strides = [1, 1]} : vector<168x192xf32> to vector<168x16xf32>
      %67 = vector.shape_cast %66 : vector<168x16xf32> to vector<7x24x16xf32>
      %68 = vector.extract_strided_slice %59 {offsets = [0, 128], sizes = [168, 16], strides = [1, 1]} : vector<168x192xf32> to vector<168x16xf32>
      %69 = vector.shape_cast %68 : vector<168x16xf32> to vector<7x24x16xf32>
      %70 = arith.truncf %65 : vector<7x24x16xf32> to vector<7x24x16xbf16>
      %71 = arith.truncf %67 : vector<7x24x16xf32> to vector<7x24x16xbf16>
      "tpu.trace_start"() <{level = 10 : i32, message = "nqd,nkd->nqk"}> : () -> ()
      %cst_22 = arith.constant dense<0.000000e+00> : vector<7x24x24xf32>
      %72 = tpu.matmul %70, %71, %cst_22 {dimension_numbers = #tpu.dot_dimension_numbers<[2], [2], [1], [1], [0, 0, 0, 1, 1, 1], [0], [0]>} : vector<7x24x16xbf16>, vector<7x24x16xbf16>, vector<7x24x24xf32> -> vector<7x24x24xf32>
      "tpu.trace_stop"() : () -> ()
      %cst_23 = arith.constant 2.500000e-01 : f32
      %73 = vector.broadcast %cst_23 : f32 to vector<7x24x24xf32>
      %74 = arith.mulf %72, %73 : vector<7x24x24xf32>
      %75 = arith.addf %74, %30 : vector<7x24x24xf32>
      %cst_24 = arith.constant dense<0xFF800000> : vector<7x24xf32>
      %76 = vector.multi_reduction <maximumf>, %75, %cst_24 [2] : vector<7x24x24xf32> to vector<7x24xf32>
      %77 = vector.shape_cast %76 : vector<7x24xf32> to vector<7x24x1xf32>
      %78 = vector.broadcast %77 : vector<7x24x1xf32> to vector<7x24x24xf32>
      %79 = arith.subf %75, %78 : vector<7x24x24xf32>
      %80 = math.exp %79 : vector<7x24x24xf32>
      %cst_25 = arith.constant dense<0.000000e+00> : vector<7x24xf32>
      %81 = vector.multi_reduction <add>, %80, %cst_25 [2] : vector<7x24x24xf32> to vector<7x24xf32>
      %82 = vector.shape_cast %81 : vector<7x24xf32> to vector<7x24x1xf32>
      %83 = tpu.reciprocal %82 {approx = true} : vector<7x24x1xf32> -> vector<7x24x1xf32>
      %84 = vector.broadcast %83 : vector<7x24x1xf32> to vector<7x24x24xf32>
      %85 = arith.mulf %80, %84 : vector<7x24x24xf32>
      %86 = arith.truncf %85 : vector<7x24x24xf32> to vector<7x24x24xbf16>
      %87 = arith.truncf %69 : vector<7x24x16xf32> to vector<7x24x16xbf16>
      "tpu.trace_start"() <{level = 10 : i32, message = "nqk,nkd->nqd"}> : () -> ()
      %cst_26 = arith.constant dense<0.000000e+00> : vector<7x24x16xf32>
      %88 = tpu.matmul %86, %87, %cst_26 {dimension_numbers = #tpu.dot_dimension_numbers<[2], [1], [1], [2], [0, 0, 0, 1, 1, 2], [0], [0]>} : vector<7x24x24xbf16>, vector<7x24x16xbf16>, vector<7x24x16xf32> -> vector<7x24x16xf32>
      "tpu.trace_stop"() : () -> ()
      %89 = vector.shape_cast %88 : vector<7x24x16xf32> to vector<168x16xf32>
      %90 = arith.truncf %89 : vector<168x16xf32> to vector<168x16xbf16>
      %91 = vector.extract_strided_slice %62 {offsets = [0, 0], sizes = [16, 64], strides = [1, 1]} : vector<64x64xbf16> to vector<16x64xbf16>
      %cst_27 = arith.constant dense<0.000000e+00> : vector<168x64xf32>
      %92 = tpu.matmul %90, %91, %cst_27 {dimension_numbers = #tpu.dot_dimension_numbers<[1], [0], [0], [1], [0, 0, 1, 1], [], []>} : vector<168x16xbf16>, vector<16x64xbf16>, vector<168x64xf32> -> vector<168x64xf32>
      %93 = arith.addf %63, %92 : vector<168x64xf32>
      %94 = vector.extract_strided_slice %59 {offsets = [0, 16], sizes = [168, 16], strides = [1, 1]} : vector<168x192xf32> to vector<168x16xf32>
      %95 = vector.shape_cast %94 : vector<168x16xf32> to vector<7x24x16xf32>
      %96 = vector.extract_strided_slice %59 {offsets = [0, 80], sizes = [168, 16], strides = [1, 1]} : vector<168x192xf32> to vector<168x16xf32>
      %97 = vector.shape_cast %96 : vector<168x16xf32> to vector<7x24x16xf32>
      %98 = vector.extract_strided_slice %59 {offsets = [0, 144], sizes = [168, 16], strides = [1, 1]} : vector<168x192xf32> to vector<168x16xf32>
      %99 = vector.shape_cast %98 : vector<168x16xf32> to vector<7x24x16xf32>
      %100 = arith.truncf %95 : vector<7x24x16xf32> to vector<7x24x16xbf16>
      %101 = arith.truncf %97 : vector<7x24x16xf32> to vector<7x24x16xbf16>
      "tpu.trace_start"() <{level = 10 : i32, message = "nqd,nkd->nqk"}> : () -> ()
      %cst_28 = arith.constant dense<0.000000e+00> : vector<7x24x24xf32>
      %102 = tpu.matmul %100, %101, %cst_28 {dimension_numbers = #tpu.dot_dimension_numbers<[2], [2], [1], [1], [0, 0, 0, 1, 1, 1], [0], [0]>} : vector<7x24x16xbf16>, vector<7x24x16xbf16>, vector<7x24x24xf32> -> vector<7x24x24xf32>
      "tpu.trace_stop"() : () -> ()
      %cst_29 = arith.constant 2.500000e-01 : f32
      %103 = vector.broadcast %cst_29 : f32 to vector<7x24x24xf32>
      %104 = arith.mulf %102, %103 : vector<7x24x24xf32>
      %105 = arith.addf %104, %30 : vector<7x24x24xf32>
      %cst_30 = arith.constant dense<0xFF800000> : vector<7x24xf32>
      %106 = vector.multi_reduction <maximumf>, %105, %cst_30 [2] : vector<7x24x24xf32> to vector<7x24xf32>
      %107 = vector.shape_cast %106 : vector<7x24xf32> to vector<7x24x1xf32>
      %108 = vector.broadcast %107 : vector<7x24x1xf32> to vector<7x24x24xf32>
      %109 = arith.subf %105, %108 : vector<7x24x24xf32>
      %110 = math.exp %109 : vector<7x24x24xf32>
      %cst_31 = arith.constant dense<0.000000e+00> : vector<7x24xf32>
      %111 = vector.multi_reduction <add>, %110, %cst_31 [2] : vector<7x24x24xf32> to vector<7x24xf32>
      %112 = vector.shape_cast %111 : vector<7x24xf32> to vector<7x24x1xf32>
      %113 = tpu.reciprocal %112 {approx = true} : vector<7x24x1xf32> -> vector<7x24x1xf32>
      %114 = vector.broadcast %113 : vector<7x24x1xf32> to vector<7x24x24xf32>
      %115 = arith.mulf %110, %114 : vector<7x24x24xf32>
      %116 = arith.truncf %115 : vector<7x24x24xf32> to vector<7x24x24xbf16>
      %117 = arith.truncf %99 : vector<7x24x16xf32> to vector<7x24x16xbf16>
      "tpu.trace_start"() <{level = 10 : i32, message = "nqk,nkd->nqd"}> : () -> ()
      %cst_32 = arith.constant dense<0.000000e+00> : vector<7x24x16xf32>
      %118 = tpu.matmul %116, %117, %cst_32 {dimension_numbers = #tpu.dot_dimension_numbers<[2], [1], [1], [2], [0, 0, 0, 1, 1, 2], [0], [0]>} : vector<7x24x24xbf16>, vector<7x24x16xbf16>, vector<7x24x16xf32> -> vector<7x24x16xf32>
      "tpu.trace_stop"() : () -> ()
      %119 = vector.shape_cast %118 : vector<7x24x16xf32> to vector<168x16xf32>
      %120 = arith.truncf %119 : vector<168x16xf32> to vector<168x16xbf16>
      %121 = vector.extract_strided_slice %62 {offsets = [16, 0], sizes = [16, 64], strides = [1, 1]} : vector<64x64xbf16> to vector<16x64xbf16>
      %cst_33 = arith.constant dense<0.000000e+00> : vector<168x64xf32>
      %122 = tpu.matmul %120, %121, %cst_33 {dimension_numbers = #tpu.dot_dimension_numbers<[1], [0], [0], [1], [0, 0, 1, 1], [], []>} : vector<168x16xbf16>, vector<16x64xbf16>, vector<168x64xf32> -> vector<168x64xf32>
      %123 = arith.addf %93, %122 : vector<168x64xf32>
      %124 = vector.extract_strided_slice %59 {offsets = [0, 32], sizes = [168, 16], strides = [1, 1]} : vector<168x192xf32> to vector<168x16xf32>
      %125 = vector.shape_cast %124 : vector<168x16xf32> to vector<7x24x16xf32>
      %126 = vector.extract_strided_slice %59 {offsets = [0, 96], sizes = [168, 16], strides = [1, 1]} : vector<168x192xf32> to vector<168x16xf32>
      %127 = vector.shape_cast %126 : vector<168x16xf32> to vector<7x24x16xf32>
      %128 = vector.extract_strided_slice %59 {offsets = [0, 160], sizes = [168, 16], strides = [1, 1]} : vector<168x192xf32> to vector<168x16xf32>
      %129 = vector.shape_cast %128 : vector<168x16xf32> to vector<7x24x16xf32>
      %130 = arith.truncf %125 : vector<7x24x16xf32> to vector<7x24x16xbf16>
      %131 = arith.truncf %127 : vector<7x24x16xf32> to vector<7x24x16xbf16>
      "tpu.trace_start"() <{level = 10 : i32, message = "nqd,nkd->nqk"}> : () -> ()
      %cst_34 = arith.constant dense<0.000000e+00> : vector<7x24x24xf32>
      %132 = tpu.matmul %130, %131, %cst_34 {dimension_numbers = #tpu.dot_dimension_numbers<[2], [2], [1], [1], [0, 0, 0, 1, 1, 1], [0], [0]>} : vector<7x24x16xbf16>, vector<7x24x16xbf16>, vector<7x24x24xf32> -> vector<7x24x24xf32>
      "tpu.trace_stop"() : () -> ()
      %cst_35 = arith.constant 2.500000e-01 : f32
      %133 = vector.broadcast %cst_35 : f32 to vector<7x24x24xf32>
      %134 = arith.mulf %132, %133 : vector<7x24x24xf32>
      %135 = arith.addf %134, %30 : vector<7x24x24xf32>
      %cst_36 = arith.constant dense<0xFF800000> : vector<7x24xf32>
      %136 = vector.multi_reduction <maximumf>, %135, %cst_36 [2] : vector<7x24x24xf32> to vector<7x24xf32>
      %137 = vector.shape_cast %136 : vector<7x24xf32> to vector<7x24x1xf32>
      %138 = vector.broadcast %137 : vector<7x24x1xf32> to vector<7x24x24xf32>
      %139 = arith.subf %135, %138 : vector<7x24x24xf32>
      %140 = math.exp %139 : vector<7x24x24xf32>
      %cst_37 = arith.constant dense<0.000000e+00> : vector<7x24xf32>
      %141 = vector.multi_reduction <add>, %140, %cst_37 [2] : vector<7x24x24xf32> to vector<7x24xf32>
      %142 = vector.shape_cast %141 : vector<7x24xf32> to vector<7x24x1xf32>
      %143 = tpu.reciprocal %142 {approx = true} : vector<7x24x1xf32> -> vector<7x24x1xf32>
      %144 = vector.broadcast %143 : vector<7x24x1xf32> to vector<7x24x24xf32>
      %145 = arith.mulf %140, %144 : vector<7x24x24xf32>
      %146 = arith.truncf %145 : vector<7x24x24xf32> to vector<7x24x24xbf16>
      %147 = arith.truncf %129 : vector<7x24x16xf32> to vector<7x24x16xbf16>
      "tpu.trace_start"() <{level = 10 : i32, message = "nqk,nkd->nqd"}> : () -> ()
      %cst_38 = arith.constant dense<0.000000e+00> : vector<7x24x16xf32>
      %148 = tpu.matmul %146, %147, %cst_38 {dimension_numbers = #tpu.dot_dimension_numbers<[2], [1], [1], [2], [0, 0, 0, 1, 1, 2], [0], [0]>} : vector<7x24x24xbf16>, vector<7x24x16xbf16>, vector<7x24x16xf32> -> vector<7x24x16xf32>
      "tpu.trace_stop"() : () -> ()
      %149 = vector.shape_cast %148 : vector<7x24x16xf32> to vector<168x16xf32>
      %150 = arith.truncf %149 : vector<168x16xf32> to vector<168x16xbf16>
      %151 = vector.extract_strided_slice %62 {offsets = [32, 0], sizes = [16, 64], strides = [1, 1]} : vector<64x64xbf16> to vector<16x64xbf16>
      %cst_39 = arith.constant dense<0.000000e+00> : vector<168x64xf32>
      %152 = tpu.matmul %150, %151, %cst_39 {dimension_numbers = #tpu.dot_dimension_numbers<[1], [0], [0], [1], [0, 0, 1, 1], [], []>} : vector<168x16xbf16>, vector<16x64xbf16>, vector<168x64xf32> -> vector<168x64xf32>
      %153 = arith.addf %123, %152 : vector<168x64xf32>
      %154 = vector.extract_strided_slice %59 {offsets = [0, 48], sizes = [168, 16], strides = [1, 1]} : vector<168x192xf32> to vector<168x16xf32>
      %155 = vector.shape_cast %154 : vector<168x16xf32> to vector<7x24x16xf32>
      %156 = vector.extract_strided_slice %59 {offsets = [0, 112], sizes = [168, 16], strides = [1, 1]} : vector<168x192xf32> to vector<168x16xf32>
      %157 = vector.shape_cast %156 : vector<168x16xf32> to vector<7x24x16xf32>
      %158 = vector.extract_strided_slice %59 {offsets = [0, 176], sizes = [168, 16], strides = [1, 1]} : vector<168x192xf32> to vector<168x16xf32>
      %159 = vector.shape_cast %158 : vector<168x16xf32> to vector<7x24x16xf32>
      %160 = arith.truncf %155 : vector<7x24x16xf32> to vector<7x24x16xbf16>
      %161 = arith.truncf %157 : vector<7x24x16xf32> to vector<7x24x16xbf16>
      "tpu.trace_start"() <{level = 10 : i32, message = "nqd,nkd->nqk"}> : () -> ()
      %cst_40 = arith.constant dense<0.000000e+00> : vector<7x24x24xf32>
      %162 = tpu.matmul %160, %161, %cst_40 {dimension_numbers = #tpu.dot_dimension_numbers<[2], [2], [1], [1], [0, 0, 0, 1, 1, 1], [0], [0]>} : vector<7x24x16xbf16>, vector<7x24x16xbf16>, vector<7x24x24xf32> -> vector<7x24x24xf32>
      "tpu.trace_stop"() : () -> ()
      %cst_41 = arith.constant 2.500000e-01 : f32
      %163 = vector.broadcast %cst_41 : f32 to vector<7x24x24xf32>
      %164 = arith.mulf %162, %163 : vector<7x24x24xf32>
      %165 = arith.addf %164, %30 : vector<7x24x24xf32>
      %cst_42 = arith.constant dense<0xFF800000> : vector<7x24xf32>
      %166 = vector.multi_reduction <maximumf>, %165, %cst_42 [2] : vector<7x24x24xf32> to vector<7x24xf32>
      %167 = vector.shape_cast %166 : vector<7x24xf32> to vector<7x24x1xf32>
      %168 = vector.broadcast %167 : vector<7x24x1xf32> to vector<7x24x24xf32>
      %169 = arith.subf %165, %168 : vector<7x24x24xf32>
      %170 = math.exp %169 : vector<7x24x24xf32>
      %cst_43 = arith.constant dense<0.000000e+00> : vector<7x24xf32>
      %171 = vector.multi_reduction <add>, %170, %cst_43 [2] : vector<7x24x24xf32> to vector<7x24xf32>
      %172 = vector.shape_cast %171 : vector<7x24xf32> to vector<7x24x1xf32>
      %173 = tpu.reciprocal %172 {approx = true} : vector<7x24x1xf32> -> vector<7x24x1xf32>
      %174 = vector.broadcast %173 : vector<7x24x1xf32> to vector<7x24x24xf32>
      %175 = arith.mulf %170, %174 : vector<7x24x24xf32>
      %176 = arith.truncf %175 : vector<7x24x24xf32> to vector<7x24x24xbf16>
      %177 = arith.truncf %159 : vector<7x24x16xf32> to vector<7x24x16xbf16>
      "tpu.trace_start"() <{level = 10 : i32, message = "nqk,nkd->nqd"}> : () -> ()
      %cst_44 = arith.constant dense<0.000000e+00> : vector<7x24x16xf32>
      %178 = tpu.matmul %176, %177, %cst_44 {dimension_numbers = #tpu.dot_dimension_numbers<[2], [1], [1], [2], [0, 0, 0, 1, 1, 2], [0], [0]>} : vector<7x24x24xbf16>, vector<7x24x16xbf16>, vector<7x24x16xf32> -> vector<7x24x16xf32>
      "tpu.trace_stop"() : () -> ()
      %179 = vector.shape_cast %178 : vector<7x24x16xf32> to vector<168x16xf32>
      %180 = arith.truncf %179 : vector<168x16xf32> to vector<168x16xbf16>
      %181 = vector.extract_strided_slice %62 {offsets = [48, 0], sizes = [16, 64], strides = [1, 1]} : vector<64x64xbf16> to vector<16x64xbf16>
      %cst_45 = arith.constant dense<0.000000e+00> : vector<168x64xf32>
      %182 = tpu.matmul %180, %181, %cst_45 {dimension_numbers = #tpu.dot_dimension_numbers<[1], [0], [0], [1], [0, 0, 1, 1], [], []>} : vector<168x16xbf16>, vector<16x64xbf16>, vector<168x64xf32> -> vector<168x64xf32>
      %183 = arith.addf %153, %182 : vector<168x64xf32>
      %184 = arith.addf %arg9, %183 : vector<168x64xf32>
      %185 = vector.broadcast %46 : vector<1x64xf32> to vector<168x64xf32>
      %186 = arith.addf %184, %185 : vector<168x64xf32>
      %cst_46 = arith.constant dense<0.000000e+00> : vector<168xf32>
      %187 = vector.multi_reduction <add>, %186, %cst_46 [1] : vector<168x64xf32> to vector<168xf32>
      %188 = vector.shape_cast %187 : vector<168xf32> to vector<168x1xf32>
      %cst_47 = arith.constant 6.400000e+01 : f32
      %189 = vector.broadcast %cst_47 : f32 to vector<168x1xf32>
      %190 = arith.divf %188, %189 : vector<168x1xf32>
      %191 = vector.broadcast %190 : vector<168x1xf32> to vector<168x64xf32>
      %192 = arith.subf %186, %191 : vector<168x64xf32>
      %193 = arith.mulf %192, %192 : vector<168x64xf32>
      %cst_48 = arith.constant dense<0.000000e+00> : vector<168xf32>
      %194 = vector.multi_reduction <add>, %193, %cst_48 [1] : vector<168x64xf32> to vector<168xf32>
      %195 = vector.shape_cast %194 : vector<168xf32> to vector<168x1xf32>
      %cst_49 = arith.constant 6.400000e+01 : f32
      %196 = vector.broadcast %cst_49 : f32 to vector<168x1xf32>
      %197 = arith.divf %195, %196 : vector<168x1xf32>
      %198 = vector.broadcast %190 : vector<168x1xf32> to vector<168x64xf32>
      %199 = arith.subf %186, %198 : vector<168x64xf32>
      %cst_50 = arith.constant 9.99999996E-13 : f32
      %200 = vector.broadcast %cst_50 : f32 to vector<168x1xf32>
      %201 = arith.addf %197, %200 : vector<168x1xf32>
      %202 = math.rsqrt %201 : vector<168x1xf32>
      %203 = vector.broadcast %202 : vector<168x1xf32> to vector<168x64xf32>
      %204 = arith.mulf %199, %203 : vector<168x64xf32>
      %205 = vector.broadcast %49 : vector<1x64xf32> to vector<168x64xf32>
      %206 = arith.mulf %204, %205 : vector<168x64xf32>
      %207 = vector.broadcast %50 : vector<1x64xf32> to vector<168x64xf32>
      %208 = arith.addf %206, %207 : vector<168x64xf32>
      %209 = arith.truncf %208 : vector<168x64xf32> to vector<168x64xbf16>
      %210 = arith.index_cast %arg8 : i32 to index
      %c0_51 = arith.constant 0 : index
      %c0_52 = arith.constant 0 : index
      %211 = vector.load %arg5[%210, %c0_51, %c0_52] : memref<2x64x256xbf16, #tpu.memory_space<vmem>>, vector<1x64x256xbf16>
      %212 = vector.shape_cast %211 : vector<1x64x256xbf16> to vector<64x256xbf16>
      %cst_53 = arith.constant dense<0.000000e+00> : vector<168x256xf32>
      %213 = tpu.matmul %209, %212, %cst_53 {dimension_numbers = #tpu.dot_dimension_numbers<[1], [0], [0], [1], [0, 0, 1, 1], [], []>} : vector<168x64xbf16>, vector<64x256xbf16>, vector<168x256xf32> -> vector<168x256xf32>
      %214 = vector.broadcast %47 : vector<1x256xf32> to vector<168x256xf32>
      %215 = arith.addf %213, %214 : vector<168x256xf32>
      %cst_54 = arith.constant 5.000000e-01 : f32
      %216 = vector.broadcast %cst_54 : f32 to vector<168x256xf32>
      %217 = arith.mulf %216, %215 : vector<168x256xf32>
      %cst_55 = arith.constant 0.707106769 : f32
      %218 = vector.broadcast %cst_55 : f32 to vector<168x256xf32>
      %219 = arith.mulf %215, %218 : vector<168x256xf32>
      %cst_56 = arith.constant 0.000000e+00 : f32
      %220 = vector.broadcast %cst_56 : f32 to vector<168x256xf32>
      %221 = arith.cmpf oge, %219, %220 : vector<168x256xf32>
      %cst_57 = arith.constant 1.000000e+00 : f32
      %cst_58 = arith.constant -1.000000e+00 : f32
      %222 = vector.broadcast %cst_57 : f32 to vector<168x256xf32>
      %223 = vector.broadcast %cst_58 : f32 to vector<168x256xf32>
      %224 = arith.select %221, %222, %223 : vector<168x256xi1>, vector<168x256xf32>
      %225 = math.absf %219 : vector<168x256xf32>
      %cst_59 = arith.constant 0.327591091 : f32
      %226 = vector.broadcast %cst_59 : f32 to vector<168x256xf32>
      %227 = arith.mulf %226, %225 : vector<168x256xf32>
      %cst_60 = arith.constant 1.000000e+00 : f32
      %228 = vector.broadcast %cst_60 : f32 to vector<168x256xf32>
      %229 = arith.addf %228, %227 : vector<168x256xf32>
      %cst_61 = arith.constant 1.000000e+00 : f32
      %230 = vector.broadcast %cst_61 : f32 to vector<168x256xf32>
      %231 = arith.divf %230, %229 : vector<168x256xf32>
      %cst_62 = arith.constant 1.06140542 : f32
      %232 = vector.broadcast %cst_62 : f32 to vector<168x256xf32>
      %233 = arith.mulf %232, %231 : vector<168x256xf32>
      %cst_63 = arith.constant -1.45315206 : f32
      %234 = vector.broadcast %cst_63 : f32 to vector<168x256xf32>
      %235 = arith.addf %233, %234 : vector<168x256xf32>
      %236 = arith.mulf %235, %231 : vector<168x256xf32>
      %cst_64 = arith.constant 1.42141378 : f32
      %237 = vector.broadcast %cst_64 : f32 to vector<168x256xf32>
      %238 = arith.addf %236, %237 : vector<168x256xf32>
      %239 = arith.mulf %238, %231 : vector<168x256xf32>
      %cst_65 = arith.constant -0.284496725 : f32
      %240 = vector.broadcast %cst_65 : f32 to vector<168x256xf32>
      %241 = arith.addf %239, %240 : vector<168x256xf32>
      %242 = arith.mulf %241, %231 : vector<168x256xf32>
      %cst_66 = arith.constant 0.254829586 : f32
      %243 = vector.broadcast %cst_66 : f32 to vector<168x256xf32>
      %244 = arith.addf %242, %243 : vector<168x256xf32>
      %245 = arith.mulf %244, %231 : vector<168x256xf32>
      %cst_67 = arith.constant 0.000000e+00 : f32
      %246 = vector.broadcast %cst_67 : f32 to vector<168x256xf32>
      %247 = arith.subf %246, %225 : vector<168x256xf32>
      %248 = arith.mulf %247, %225 : vector<168x256xf32>
      %249 = math.exp %248 : vector<168x256xf32>
      %250 = arith.mulf %245, %249 : vector<168x256xf32>
      %cst_68 = arith.constant 1.000000e+00 : f32
      %251 = vector.broadcast %cst_68 : f32 to vector<168x256xf32>
      %252 = arith.subf %251, %250 : vector<168x256xf32>
      %253 = arith.mulf %224, %252 : vector<168x256xf32>
      %cst_69 = arith.constant 1.000000e+00 : f32
      %254 = vector.broadcast %cst_69 : f32 to vector<168x256xf32>
      %255 = arith.addf %254, %253 : vector<168x256xf32>
      %256 = arith.mulf %217, %255 : vector<168x256xf32>
      %257 = arith.truncf %256 : vector<168x256xf32> to vector<168x256xbf16>
      %258 = arith.index_cast %arg8 : i32 to index
      %c0_70 = arith.constant 0 : index
      %c0_71 = arith.constant 0 : index
      %259 = vector.load %arg6[%258, %c0_70, %c0_71] : memref<2x256x64xbf16, #tpu.memory_space<vmem>>, vector<1x256x64xbf16>
      %260 = vector.shape_cast %259 : vector<1x256x64xbf16> to vector<256x64xbf16>
      %cst_72 = arith.constant dense<0.000000e+00> : vector<168x64xf32>
      %261 = tpu.matmul %257, %260, %cst_72 {dimension_numbers = #tpu.dot_dimension_numbers<[1], [0], [0], [1], [0, 0, 1, 1], [], []>} : vector<168x256xbf16>, vector<256x64xbf16>, vector<168x64xf32> -> vector<168x64xf32>
      %262 = vector.broadcast %48 : vector<1x64xf32> to vector<168x64xf32>
      %263 = arith.addf %261, %262 : vector<168x64xf32>
      %264 = arith.addf %208, %263 : vector<168x64xf32>
      %cst_73 = arith.constant dense<0.000000e+00> : vector<168xf32>
      %265 = vector.multi_reduction <add>, %264, %cst_73 [1] : vector<168x64xf32> to vector<168xf32>
      %266 = vector.shape_cast %265 : vector<168xf32> to vector<168x1xf32>
      %cst_74 = arith.constant 6.400000e+01 : f32
      %267 = vector.broadcast %cst_74 : f32 to vector<168x1xf32>
      %268 = arith.divf %266, %267 : vector<168x1xf32>
      %269 = vector.broadcast %268 : vector<168x1xf32> to vector<168x64xf32>
      %270 = arith.subf %264, %269 : vector<168x64xf32>
      %271 = arith.mulf %270, %270 : vector<168x64xf32>
      %cst_75 = arith.constant dense<0.000000e+00> : vector<168xf32>
      %272 = vector.multi_reduction <add>, %271, %cst_75 [1] : vector<168x64xf32> to vector<168xf32>
      %273 = vector.shape_cast %272 : vector<168xf32> to vector<168x1xf32>
      %cst_76 = arith.constant 6.400000e+01 : f32
      %274 = vector.broadcast %cst_76 : f32 to vector<168x1xf32>
      %275 = arith.divf %273, %274 : vector<168x1xf32>
      %276 = vector.broadcast %268 : vector<168x1xf32> to vector<168x64xf32>
      %277 = arith.subf %264, %276 : vector<168x64xf32>
      %cst_77 = arith.constant 9.99999996E-13 : f32
      %278 = vector.broadcast %cst_77 : f32 to vector<168x1xf32>
      %279 = arith.addf %275, %278 : vector<168x1xf32>
      %280 = math.rsqrt %279 : vector<168x1xf32>
      %281 = vector.broadcast %280 : vector<168x1xf32> to vector<168x64xf32>
      %282 = arith.mulf %277, %281 : vector<168x64xf32>
      %283 = vector.broadcast %51 : vector<1x64xf32> to vector<168x64xf32>
      %284 = arith.mulf %282, %283 : vector<168x64xf32>
      %285 = vector.broadcast %52 : vector<1x64xf32> to vector<168x64xf32>
      %286 = arith.addf %284, %285 : vector<168x64xf32>
      scf.yield %286 : vector<168x64xf32>
    }
    %c2_i32_9 = arith.constant 2 : i32
    %33 = vector.shape_cast %32 : vector<168x64xf32> to vector<7x24x64xf32>
    %34 = vector.extract_strided_slice %33 {offsets = [0, 0, 0], sizes = [7, 1, 64], strides = [1, 1, 1]} : vector<7x24x64xf32> to vector<7x1x64xf32>
    %35 = vector.shape_cast %34 : vector<7x1x64xf32> to vector<7x64xf32>
    %36 = vector.extract_strided_slice %33 {offsets = [0, 10, 0], sizes = [7, 1, 64], strides = [1, 1, 1]} : vector<7x24x64xf32> to vector<7x1x64xf32>
    %37 = vector.shape_cast %36 : vector<7x1x64xf32> to vector<7x64xf32>
    %38 = arith.mulf %35, %37 : vector<7x64xf32>
    %cst_10 = arith.constant 1.000000e+00 : f32
    %39 = vector.broadcast %cst_10 : f32 to vector<1x64xf32>
    "tpu.trace_start"() <{level = 10 : i32, message = "md,nd->mn"}> : () -> ()
    %cst_11 = arith.constant dense<0.000000e+00> : vector<1x7xf32>
    %40 = tpu.matmul %39, %38, %cst_11 {dimension_numbers = #tpu.dot_dimension_numbers<[1], [1], [0], [0], [0, 0, 1, 0], [], []>} : vector<1x64xf32>, vector<7x64xf32>, vector<1x7xf32> -> vector<1x7xf32>
    "tpu.trace_stop"() : () -> ()
    %c0_12 = arith.constant 0 : index
    %c0_13 = arith.constant 0 : index
    %41 = vector.load %arg7[%c0_12, %c0_13] : memref<1x7xf32, #tpu.memory_space<vmem>>, vector<1x7xf32>
    tpu.vector_store %arg7[%c0_12, %c0_13], %40 {strides = array<i32>} : memref<1x7xf32, #tpu.memory_space<vmem>>, vector<1x7xf32>,
    return
  }
}

</mosaic_0001>

<bundles_post_ra>
// kernel: retriever_forward.1
= control target key start
LH: loop header
LB: loop body
LE: loop exit
PB: predicated region body
PF: predicated region fallthrough
CT: control target
= control target key end

     0   :  { %vm50_vm0 = vcmask 523264   ;;  %s11589_s22 = smov 0   ;;  %s16122_s0 = inlined_call_operand.vmem [shape: f32[168,64], index: 0, kind: input, shape index: {}]   ;;  %s16123_s1 = inlined_call_operand.vmem [shape: f32[1,24], index: 1, kind: input, shape index: {}]   ;;  %s16124_s3 = inlined_call_operand.vmem [shape: bf16[2,64,192], index: 3, kind: input, shape index: {}]   ;;  %s16125_s4 = inlined_call_operand.vmem [shape: bf16[2,64,64], index: 4, kind: input, shape index: {}]   ;;  %s16126_s5 = inlined_call_operand.vmem [shape: bf16[2,64,256], index: 5, kind: input, shape index: {}]   ;;  %s16127_s6 = inlined_call_operand.vmem [shape: bf16[2,256,64], index: 6, kind: input, shape index: {}]   ;;  %s16128_s7 = inlined_call_operand.vmem [shape: f32[1,7], index: 7, kind: output, shape index: {}]   ;;  %s16129_s2 = inlined_call_operand.vmem [shape: f32[3,8,256], index: 2, kind: input, shape index: {}]  }
   0x1   :  { %v11166_v0 = vld [vmem:[%s16122_s0] sm:$0xff]  ;;  %v11171_v1 = vld [vmem:[%s16122_s0 + $0x10] sm:$0xff]  ;;  %v11176_v2 = vld [vmem:[%s16122_s0 + $0x8] sm:$0xff] }
   0x2   :  { %v51_v3 = vsel %vm50_vm0, %v11166_v0, 0.0  ;;  %v57_v4 = vsel %vm50_vm0, %v11171_v1, 0.0  ;;  %v11185_v5 = vld [vmem:[%s16122_s0 + $0x18] sm:$0xff]  ;;  %v54_v6 = vsel %vm50_vm0, %v11176_v2, 0.0  ;;  %v11194_v8 = vld [vmem:[%s16122_s0 + $0x20] sm:$0xff]  ;;  %v11199_v9 = vld [vmem:[%s16122_s0 + $0x28] sm:$0xff] }
   0x3   :  { %52 = vadd.xlane.f32.xlu0 %v51_v3  ;;  %58 = vadd.xlane.f32.xlu1 %v57_v4  ;;  %v60_v7 = vsel %vm50_vm0, %v11185_v5, 0.0  ;;  %v63_v10 = vsel %vm50_vm0, %v11194_v8, 0.0  ;;  %v66_v11 = vsel %vm50_vm0, %v11199_v9, 0.0  ;;  %v11208_v12 = vld [vmem:[%s16122_s0 + $0x30] sm:$0xff]  ;;  %v11213_v13 = vld [vmem:[%s16122_s0 + $0x38] sm:$0xff]  ;;  %v11222_v16 = vld [vmem:[%s16122_s0 + $0x40] sm:$0xff] }
   0x4   :  { %v69_v14 = vsel %vm50_vm0, %v11208_v12, 0.0  ;;  %v72_v15 = vsel %vm50_vm0, %v11213_v13, 0.0  ;;  %v11227_v17 = vld [vmem:[%s16122_s0 + $0x48] sm:$0xff]  ;;  %v75_v18 = vsel %vm50_vm0, %v11222_v16, 0.0  ;;  %v11236_v20 = vld [vmem:[%s16122_s0 + $0x50] sm:$0xff]  ;;  %v11241_v21 = vld [vmem:[%s16122_s0 + $0x58] sm:$0xff] }
   0x5   :  { %v78_v19 = vsel %vm50_vm0, %v11227_v17, 0.0  ;;  %v81_v22 = vsel %vm50_vm0, %v11236_v20, 0.0  ;;  %v84_v23 = vsel %vm50_vm0, %v11241_v21, 0.0  ;;  %v11250_v24 = vld [vmem:[%s16122_s0 + $0x60] sm:$0xff]  ;;  %v11255_v25 = vld [vmem:[%s16122_s0 + $0x68] sm:$0xff]  ;;  %v11264_v28 = vld [vmem:[%s16122_s0 + $0x70] sm:$0xff] }
   0x6   :  { %v87_v26 = vsel %vm50_vm0, %v11250_v24, 0.0  ;;  %v90_v27 = vsel %vm50_vm0, %v11255_v25, 0.0  ;;  %v11269_v29 = vld [vmem:[%s16122_s0 + $0x78] sm:$0xff]  ;;  %v93_v30 = vsel %vm50_vm0, %v11264_v28, 0.0  ;;  %v11278_v32 = vld [vmem:[%s16122_s0 + $0x80] sm:$0xff]  ;;  %v11283_v33 = vld [vmem:[%s16122_s0 + $0x88] sm:$0xff] }
   0x7   :  { %55 = vadd.xlane.f32.xlu0 %v54_v6  ;;  %61 = vadd.xlane.f32.xlu1 %v60_v7  ;;  %v96_v31 = vsel %vm50_vm0, %v11269_v29, 0.0  ;;  %v99_v34 = vsel %vm50_vm0, %v11278_v32, 0.0  ;;  %v102_v35 = vsel %vm50_vm0, %v11283_v33, 0.0  ;;  %v11292_v36 = vld [vmem:[%s16122_s0 + $0x90] sm:$0xff]  ;;  %v11297_v37 = vld [vmem:[%s16122_s0 + $0x98] sm:$0xff]  ;;  %v11306_v40 = vld [vmem:[%s16122_s0 + $0xa0] sm:$0xff] }
   0x8   :  { %v105_v38 = vsel %vm50_vm0, %v11292_v36, 0.0  ;;  %v108_v39 = vsel %vm50_vm0, %v11297_v37, 0.0  ;;  %v111_v41 = vsel %vm50_vm0, %v11306_v40, 0.0 }
   0xb   :  { %64 = vadd.xlane.f32.xlu0 %v63_v10  ;;  %67 = vadd.xlane.f32.xlu1 %v66_v11 }
   0xf   :  { %70 = vadd.xlane.f32.xlu0 %v69_v14  ;;  %73 = vadd.xlane.f32.xlu1 %v72_v15 }
  0x13   :  { %76 = vadd.xlane.f32.xlu0 %v75_v18  ;;  %79 = vadd.xlane.f32.xlu1 %v78_v19 }
  0x17   :  { %82 = vadd.xlane.f32.xlu0 %v81_v22  ;;  %85 = vadd.xlane.f32.xlu1 %v84_v23 }
  0x1b   :  { %88 = vadd.xlane.f32.xlu0 %v87_v26  ;;  %91 = vadd.xlane.f32.xlu1 %v90_v27 }
  0x1f   :  { %94 = vadd.xlane.f32.xlu0 %v93_v30  ;;  %97 = vadd.xlane.f32.xlu1 %v96_v31 }
  0x23   :  { %100 = vadd.xlane.f32.xlu0 %v99_v34  ;;  %103 = vadd.xlane.f32.xlu1 %v102_v35 }
  0x27   :  { %106 = vadd.xlane.f32.xlu0 %v105_v38  ;;  %109 = vadd.xlane.f32.xlu1 %v108_v39 }
  0x2b   :  { %112 = vadd.xlane.f32.xlu0 %v111_v41 }
  0x8c   :  { %v53_v42 = vpop.xlane.xlu0 %52  ;;  %v59_v43 = vpop.xlane.xlu1 %58 }
  0x8d   :  { %v115_v44 = vmul.f32 0.015625, %v53_v42  ;;  %v117_v45 = vmul.f32 0.015625, %v59_v43 }
  0x8f   :  { %v11311_v46 = vsub.f32 %v11166_v0, %v115_v44  ;;  %v11314_v47 = vsub.f32 %v11171_v1, %v117_v45 }
  0x90   :  { %v56_v48 = vpop.xlane.xlu0 %55  ;;  %v62_v49 = vpop.xlane.xlu1 %61 }
  0x91   :  { %v116_v50 = vmul.f32 0.015625, %v56_v48  ;;  %v118_v51 = vmul.f32 0.015625, %v62_v49  ;;  %v157_v52 = vmul.f32 %v11311_v46, %v11311_v46  ;;  %v159_v53 = vmul.f32 %v11314_v47, %v11314_v47 }
  0x93   :  { %v11321_v54 = vsub.f32 %v11176_v2, %v116_v50  ;;  %v11324_v55 = vsub.f32 %v11185_v5, %v118_v51  ;;  %v178_v56 = vsel %vm50_vm0, %v157_v52, 0.0  ;;  %v184_v59 = vsel %vm50_vm0, %v159_v53, 0.0 }
  0x94   :  { %179 = vadd.xlane.f32.xlu1 %v178_v56  ;;  %v65_v57 = vpop.xlane.xlu0 %64  ;;  %v68_v58 = vpop.xlane.xlu1 %67 }
  0x95   :  { %v119_v60 = vmul.f32 0.015625, %v65_v57  ;;  %v120_v61 = vmul.f32 0.015625, %v68_v58  ;;  %v158_v62 = vmul.f32 %v11321_v54, %v11321_v54  ;;  %v160_v63 = vmul.f32 %v11324_v55, %v11324_v55 }
  0x97   :  { %v11333_v0 = vsub.f32 %v11194_v8, %v119_v60  ;;  %v11336_v1 = vsub.f32 %v11199_v9, %v120_v61  ;;  %v181_v2 = vsel %vm50_vm0, %v158_v62, 0.0  ;;  %v187_v5 = vsel %vm50_vm0, %v160_v63, 0.0 }
  0x98   :  { %185 = vadd.xlane.f32.xlu1 %v184_v59  ;;  %182 = vadd.xlane.f32.xlu0 %v181_v2  ;;  %v71_v3 = vpop.xlane.xlu0 %70  ;;  %v74_v4 = vpop.xlane.xlu1 %73 }
  0x99   :  { %v121_v6 = vmul.f32 0.015625, %v71_v3  ;;  %v122_v7 = vmul.f32 0.015625, %v74_v4  ;;  %v161_v10 = vmul.f32 %v11333_v0, %v11333_v0  ;;  %v162_v8 = vmul.f32 %v11336_v1, %v11336_v1 }
  0x9b   :  { %v11345_v11 = vsub.f32 %v11208_v12, %v121_v6  ;;  %v11348_v9 = vsub.f32 %v11213_v13, %v122_v7  ;;  %v190_v14 = vsel %vm50_vm0, %v161_v10, 0.0  ;;  %v193_v19 = vsel %vm50_vm0, %v162_v8, 0.0 }
  0x9c   :  { %188 = vadd.xlane.f32.xlu0 %v187_v5  ;;  %191 = vadd.xlane.f32.xlu1 %v190_v14  ;;  %v77_v15 = vpop.xlane.xlu0 %76  ;;  %v80_v18 = vpop.xlane.xlu1 %79 }
  0x9d   :  { %v123_v22 = vmul.f32 0.015625, %v77_v15  ;;  %v124_v23 = vmul.f32 0.015625, %v80_v18  ;;  %v163_v26 = vmul.f32 %v11345_v11, %v11345_v11  ;;  %v164_v12 = vmul.f32 %v11348_v9, %v11348_v9 }
  0x9f   :  { %v11357_v27 = vsub.f32 %v11222_v16, %v123_v22  ;;  %v11360_v13 = vsub.f32 %v11227_v17, %v124_v23  ;;  %v196_v30 = vsel %vm50_vm0, %v163_v26, 0.0  ;;  %v199_v35 = vsel %vm50_vm0, %v164_v12, 0.0 }
  0xa0   :  { %194 = vadd.xlane.f32.xlu0 %v193_v19  ;;  %197 = vadd.xlane.f32.xlu1 %v196_v30  ;;  %v83_v31 = vpop.xlane.xlu0 %82  ;;  %v86_v34 = vpop.xlane.xlu1 %85 }
  0xa1   :  { %v125_v38 = vmul.f32 0.015625, %v83_v31  ;;  %v126_v39 = vmul.f32 0.015625, %v86_v34  ;;  %v165_v41 = vmul.f32 %v11357_v27, %v11357_v27  ;;  %v166_v16 = vmul.f32 %v11360_v13, %v11360_v13 }
  0xa3   :  { %v11369_v42 = vsub.f32 %v11236_v20, %v125_v38  ;;  %v11372_v17 = vsub.f32 %v11241_v21, %v126_v39  ;;  %v202_v43 = vsel %vm50_vm0, %v165_v41, 0.0  ;;  %v205_v48 = vsel %vm50_vm0, %v166_v16, 0.0 }
  0xa4   :  { %200 = vadd.xlane.f32.xlu0 %v199_v35  ;;  %203 = vadd.xlane.f32.xlu1 %v202_v43  ;;  %v89_v44 = vpop.xlane.xlu0 %88  ;;  %v92_v45 = vpop.xlane.xlu1 %91  ;;  %v11439_v43 = vld [vmem:[%s16123_s1] ss:$0 sm:$0xff] }
  0xa5   :  { %v127_v49 = vmul.f32 0.015625, %v89_v44  ;;  %v128_v50 = vmul.f32 0.015625, %v92_v45  ;;  %v167_v51 = vmul.f32 %v11369_v42, %v11369_v42  ;;  %v168_v20 = vmul.f32 %v11372_v17, %v11372_v17  ;;  %16218 = vst [vmem:[#allocation2_spill] sm:$0xff] %v11439_v43 }
  0xa7   :  { %v11381_v52 = vsub.f32 %v11250_v24, %v127_v49  ;;  %v11384_v21 = vsub.f32 %v11255_v25, %v128_v50  ;;  %v208_v53 = vsel %vm50_vm0, %v167_v51, 0.0  ;;  %v211_v58 = vsel %vm50_vm0, %v168_v20, 0.0 }
  0xa8   :  { %206 = vadd.xlane.f32.xlu0 %v205_v48  ;;  %209 = vadd.xlane.f32.xlu1 %v208_v53  ;;  %v95_v56 = vpop.xlane.xlu0 %94  ;;  %v98_v57 = vpop.xlane.xlu1 %97  ;;  %v325_v50 = vlaneseq }
  0xa9   :  { %v129_v59 = vmul.f32 0.015625, %v95_v56  ;;  %v130_v60 = vmul.f32 0.015625, %v98_v57  ;;  %v169_v61 = vmul.f32 %v11381_v52, %v11381_v52  ;;  %v170_v24 = vmul.f32 %v11384_v21, %v11384_v21 }
  0xab   :  { %v11393_v62 = vsub.f32 %v11264_v28, %v129_v59  ;;  %v11396_v25 = vsub.f32 %v11269_v29, %v130_v60  ;;  %v214_v63 = vsel %vm50_vm0, %v169_v61, 0.0  ;;  %v217_v4 = vsel %vm50_vm0, %v170_v24, 0.0 }
  0xac   :  { %212 = vadd.xlane.f32.xlu0 %v211_v58  ;;  %215 = vadd.xlane.f32.xlu1 %v214_v63  ;;  %v101_v2 = vpop.xlane.xlu0 %100  ;;  %v104_v3 = vpop.xlane.xlu1 %103  ;;  %v11441_v59 = vshrl.u32 %v325_v50, 7 }
  0xad   :  { %v131_v5 = vmul.f32 0.015625, %v101_v2  ;;  %v132_v6 = vmul.f32 0.015625, %v104_v3  ;;  %v171_v7 = vmul.f32 %v11393_v62, %v11393_v62  ;;  %v172_v28 = vmul.f32 %v11396_v25, %v11396_v25 }
  0xae   :  { %16219 = vst [vmem:[#allocation3_spill] sm:$0xff] %v11441_v59 }
  0xaf   :  { %v11405_v10 = vsub.f32 %v11278_v32, %v131_v5  ;;  %v11408_v29 = vsub.f32 %v11283_v33, %v132_v6  ;;  %v220_v8 = vsel %vm50_vm0, %v171_v7, 0.0  ;;  %v223_v18 = vsel %vm50_vm0, %v172_v28, 0.0  ;;  %v8754_v7 = vld [vmem:[%s16129_s2 + $0x20] sm:$0xff] }
  0xb0   :  { %218 = vadd.xlane.f32.xlu0 %v217_v4  ;;  %221 = vadd.xlane.f32.xlu1 %v220_v8  ;;  %v107_v14 = vpop.xlane.xlu0 %106  ;;  %v110_v15 = vpop.xlane.xlu1 %109  ;;  %v11444_v4 = vsub.s32 0, %v11441_v59  ;;  %v16130_v28 = vsub.s32 1, %v11441_v59 }
  0xb1   :  { %v133_v19 = vmul.f32 0.015625, %v107_v14  ;;  %v134_v22 = vmul.f32 0.015625, %v110_v15  ;;  %v173_v23 = vmul.f32 %v11405_v10, %v11405_v10  ;;  %v174_v32 = vmul.f32 %v11408_v29, %v11408_v29 }
  0xb2   :  { %16220 = vst [vmem:[#allocation4_spill] sm:$0xff] %v11444_v4 }
  0xb3   :  { %v11417_v26 = vsub.f32 %v11292_v36, %v133_v19  ;;  %v11420_v33 = vsub.f32 %v11297_v37, %v134_v22  ;;  %v226_v12 = vsel %vm50_vm0, %v173_v23, 0.0  ;;  %v229_v34 = vsel %vm50_vm0, %v174_v32, 0.0 }
  0xb4   :  { %224 = vadd.xlane.f32.xlu0 %v223_v18  ;;  %227 = vadd.xlane.f32.xlu1 %v226_v12  ;;  %v113_v30 = vpop.xlane.xlu0 %112  ;;  %v11451_v19 = vrot.slane %v8754_v7, %v11444_v4  ;;  %v11455_v12 = vrot.slane %v8754_v7, %v16130_v28 }
  0xb5   :  { %v135_v31 = vmul.f32 0.015625, %v113_v30  ;;  %v175_v35 = vmul.f32 %v11417_v26, %v11417_v26  ;;  %v176_v38 = vmul.f32 %v11420_v33, %v11420_v33 }
  0xb7   :  { %v11429_v36 = vsub.f32 %v11306_v40, %v135_v31  ;;  %v232_v37 = vsel %vm50_vm0, %v175_v35, 0.0  ;;  %v235_v39 = vsel %vm50_vm0, %v176_v38, 0.0 }
  0xb8   :  { %230 = vadd.xlane.f32.xlu0 %v229_v34  ;;  %233 = vadd.xlane.f32.xlu1 %v232_v37 }
  0xb9   :  { %v177_v41 = vmul.f32 %v11429_v36, %v11429_v36 }
  0xbb   :  { %v238_v16 = vsel %vm50_vm0, %v177_v41, 0.0 }
  0xbc   :  { %236 = vadd.xlane.f32.xlu0 %v235_v39  ;;  %239 = vadd.xlane.f32.xlu1 %v238_v16 }
 0x11d   :  { %v180_v40 = vpop.xlane.xlu1 %179 }
 0x11e   :  { %v241_v44 = vmul.f32 0.015625, %v180_v40 }
 0x120   :  { %v262_v45 = vadd.f32 1e-12, %v241_v44 }
 0x121   :  { %v186_v48 = vpop.xlane.xlu1 %185  ;;  %v183_v49 = vpop.xlane.xlu0 %182 }
 0x122   :  { %10255 = vrsqrt.f32 %v262_v45  ;;  %v243_v51 = vmul.f32 0.015625, %v186_v48  ;;  %v242_v20 = vmul.f32 0.015625, %v183_v49 }
 0x124   :  { %v264_v53 = vadd.f32 1e-12, %v243_v51  ;;  %v263_v56 = vadd.f32 1e-12, %v242_v20 }
 0x125   :  { %v192_v57 = vpop.xlane.xlu1 %191  ;;  %v189_v58 = vpop.xlane.xlu0 %188 }
 0x126   :  { %10257 = vrsqrt.f32 %v264_v53  ;;  %v245_v60 = vmul.f32 0.015625, %v192_v57  ;;  %v244_v61 = vmul.f32 0.015625, %v189_v58 }
 0x127   :  { %10259 = vrsqrt.f32 %v263_v56 }
 0x128   :  { %v266_v24 = vadd.f32 1e-12, %v245_v60  ;;  %v265_v63 = vadd.f32 1e-12, %v244_v61 }
 0x129   :  { %v198_v2 = vpop.xlane.xlu1 %197  ;;  %v195_v3 = vpop.xlane.xlu0 %194 }
 0x12a   :  { %10261 = vrsqrt.f32 %v266_v24  ;;  %v247_v5 = vmul.f32 0.015625, %v198_v2  ;;  %v246_v6 = vmul.f32 0.015625, %v195_v3 }
 0x12b   :  { %10263 = vrsqrt.f32 %v265_v63 }
 0x12c   :  { %v268_v8 = vadd.f32 1e-12, %v247_v5  ;;  %v267_v14 = vadd.f32 1e-12, %v246_v6 }
 0x12d   :  { %v204_v15 = vpop.xlane.xlu1 %203  ;;  %v201_v18 = vpop.xlane.xlu0 %200 }
 0x12e   :  { %10265 = vrsqrt.f32 %v268_v8  ;;  %v249_v22 = vmul.f32 0.015625, %v204_v15  ;;  %v248_v23 = vmul.f32 0.015625, %v201_v18 }
 0x12f   :  { %v10256_v32 = vpop.eup %10255  ;;  %10267 = vrsqrt.f32 %v267_v14 }
 0x130   :  { %v304_v30 = vmul.f32 %v10256_v32, %v11311_v46  ;;  %v270_v31 = vadd.f32 1e-12, %v249_v22  ;;  %v269_v34 = vadd.f32 1e-12, %v248_v23 }
 0x131   :  { %v210_v35 = vpop.xlane.xlu1 %209  ;;  %v207_v38 = vpop.xlane.xlu0 %206 }
 0x132   :  { %v329_v37 = vmul.f32 %v11451_v19, %v304_v30  ;;  %10269 = vrsqrt.f32 %v270_v31  ;;  %v251_v39 = vmul.f32 0.015625, %v210_v35  ;;  %v250_v41 = vmul.f32 0.015625, %v207_v38 }
 0x133   :  { %v10258_v16 = vpop.eup %10257  ;;  %10271 = vrsqrt.f32 %v269_v34 }
 0x134   :  { %v10260_v40 = vpop.eup %10259  ;;  %v11460_v44 = vadd.f32 %v11455_v12, %v329_v37   ;;  %v306_v45 = vmul.f32 %v10258_v16, %v11314_v47  ;;  %v272_v48 = vadd.f32 1e-12, %v251_v39  ;;  %v271_v49 = vadd.f32 1e-12, %v250_v41 }
 0x135   :  { %v305_v46 = vmul.f32 %v10260_v40, %v11321_v54  ;;  %v216_v50 = vpop.xlane.xlu1 %215  ;;  %v213_v51 = vpop.xlane.xlu0 %212 }
 0x136   :  { %v331_v20 = vmul.f32 %v11451_v19, %v306_v45  ;;  %10273 = vrsqrt.f32 %v272_v48  ;;  %v253_v53 = vmul.f32 0.015625, %v216_v50  ;;  %v252_v56 = vmul.f32 0.015625, %v213_v51 }
 0x137   :  { %v10262_v57 = vpop.eup %10261  ;;  %v330_v58 = vmul.f32 %v11451_v19, %v305_v46  ;;  %10275 = vrsqrt.f32 %v271_v49 }
 0x138   :  { %v10264_v60 = vpop.eup %10263  ;;  %v11467_v61 = vadd.f32 %v11455_v12, %v331_v20   ;;  %v308_v47 = vmul.f32 %v10262_v57, %v11333_v0  ;;  %v274_v24 = vadd.f32 1e-12, %v253_v53  ;;  %v273_v63 = vadd.f32 1e-12, %v252_v56 }
 0x139   :  { %v11471_v54 = vadd.f32 %v11455_v12, %v330_v58   ;;  %v307_v2 = vmul.f32 %v10264_v60, %v11324_v55  ;;  %v222_v3 = vpop.xlane.xlu1 %221  ;;  %v219_v5 = vpop.xlane.xlu0 %218 }
 0x13a   :  { %v333_v6 = vmul.f32 %v11451_v19, %v308_v47  ;;  %10277 = vrsqrt.f32 %v274_v24  ;;  %v255_v7 = vmul.f32 0.015625, %v222_v3  ;;  %v254_v8 = vmul.f32 0.015625, %v219_v5 }
 0x13b   :  { %v10266_v14 = vpop.eup %10265  ;;  %v332_v15 = vmul.f32 %v11451_v19, %v307_v2  ;;  %10279 = vrsqrt.f32 %v273_v63 }
 0x13c   :  { %v10268_v18 = vpop.eup %10267  ;;  %v11477_v0 = vadd.f32 %v11455_v12, %v333_v6   ;;  %v310_v22 = vmul.f32 %v10266_v14, %v11345_v11  ;;  %v276_v23 = vadd.f32 1e-12, %v255_v7  ;;  %v275_v32 = vadd.f32 1e-12, %v254_v8 }
 0x13d   :  { %v11481_v55 = vadd.f32 %v11455_v12, %v332_v15   ;;  %v309_v30 = vmul.f32 %v10268_v18, %v11336_v1  ;;  %v228_v31 = vpop.xlane.xlu1 %227  ;;  %v225_v34 = vpop.xlane.xlu0 %224 }
 0x13e   :  { %v335_v35 = vmul.f32 %v11451_v19, %v310_v22  ;;  %10281 = vrsqrt.f32 %v276_v23  ;;  %v257_v38 = vmul.f32 0.015625, %v228_v31  ;;  %v256_v37 = vmul.f32 0.015625, %v225_v34 }
 0x13f   :  { %v10270_v39 = vpop.eup %10269  ;;  %v334_v41 = vmul.f32 %v11451_v19, %v309_v30  ;;  %10283 = vrsqrt.f32 %v275_v32 }
 0x140   :  { %v10272_v16 = vpop.eup %10271  ;;  %v11487_v11 = vadd.f32 %v11455_v12, %v335_v35   ;;  %v312_v40 = vmul.f32 %v10270_v39, %v11357_v27  ;;  %v278_v45 = vadd.f32 1e-12, %v257_v38  ;;  %v277_v48 = vadd.f32 1e-12, %v256_v37 }
 0x141   :  { %v11491_v1 = vadd.f32 %v11455_v12, %v334_v41   ;;  %v311_v49 = vmul.f32 %v10272_v16, %v11348_v9  ;;  %v234_v46 = vpop.xlane.xlu1 %233  ;;  %v231_v50 = vpop.xlane.xlu0 %230 }
 0x142   :  { %v337_v51 = vmul.f32 %v11451_v19, %v312_v40  ;;  %10285 = vrsqrt.f32 %v278_v45  ;;  %v259_v20 = vmul.f32 0.015625, %v234_v46  ;;  %v258_v53 = vmul.f32 0.015625, %v231_v50 }
 0x143   :  { %v10274_v56 = vpop.eup %10273  ;;  %v336_v57 = vmul.f32 %v11451_v19, %v311_v49  ;;  %10287 = vrsqrt.f32 %v277_v48 }
 0x144   :  { %v10276_v58 = vpop.eup %10275  ;;  %v11497_v27 = vadd.f32 %v11455_v12, %v337_v51   ;;  %v314_v60 = vmul.f32 %v10274_v56, %v11369_v42  ;;  %v280_v47 = vadd.f32 1e-12, %v259_v20  ;;  %v279_v24 = vadd.f32 1e-12, %v258_v53 }
 0x145   :  { %v11501_v9 = vadd.f32 %v11455_v12, %v336_v57   ;;  %v313_v63 = vmul.f32 %v10276_v58, %v11360_v13  ;;  %v240_v2 = vpop.xlane.xlu1 %239  ;;  %v237_v3 = vpop.xlane.xlu0 %236 }
 0x146   :  { %v339_v5 = vmul.f32 %v11451_v19, %v314_v60  ;;  %10289 = vrsqrt.f32 %v280_v47  ;;  %v261_v6 = vmul.f32 0.015625, %v240_v2  ;;  %v260_v7 = vmul.f32 0.015625, %v237_v3 }
 0x147   :  { %v10278_v8 = vpop.eup %10277  ;;  %v338_v14 = vmul.f32 %v11451_v19, %v313_v63  ;;  %10291 = vrsqrt.f32 %v279_v24 }
 0x148   :  { %v10280_v15 = vpop.eup %10279  ;;  %v364_v42 = vadd.f32 %v11455_v12, %v339_v5   ;;  %v316_v18 = vmul.f32 %v10278_v8, %v11381_v52  ;;  %v282_v22 = vadd.f32 1e-12, %v261_v6  ;;  %v281_v23 = vadd.f32 1e-12, %v260_v7 }
 0x149   :  { %v363_v13 = vadd.f32 %v11455_v12, %v338_v14   ;;  %v315_v32 = vmul.f32 %v10280_v15, %v11372_v17 }
 0x14a   :  { %v341_v30 = vmul.f32 %v11451_v19, %v316_v18  ;;  %10293 = vrsqrt.f32 %v282_v22 }
 0x14b   :  { %v10282_v31 = vpop.eup %10281  ;;  %v340_v34 = vmul.f32 %v11451_v19, %v315_v32  ;;  %10295 = vrsqrt.f32 %v281_v23 }
 0x14c   :  { %v10284_v35 = vpop.eup %10283  ;;  %v366_v38 = vadd.f32 %v11455_v12, %v341_v30   ;;  %v318_v37 = vmul.f32 %v10282_v31, %v11393_v62 }
 0x14d   :  { %v365_v52 = vadd.f32 %v11455_v12, %v340_v34   ;;  %v317_v39 = vmul.f32 %v10284_v35, %v11384_v21 }
 0x14e   :  { %v343_v41 = vmul.f32 %v11451_v19, %v318_v37 }
 0x14f   :  { %v10286_v16 = vpop.eup %10285  ;;  %v342_v17 = vmul.f32 %v11451_v19, %v317_v39 }
 0x150   :  { %v10288_v40 = vpop.eup %10287  ;;  %v368_v45 = vadd.f32 %v11455_v12, %v343_v41   ;;  %v320_v48 = vmul.f32 %v10286_v16, %v11405_v10 }
 0x151   :  { %v367_v49 = vadd.f32 %v11455_v12, %v342_v17   ;;  %v319_v46 = vmul.f32 %v10288_v40, %v11396_v25 }
 0x152   :  { %v345_v62 = vmul.f32 %v11451_v19, %v320_v48 }
 0x153   :  { %v10290_v50 = vpop.eup %10289  ;;  %v344_v51 = vmul.f32 %v11451_v19, %v319_v46 }
 0x154   :  { %v10292_v21 = vpop.eup %10291  ;;  %v370_v20 = vadd.f32 %v11455_v12, %v345_v62   ;;  %v322_v53 = vmul.f32 %v10290_v50, %v11417_v26 }
 0x155   :  { %v369_v56 = vadd.f32 %v11455_v12, %v344_v51   ;;  %v321_v57 = vmul.f32 %v10292_v21, %v11408_v29 }
 0x156   :  { %v347_v10 = vmul.f32 %v11451_v19, %v322_v53 }
 0x157   :  { %v10294_v58 = vpop.eup %10293  ;;  %v346_v60 = vmul.f32 %v11451_v19, %v321_v57 }
 0x158   :  { %v10296_v25 = vpop.eup %10295  ;;  %v372_v47 = vadd.f32 %v11455_v12, %v347_v10   ;;  %v324_v24 = vmul.f32 %v10294_v58, %v11429_v36 }
 0x159   :  { %v371_v63 = vadd.f32 %v11455_v12, %v346_v60   ;;  %v323_v2 = vmul.f32 %v10296_v25, %v11420_v33 }
 0x15a   :  { %v349_v26 = vmul.f32 %v11451_v19, %v324_v24 }
 0x15b   :  { %v348_v3 = vmul.f32 %v11451_v19, %v323_v2 }
 0x15c   :  { %v374_v29 = vadd.f32 %v11455_v12, %v349_v26  }
 0x15d   :  { %v373_v5 = vadd.f32 %v11455_v12, %v348_v3  }
 0x15e LB: > { %v16221_v43 = vld [vmem:[#allocation2_spill] sm:$0xff]  ;;  %v16222_v4 = vld [vmem:[#allocation4_spill] sm:$0xff]  ;;  %16223 = vst [vmem:[#allocation5_spill] sm:$0xff] %v11023_v29  ;;  %16224 = vst [vmem:[#allocation6_spill] sm:$0xff] %v11027_v5  ;;  %v16131_v33 = vmov 0   ;;  %s8982_s23 = sshll.u32 %s11107_s22, 6  ;;  %v414_v18 = vpack.c.bf16 %v11099_v54, %v11103_v44  ;;  %v415_v22 = vpack.c.bf16 %v11091_v55, %v11095_v61  ;;  %v416_v23 = vpack.c.bf16 %v11083_v1, %v11087_v0  ;;  %v11027_v5 = vphi %v373_v5, %v16493_v5   ;;  %v11023_v29 = vphi %v374_v29, %v8541_v29   ;;  %s11107_s22 = sphi %s11589_s22, %s387_s22   ;;  %v11103_v44 = vphi %v11460_v44, %v16508_v44   ;;  %v11099_v54 = vphi %v11471_v54, %v16507_v54   ;;  %v11095_v61 = vphi %v11467_v61, %v15951_v61   ;;  %v11091_v55 = vphi %v11481_v55, %v16506_v55   ;;  %v11087_v0 = vphi %v11477_v0, %v16505_v0   ;;  %v11083_v1 = vphi %v11491_v1, %v16504_v1   ;;  %v11079_v11 = vphi %v11487_v11, %v16503_v11   ;;  %v11075_v9 = vphi %v11501_v9, %v16502_v9   ;;  %v11071_v27 = vphi %v11497_v27, %v16501_v27   ;;  %v11067_v13 = vphi %v363_v13, %v16500_v13   ;;  %v11063_v42 = vphi %v364_v42, %v16499_v42   ;;  %v11059_v52 = vphi %v365_v52, %v16001_v52   ;;  %v11055_v38 = vphi %v366_v38, %v16498_v38   ;;  %v11051_v49 = vphi %v367_v49, %v16497_v49   ;;  %v11047_v45 = vphi %v368_v45, %v8535_v45   ;;  %v11043_v56 = vphi %v369_v56, %v16496_v56   ;;  %v11039_v20 = vphi %v370_v20, %v16495_v20   ;;  %v11035_v63 = vphi %v371_v63, %v8538_v63   ;;  %v11031_v47 = vphi %v372_v47, %v16494_v47  }
 0x15f   : > { %16225 = vst [vmem:[#allocation7_spill] sm:$0xff] %v11031_v47  ;;  %16226 = vst [vmem:[#allocation8_spill] sm:$0xff] %v11035_v63  ;;  %549 = vmatprep.mubr.bf16.mxu0 %v16131_v33  ;;  %s427_s26 = scalar_lea.vmem %s16124_s3, %s8982_s23  ;;  %s8985_s27 = sshll.u32 %s11107_s22, 7  ;;  %v417_v32 = vpack.c.bf16 %v11075_v9, %v11079_v11  ;;  %v418_v30 = vpack.c.bf16 %v11067_v13, %v11071_v27  ;;  %v419_v31 = vpack.c.bf16 %v11059_v52, %v11063_v42  ;;  %vm689_vm1 = vcmask 130048  }
 0x160   : > { %16227 = vst [vmem:[#allocation9_spill] sm:$0xff] %v11039_v20  ;;  %16228 = vst [vmem:[#allocation10_spill] sm:$0xff] %v11043_v56  ;;  %v10297_v36 = vld [vmem:[%s427_s26 + $0x34] ss:$8 sps:$4 sm:$0xff]   ;;  %v10299_v19 = vld [vmem:[%s427_s26 + $0x30] ss:$8 sps:$4 sm:$0xff]   ;;  %s11666_s30 = scalar_lea.vmem %s16126_s5, %s8982_s23  ;;  %s11671_s10 = scalar_lea.vmem %s16127_s6, %s8985_s27  ;;  %v420_v34 = vpack.c.bf16 %v11051_v49, %v11055_v38  ;;  %v421_v35 = vpack.c.bf16 %v11043_v56, %v11047_v45  ;;  %v422_v37 = vpack.c.bf16 %v11035_v63, %v11039_v20 }
 0x161   : > { %16229 = vst [vmem:[#allocation11_spill] sm:$0xff] %v11047_v45  ;;  %16230 = vst [vmem:[#allocation12_spill] sm:$0xff] %v11051_v49  ;;  %v10300_v12 = vld [vmem:[%s427_s26 + $0x24] ss:$8 sps:$4 sm:$0xff]   ;;  %525 = vmatprep.subr.bf16.mxu0 %v10297_v36  ;;  %v10302_v6 = vld [vmem:[%s427_s26 + $0x20] ss:$8 sps:$4 sm:$0xff]   ;;  %v423_v39 = vpack.c.bf16 %v11027_v5, %v11031_v47  ;;  %v424_v41 = vpack.c.bf16 %v11023_v29, %v11023_v29 }
 0x162   : > { %16231 = vst [vmem:[#allocation13_spill] sm:$0xff] %v11055_v38  ;;  %16232 = vst [vmem:[#allocation14_spill] sm:$0xff] %v11059_v52  ;;  %526 = vmatpush1.bf16.msra.mxu0 %v10299_v19  ;;  %v10303_v7 = vld [vmem:[%s427_s26 + $0x14] ss:$8 sps:$4 sm:$0xff]   ;;  %v10305_v8 = vld [vmem:[%s427_s26 + $0x10] ss:$8 sps:$4 sm:$0xff]  }
 0x163   : > { %16233 = vst [vmem:[#allocation15_spill] sm:$0xff] %v11063_v42  ;;  %16234 = vst [vmem:[#allocation16_spill] sm:$0xff] %v11067_v13  ;;  %527 = vmatprep.subr.bf16.mxu0 %v10300_v12  ;;  %v10306_v14 = vld [vmem:[%s427_s26 + $0x4] ss:$8 sps:$4 sm:$0xff]   ;;  %v10308_v15 = vld [vmem:[%s427_s26] ss:$8 sps:$4 sm:$0xff]  }
 0x164   : > { %16235 = vst [vmem:[#allocation17_spill] sm:$0xff] %v11071_v27  ;;  %16236 = vst [vmem:[#allocation18_spill] sm:$0xff] %v11075_v9  ;;  %s8981_s11 = sshll.u32 %s11107_s22, 4  ;;  %s11110_s15 = smov 64   ;;  %vm1454_vm2 = vcmask 1043456   ;;  %vm1188_vm3 = vcmask 195584  }
 0x165   : > { %16237 = vst [vmem:[#allocation19_spill] sm:$0xff] %v11079_v11  ;;  %16238 = vst [vmem:[#allocation20_spill] sm:$0xff] %v11083_v1  ;;  %s11720_s14 = scalar_lea.vmem %s16129_s2, %s8981_s11  ;;  %s11111_s16 = smov 48   ;;  %vm11116_vm4 = vmmov 0  }
 0x166   : > { %16239 = vst [vmem:[#allocation21_spill] sm:$0xff] %v11087_v0  ;;  %16240 = vst [vmem:[#allocation22_spill] sm:$0xff] %v11091_v55  ;;  %528 = vmatpush1.bf16.msra.mxu0 %v10302_v6  ;;  %v412_v16 = vld [vmem:[%s11720_s14] sm:$0xff]  ;;  %s11112_s17 = smov 112   ;;  %s8983_s18 = sshll.u32 %s11107_s22, 5 }
 0x167   : > { %16241 = vst [vmem:[#allocation23_spill] sm:$0xff] %v11095_v61  ;;  %16242 = vst [vmem:[#allocation24_spill] sm:$0xff] %v11099_v54  ;;  %529 = vmatprep.subr.bf16.mxu0 %v10303_v7  ;;  %v11724_v40 = vrot.slane %v412_v16, %v16222_v4  ;;  %s12657_s20 = scalar_lea.vmem %s16125_s4, %s8983_s18  ;;  %s11113_s1 = smov 32  }
 0x168   : > { %16243 = vst [vmem:[#allocation25_spill] sm:$0xff] %v11103_v44  ;;  %s11114_s21 = smov 96   ;;  %s11117_s23 = smov 16  }
 0x169   : > { %s11118_s24 = smov 80   ;;  %s387_s22 = sadd.s32 1, %s11107_s22  }
 0x16a   : > { %530 = vmatpush1.bf16.msra.mxu0 %v10305_v8  ;;  %p16039_p0 = scmp.ge.s32.totalorder %s387_s22, 2  }
 0x16b   : > { %531 = vmatprep.subr.bf16.mxu0 %v10306_v14 }
 0x16e   : > { %532 = vmatpush1.bf16.msra.mxu0 %v10308_v15 }
 0x171   : > { %8768 = vmatmul.mubr.msk.bf16.vlgmr.msra.gmra.mxu0 %vm50_vm0, %v414_v18 }
 0x172   : > { %559 = vmatprep.mubr.bf16.mxu0 %v16131_v33 }
 0x179   : > { %8769 = vmatmul.mubr.msk.bf16.gmra.mxu0 %vm50_vm0, %v415_v22 }
 0x17a   : > { %569 = vmatprep.mubr.bf16.mxu0 %v16131_v33 }
 0x181   : > { %8770 = vmatmul.mubr.msk.bf16.gmra.mxu0 %vm50_vm0, %v416_v23 }
 0x182   : > { %579 = vmatprep.mubr.bf16.mxu0 %v16131_v33 }
 0x189   : > { %8771 = vmatmul.mubr.msk.bf16.gmra.mxu0 %vm50_vm0, %v417_v32 }
 0x18a   : > { %589 = vmatprep.mubr.bf16.mxu0 %v16131_v33 }
 0x191   : > { %8772 = vmatmul.mubr.msk.bf16.gmra.mxu0 %vm50_vm0, %v418_v30 }
 0x192   : > { %599 = vmatprep.mubr.bf16.mxu0 %v16131_v33 }
 0x199   : > { %8773 = vmatmul.mubr.msk.bf16.gmra.mxu0 %vm50_vm0, %v419_v31 }
 0x19a   : > { %609 = vmatprep.mubr.bf16.mxu0 %v16131_v33 }
 0x1a1   : > { %8774 = vmatmul.mubr.msk.bf16.gmra.mxu0 %vm50_vm0, %v420_v34 }
 0x1a2   : > { %619 = vmatprep.mubr.bf16.mxu0 %v16131_v33 }
 0x1a9   : > { %8775 = vmatmul.mubr.msk.bf16.gmra.mxu0 %vm50_vm0, %v421_v35 }
 0x1aa   : > { %629 = vmatprep.mubr.bf16.mxu0 %v16131_v33 }
 0x1b1   : > { %8776 = vmatmul.mubr.msk.bf16.gmra.mxu0 %vm50_vm0, %v422_v37 }
 0x1b2   : > { %639 = vmatprep.mubr.bf16.mxu0 %v16131_v33 }
 0x1b9   : > { %8777 = vmatmul.mubr.msk.bf16.gmra.mxu0 %vm50_vm0, %v423_v39 }
 0x1ba   : > { %649 = vmatprep.mubr.bf16.mxu0 %v16131_v33 }
 0x1c1   : > { %8778 = vmatmul.mubr.msk.bf16.gmra.mxu0 %vm50_vm0, %v424_v41 }
 0x231   : > { %v551_v17 = vpop.f32.mrf.mxu0 }
 0x232   : > { %v552_v62 = vadd.f32 %v551_v17, %v11724_v40 }
 0x233   : > { %v11726_v48 = vpop.f32.mrf.mxu0 }
 0x235   : > { %v555_v46 = vpop.f32.mrf.mxu0 }
 0x236   : > { %v556_v50 = vadd.f32 %v555_v46, %v11724_v40 }
 0x237   : > { %v11730_v51 = vpop.f32.mrf.mxu0 }
 0x238   : > { %v11732_v21 = vpack.c.bf16 %v556_v50, %v552_v62 }
 0x239   : > { %v561_v53 = vpop.f32.mrf.mxu0 }
 0x23a   : > { %v562_v57 = vadd.f32 %v561_v53, %v11724_v40  ;;  %9346 = vmatprep.mubr.msk.bf16.mxu1 %vm689_vm1, %v11732_v21 }
 0x23b   : > { %v11737_v10 = vpop.f32.mrf.mxu0 }
 0x23c   : > { %v11739_v58 = vpack.c.bf16 %v562_v57, %v562_v57 }
 0x23d   : > { %v565_v60 = vpop.f32.mrf.mxu0 }
 0x23e   : > { %687 = vrot.lane.b32.xlu0 %v11739_v58, %s11110_s15  ;;  %v566_v7 = vadd.f32 %v565_v60, %v11724_v40 }
 0x23f   : > { %v11743_v25 = vpop.f32.mrf.mxu0 }
 0x241   : > { %v571_v24 = vpop.f32.mrf.mxu0 }
 0x242   : > { %685 = vrot.lane.b32.xlu0 %v11732_v21, %s11110_s15  ;;  %v572_v19 = vadd.f32 %v571_v24, %v11724_v40 }
 0x243   : > { %v11747_v2 = vpop.f32.mrf.mxu0 }
 0x244   : > { %v11760_v14 = vpack.c.bf16 %v572_v19, %v566_v7 }
 0x245   : > { %v575_v26 = vpop.f32.mrf.mxu0 }
 0x246   : > { %v576_v3 = vadd.f32 %v575_v26, %v11724_v40 }
 0x247   : > { %v11750_v36 = vpop.f32.mrf.mxu0 }
 0x248   : > { %v11753_v12 = vpack.c.bf16 %v576_v3, %v576_v3 }
 0x249   : > { %v581_v6 = vpop.f32.mrf.mxu0 }
 0x24a   : > { %754 = vrot.lane.b32.xlu1 %v11753_v12, %s11110_s15  ;;  %v582_v15 = vadd.f32 %v581_v6, %v11724_v40 }
 0x24b   : > { %v11758_v8 = vpop.f32.mrf.mxu0 }
 0x24d   : > { %v585_v18 = vpop.f32.mrf.mxu0 }
 0x24e   : > { %v586_v22 = vadd.f32 %v585_v18, %v11724_v40  ;;  %752 = vrot.lane.b32.xlu1 %v11760_v14, %s11110_s15 }
 0x24f   : > { %v11766_v23 = vpop.f32.mrf.mxu0 }
 0x250   : > { %v11768_v32 = vpack.c.bf16 %v586_v22, %v582_v15 }
 0x251   : > { %v591_v30 = vpop.f32.mrf.mxu0 }
 0x252   : > { %v592_v31 = vadd.f32 %v591_v30, %v11724_v40  ;;  %818 = vrot.lane.b32.xlu1 %v11768_v32, %s11110_s15 }
 0x253   : > { %v11773_v34 = vpop.f32.mrf.mxu0 }
 0x254   : > { %v11775_v35 = vpack.c.bf16 %v592_v31, %v592_v31 }
 0x255   : > { %v595_v37 = vpop.f32.mrf.mxu0 }
 0x256   : > { %16244 = vst [vmem:[#allocation26_spill] sm:$0xff] %v11775_v35  ;;  %820 = vrot.lane.b32.xlu0 %v11775_v35, %s11110_s15  ;;  %v596_v41 = vadd.f32 %v595_v37, %v11724_v40 }
 0x257   : > { %v11779_v39 = vpop.f32.mrf.mxu0 }
 0x259   : > { %v601_v16 = vpop.f32.mrf.mxu0 }
 0x25a   : > { %v602_v17 = vadd.f32 %v601_v16, %v11724_v40 }
 0x25b   : > { %v11783_v46 = vpop.f32.mrf.mxu0 }
 0x25c   : > { %v11785_v62 = vpack.c.bf16 %v602_v17, %v596_v41 }
 0x25d   : > { %v605_v50 = vpop.f32.mrf.mxu0 }
 0x25e   : > { %v606_v53 = vadd.f32 %v605_v50, %v11724_v40  ;;  %884 = vrot.lane.b32.xlu1 %v11785_v62, %s11110_s15 }
 0x25f   : > { %v11790_v57 = vpop.f32.mrf.mxu0 }
 0x260   : > { %v11792_v60 = vpack.c.bf16 %v606_v53, %v606_v53 }
 0x261   : > { %v611_v24 = vpop.f32.mrf.mxu0 }
 0x262   : > { %16245 = vst [vmem:[#allocation27_spill] sm:$0xff] %v11792_v60  ;;  %886 = vrot.lane.b32.xlu0 %v11792_v60, %s11110_s15  ;;  %v612_v3 = vadd.f32 %v611_v24, %v11724_v40 }
 0x263   : > { %v11796_v26 = vpop.f32.mrf.mxu0 }
 0x265   : > { %v615_v19 = vpop.f32.mrf.mxu0 }
 0x266   : > { %v616_v6 = vadd.f32 %v615_v19, %v11724_v40 }
 0x267   : > { %v11800_v7 = vpop.f32.mrf.mxu0 }
 0x268   : > { %v11802_v15 = vpack.c.bf16 %v616_v6, %v612_v3 }
 0x269   : > { %v621_v18 = vpop.f32.mrf.mxu0 }
 0x26a   : > { %v622_v22 = vadd.f32 %v621_v18, %v11724_v40  ;;  %950 = vrot.lane.b32.xlu1 %v11802_v15, %s11110_s15 }
 0x26b   : > { %v11807_v30 = vpop.f32.mrf.mxu0 }
 0x26c   : > { %v11809_v31 = vpack.c.bf16 %v622_v22, %v622_v22 }
 0x26d   : > { %v625_v37 = vpop.f32.mrf.mxu0 }
 0x26e   : > { %952 = vrot.lane.b32.xlu0 %v11809_v31, %s11110_s15  ;;  %v626_v16 = vadd.f32 %v625_v37, %v11724_v40 }
 0x26f   : > { %v11813_v41 = vpop.f32.mrf.mxu0 }
 0x270   : > { %16246 = vst [vmem:[#allocation28_spill] sm:$0xff] %v11813_v41 }
 0x271   : > { %v631_v17 = vpop.f32.mrf.mxu0 }
 0x272   : > { %v632_v50 = vadd.f32 %v631_v17, %v11724_v40 }
 0x273   : > { %v11817_v53 = vpop.f32.mrf.mxu0 }
 0x274   : > { %16247 = vst [vmem:[#allocation29_spill] sm:$0xff] %v11817_v53  ;;  %v11819_v24 = vpack.c.bf16 %v632_v50, %v626_v16 }
 0x275   : > { %v635_v3 = vpop.f32.mrf.mxu0 }
 0x276   : > { %v636_v19 = vadd.f32 %v635_v3, %v11724_v40  ;;  %1016 = vrot.lane.b32.xlu1 %v11819_v24, %s11110_s15 }
 0x277   : > { %v11824_v6 = vpop.f32.mrf.mxu0 }
 0x278   : > { %v11826_v18 = vpack.c.bf16 %v636_v19, %v636_v19 }
 0x279   : > { %v641_v22 = vpop.f32.mrf.mxu0 }
 0x27a   : > { %1018 = vrot.lane.b32.xlu0 %v11826_v18, %s11110_s15  ;;  %v642_v17 = vadd.f32 %v641_v22, %v11724_v40 }
 0x27b   : > { %v11830_v37 = vpop.f32.mrf.mxu0 }
 0x27c   : > { %16248 = vst [vmem:[#allocation30_spill] sm:$0xff] %v11830_v37 }
 0x27d   : > { %v645_v16 = vpop.f32.mrf.mxu0 }
 0x27e   : > { %v646_v50 = vadd.f32 %v645_v16, %v11724_v40 }
 0x27f   : > { %v11834_v28 = vpop.f32.mrf.mxu0 }
 0x280   : > { %16249 = vst [vmem:[#allocation31_spill] sm:$0xff] %v11834_v28  ;;  %v11836_v3 = vpack.c.bf16 %v646_v50, %v642_v17 }
 0x281   : > { %v651_v33 = vpop.f32.mrf.mxu0 }
 0x282   : > { %v652_v29 = vadd.f32 %v651_v33, %v11724_v40  ;;  %1082 = vrot.lane.b32.xlu1 %v11836_v3, %s11110_s15  ;;  %9394 = vmatprep.mubr.msk.bf16.mxu0 %vm689_vm1, %v11836_v3 }
 0x283   : > { %v11843_v19 = vpop.f32.mrf.mxu0 }
 0x284   : > { %16250 = vst [vmem:[#allocation32_spill] sm:$0xff] %v11843_v19  ;;  %v11845_v5 = vpack.c.bf16 %v652_v29, %v652_v29 }
 0x285   : > { %v655_v22 = vpop.f32.mrf.mxu0 }
 0x286   : > { %1084 = vrot.lane.b32.xlu0 %v11845_v5, %s11110_s15 }
 0x287   : > { %v656_v16 = vpop.f32.mrf.mxu0 }
 0x2b0   : > { %v688_v17 = vpop.permute.xlu0 %687 }
 0x2b1   : > { %9981 = vmatprep.subr.msk.bf16.mxu1 %vm689_vm1, %v688_v17  ;;  %v700_v33 = vsel %vm689_vm1, %v688_v17, 0 }
 0x2b2   : > { %9343 = vmatpush3.bf16.xpose.msra.mxu1 %v700_v33 }
 0x2b4   : > { %v686_v40 = vpop.permute.xlu0 %685 }
 0x2b5   : > { %9982 = vmatprep.subr.msk.bf16.mxu1 %vm689_vm1, %v686_v40  ;;  %v697_v50 = vsel %vm689_vm1, %v686_v40, 0 }
 0x2ba   : > { %9345 = vmatpush3.bf16.xpose.msra.mxu1 %v697_v50 }
 0x2bc   : > { %v755_v47 = vpop.permute.xlu1 %754 }
 0x2bd   : > { %9983 = vmatprep.subr.msk.bf16.mxu1 %vm689_vm1, %v755_v47  ;;  %v766_v29 = vsel %vm689_vm1, %v755_v47, 0 }
 0x2c0   : > { %v753_v22 = vpop.permute.xlu1 %752 }
 0x2c1   : > { %9347 = vmatmul.mubr.msk.bf16.vlgmr.msra.gmra.mxu1 %vm689_vm1, %v11739_v58  ;;  %v763_v17 = vsel %vm689_vm1, %v753_v22, 0 }
 0x2c2   : > { %9351 = vmatpush3.bf16.xpose.msra.mxu1 %v766_v29  ;;  %9354 = vmatprep.mubr.msk.bf16.mxu1 %vm689_vm1, %v11760_v14 }
 0x2c3   : > { %9984 = vmatprep.subr.msk.bf16.mxu1 %vm689_vm1, %v753_v22 }
 0x2c4   : > { %v819_v40 = vpop.permute.xlu1 %818 }
 0x2c5   : > { %v829_v50 = vsel %vm689_vm1, %v819_v40, 0 }
 0x2c8   : > { %v821_v16 = vpop.permute.xlu0 %820 }
 0x2c9   : > { %v832_v33 = vsel %vm689_vm1, %v821_v16, 0 }
 0x2ca   : > { %9353 = vmatpush3.bf16.xpose.msra.mxu1 %v763_v17 }
 0x2cb   : > { %9985 = vmatprep.subr.msk.bf16.mxu1 %vm689_vm1, %v821_v16 }
 0x2d0   : > { %v885_v22 = vpop.permute.xlu1 %884 }
 0x2d1   : > { %9355 = vmatmul.mubr.msk.bf16.vlgmr.msra.gmra.mxu1 %vm689_vm1, %v11753_v12  ;;  %v895_v17 = vsel %vm689_vm1, %v885_v22, 0 }
 0x2d2   : > { %9359 = vmatpush3.bf16.xpose.msra.mxu1 %v832_v33  ;;  %9362 = vmatprep.mubr.msk.bf16.mxu1 %vm689_vm1, %v11768_v32 }
 0x2d3   : > { %9986 = vmatprep.subr.msk.bf16.mxu1 %vm689_vm1, %v819_v40 }
 0x2d4   : > { %v887_v47 = vpop.permute.xlu0 %886 }
 0x2d5   : > { %v898_v29 = vsel %vm689_vm1, %v887_v47, 0 }
 0x2da   : > { %9361 = vmatpush3.bf16.xpose.msra.mxu1 %v829_v50 }
 0x2db   : > { %9987 = vmatprep.subr.msk.bf16.mxu1 %vm689_vm1, %v887_v47 }
 0x2dc   : > { %v951_v40 = vpop.permute.xlu1 %950 }
 0x2e0   : > { %v953_v16 = vpop.permute.xlu0 %952 }
 0x2e1   : > { %9363 = vmatmul.mubr.msk.bf16.vlgmr.msra.gmra.mxu1 %vm689_vm1, %v11775_v35  ;;  %v964_v33 = vsel %vm689_vm1, %v953_v16, 0 }
 0x2e2   : > { %9367 = vmatpush3.bf16.xpose.msra.mxu1 %v898_v29  ;;  %9370 = vmatprep.mubr.msk.bf16.mxu1 %vm689_vm1, %v11785_v62 }
 0x2e3   : > { %9988 = vmatprep.subr.msk.bf16.mxu1 %vm689_vm1, %v885_v22  ;;  %v413_v22 = vld [vmem:[%s11720_s14 + $0x8] sm:$0xff] }
 0x2e8   : > { %v1017_v50 = vpop.permute.xlu1 %1016 }
 0x2ea   : > { %9369 = vmatpush3.bf16.xpose.msra.mxu1 %v895_v17  ;;  %v961_v17 = vsel %vm689_vm1, %v951_v40, 0 }
 0x2eb   : > { %9989 = vmatprep.subr.msk.bf16.mxu1 %vm689_vm1, %v953_v16 }
 0x2ec   : > { %v1019_v47 = vpop.permute.xlu0 %1018 }
 0x2f1   : > { %9371 = vmatmul.mubr.msk.bf16.vlgmr.msra.gmra.mxu1 %vm689_vm1, %v11792_v60 }
 0x2f2   : > { %9375 = vmatpush3.bf16.xpose.msra.mxu1 %v964_v33  ;;  %9378 = vmatprep.mubr.msk.bf16.mxu1 %vm689_vm1, %v11802_v15  ;;  %v11891_v33 = vrot.slane %v413_v22, %v16222_v4  ;;  %v1027_v22 = vsel %vm689_vm1, %v1017_v50, 0 }
 0x2f3   : > { %9990 = vmatprep.subr.msk.bf16.mxu1 %vm689_vm1, %v951_v40  ;;  %v1030_v40 = vsel %vm689_vm1, %v1019_v47, 0 }
 0x2f4   : > { %v1083_v29 = vpop.permute.xlu1 %1082  ;;  %v578_v20 = vadd.f32 %v11750_v36, %v11891_v33  ;;  %v564_v36 = vadd.f32 %v11737_v10, %v11891_v33 }
 0x2f5   : > { %v1093_v56 = vsel %vm689_vm1, %v1083_v29, 0 }
 0x2f8   : > { %v1085_v63 = vpop.permute.xlu0 %1084 }
 0x2f9   : > { %9993 = vmatprep.subr.msk.bf16.mxu0 %vm689_vm1, %v1085_v63  ;;  %v1096_v16 = vsel %vm689_vm1, %v1085_v63, 0  ;;  %v11899_v63 = vpack.c.bf16 %v578_v20, %v578_v20  ;;  %v568_v20 = vadd.f32 %v11743_v25, %v11891_v33  ;;  %v558_v25 = vadd.f32 %v11730_v51, %v11891_v33 }
 0x2fa   : > { %9377 = vmatpush3.bf16.xpose.msra.mxu1 %v961_v17  ;;  %9391 = vmatpush3.bf16.xpose.msra.mxu0 %v1096_v16  ;;  %v608_v17 = vadd.f32 %v11790_v57, %v11891_v33  ;;  %v554_v57 = vadd.f32 %v11726_v48, %v11891_v33  ;;  %v594_v16 = vadd.f32 %v11773_v34, %v11891_v33 }
 0x2fb   : > { %9991 = vmatprep.subr.msk.bf16.mxu1 %vm689_vm1, %v1019_v47  ;;  %9994 = vmatprep.subr.msk.bf16.mxu0 %vm689_vm1, %v1083_v29  ;;  %v574_v29 = vadd.f32 %v11747_v2, %v11891_v33  ;;  %v11912_v47 = vpack.c.bf16 %v564_v36, %v564_v36  ;;  %v1513_v10 = vsel %vm1454_vm2, %v11899_v63, 0 }
 0x2fc   : > { %v11928_v2 = vpack.c.bf16 %v608_v17, %v608_v17  ;;  %v11944_v48 = vpack.c.bf16 %v594_v16, %v594_v16 }
 0x2fd   : > { %v1456_v51 = vsel %vm1454_vm2, %v11912_v47, 0 }
 0x2fe   : > { %16252 = vst [vmem:[#allocation34_spill] sm:$0xff] %v11928_v2  ;;  %16253 = vst [vmem:[#allocation35_spill] sm:$0xff] %v11944_v48 }
 0x301   : > { %9379 = vmatmul.mubr.msk.bf16.vlgmr.msra.gmra.mxu1 %vm689_vm1, %v11809_v31 }
 0x302   : > { %9383 = vmatpush3.bf16.xpose.msra.mxu1 %v1030_v40  ;;  %9386 = vmatprep.mubr.msk.bf16.mxu1 %vm689_vm1, %v11819_v24 }
 0x303   : > { %9393 = vmatpush3.bf16.xpose.msra.mxu0 %v1093_v56  ;;  %9992 = vmatprep.subr.msk.bf16.mxu1 %vm689_vm1, %v1017_v50  ;;  %v11915_v56 = vpack.c.bf16 %v574_v29, %v568_v20  ;;  %v11935_v50 = vpack.c.bf16 %v558_v25, %v554_v57 }
 0x304   : > { %9996 = vmatprep.subr.msk.bf16.mxu0 %vm1454_vm2, %v11899_v63 }
 0x305   : > { %16251 = vst [vmem:[#allocation33_spill] sm:$0xff] %v11915_v56 }
 0x30a   : > { %9395 = vmatmul.mubr.msk.bf16.vlgmr.msra.gmra.mxu0 %vm689_vm1, %v11845_v5  ;;  %9385 = vmatpush3.bf16.xpose.msra.mxu1 %v1027_v22 }
 0x30b   : > { %9407 = vmatpush3.bf16.msra.mxu0 %v1513_v10  ;;  %9995 = vmatprep.subr.msk.bf16.mxu1 %vm1454_vm2, %v11912_v47 }
 0x30c   : > { %9408 = vmatprep.subr.bf16.mxu0 %v11915_v56 }
 0x30f   : > { %9409 = vmatpush3.bf16.msra.mxu0 %v11915_v56 }
 0x310   : > { %9998 = vmatprep.subr.msk.bf16.mxu0 %vm1454_vm2, %v11928_v2 }
 0x311   : > { %9387 = vmatmul.mubr.msk.bf16.vlgmr.msra.gmra.mxu1 %vm689_vm1, %v11826_v18 }
 0x312   : > { %9399 = vmatpush3.bf16.msra.mxu1 %v1456_v51 }
 0x313   : > { %9400 = vmatprep.subr.bf16.mxu1 %v11935_v50 }
 0x316   : > { %9401 = vmatpush3.bf16.msra.mxu1 %v11935_v50 }
 0x317   : > { %9997 = vmatprep.subr.msk.bf16.mxu1 %vm1454_vm2, %v11944_v48 }
 0x381   : > { %v9348_v40 = vpop.f32.mrf.mxu1 }
 0x382   : > { %v1148_v36 = vmul.f32 0.25, %v9348_v40 }
 0x383   : > { %v736_v29 = vpop.f32.mrf.mxu1 }
 0x384   : > { %v11950_v34 = vadd.f32 %v16221_v43, %v1148_v36  ;;  %v1146_v20 = vmul.f32 0.25, %v736_v29 }
 0x385   : > { %v9349_v22 = vpop.f32.mrf.mxu1 }
 0x386   : > { %v11953_v17 = vadd.f32 %v16221_v43, %v1146_v20  ;;  %v1195_v10 = vsel %vm1188_vm3, %v11950_v34, -inf }
 0x387   : > { %v739_v25 = vpop.f32.mrf.mxu1  ;;  %1196 = vmax.xlane.f32.xlu0 %v1195_v10 }
 0x388   : > { %v1147_v57 = vmul.f32 0.25, %v739_v25  ;;  %v1189_v51 = vsel %vm1188_vm3, %v11953_v17, -inf }
 0x38a   : > { %v11958_v16 = vadd.f32 %v16221_v43, %v1147_v57 }
 0x38b   : > { %1190 = vmax.xlane.f32.xlu0 %v1189_v51 }
 0x38c   : > { %v1192_v40 = vsel %vm1188_vm3, %v11958_v16, -inf }
 0x38d   : > { %1193 = vmax.xlane.f32.xlu1 %v1192_v40 }
 0x391   : > { %v9356_v36 = vpop.f32.mrf.mxu1 }
 0x392   : > { %v1151_v29 = vmul.f32 0.25, %v9356_v36 }
 0x393   : > { %v802_v20 = vpop.f32.mrf.mxu1 }
 0x394   : > { %v11965_v22 = vadd.f32 %v16221_v43, %v1151_v29  ;;  %v1149_v4 = vmul.f32 0.25, %v802_v20 }
 0x395   : > { %v9357_v10 = vpop.f32.mrf.mxu1 }
 0x396   : > { %v11968_v25 = vadd.f32 %v16221_v43, %v1149_v4  ;;  %v1204_v57 = vsel %vm1188_vm3, %v11965_v22, -inf }
 0x397   : > { %v805_v45 = vpop.f32.mrf.mxu1  ;;  %1205 = vmax.xlane.f32.xlu0 %v1204_v57 }
 0x398   : > { %v1150_v51 = vmul.f32 0.25, %v805_v45  ;;  %v1198_v40 = vsel %vm1188_vm3, %v11968_v25, -inf }
 0x39a   : > { %v11973_v49 = vadd.f32 %v16221_v43, %v1150_v51 }
 0x39b   : > { %1199 = vmax.xlane.f32.xlu0 %v1198_v40 }
 0x39c   : > { %v1201_v36 = vsel %vm1188_vm3, %v11973_v49, -inf }
 0x39d   : > { %1202 = vmax.xlane.f32.xlu1 %v1201_v36 }
 0x3a1   : > { %v9364_v29 = vpop.f32.mrf.mxu1 }
 0x3a2   : > { %v1154_v27 = vmul.f32 0.25, %v9364_v29 }
 0x3a3   : > { %v868_v4 = vpop.f32.mrf.mxu1 }
 0x3a4   : > { %v1152_v20 = vmul.f32 0.25, %v868_v4 }
 0x3a5   : > { %v9365_v10 = vpop.f32.mrf.mxu1 }
 0x3a6   : > { %v11980_v38 = vadd.f32 %v16221_v43, %v1152_v20 }
 0x3a7   : > { %v871_v57 = vpop.f32.mrf.mxu1 }
 0x3a8   : > { %v1153_v45 = vmul.f32 0.25, %v871_v57  ;;  %v1207_v51 = vsel %vm1188_vm3, %v11980_v38, -inf }
 0x3a9   : > { %1208 = vmax.xlane.f32.xlu0 %v1207_v51 }
 0x3aa   : > { %v11985_v52 = vadd.f32 %v16221_v43, %v1153_v45 }
 0x3ac   : > { %v1210_v40 = vsel %vm1188_vm3, %v11985_v52, -inf }
 0x3ad   : > { %1211 = vmax.xlane.f32.xlu1 %v1210_v40 }
 0x3b1   : > { %v9372_v36 = vpop.f32.mrf.mxu1 }
 0x3b2   : > { %v1157_v42 = vmul.f32 0.25, %v9372_v36 }
 0x3b3   : > { %v934_v4 = vpop.f32.mrf.mxu1 }
 0x3b4   : > { %v11990_v10 = vadd.f32 %v16221_v43, %v1157_v42  ;;  %v1155_v20 = vmul.f32 0.25, %v934_v4  ;;  %v12003_v42 = vadd.f32 %v16221_v43, %v1154_v27 }
 0x3b5   : > { %v9373_v13 = vpop.f32.mrf.mxu1 }
 0x3b6   : > { %v11993_v57 = vadd.f32 %v16221_v43, %v1155_v20  ;;  %v1222_v51 = vsel %vm1188_vm3, %v11990_v10, -inf  ;;  %v1213_v4 = vsel %vm1188_vm3, %v12003_v42, -inf }
 0x3b7   : > { %v937_v45 = vpop.f32.mrf.mxu1  ;;  %1223 = vmax.xlane.f32.xlu1 %v1222_v51 }
 0x3b8   : > { %v1156_v9 = vmul.f32 0.25, %v937_v45  ;;  %v1216_v36 = vsel %vm1188_vm3, %v11993_v57, -inf }
 0x3ba   : > { %v11998_v40 = vadd.f32 %v16221_v43, %v1156_v9 }
 0x3bb   : > { %1217 = vmax.xlane.f32.xlu1 %v1216_v36 }
 0x3bc   : > { %v1219_v13 = vsel %vm1188_vm3, %v11998_v40, -inf }
 0x3bd   : > { %1220 = vmax.xlane.f32.xlu0 %v1219_v13 }
 0x3c1   : > { %v9380_v20 = vpop.f32.mrf.mxu1  ;;  %1214 = vmax.xlane.f32.xlu0 %v1213_v4 }
 0x3c3   : > { %v1000_v29 = vpop.f32.mrf.mxu1 }
 0x3c4   : > { %v1158_v59 = vmul.f32 0.25, %v1000_v29 }
 0x3c5   : > { %v9381_v51 = vpop.f32.mrf.mxu1 }
 0x3c7   : > { %v1003_v1 = vpop.f32.mrf.mxu1 }
 0x3c8   : > { %v1159_v13 = vmul.f32 0.25, %v1003_v1 }
 0x3ca   : > { %v9396_v9 = vpop.f32.mrf.mxu0  ;;  %v12018_v28 = vadd.f32 %v16221_v43, %v1159_v13 }
 0x3cc   : > { %v1132_v45 = vpop.f32.mrf.mxu0 }
 0x3ce   : > { %v9397_v11 = vpop.f32.mrf.mxu0 }
 0x3d0   : > { %v1135_v29 = vpop.f32.mrf.mxu0 }
 0x3d1   : > { %v9388_v0 = vpop.f32.mrf.mxu1 }
 0x3d2   : > { %v1163_v36 = vmul.f32 0.25, %v9388_v0  ;;  %v1164_v0 = vmul.f32 0.25, %v1132_v45  ;;  %v1228_v45 = vsel %vm1188_vm3, %v12018_v28, -inf }
 0x3d3   : > { %v1066_v55 = vpop.f32.mrf.mxu1 }
 0x3d4   : > { %v12010_v27 = vadd.f32 %v16221_v43, %v1163_v36  ;;  %v1161_v61 = vmul.f32 0.25, %v1066_v55  ;;  %v12026_v55 = vadd.f32 %v16221_v43, %v1158_v59  ;;  %v12031_v13 = vadd.f32 %v16221_v43, %v1164_v0 }
 0x3d5   : > { %v9389_v54 = vpop.f32.mrf.mxu1 }
 0x3d6   : > { %v12013_v44 = vadd.f32 %v16221_v43, %v1161_v61  ;;  %v1240_v4 = vsel %vm1188_vm3, %v12010_v27, -inf  ;;  %v1160_v61 = vmul.f32 0.25, %v9380_v20  ;;  %v1165_v20 = vmul.f32 0.25, %v1135_v29 }
 0x3d7   : > { %v1069_v51 = vpop.f32.mrf.mxu1  ;;  %1241 = vmax.xlane.f32.xlu1 %v1240_v4  ;;  %v1166_v4 = vmul.f32 0.25, %v9396_v9  ;;  %v1225_v59 = vsel %vm1188_vm3, %v12026_v55, -inf  ;;  %v1243_v9 = vsel %vm1188_vm3, %v12031_v13, -inf }
 0x3d8   : > { %v1162_v11 = vmul.f32 0.25, %v1069_v51  ;;  %v1234_v54 = vsel %vm1188_vm3, %v12013_v44, -inf  ;;  %v12036_v51 = vadd.f32 %v16221_v43, %v1160_v61  ;;  %v12046_v0 = vadd.f32 %v16221_v43, %v1165_v20 }
 0x3da   : > { %v12021_v36 = vadd.f32 %v16221_v43, %v1162_v11  ;;  %v12041_v11 = vadd.f32 %v16221_v43, %v1166_v4 }
 0x3db   : > { %1235 = vmax.xlane.f32.xlu1 %v1234_v54  ;;  %v1231_v54 = vsel %vm1188_vm3, %v12036_v51, -inf }
 0x3dc   : > { %v1237_v1 = vsel %vm1188_vm3, %v12021_v36, -inf  ;;  %v1249_v61 = vsel %vm1188_vm3, %v12041_v11, -inf }
 0x3dd   : > { %1238 = vmax.xlane.f32.xlu0 %v1237_v1  ;;  %v1246_v1 = vsel %vm1188_vm3, %v12046_v0, -inf }
 0x3df   : > { %1229 = vmax.xlane.f32.xlu1 %v1228_v45 }
 0x3e1   : > { %1226 = vmax.xlane.f32.xlu0 %v1225_v59 }
 0x3e3   : > { %1244 = vmax.xlane.f32.xlu1 %v1243_v9 }
 0x3e5   : > { %1232 = vmax.xlane.f32.xlu0 %v1231_v54 }
 0x3e7   : > { %1250 = vmax.xlane.f32.xlu1 %v1249_v61 }
 0x3e9   : > { %1247 = vmax.xlane.f32.xlu0 %v1246_v1 }
 0x410   : > { %v1197_v29 = vpop.xlane.xlu0 %1196 }
 0x411   : > { %v1254_v4 = vsub.f32 %v11950_v34, %v1197_v29 }
 0x413   : > { %v1277_v45 = vmul.f32 1.442695, %v1254_v4 }
 0x414   : > { %v1191_v59 = vpop.xlane.xlu0 %1190 }
 0x415   : > { %10341 = vpow2.f32 %v1277_v45  ;;  %v1252_v20 = vsub.f32 %v11953_v17, %v1191_v59 }
 0x416   : > { %v1194_v9 = vpop.xlane.xlu1 %1193 }
 0x417   : > { %v1273_v43 = vmul.f32 1.442695, %v1252_v20  ;;  %v1253_v54 = vsub.f32 %v11958_v16, %v1194_v9 }
 0x419   : > { %10343 = vpow2.f32 %v1273_v43  ;;  %v1275_v37 = vmul.f32 1.442695, %v1253_v54 }
 0x41b   : > { %10345 = vpow2.f32 %v1275_v37 }
 0x420   : > { %v1206_v61 = vpop.xlane.xlu0 %1205 }
 0x421   : > { %v1257_v19 = vsub.f32 %v11965_v22, %v1206_v61 }
 0x422   : > { %v12058_v53 = vpop.eup %10341 }
 0x423   : > { %v1283_v1 = vmul.f32 1.442695, %v1257_v19  ;;  %v1321_v34 = vsel %vm1188_vm3, %v12058_v53, 0.0 }
 0x424   : > { %1322 = vadd.xlane.f32.xlu1 %v1321_v34  ;;  %v1200_v29 = vpop.xlane.xlu0 %1199 }
 0x425   : > { %10347 = vpow2.f32 %v1283_v1  ;;  %v1255_v17 = vsub.f32 %v11968_v25, %v1200_v29 }
 0x426   : > { %v12063_v4 = vpop.eup %10343  ;;  %v1203_v16 = vpop.xlane.xlu1 %1202 }
 0x427   : > { %v1279_v43 = vmul.f32 1.442695, %v1255_v17  ;;  %v1256_v37 = vsub.f32 %v11973_v49, %v1203_v16  ;;  %v1315_v22 = vsel %vm1188_vm3, %v12063_v4, 0.0 }
 0x428   : > { %v12068_v45 = vpop.eup %10345  ;;  %1316 = vadd.xlane.f32.xlu1 %v1315_v22 }
 0x429   : > { %10349 = vpow2.f32 %v1279_v43  ;;  %v1281_v19 = vmul.f32 1.442695, %v1256_v37  ;;  %v1318_v59 = vsel %vm1188_vm3, %v12068_v45, 0.0 }
 0x42a   : > { %1319 = vadd.xlane.f32.xlu0 %v1318_v59 }
 0x42b   : > { %10351 = vpow2.f32 %v1281_v19 }
 0x432   : > { %v12072_v25 = vpop.eup %10347  ;;  %v1209_v43 = vpop.xlane.xlu0 %1208 }
 0x433   : > { %v1330_v20 = vsel %vm1188_vm3, %v12072_v25, 0.0 }
 0x434   : > { %1331 = vadd.xlane.f32.xlu0 %v1330_v20 }
 0x436   : > { %v12076_v49 = vpop.eup %10349  ;;  %v1212_v9 = vpop.xlane.xlu1 %1211 }
 0x437   : > { %v1259_v54 = vsub.f32 %v11985_v52, %v1212_v9  ;;  %v1324_v61 = vsel %vm1188_vm3, %v12076_v49, 0.0  ;;  %v1258_v9 = vsub.f32 %v11980_v38, %v1209_v43 }
 0x438   : > { %v12081_v1 = vpop.eup %10351  ;;  %1325 = vadd.xlane.f32.xlu0 %v1324_v61 }
 0x439   : > { %v1287_v34 = vmul.f32 1.442695, %v1259_v54  ;;  %v1327_v29 = vsel %vm1188_vm3, %v12081_v1, 0.0 }
 0x43a   : > { %1328 = vadd.xlane.f32.xlu1 %v1327_v29 }
 0x43b   : > { %10353 = vpow2.f32 %v1287_v34  ;;  %v1285_v34 = vmul.f32 1.442695, %v1258_v9 }
 0x440   : > { %v1224_v17 = vpop.xlane.xlu1 %1223 }
 0x441   : > { %v1263_v16 = vsub.f32 %v11990_v10, %v1224_v17 }
 0x443   : > { %v1295_v37 = vmul.f32 1.442695, %v1263_v16 }
 0x444   : > { %v1218_v22 = vpop.xlane.xlu1 %1217 }
 0x445   : > { %10355 = vpow2.f32 %v1295_v37  ;;  %v1261_v52 = vsub.f32 %v11993_v57, %v1218_v22 }
 0x446   : > { %v1221_v19 = vpop.xlane.xlu0 %1220 }
 0x447   : > { %v1291_v59 = vmul.f32 1.442695, %v1261_v52  ;;  %v1262_v29 = vsub.f32 %v11998_v40, %v1221_v19 }
 0x448   : > { %v12087_v20 = vpop.eup %10353 }
 0x449   : > { %10357 = vpow2.f32 %v1291_v59  ;;  %v1336_v54 = vsel %vm1188_vm3, %v12087_v20, 0.0  ;;  %v1293_v57 = vmul.f32 1.442695, %v1262_v29 }
 0x44a   : > { %1337 = vadd.xlane.f32.xlu0 %v1336_v54  ;;  %v1215_v61 = vpop.xlane.xlu0 %1214 }
 0x44b   : > { %v1260_v10 = vsub.f32 %v12003_v42, %v1215_v61 }
 0x44d   : > { %v1289_v17 = vmul.f32 1.442695, %v1260_v10 }
 0x44f   : > { %10359 = vpow2.f32 %v1289_v17 }
 0x450   : > { %10361 = vpow2.f32 %v1285_v34 }
 0x451   : > { %10363 = vpow2.f32 %v1293_v57 }
 0x452   : > { %v12094_v16 = vpop.eup %10355 }
 0x453   : > { %16254 = vst [vmem:[#allocation36_spill] sm:$0xff] %v12094_v16  ;;  %v1348_v38 = vsel %vm1188_vm3, %v12094_v16, 0.0 }
 0x454   : > { %1349 = vadd.xlane.f32.xlu0 %v1348_v38 }
 0x456   : > { %v12098_v43 = vpop.eup %10357 }
 0x457   : > { %16255 = vst [vmem:[#allocation37_spill] sm:$0xff] %v12098_v43  ;;  %v1342_v37 = vsel %vm1188_vm3, %v12098_v43, 0.0 }
 0x458   : > { %1343 = vadd.xlane.f32.xlu0 %v1342_v37 }
 0x45c   : > { %v12102_v42 = vpop.eup %10359 }
 0x45d   : > { %v1339_v40 = vsel %vm1188_vm3, %v12102_v42, 0.0  ;;  %v12106_v22 = vpop.eup %10361 }
 0x45e   : > { %1340 = vadd.xlane.f32.xlu1 %v1339_v40  ;;  %v1333_v19 = vsel %vm1188_vm3, %v12106_v22, 0.0  ;;  %v12110_v59 = vpop.eup %10363 }
 0x45f   : > { %16256 = vst [vmem:[#allocation38_spill] sm:$0xff] %v12110_v59  ;;  %v1345_v54 = vsel %vm1188_vm3, %v12110_v59, 0.0 }
 0x460   : > { %v1242_v52 = vpop.xlane.xlu1 %1241 }
 0x461   : > { %v1269_v10 = vsub.f32 %v12010_v27, %v1242_v52 }
 0x462   : > { %1334 = vadd.xlane.f32.xlu1 %v1333_v19 }
 0x463   : > { %v1307_v38 = vmul.f32 1.442695, %v1269_v10 }
 0x464   : > { %v1236_v9 = vpop.xlane.xlu1 %1235 }
 0x465   : > { %v1267_v17 = vsub.f32 %v12013_v44, %v1236_v9 }
 0x466   : > { %1346 = vadd.xlane.f32.xlu1 %v1345_v54  ;;  %v1239_v61 = vpop.xlane.xlu0 %1238 }
 0x467   : > { %v1303_v41 = vmul.f32 1.442695, %v1267_v17 }
 0x468   : > { %v1230_v34 = vpop.xlane.xlu1 %1229 }
 0x469   : > { %v1265_v29 = vsub.f32 %v12018_v28, %v1230_v34 }
 0x46a   : > { %v1227_v57 = vpop.xlane.xlu0 %1226 }
 0x46b   : > { %v1299_v37 = vmul.f32 1.442695, %v1265_v29  ;;  %v1264_v19 = vsub.f32 %v12026_v55, %v1227_v57  ;;  %v1268_v55 = vsub.f32 %v12021_v36, %v1239_v61 }
 0x46c   : > { %v1245_v40 = vpop.xlane.xlu1 %1244 }
 0x46d   : > { %10365 = vpow2.f32 %v1299_v37  ;;  %v1270_v54 = vsub.f32 %v12031_v13, %v1245_v40  ;;  %v1297_v52 = vmul.f32 1.442695, %v1264_v19  ;;  %v1305_v13 = vmul.f32 1.442695, %v1268_v55 }
 0x46e   : > { %v1233_v43 = vpop.xlane.xlu0 %1232  ;;  %10367 = vpow2.f32 %v1307_v38 }
 0x46f   : > { %v1266_v59 = vsub.f32 %v12036_v51, %v1233_v43  ;;  %10369 = vpow2.f32 %v1303_v41  ;;  %v1309_v44 = vmul.f32 1.442695, %v1270_v54 }
 0x470   : > { %v1251_v27 = vpop.xlane.xlu1 %1250 }
 0x471   : > { %v1301_v16 = vmul.f32 1.442695, %v1266_v59  ;;  %v1272_v9 = vsub.f32 %v12041_v11, %v1251_v27 }
 0x472   : > { %v1248_v28 = vpop.xlane.xlu0 %1247 }
 0x473   : > { %10371 = vpow2.f32 %v1301_v16  ;;  %v1271_v10 = vsub.f32 %v12046_v0, %v1248_v28  ;;  %v1313_v29 = vmul.f32 1.442695, %v1272_v9 }
 0x474   : > { %10373 = vpow2.f32 %v1297_v52 }
 0x475   : > { %v1311_v34 = vmul.f32 1.442695, %v1271_v10  ;;  %10375 = vpow2.f32 %v1309_v44 }
 0x477   : > { %10377 = vpow2.f32 %v1311_v34 }
 0x478   : > { %10379 = vpow2.f32 %v1313_v29 }
 0x479   : > { %10381 = vpow2.f32 %v1305_v13 }
 0x47a   : > { %v12123_v51 = vpop.eup %10365 }
 0x47b   : > { %v1354_v41 = vsel %vm1188_vm3, %v12123_v51, 0.0  ;;  %v12127_v43 = vpop.eup %10367 }
 0x47c   : > { %1355 = vadd.xlane.f32.xlu0 %v1354_v41  ;;  %v12129_v11 = vpop.eup %10369  ;;  %v1366_v36 = vsel %vm1188_vm3, %v12127_v43, 0.0 }
 0x47d   : > { %v1360_v61 = vsel %vm1188_vm3, %v12129_v11, 0.0 }
 0x480   : > { %v12133_v0 = vpop.eup %10371  ;;  %1367 = vadd.xlane.f32.xlu0 %v1366_v36 }
 0x481   : > { %v1357_v16 = vsel %vm1188_vm3, %v12133_v0, 0.0  ;;  %v12137_v59 = vpop.eup %10373 }
 0x482   : > { %1358 = vadd.xlane.f32.xlu1 %v1357_v16  ;;  %v12141_v17 = vpop.eup %10375  ;;  %v1351_v57 = vsel %vm1188_vm3, %v12137_v59, 0.0 }
 0x483   : > { %v1369_v37 = vsel %vm1188_vm3, %v12141_v17, 0.0 }
 0x484   : > { %1361 = vadd.xlane.f32.xlu0 %v1360_v61  ;;  %v12145_v38 = vpop.eup %10377  ;;  %v584_v61 = vadd.f32 %v11758_v8, %v11891_v33  ;;  %v624_v8 = vadd.f32 %v11807_v30, %v11891_v33 }
 0x485   : > { %v12149_v40 = vpop.eup %10379  ;;  %v1372_v19 = vsel %vm1188_vm3, %v12145_v38, 0.0 }
 0x486   : > { %1352 = vadd.xlane.f32.xlu1 %v1351_v57  ;;  %v12153_v54 = vpop.eup %10381  ;;  %v1375_v27 = vsel %vm1188_vm3, %v12149_v40, 0.0  ;;  %v588_v57 = vadd.f32 %v11766_v23, %v11891_v33  ;;  %v1570_v23 = vsel %vm1454_vm2, %v11944_v48, 0 }
 0x487   : > { %v1363_v52 = vsel %vm1188_vm3, %v12153_v54, 0.0 }
 0x488   : > { %1370 = vadd.xlane.f32.xlu0 %v1369_v37 }
 0x48a   : > { %1373 = vadd.xlane.f32.xlu1 %v1372_v19 }
 0x48c   : > { %1376 = vadd.xlane.f32.xlu0 %v1375_v27 }
 0x48e   : > { %1364 = vadd.xlane.f32.xlu1 %v1363_v52 }
 0x49f   : > { %1865 = vrot.lane.b32.xlu1 %v11739_v58, %s11111_s16 }
 0x4a2   : > { %1863 = vrot.lane.b32.xlu0 %v11732_v21, %s11111_s16 }
 0x4a3   : > { %1933 = vrot.lane.b32.xlu1 %v11753_v12, %s11111_s16 }
 0x4a6   : > { %1861 = vrot.lane.b32.xlu0 %v11739_v58, %s11112_s17 }
 0x4a7   : > { %1859 = vrot.lane.b32.xlu1 %v11732_v21, %s11112_s17 }
 0x4aa   : > { %2001 = vrot.lane.b32.xlu0 %v11775_v35, %s11111_s16 }
 0x4ab   : > { %1931 = vrot.lane.b32.xlu1 %v11760_v14, %s11111_s16 }
 0x4ad   : > { %v1323_v28 = vpop.xlane.xlu1 %1322 }
 0x4ae   : > { %1929 = vrot.lane.b32.xlu0 %v11753_v12, %s11112_s17  ;;  %10383 = vrcp.f32 %v1323_v28 }
 0x4af   : > { %1927 = vrot.lane.b32.xlu1 %v11760_v14, %s11112_s17 }
 0x4b1   : > { %v1317_v44 = vpop.xlane.xlu1 %1316 }
 0x4b2   : > { %10385 = vrcp.f32 %v1317_v44  ;;  %2069 = vrot.lane.b32.xlu0 %v11792_v60, %s11111_s16 }
 0x4b3   : > { %1999 = vrot.lane.b32.xlu1 %v11768_v32, %s11111_s16  ;;  %v1320_v9 = vpop.xlane.xlu0 %1319 }
 0x4b4   : > { %10387 = vrcp.f32 %v1320_v9 }
 0x4b6   : > { %1997 = vrot.lane.b32.xlu0 %v11775_v35, %s11112_s17 }
 0x4b7   : > { %1995 = vrot.lane.b32.xlu1 %v11768_v32, %s11112_s17 }
 0x4ba   : > { %2137 = vrot.lane.b32.xlu0 %v11809_v31, %s11111_s16 }
 0x4bb   : > { %2067 = vrot.lane.b32.xlu1 %v11785_v62, %s11111_s16  ;;  %v10384_v55 = vpop.eup %10383 }
 0x4bc   : > { %v1401_v41 = vmul.f32 %v10384_v55, %v12058_v53 }
 0x4bd   : > { %v1332_v10 = vpop.xlane.xlu0 %1331 }
 0x4be   : > { %2065 = vrot.lane.b32.xlu0 %v11792_v60, %s11112_s17  ;;  %10389 = vrcp.f32 %v1332_v10  ;;  %v1421_v19 = vpack.c.bf16 %v1401_v41, %v1401_v41  ;;  %v604_v10 = vadd.f32 %v11783_v46, %v11891_v33  ;;  %v1627_v46 = vsel %vm1454_vm2, %v11928_v2, 0 }
 0x4bf   : > { %v10386_v34 = vpop.eup %10385  ;;  %2063 = vrot.lane.b32.xlu1 %v11785_v62, %s11112_s17 }
 0x4c0   : > { %v1399_v36 = vmul.f32 %v10386_v34, %v12063_v4  ;;  %v12207_v4 = vpack.c.bf16 %v588_v57, %v584_v61  ;;  %v598_v34 = vadd.f32 %v11779_v39, %v11891_v33 }
 0x4c1   : > { %v10388_v29 = vpop.eup %10387  ;;  %v1326_v13 = vpop.xlane.xlu0 %1325 }
 0x4c2   : > { %10391 = vrcp.f32 %v1326_v13  ;;  %2205 = vrot.lane.b32.xlu0 %v11826_v18, %s11111_s16  ;;  %v1400_v16 = vmul.f32 %v10388_v29, %v12068_v45  ;;  %16257 = vst [vmem:[#allocation39_spill] sm:$0xff] %v12207_v4  ;;  %v12219_v45 = vpack.c.bf16 %v624_v8, %v624_v8  ;;  %v614_v8 = vadd.f32 %v11796_v26, %v11891_v33  ;;  %v16264_v26 = vld [vmem:[#allocation38_spill] sm:$0xff] }
 0x4c3   : > { %v1329_v37 = vpop.xlane.xlu1 %1328  ;;  %2135 = vrot.lane.b32.xlu1 %v11802_v15, %s11111_s16 }
 0x4c4   : > { %10393 = vrcp.f32 %v1329_v37  ;;  %v1420_v53 = vpack.c.bf16 %v1400_v16, %v1399_v36  ;;  %16258 = vst [vmem:[#allocation40_spill] sm:$0xff] %v12219_v45 }
 0x4c6   : > { %2133 = vrot.lane.b32.xlu0 %v11809_v31, %s11112_s17  ;;  %9402 = vmatprep.mubr.msk.bf16.mxu1 %vm1188_vm3, %v1420_v53 }
 0x4c7   : > { %2131 = vrot.lane.b32.xlu1 %v11802_v15, %s11112_s17  ;;  %9403 = vmatmul.mubr.msk.bf16.vlgmr.msra.gmra.mxu1 %vm1188_vm3, %v1421_v19 }
 0x4c8   : > { %9415 = vmatpush3.bf16.msra.mxu1 %v1570_v23  ;;  %v618_v23 = vadd.f32 %v11800_v7, %v11891_v33  ;;  %v16265_v7 = vld [vmem:[#allocation28_spill] sm:$0xff] }
 0x4c9   : > { %9416 = vmatprep.subr.bf16.mxu1 %v12207_v4 }
 0x4ca   : > { %2273 = vrot.lane.b32.xlu0 %v11845_v5, %s11111_s16 }
 0x4cb   : > { %2203 = vrot.lane.b32.xlu1 %v11819_v24, %s11111_s16  ;;  %v10390_v30 = vpop.eup %10389 }
 0x4cc   : > { %9417 = vmatpush3.bf16.msra.mxu1 %v12207_v4  ;;  %v1404_v28 = vmul.f32 %v10390_v30, %v12072_v25  ;;  %v12244_v25 = vpack.c.bf16 %v604_v10, %v598_v34  ;;  %v16261_v10 = vld [vmem:[#allocation36_spill] sm:$0xff]  ;;  %v12281_v34 = vpack.c.bf16 %v618_v23, %v614_v8 }
 0x4cd   : > { %9999 = vmatprep.subr.msk.bf16.mxu1 %vm1454_vm2, %v12219_v45 }
 0x4ce   : > { %2201 = vrot.lane.b32.xlu0 %v11826_v18, %s11112_s17  ;;  %v1423_v29 = vpack.c.bf16 %v1404_v28, %v1404_v28  ;;  %16259 = vst [vmem:[#allocation41_spill] sm:$0xff] %v12244_v25  ;;  %16262 = vst [vmem:[#allocation36_spill] sm:$0xff] %v12281_v34 }
 0x4cf   : > { %v10392_v27 = vpop.eup %10391  ;;  %2199 = vrot.lane.b32.xlu1 %v11819_v24, %s11112_s17 }
 0x4d0   : > { %v1402_v44 = vmul.f32 %v10392_v27, %v12076_v49  ;;  %v638_v49 = vadd.f32 %v11824_v6, %v11891_v33 }
 0x4d1   : > { %v10394_v52 = vpop.eup %10393 }
 0x4d2   : > { %2267 = vrot.lane.b32.xlu0 %v11836_v3, %s11112_s17  ;;  %v1403_v9 = vmul.f32 %v10394_v52, %v12081_v1  ;;  %v12256_v39 = vpack.c.bf16 %v638_v49, %v638_v49 }
 0x4d3   : > { %2271 = vrot.lane.b32.xlu1 %v11836_v3, %s11111_s16  ;;  %v1338_v6 = vpop.xlane.xlu0 %1337 }
 0x4d4   : > { %v1422_v55 = vpack.c.bf16 %v1403_v9, %v1402_v44  ;;  %16260 = vst [vmem:[#allocation42_spill] sm:$0xff] %v12256_v39 }
 0x4d6   : > { %2626 = vrot.lane.b32.xlu0 %v11912_v47, %s11112_s17  ;;  %9410 = vmatprep.mubr.msk.bf16.mxu0 %vm1188_vm3, %v1422_v55 }
 0x4d7   : > { %2269 = vrot.lane.b32.xlu1 %v11845_v5, %s11112_s17  ;;  %9411 = vmatmul.mubr.msk.bf16.vlgmr.msra.gmra.mxu0 %vm1188_vm3, %v1423_v29 }
 0x4d8   : > { %9423 = vmatpush3.bf16.msra.mxu0 %v1627_v46  ;;  %v628_v46 = vadd.f32 %v16265_v7, %v11891_v33 }
 0x4d9   : > { %9424 = vmatprep.subr.bf16.mxu0 %v12244_v25 }
 0x4da   : > { %2690 = vrot.lane.b32.xlu0 %v11899_v63, %s11112_s17 }
 0x4db   : > { %2624 = vrot.lane.b32.xlu1 %v11935_v50, %s11112_s17 }
 0x4dc   : > { %9425 = vmatpush3.bf16.msra.mxu0 %v12244_v25 }
 0x4dd   : > { %10000 = vmatprep.subr.msk.bf16.mxu0 %vm1454_vm2, %v12256_v39  ;;  %v1350_v1 = vpop.xlane.xlu0 %1349 }
 0x4de   : > { %2688 = vrot.lane.b32.xlu0 %v11915_v56, %s11112_s17 }
 0x4df   : > { %2754 = vrot.lane.b32.xlu1 %v11944_v48, %s11112_s17 }
 0x4e1   : > { %v1344_v41 = vpop.xlane.xlu0 %1343 }
 0x4e2   : > { %2752 = vrot.lane.b32.xlu0 %v12207_v4, %s11112_s17 }
 0x4e3   : > { %2818 = vrot.lane.b32.xlu1 %v11928_v2, %s11112_s17 }
 0x4e7   : > { %v1341_v13 = vpop.xlane.xlu1 %1340  ;;  %2816 = vrot.lane.b32.xlu1 %v12244_v25, %s11112_s17 }
 0x4e8   : > { %10395 = vrcp.f32 %v1341_v13  ;;  %v1684_v13 = vsel %vm1454_vm2, %v12219_v45, 0 }
 0x4e9   : > { %10397 = vrcp.f32 %v1338_v6  ;;  %v16267_v6 = vld [vmem:[#allocation32_spill] sm:$0xff] }
 0x4eb   : > { %v1335_v36 = vpop.xlane.xlu1 %1334 }
 0x4ec   : > { %10399 = vrcp.f32 %v1335_v36 }
 0x4ed   : > { %10401 = vrcp.f32 %v1350_v1  ;;  %v654_v1 = vadd.f32 %v16267_v6, %v11891_v33  ;;  %v16269_v6 = vld [vmem:[#allocation31_spill] sm:$0xff] }
 0x4ee   : > { %10403 = vrcp.f32 %v1344_v41 }
 0x4ef   : > { %v1347_v16 = vpop.xlane.xlu1 %1346 }
 0x4f0   : > { %10405 = vrcp.f32 %v1347_v16 }
 0x4f5   : > { %v10396_v61 = vpop.eup %10395 }
 0x4f6   : > { %v10398_v57 = vpop.eup %10397  ;;  %v1407_v53 = vmul.f32 %v10396_v61, %v12102_v42  ;;  %v16263_v42 = vld [vmem:[#allocation37_spill] sm:$0xff]  ;;  %v12299_v61 = vpack.c.bf16 %v654_v1, %v654_v1  ;;  %v648_v1 = vadd.f32 %v16269_v6, %v11891_v33 }
 0x4f7   : > { %v1406_v27 = vmul.f32 %v10398_v57, %v12087_v20  ;;  %v1741_v57 = vsel %vm1454_vm2, %v12256_v39, 0 }
 0x4f8   : > { %v1425_v9 = vpack.c.bf16 %v1407_v53, %v1407_v53 }
 0x4f9   : > { %v10400_v37 = vpop.eup %10399 }
 0x4fa   : > { %v10402_v19 = vpop.eup %10401  ;;  %v1405_v30 = vmul.f32 %v10400_v37, %v12106_v22  ;;  %v16266_v22 = vld [vmem:[#allocation29_spill] sm:$0xff] }
 0x4fb   : > { %v10404_v52 = vpop.eup %10403  ;;  %v1410_v55 = vmul.f32 %v10402_v19, %v16261_v10  ;;  %v634_v20 = vadd.f32 %v16266_v22, %v11891_v33  ;;  %v16268_v22 = vld [vmem:[#allocation30_spill] sm:$0xff] }
 0x4fc   : > { %v1424_v28 = vpack.c.bf16 %v1406_v27, %v1405_v30  ;;  %v1408_v29 = vmul.f32 %v10404_v52, %v16263_v42 }
 0x4fd   : > { %v10406_v44 = vpop.eup %10405  ;;  %v1427_v36 = vpack.c.bf16 %v1410_v55, %v1410_v55  ;;  %v12297_v16 = vpack.c.bf16 %v634_v20, %v628_v46  ;;  %v644_v20 = vadd.f32 %v16268_v22, %v11891_v33  ;;  %v1798_v33 = vsel %vm1454_vm2, %v12299_v61, 0 }
 0x4fe   : > { %9418 = vmatprep.mubr.msk.bf16.mxu1 %vm1188_vm3, %v1424_v28  ;;  %v1409_v49 = vmul.f32 %v10406_v44, %v16264_v26 }
 0x4ff   : > { %9419 = vmatmul.mubr.msk.bf16.vlgmr.msra.gmra.mxu1 %vm1188_vm3, %v1425_v9 }
 0x500   : > { %9431 = vmatpush3.bf16.msra.mxu1 %v1684_v13  ;;  %v1426_v41 = vpack.c.bf16 %v1409_v49, %v1408_v29 }
 0x501   : > { %9432 = vmatprep.subr.bf16.mxu1 %v12281_v34 }
 0x502   : > { %9426 = vmatprep.mubr.msk.bf16.mxu0 %vm1188_vm3, %v1426_v41 }
 0x503   : > { %9427 = vmatmul.mubr.msk.bf16.vlgmr.msra.gmra.mxu0 %vm1188_vm3, %v1427_v36 }
 0x504   : > { %9433 = vmatpush3.bf16.msra.mxu1 %v12281_v34  ;;  %9439 = vmatpush3.bf16.msra.mxu0 %v1741_v57 }
 0x505   : > { %9440 = vmatprep.subr.bf16.mxu0 %v12297_v16  ;;  %10001 = vmatprep.subr.msk.bf16.mxu1 %vm1454_vm2, %v12299_v61  ;;  %v1356_v37 = vpop.xlane.xlu0 %1355 }
 0x508   : > { %9441 = vmatpush3.bf16.msra.mxu0 %v12297_v16 }
 0x509   : > { %v1368_v53 = vpop.xlane.xlu0 %1367 }
 0x50b   : > { %v1359_v19 = vpop.xlane.xlu1 %1358 }
 0x50c   : > { %10407 = vrcp.f32 %v1359_v19 }
 0x50d   : > { %v1362_v8 = vpop.xlane.xlu0 %1361  ;;  %10409 = vrcp.f32 %v1356_v37 }
 0x50f   : > { %v1353_v23 = vpop.xlane.xlu1 %1352 }
 0x510   : > { %10411 = vrcp.f32 %v1353_v23 }
 0x511   : > { %v1371_v30 = vpop.xlane.xlu0 %1370 }
 0x512   : > { %10413 = vrcp.f32 %v1371_v30 }
 0x513   : > { %10415 = vrcp.f32 %v1368_v53  ;;  %v1374_v27 = vpop.xlane.xlu1 %1373 }
 0x514   : > { %10417 = vrcp.f32 %v1374_v27 }
 0x515   : > { %10419 = vrcp.f32 %v1362_v8  ;;  %v1377_v52 = vpop.xlane.xlu0 %1376  ;;  %v12322_v8 = vpack.c.bf16 %v648_v1, %v644_v20 }
 0x516   : > { %10421 = vrcp.f32 %v1377_v52 }
 0x517   : > { %v1365_v28 = vpop.xlane.xlu1 %1364  ;;  %16270 = vst [vmem:[#allocation37_spill] sm:$0xff] %v12322_v8 }
 0x518   : > { %10423 = vrcp.f32 %v1365_v28 }
 0x519   : > { %v1864_v44 = vpop.permute.xlu0 %1863  ;;  %v10408_v9 = vpop.eup %10407 }
 0x51a   : > { %v10410_v10 = vpop.eup %10409  ;;  %v1413_v26 = vmul.f32 %v10408_v9, %v12133_v0  ;;  %v1874_v6 = vsel %vm689_vm1, %v1864_v44, 0 }
 0x51b   : > { %v1866_v55 = vpop.permute.xlu1 %1865  ;;  %v1412_v7 = vmul.f32 %v10410_v10, %v12123_v51 }
 0x51c   : > { %10002 = vmatprep.subr.msk.bf16.mxu0 %vm689_vm1, %v1866_v55  ;;  %v1429_v53 = vpack.c.bf16 %v1413_v26, %v1413_v26 }
 0x51d   : > { %v10412_v42 = vpop.eup %10411  ;;  %v12310_v29 = vpop.permute.xlu0 %1861 }
 0x51e   : > { %v1411_v49 = vmul.f32 %v10412_v42, %v12137_v59 }
 0x51f   : > { %v10414_v46 = vpop.eup %10413  ;;  %v1934_v13 = vpop.permute.xlu1 %1933 }
 0x520   : > { %v10416_v41 = vpop.eup %10415  ;;  %v1428_v36 = vpack.c.bf16 %v1412_v7, %v1411_v49  ;;  %v1417_v0 = vmul.f32 %v10414_v46, %v12141_v17 }
 0x521   : > { %v10418_v57 = vpop.eup %10417  ;;  %v2002_v37 = vpop.permute.xlu0 %2001  ;;  %v1416_v28 = vmul.f32 %v10416_v41, %v12127_v43 }
 0x522   : > { %v10420_v19 = vpop.eup %10419  ;;  %9434 = vmatprep.mubr.msk.bf16.mxu1 %vm1188_vm3, %v1428_v36  ;;  %v1418_v51 = vmul.f32 %v10418_v57, %v12145_v38  ;;  %v2013_v57 = vsel %vm689_vm1, %v2002_v37, 0 }
 0x523   : > { %v10422_v59 = vpop.eup %10421  ;;  %v1860_v23 = vpop.permute.xlu1 %1859  ;;  %9435 = vmatmul.mubr.msk.bf16.vlgmr.msra.gmra.mxu1 %vm1188_vm3, %v1429_v53  ;;  %v1414_v38 = vmul.f32 %v10420_v19, %v12129_v11  ;;  %v1431_v49 = vpack.c.bf16 %v1416_v28, %v1416_v28  ;;  %v1877_v11 = vsel %vm689_vm1, %v1866_v55, 0 }
 0x524   : > { %9447 = vmatpush3.bf16.msra.mxu1 %v1798_v33  ;;  %v1432_v30 = vpack.c.bf16 %v1418_v51, %v1417_v0  ;;  %v1419_v17 = vmul.f32 %v10422_v59, %v12149_v40  ;;  %v1945_v40 = vsel %vm689_vm1, %v1934_v13, 0 }
 0x525   : > { %v10424_v27 = vpop.eup %10423  ;;  %9448 = vmatprep.subr.bf16.mxu1 %v12322_v8  ;;  %v1930_v52 = vpop.permute.xlu0 %1929 }
 0x526   : > { %9450 = vmatprep.mubr.msk.bf16.mxu1 %vm1188_vm3, %v1432_v30  ;;  %v1415_v9 = vmul.f32 %v10424_v27, %v12153_v54  ;;  %v1433_v7 = vpack.c.bf16 %v1419_v17, %v1419_v17 }
 0x527   : > { %v1932_v10 = vpop.permute.xlu1 %1931 }
 0x528   : > { %9449 = vmatpush3.bf16.msra.mxu1 %v12322_v8  ;;  %v1430_v42 = vpack.c.bf16 %v1415_v9, %v1414_v38  ;;  %v1942_v55 = vsel %vm689_vm1, %v1932_v10, 0 }
 0x529   : > { %10004 = vmatprep.subr.msk.bf16.mxu1 %vm689_vm1, %v1934_v13  ;;  %v2070_v26 = vpop.permute.xlu0 %2069 }
 0x52a   : > { %9442 = vmatprep.mubr.msk.bf16.mxu0 %vm1188_vm3, %v1430_v42 }
 0x52b   : > { %v1928_v43 = vpop.permute.xlu1 %1927  ;;  %9443 = vmatmul.mubr.msk.bf16.vlgmr.msra.gmra.mxu0 %vm1188_vm3, %v1431_v49  ;;  %9451 = vmatmul.mubr.msk.bf16.vlgmr.msra.gmra.mxu1 %vm1188_vm3, %v1433_v7 }
 0x52c   : > { %9455 = vmatpush3.bf16.xpose.msra.mxu0 %v1877_v11  ;;  %9463 = vmatpush3.bf16.xpose.msra.mxu1 %v1945_v40 }
 0x52d   : > { %10003 = vmatprep.subr.msk.bf16.mxu0 %vm689_vm1, %v1864_v44  ;;  %9458 = vmatprep.mubr.msk.bf16.mxu0 %vm689_vm1, %v1860_v23  ;;  %v1998_v54 = vpop.permute.xlu0 %1997  ;;  %v2081_v44 = vsel %vm689_vm1, %v2070_v26, 0 }
 0x52e   : > { %10005 = vmatprep.subr.msk.bf16.mxu1 %vm689_vm1, %v1932_v10  ;;  %9466 = vmatprep.mubr.msk.bf16.mxu1 %vm689_vm1, %v1928_v43 }
 0x52f   : > { %v2000_v46 = vpop.permute.xlu1 %1999 }
 0x530   : > { %v2010_v51 = vsel %vm689_vm1, %v2000_v46, 0 }
 0x531   : > { %v2138_v22 = vpop.permute.xlu0 %2137 }
 0x532   : > { %v2149_v30 = vsel %vm689_vm1, %v2138_v22, 0 }
 0x533   : > { %v1996_v20 = vpop.permute.xlu1 %1995 }
 0x534   : > { %9457 = vmatpush3.bf16.xpose.msra.mxu0 %v1874_v6  ;;  %9465 = vmatpush3.bf16.xpose.msra.mxu1 %v1942_v55 }
 0x535   : > { %10006 = vmatprep.subr.msk.bf16.mxu0 %vm689_vm1, %v2002_v37  ;;  %10008 = vmatprep.subr.msk.bf16.mxu1 %vm689_vm1, %v2070_v26  ;;  %v2066_v1 = vpop.permute.xlu0 %2065 }
 0x537   : > { %v2068_v13 = vpop.permute.xlu1 %2067 }
 0x538   : > { %v2078_v37 = vsel %vm689_vm1, %v2068_v13, 0 }
 0x539   : > { %v2206_v41 = vpop.permute.xlu0 %2205 }
 0x53a   : > { %v2217_v27 = vsel %vm689_vm1, %v2206_v41, 0 }
 0x53b   : > { %9459 = vmatmul.mubr.msk.bf16.vlgmr.msra.gmra.mxu0 %vm689_vm1, %v12310_v29  ;;  %9467 = vmatmul.mubr.msk.bf16.vlgmr.msra.gmra.mxu1 %vm689_vm1, %v1930_v52  ;;  %v2064_v36 = vpop.permute.xlu1 %2063 }
 0x53c   : > { %9471 = vmatpush3.bf16.xpose.msra.mxu0 %v2013_v57  ;;  %9474 = vmatprep.mubr.msk.bf16.mxu0 %vm689_vm1, %v1996_v20 }
 0x53d   : > { %9479 = vmatpush3.bf16.xpose.msra.mxu1 %v2081_v44  ;;  %10007 = vmatprep.subr.msk.bf16.mxu0 %vm689_vm1, %v2000_v46  ;;  %v2134_v53 = vpop.permute.xlu0 %2133 }
 0x53e   : > { %10009 = vmatprep.subr.msk.bf16.mxu1 %vm689_vm1, %v2068_v13  ;;  %9482 = vmatprep.mubr.msk.bf16.mxu1 %vm689_vm1, %v2064_v36 }
 0x53f   : > { %v2136_v19 = vpop.permute.xlu1 %2135 }
 0x540   : > { %v2146_v17 = vsel %vm689_vm1, %v2136_v19, 0 }
 0x541   : > { %v2274_v29 = vpop.permute.xlu0 %2273 }
 0x542   : > { %v2285_v42 = vsel %vm689_vm1, %v2274_v29, 0 }
 0x543   : > { %v2132_v0 = vpop.permute.xlu1 %2131 }
 0x544   : > { %9473 = vmatpush3.bf16.xpose.msra.mxu0 %v2010_v51 }
 0x545   : > { %9481 = vmatpush3.bf16.xpose.msra.mxu1 %v2078_v37  ;;  %10010 = vmatprep.subr.msk.bf16.mxu0 %vm689_vm1, %v2138_v22  ;;  %v2202_v23 = vpop.permute.xlu0 %2201 }
 0x546   : > { %10012 = vmatprep.subr.msk.bf16.mxu1 %vm689_vm1, %v2206_v41 }
 0x547   : > { %v2204_v59 = vpop.permute.xlu1 %2203 }
 0x548   : > { %v2214_v38 = vsel %vm689_vm1, %v2204_v59, 0 }
 0x549   : > { %v2268_v52 = vpop.permute.xlu0 %2267 }
 0x54b   : > { %9475 = vmatmul.mubr.msk.bf16.vlgmr.msra.gmra.mxu0 %vm689_vm1, %v1998_v54  ;;  %v2200_v33 = vpop.permute.xlu1 %2199 }
 0x54c   : > { %9483 = vmatmul.mubr.msk.bf16.vlgmr.msra.gmra.mxu1 %vm689_vm1, %v2066_v1  ;;  %9487 = vmatpush3.bf16.xpose.msra.mxu0 %v2149_v30 }
 0x54d   : > { %9490 = vmatprep.mubr.msk.bf16.mxu0 %vm689_vm1, %v2132_v0  ;;  %9495 = vmatpush3.bf16.xpose.msra.mxu1 %v2217_v27  ;;  %v2627_v9 = vpop.permute.xlu0 %2626 }
 0x54e   : > { %10011 = vmatprep.subr.msk.bf16.mxu0 %vm689_vm1, %v2136_v19  ;;  %10013 = vmatprep.subr.msk.bf16.mxu1 %vm689_vm1, %v2204_v59  ;;  %v2636_v26 = vsel %vm1454_vm2, %v2627_v9, 0 }
 0x54f   : > { %9498 = vmatprep.mubr.msk.bf16.mxu1 %vm689_vm1, %v2200_v33  ;;  %v2272_v28 = vpop.permute.xlu1 %2271 }
 0x550   : > { %v2282_v43 = vsel %vm689_vm1, %v2272_v28, 0 }
 0x551   : > { %v12379_v7 = vpop.permute.xlu0 %2690 }
 0x553   : > { %v2270_v10 = vpop.permute.xlu1 %2269 }
 0x554   : > { %9489 = vmatpush3.bf16.xpose.msra.mxu0 %v2146_v17 }
 0x555   : > { %9497 = vmatpush3.bf16.xpose.msra.mxu1 %v2214_v38  ;;  %10014 = vmatprep.subr.msk.bf16.mxu0 %vm689_vm1, %v2274_v29  ;;  %v12385_v40 = vpop.permute.xlu0 %2688 }
 0x556   : > { %10016 = vmatprep.subr.msk.bf16.mxu1 %vm1454_vm2, %v2627_v9 }
 0x557   : > { %v2625_v49 = vpop.permute.xlu1 %2624 }
 0x559   : > { %v2753_v46 = vpop.permute.xlu0 %2752 }
 0x55b   : > { %9491 = vmatmul.mubr.msk.bf16.vlgmr.msra.gmra.mxu0 %vm689_vm1, %v2134_v53  ;;  %v2755_v11 = vpop.permute.xlu1 %2754 }
 0x55c   : > { %9499 = vmatmul.mubr.msk.bf16.vlgmr.msra.gmra.mxu1 %vm689_vm1, %v2202_v23  ;;  %9503 = vmatpush3.bf16.xpose.msra.mxu0 %v2285_v42  ;;  %v2764_v54 = vsel %vm1454_vm2, %v2755_v11, 0 }
 0x55d   : > { %9506 = vmatprep.mubr.msk.bf16.mxu0 %vm689_vm1, %v2268_v52  ;;  %9511 = vmatpush3.bf16.msra.mxu1 %v2636_v26 }
 0x55e   : > { %10015 = vmatprep.subr.msk.bf16.mxu0 %vm689_vm1, %v2272_v28  ;;  %9512 = vmatprep.subr.bf16.mxu1 %v2625_v49 }
 0x561   : > { %9513 = vmatpush3.bf16.msra.mxu1 %v2625_v49 }
 0x562   : > { %10017 = vmatprep.subr.msk.bf16.mxu1 %vm1454_vm2, %v12379_v7 }
 0x564   : > { %9505 = vmatpush3.bf16.xpose.msra.mxu0 %v2282_v43 }
 0x565   : > { %10018 = vmatprep.subr.msk.bf16.mxu0 %vm1454_vm2, %v2755_v11 }
 0x56b   : > { %9507 = vmatmul.mubr.msk.bf16.vlgmr.msra.gmra.mxu0 %vm689_vm1, %v2270_v10 }
 0x56c   : > { %9527 = vmatpush3.bf16.msra.mxu0 %v2764_v54 }
 0x56d   : > { %9528 = vmatprep.subr.bf16.mxu0 %v2753_v46 }
 0x570   : > { %9529 = vmatpush3.bf16.msra.mxu0 %v2753_v46 }
 0x587   : > { %v12389_v22 = vpop.f32.mrf.mxu1 }
 0x588   : > { %16271 = vst [vmem:[#allocation38_spill] sm:$0xff] %v12389_v22 }
 0x589   : > { %v12391_v20 = vpop.f32.mrf.mxu1 }
 0x58b   : > { %v9405_v6 = vpop.f32.mrf.mxu1 }
 0x58d   : > { %v12399_v36 = vpop.f32.mrf.mxu1 }
 0x597   : > { %v12393_v55 = vpop.f32.mrf.mxu0 }
 0x598   : > { %16272 = vst [vmem:[#allocation28_spill] sm:$0xff] %v12393_v55 }
 0x599   : > { %v12395_v1 = vpop.f32.mrf.mxu0 }
 0x59a   : > { %16273 = vst [vmem:[#allocation29_spill] sm:$0xff] %v12395_v1 }
 0x59b   : > { %v9413_v41 = vpop.f32.mrf.mxu0 }
 0x59d   : > { %v12403_v44 = vpop.f32.mrf.mxu0 }
 0x59e   : > { %16275 = vst [vmem:[#allocation30_spill] sm:$0xff] %v12403_v44 }
 0x5bf   : > { %v12401_v57 = vpop.f32.mrf.mxu1 }
 0x5c0   : > { %16274 = vst [vmem:[#allocation32_spill] sm:$0xff] %v12401_v57 }
 0x5c1   : > { %v12405_v53 = vpop.f32.mrf.mxu1 }
 0x5c2   : > { %16276 = vst [vmem:[#allocation31_spill] sm:$0xff] %v12405_v53 }
 0x5c3   : > { %v9421_v19 = vpop.f32.mrf.mxu1  ;;  %v12407_v29 = vpop.f32.mrf.mxu0 }
 0x5c4   : > { %16277 = vst [vmem:[#allocation43_spill] sm:$0xff] %v12407_v29  ;;  %v16290_v19 = vld [vmem:[#allocation2_spill] sm:$0xff] }
 0x5c5   : > { %v12409_v0 = vpop.f32.mrf.mxu0  ;;  %v12413_v59 = vpop.f32.mrf.mxu1 }
 0x5c6   : > { %16278 = vst [vmem:[#allocation44_spill] sm:$0xff] %v12409_v0  ;;  %16279 = vst [vmem:[#allocation45_spill] sm:$0xff] %v12413_v59 }
 0x5c7   : > { %v9429_v37 = vpop.f32.mrf.mxu0 }
 0x5c9   : > { %v12419_v27 = vpop.f32.mrf.mxu0 }
 0x5ca   : > { %16282 = vst [vmem:[#allocation48_spill] sm:$0xff] %v12419_v27 }
 0x5e3   : > { %v12415_v23 = vpop.f32.mrf.mxu1 }
 0x5e4   : > { %16280 = vst [vmem:[#allocation46_spill] sm:$0xff] %v12415_v23 }
 0x5e5   : > { %v12417_v33 = vpop.f32.mrf.mxu1 }
 0x5e6   : > { %16281 = vst [vmem:[#allocation47_spill] sm:$0xff] %v12417_v33 }
 0x5e7   : > { %v9437_v30 = vpop.f32.mrf.mxu1 }
 0x5e9   : > { %v12421_v52 = vpop.f32.mrf.mxu1 }
 0x5ea   : > { %16283 = vst [vmem:[#allocation49_spill] sm:$0xff] %v12421_v52 }
 0x5eb   : > { %v12423_v28 = vpop.f32.mrf.mxu0  ;;  %v12425_v17 = vpop.f32.mrf.mxu1 }
 0x5ec   : > { %16284 = vst [vmem:[#allocation50_spill] sm:$0xff] %v12423_v28  ;;  %16285 = vst [vmem:[#allocation51_spill] sm:$0xff] %v12425_v17 }
 0x5ed   : > { %v12427_v38 = vpop.f32.mrf.mxu0  ;;  %v12429_v9 = vpop.f32.mrf.mxu1 }
 0x5ee   : > { %16286 = vst [vmem:[#allocation52_spill] sm:$0xff] %v12427_v38  ;;  %16287 = vst [vmem:[#allocation53_spill] sm:$0xff] %v12429_v9 }
 0x5ef   : > { %v9445_v42 = vpop.f32.mrf.mxu0  ;;  %v9453_v26 = vpop.f32.mrf.mxu1 }
 0x5f1   : > { %v12433_v49 = vpop.f32.mrf.mxu0  ;;  %v12435_v43 = vpop.f32.mrf.mxu1 }
 0x5f2   : > { %16288 = vst [vmem:[#allocation54_spill] sm:$0xff] %v12433_v49  ;;  %16289 = vst [vmem:[#allocation55_spill] sm:$0xff] %v12435_v43 }
 0x5fb   : > { %v9460_v11 = vpop.f32.mrf.mxu0  ;;  %v9468_v54 = vpop.f32.mrf.mxu1 }
 0x5fc   : > { %v2340_v46 = vmul.f32 0.25, %v9468_v54  ;;  %v2337_v4 = vmul.f32 0.25, %v9460_v11 }
 0x5fd   : > { %v1913_v6 = vpop.f32.mrf.mxu0  ;;  %v1981_v41 = vpop.f32.mrf.mxu1 }
 0x5fe   : > { %v12438_v37 = vadd.f32 %v16290_v19, %v2340_v46  ;;  %v2338_v30 = vmul.f32 0.25, %v1981_v41  ;;  %v12446_v17 = vadd.f32 %v16290_v19, %v2337_v4  ;;  %v2335_v46 = vmul.f32 0.25, %v1913_v6 }
 0x5ff   : > { %v9461_v51 = vpop.f32.mrf.mxu0  ;;  %v9469_v13 = vpop.f32.mrf.mxu1 }
 0x600   : > { %v12441_v10 = vadd.f32 %v16290_v19, %v2338_v30  ;;  %v2392_v42 = vsel %vm1188_vm3, %v12438_v37, -inf  ;;  %v2383_v4 = vsel %vm1188_vm3, %v12446_v17, -inf }
 0x601   : > { %v1916_v26 = vpop.f32.mrf.mxu0  ;;  %2393 = vmax.xlane.f32.xlu0 %v2392_v42  ;;  %v1984_v25 = vpop.f32.mrf.mxu1 }
 0x602   : > { %v2336_v2 = vmul.f32 0.25, %v1916_v26  ;;  %v2339_v54 = vmul.f32 0.25, %v1984_v25  ;;  %v2386_v13 = vsel %vm1188_vm3, %v12441_v10, -inf  ;;  %v12459_v25 = vadd.f32 %v16290_v19, %v2335_v46 }
 0x604   : > { %v12449_v41 = vadd.f32 %v16290_v19, %v2339_v54  ;;  %v12454_v51 = vadd.f32 %v16290_v19, %v2336_v2  ;;  %v2377_v2 = vsel %vm1188_vm3, %v12459_v25, -inf }
 0x605   : > { %2387 = vmax.xlane.f32.xlu0 %v2386_v13 }
 0x606   : > { %v2389_v11 = vsel %vm1188_vm3, %v12449_v41, -inf  ;;  %v2380_v6 = vsel %vm1188_vm3, %v12454_v51, -inf }
 0x607   : > { %2390 = vmax.xlane.f32.xlu1 %v2389_v11 }
 0x609   : > { %2384 = vmax.xlane.f32.xlu0 %v2383_v4 }
 0x60b   : > { %2381 = vmax.xlane.f32.xlu1 %v2380_v6  ;;  %v9476_v30 = vpop.f32.mrf.mxu0 }
 0x60c   : > { %v9484_v42 = vpop.f32.mrf.mxu1 }
 0x60d   : > { %v2346_v26 = vmul.f32 0.25, %v9484_v42  ;;  %2378 = vmax.xlane.f32.xlu0 %v2377_v2  ;;  %v2049_v54 = vpop.f32.mrf.mxu0  ;;  %v2343_v42 = vmul.f32 0.25, %v9476_v30 }
 0x60e   : > { %v2117_v13 = vpop.f32.mrf.mxu1 }
 0x60f   : > { %v12468_v46 = vadd.f32 %v16290_v19, %v2346_v26  ;;  %v2344_v11 = vmul.f32 0.25, %v2117_v13  ;;  %v9477_v43 = vpop.f32.mrf.mxu0  ;;  %v2341_v13 = vmul.f32 0.25, %v2049_v54 }
 0x610   : > { %v9485_v9 = vpop.f32.mrf.mxu1  ;;  %v12484_v43 = vadd.f32 %v16290_v19, %v2343_v42 }
 0x611   : > { %v12471_v4 = vadd.f32 %v16290_v19, %v2344_v11  ;;  %v2052_v28 = vpop.f32.mrf.mxu0  ;;  %v2410_v6 = vsel %vm1188_vm3, %v12468_v46, -inf }
 0x612   : > { %v2342_v49 = vmul.f32 0.25, %v2052_v28  ;;  %2411 = vmax.xlane.f32.xlu0 %v2410_v6  ;;  %v2120_v23 = vpop.f32.mrf.mxu1  ;;  %v2401_v30 = vsel %vm1188_vm3, %v12484_v43, -inf }
 0x613   : > { %v2345_v2 = vmul.f32 0.25, %v2120_v23  ;;  %v2404_v9 = vsel %vm1188_vm3, %v12471_v4, -inf }
 0x614   : > { %v12476_v38 = vadd.f32 %v16290_v19, %v2342_v49  ;;  %v12491_v49 = vadd.f32 %v16290_v19, %v2341_v13 }
 0x615   : > { %v12479_v26 = vadd.f32 %v16290_v19, %v2345_v2 }
 0x616   : > { %2405 = vmax.xlane.f32.xlu0 %v2404_v9  ;;  %v2398_v23 = vsel %vm1188_vm3, %v12476_v38, -inf  ;;  %v2395_v52 = vsel %vm1188_vm3, %v12491_v49, -inf }
 0x617   : > { %v2407_v28 = vsel %vm1188_vm3, %v12479_v26, -inf }
 0x618   : > { %2408 = vmax.xlane.f32.xlu1 %v2407_v28 }
 0x61a   : > { %2399 = vmax.xlane.f32.xlu0 %v2398_v23 }
 0x61b   : > { %v9492_v11 = vpop.f32.mrf.mxu0 }
 0x61c   : > { %2402 = vmax.xlane.f32.xlu1 %v2401_v30  ;;  %v9500_v6 = vpop.f32.mrf.mxu1  ;;  %v2349_v57 = vmul.f32 0.25, %v9492_v11 }
 0x61d   : > { %v2352_v42 = vmul.f32 0.25, %v9500_v6  ;;  %v2185_v2 = vpop.f32.mrf.mxu0 }
 0x61e   : > { %v2253_v54 = vpop.f32.mrf.mxu1 }
 0x61f   : > { %v12496_v9 = vadd.f32 %v16290_v19, %v2352_v42  ;;  %v2350_v28 = vmul.f32 0.25, %v2253_v54  ;;  %v9493_v23 = vpop.f32.mrf.mxu0 }
 0x620   : > { %2396 = vmax.xlane.f32.xlu1 %v2395_v52  ;;  %v9501_v13 = vpop.f32.mrf.mxu1  ;;  %v2347_v23 = vmul.f32 0.25, %v2185_v2 }
 0x621   : > { %v12501_v33 = vadd.f32 %v16290_v19, %v2350_v28  ;;  %v2188_v29 = vpop.f32.mrf.mxu0  ;;  %v2428_v30 = vsel %vm1188_vm3, %v12496_v9, -inf  ;;  %v12514_v28 = vadd.f32 %v16290_v19, %v2349_v57 }
 0x622   : > { %v2348_v6 = vmul.f32 0.25, %v2188_v29  ;;  %2429 = vmax.xlane.f32.xlu0 %v2428_v30  ;;  %v2256_v27 = vpop.f32.mrf.mxu1  ;;  %v12521_v11 = vadd.f32 %v16290_v19, %v2347_v23 }
 0x623   : > { %v2351_v42 = vmul.f32 0.25, %v2256_v27  ;;  %v2422_v52 = vsel %vm1188_vm3, %v12501_v33, -inf  ;;  %v2419_v13 = vsel %vm1188_vm3, %v12514_v28, -inf }
 0x624   : > { %v12506_v54 = vadd.f32 %v16290_v19, %v2348_v6 }
 0x625   : > { %v12509_v0 = vadd.f32 %v16290_v19, %v2351_v42 }
 0x626   : > { %2423 = vmax.xlane.f32.xlu0 %v2422_v52  ;;  %v2416_v27 = vsel %vm1188_vm3, %v12506_v54, -inf  ;;  %v2413_v52 = vsel %vm1188_vm3, %v12521_v11, -inf }
 0x627   : > { %v2425_v29 = vsel %vm1188_vm3, %v12509_v0, -inf }
 0x628   : > { %2426 = vmax.xlane.f32.xlu1 %v2425_v29 }
 0x62a   : > { %2417 = vmax.xlane.f32.xlu0 %v2416_v27 }
 0x62b   : > { %v9508_v30 = vpop.f32.mrf.mxu0 }
 0x62c   : > { %2420 = vmax.xlane.f32.xlu1 %v2419_v13  ;;  %v2355_v6 = vmul.f32 0.25, %v9508_v30 }
 0x62d   : > { %v2321_v57 = vpop.f32.mrf.mxu0 }
 0x62e   : > { %v12526_v2 = vadd.f32 %v16290_v19, %v2355_v6  ;;  %v2353_v42 = vmul.f32 0.25, %v2321_v57 }
 0x62f   : > { %v9509_v29 = vpop.f32.mrf.mxu0 }
 0x630   : > { %2414 = vmax.xlane.f32.xlu1 %v2413_v52  ;;  %v12531_v27 = vadd.f32 %v16290_v19, %v2353_v42  ;;  %v2437_v23 = vsel %vm1188_vm3, %v12526_v2, -inf  ;;  %v12544_v52 = vpop.permute.xlu1 %2818 }
 0x631   : > { %v2324_v30 = vpop.f32.mrf.mxu0 }
 0x632   : > { %v2431_v13 = vsel %vm1188_vm3, %v12531_v27, -inf  ;;  %v2354_v6 = vmul.f32 0.25, %v2324_v30 }
 0x634   : > { %2438 = vmax.xlane.f32.xlu1 %v2437_v23  ;;  %v12540_v57 = vadd.f32 %v16290_v19, %v2354_v6  ;;  %v12547_v59 = vpop.permute.xlu1 %2816 }
 0x636   : > { %v2434_v42 = vsel %vm1188_vm3, %v12540_v57, -inf }
 0x638   : > { %2432 = vmax.xlane.f32.xlu1 %v2431_v13 }
 0x640   : > { %2882 = vrot.lane.b32.xlu0 %v12219_v45, %s11112_s17 }
 0x65f   : > { %2435 = vmax.xlane.f32.xlu0 %v2434_v42 }
 0x68a   : > { %v2394_v29 = vpop.xlane.xlu0 %2393 }
 0x68b   : > { %v2445_v23 = vsub.f32 %v12438_v37, %v2394_v29 }
 0x68d   : > { %v2471_v13 = vmul.f32 1.442695, %v2445_v23 }
 0x68e   : > { %v2388_v53 = vpop.xlane.xlu0 %2387 }
 0x68f   : > { %10425 = vpow2.f32 %v2471_v13  ;;  %v2443_v45 = vsub.f32 %v12441_v10, %v2388_v53 }
 0x690   : > { %v2391_v30 = vpop.xlane.xlu1 %2390 }
 0x691   : > { %v2467_v55 = vmul.f32 1.442695, %v2443_v45  ;;  %v2444_v6 = vsub.f32 %v12449_v41, %v2391_v30 }
 0x692   : > { %v2385_v19 = vpop.xlane.xlu0 %2384 }
 0x693   : > { %10427 = vpow2.f32 %v2467_v55  ;;  %v2469_v44 = vmul.f32 1.442695, %v2444_v6  ;;  %v2442_v42 = vsub.f32 %v12446_v17, %v2385_v19 }
 0x694   : > { %v2382_v22 = vpop.xlane.xlu1 %2381 }
 0x695   : > { %10429 = vpow2.f32 %v2469_v44  ;;  %v2465_v1 = vmul.f32 1.442695, %v2442_v42  ;;  %v2441_v37 = vsub.f32 %v12454_v51, %v2382_v22 }
 0x696   : > { %v2379_v29 = vpop.xlane.xlu0 %2378 }
 0x697   : > { %10431 = vpow2.f32 %v2465_v1  ;;  %v2463_v23 = vmul.f32 1.442695, %v2441_v37  ;;  %v2440_v13 = vsub.f32 %v12459_v25, %v2379_v29 }
 0x699   : > { %10433 = vpow2.f32 %v2463_v23  ;;  %v2461_v53 = vmul.f32 1.442695, %v2440_v13 }
 0x69b   : > { %10435 = vpow2.f32 %v2461_v53  ;;  %v2412_v45 = vpop.xlane.xlu0 %2411 }
 0x69c   : > { %v12554_v10 = vpop.eup %10425  ;;  %v2451_v55 = vsub.f32 %v12468_v46, %v2412_v45 }
 0x69d   : > { %v2518_v17 = vsel %vm1188_vm3, %v12554_v10, 0.0 }
 0x69e   : > { %v2483_v44 = vmul.f32 1.442695, %v2451_v55  ;;  %2519 = vadd.xlane.f32.xlu1 %v2518_v17 }
 0x69f   : > { %v2406_v19 = vpop.xlane.xlu0 %2405 }
 0x6a0   : > { %v12559_v22 = vpop.eup %10427  ;;  %10437 = vpow2.f32 %v2483_v44  ;;  %v2449_v1 = vsub.f32 %v12471_v4, %v2406_v19 }
 0x6a1   : > { %v2409_v41 = vpop.xlane.xlu1 %2408  ;;  %v2512_v51 = vsel %vm1188_vm3, %v12559_v22, 0.0 }
 0x6a2   : > { %v12564_v25 = vpop.eup %10429  ;;  %v2479_v30 = vmul.f32 1.442695, %v2449_v1  ;;  %v2450_v46 = vsub.f32 %v12479_v26, %v2409_v41  ;;  %2513 = vadd.xlane.f32.xlu1 %v2512_v51 }
 0x6a3   : > { %v2515_v6 = vsel %vm1188_vm3, %v12564_v25, 0.0  ;;  %v2400_v29 = vpop.xlane.xlu0 %2399 }
 0x6a4   : > { %v12569_v42 = vpop.eup %10431  ;;  %10439 = vpow2.f32 %v2479_v30  ;;  %v2481_v37 = vmul.f32 1.442695, %v2450_v46  ;;  %2516 = vadd.xlane.f32.xlu0 %v2515_v6  ;;  %v2447_v53 = vsub.f32 %v12476_v38, %v2400_v29 }
 0x6a5   : > { %v2403_v4 = vpop.xlane.xlu1 %2402  ;;  %v2509_v45 = vsel %vm1188_vm3, %v12569_v42, 0.0 }
 0x6a6   : > { %v12571_v23 = vpop.eup %10433  ;;  %10441 = vpow2.f32 %v2481_v37  ;;  %v2448_v13 = vsub.f32 %v12484_v43, %v2403_v4  ;;  %v2475_v1 = vmul.f32 1.442695, %v2447_v53 }
 0x6a7   : > { %v2506_v26 = vsel %vm1188_vm3, %v12571_v23, 0.0 }
 0x6a8   : > { %v12579_v55 = vpop.eup %10435  ;;  %v2477_v17 = vmul.f32 1.442695, %v2448_v13  ;;  %2507 = vadd.xlane.f32.xlu1 %v2506_v26  ;;  %2510 = vadd.xlane.f32.xlu0 %v2509_v45 }
 0x6a9   : > { %v2397_v44 = vpop.xlane.xlu1 %2396  ;;  %v2503_v38 = vsel %vm1188_vm3, %v12579_v55, 0.0 }
 0x6aa   : > { %10443 = vpow2.f32 %v2477_v17  ;;  %v2446_v19 = vsub.f32 %v12491_v49, %v2397_v44 }
 0x6ab   : > { %v2430_v41 = vpop.xlane.xlu0 %2429 }
 0x6ac   : > { %v2473_v43 = vmul.f32 1.442695, %v2446_v19  ;;  %v2457_v51 = vsub.f32 %v12496_v9, %v2430_v41  ;;  %2504 = vadd.xlane.f32.xlu0 %v2503_v38 }
 0x6ad   : > { %v12585_v30 = vpop.eup %10437 }
 0x6ae   : > { %10445 = vpow2.f32 %v2473_v43  ;;  %v2495_v46 = vmul.f32 1.442695, %v2457_v51  ;;  %v2536_v37 = vsel %vm1188_vm3, %v12585_v30, 0.0 }
 0x6af   : > { %10447 = vpow2.f32 %v2475_v1  ;;  %v2424_v6 = vpop.xlane.xlu0 %2423 }
 0x6b0   : > { %10449 = vpow2.f32 %v2495_v46  ;;  %v2455_v49 = vsub.f32 %v12501_v33, %v2424_v6  ;;  %2537 = vadd.xlane.f32.xlu0 %v2536_v37 }
 0x6b1   : > { %v12590_v29 = vpop.eup %10439  ;;  %v2427_v4 = vpop.xlane.xlu1 %2426 }
 0x6b2   : > { %v2491_v13 = vmul.f32 1.442695, %v2455_v49  ;;  %v2456_v9 = vsub.f32 %v12509_v0, %v2427_v4  ;;  %v2530_v45 = vsel %vm1188_vm3, %v12590_v29, 0.0 }
 0x6b3   : > { %v12593_v53 = vpop.eup %10441  ;;  %v2418_v26 = vpop.xlane.xlu0 %2417 }
 0x6b4   : > { %10451 = vpow2.f32 %v2491_v13  ;;  %v2493_v17 = vmul.f32 1.442695, %v2456_v9  ;;  %v2533_v44 = vsel %vm1188_vm3, %v12593_v53, 0.0  ;;  %2531 = vadd.xlane.f32.xlu0 %v2530_v45 }
 0x6b5   : > { %v2421_v33 = vpop.xlane.xlu1 %2420  ;;  %2534 = vadd.xlane.f32.xlu1 %v2533_v44 }
 0x6b6   : > { %10453 = vpow2.f32 %v2493_v17  ;;  %v2454_v19 = vsub.f32 %v12514_v28, %v2421_v33 }
 0x6b7   : > { %v12600_v1 = vpop.eup %10443  ;;  %v12602_v0 = vpop.permute.xlu0 %2882 }
 0x6b8   : > { %v2489_v41 = vmul.f32 1.442695, %v2454_v19  ;;  %10020 = vmatprep.subr.msk.bf16.mxu0 %vm1454_vm2, %v12602_v0  ;;  %v2527_v38 = vsel %vm1188_vm3, %v12600_v1, 0.0 }
 0x6b9   : > { %v2415_v43 = vpop.xlane.xlu1 %2414  ;;  %2528 = vadd.xlane.f32.xlu1 %v2527_v38  ;;  %v2453_v38 = vsub.f32 %v12506_v54, %v2418_v26 }
 0x6ba   : > { %10455 = vpow2.f32 %v2489_v41  ;;  %v2452_v51 = vsub.f32 %v12521_v11, %v2415_v43 }
 0x6bb   : > { %v12609_v46 = vpop.eup %10445  ;;  %v2487_v43 = vmul.f32 1.442695, %v2453_v38 }
 0x6bc   : > { %v12611_v6 = vpop.eup %10447  ;;  %v2485_v28 = vmul.f32 1.442695, %v2452_v51  ;;  %v2521_v37 = vsel %vm1188_vm3, %v12609_v46, 0.0 }
 0x6bd   : > { %v12615_v49 = vpop.eup %10449  ;;  %2522 = vadd.xlane.f32.xlu1 %v2521_v37  ;;  %v2524_v13 = vsel %vm1188_vm3, %v12611_v6, 0.0  ;;  %v2439_v26 = vpop.xlane.xlu1 %2438 }
 0x6be   : > { %10457 = vpow2.f32 %v2485_v28  ;;  %v2554_v4 = vsel %vm1188_vm3, %v12615_v49, 0.0 }
 0x6bf   : > { %2555 = vadd.xlane.f32.xlu0 %v2554_v4  ;;  %10459 = vpow2.f32 %v2487_v43 }
 0x6c1   : > { %v12621_v11 = vpop.eup %10451  ;;  %2525 = vadd.xlane.f32.xlu1 %v2524_v13 }
 0x6c2   : > { %v2548_v17 = vsel %vm1188_vm3, %v12621_v11, 0.0 }
 0x6c3   : > { %v12623_v9 = vpop.eup %10453 }
 0x6c4   : > { %v2551_v45 = vsel %vm1188_vm3, %v12623_v9, 0.0 }
 0x6c5   : > { %2552 = vadd.xlane.f32.xlu0 %v2551_v45  ;;  %2549 = vadd.xlane.f32.xlu1 %v2548_v17  ;;  %v2433_v17 = vpop.xlane.xlu1 %2432 }
 0x6c7   : > { %v12629_v44 = vpop.eup %10455 }
 0x6c8   : > { %v2545_v33 = vsel %vm1188_vm3, %v12629_v44, 0.0 }
 0x6c9   : > { %2546 = vadd.xlane.f32.xlu0 %v2545_v33 }
 0x6cb   : > { %v12633_v19 = vpop.eup %10457 }
 0x6cc   : > { %v2539_v41 = vsel %vm1188_vm3, %v12633_v19, 0.0  ;;  %v12643_v4 = vpop.eup %10459 }
 0x6cd   : > { %2540 = vadd.xlane.f32.xlu0 %v2539_v41  ;;  %v2542_v13 = vsel %vm1188_vm3, %v12643_v4, 0.0  ;;  %v2458_v41 = vsub.f32 %v12531_v27, %v2433_v17 }
 0x6cf   : > { %v2497_v38 = vmul.f32 1.442695, %v2458_v41 }
 0x6d6   : > { %2946 = vrot.lane.b32.xlu1 %v12256_v39, %s11112_s17 }
 0x6e3   : > { %2880 = vrot.lane.b32.xlu0 %v12281_v34, %s11112_s17 }
 0x6e8   : > { %v2436_v51 = vpop.xlane.xlu0 %2435 }
 0x6e9   : > { %v2459_v28 = vsub.f32 %v12540_v57, %v2436_v51  ;;  %v2460_v57 = vsub.f32 %v12526_v2, %v2439_v26 }
 0x6eb   : > { %v2499_v37 = vmul.f32 1.442695, %v2459_v28  ;;  %v2501_v33 = vmul.f32 1.442695, %v2460_v57 }
 0x6ed   : > { %10461 = vpow2.f32 %v2499_v37 }
 0x6ee   : > { %10463 = vpow2.f32 %v2501_v33 }
 0x6ef   : > { %10465 = vpow2.f32 %v2497_v38 }
 0x6fa   : > { %2543 = vadd.xlane.f32.xlu1 %v2542_v13  ;;  %v12647_v45 = vpop.eup %10461 }
 0x6fb   : > { %v2560_v54 = vsel %vm1188_vm3, %v12647_v45, 0.0  ;;  %v12671_v43 = vpop.eup %10463 }
 0x6fc   : > { %v2563_v28 = vsel %vm1188_vm3, %v12671_v43, 0.0  ;;  %v12677_v37 = vpop.eup %10465 }
 0x6fd   : > { %v2557_v26 = vsel %vm1188_vm3, %v12677_v37, 0.0 }
 0x702   : > { %2561 = vadd.xlane.f32.xlu0 %v2560_v54 }
 0x70b   : > { %2944 = vrot.lane.b32.xlu1 %v12297_v16, %s11112_s17 }
 0x718   : > { %3010 = vrot.lane.b32.xlu0 %v12299_v61, %s11112_s17 }
 0x71c   : > { %3405 = vrot.lane.b32.xlu0 %v11739_v58, %s11113_s1 }
 0x720   : > { %3473 = vrot.lane.b32.xlu0 %v11753_v12, %s11113_s1 }
 0x724   : > { %3401 = vrot.lane.b32.xlu0 %v11739_v58, %s11114_s21 }
 0x727   : > { %v2520_v2 = vpop.xlane.xlu1 %2519 }
 0x728   : > { %3541 = vrot.lane.b32.xlu0 %v11775_v35, %s11113_s1 }
 0x72b   : > { %v2514_v27 = vpop.xlane.xlu1 %2513 }
 0x72c   : > { %3469 = vrot.lane.b32.xlu0 %v11753_v12, %s11114_s21 }
 0x72d   : > { %v2517_v51 = vpop.xlane.xlu0 %2516 }
 0x72f   : > { %2564 = vadd.xlane.f32.xlu1 %v2563_v28 }
 0x730   : > { %3609 = vrot.lane.b32.xlu0 %v11792_v60, %s11113_s1 }
 0x731   : > { %v2508_v13 = vpop.xlane.xlu1 %2507  ;;  %v2511_v54 = vpop.xlane.xlu0 %2510 }
 0x732   : > { %10467 = vrcp.f32 %v2508_v13 }
 0x733   : > { %2558 = vadd.xlane.f32.xlu1 %v2557_v26  ;;  %10469 = vrcp.f32 %v2511_v54 }
 0x734   : > { %3537 = vrot.lane.b32.xlu0 %v11775_v35, %s11114_s21  ;;  %10471 = vrcp.f32 %v2517_v51 }
 0x735   : > { %v2505_v57 = vpop.xlane.xlu0 %2504 }
 0x736   : > { %10473 = vrcp.f32 %v2505_v57 }
 0x737   : > { %10475 = vrcp.f32 %v2514_v27 }
 0x738   : > { %3677 = vrot.lane.b32.xlu0 %v11809_v31, %s11113_s1  ;;  %10477 = vrcp.f32 %v2520_v2 }
 0x739   : > { %v2538_v17 = vpop.xlane.xlu0 %2537 }
 0x73c   : > { %3605 = vrot.lane.b32.xlu0 %v11792_v60, %s11114_s21 }
 0x73d   : > { %v2532_v33 = vpop.xlane.xlu0 %2531 }
 0x73e   : > { %v2535_v41 = vpop.xlane.xlu1 %2534  ;;  %10479 = vrcp.f32 %v2532_v33 }
 0x73f   : > { %10481 = vrcp.f32 %v2535_v41  ;;  %v10468_v38 = vpop.eup %10467 }
 0x740   : > { %3745 = vrot.lane.b32.xlu0 %v11826_v18, %s11113_s1  ;;  %v10470_v51 = vpop.eup %10469  ;;  %10483 = vrcp.f32 %v2538_v17  ;;  %v2588_v26 = vmul.f32 %v10468_v38, %v12571_v23 }
 0x741   : > { %v10472_v28 = vpop.eup %10471  ;;  %v2589_v57 = vmul.f32 %v10470_v51, %v12569_v42 }
 0x742   : > { %v2529_v13 = vpop.xlane.xlu1 %2528  ;;  %v2591_v33 = vmul.f32 %v10472_v28, %v12564_v25 }
 0x743   : > { %v10474_v27 = vpop.eup %10473  ;;  %10485 = vrcp.f32 %v2529_v13  ;;  %v2609_v17 = vpack.c.bf16 %v2589_v57, %v2589_v57 }
 0x744   : > { %v10476_v54 = vpop.eup %10475  ;;  %3008 = vrot.lane.b32.xlu1 %v12322_v8, %s11112_s17  ;;  %3673 = vrot.lane.b32.xlu0 %v11809_v31, %s11114_s21  ;;  %v2587_v2 = vmul.f32 %v10474_v27, %v12579_v55 }
 0x745   : > { %v2590_v35 = vmul.f32 %v10476_v54, %v12559_v22  ;;  %v10478_v8 = vpop.eup %10477  ;;  %v2700_v22 = vsel %vm1454_vm2, %v12379_v7, 0 }
 0x746   : > { %v2523_v41 = vpop.xlane.xlu1 %2522  ;;  %v2608_v60 = vpack.c.bf16 %v2588_v26, %v2587_v2 }
 0x747   : > { %10487 = vrcp.f32 %v2523_v41  ;;  %v2610_v23 = vpack.c.bf16 %v2591_v33, %v2590_v35  ;;  %v2592_v35 = vmul.f32 %v10478_v8, %v12554_v10 }
 0x748   : > { %3403 = vrot.lane.b32.xlu1 %v11732_v21, %s11113_s1  ;;  %3813 = vrot.lane.b32.xlu0 %v11845_v5, %s11113_s1  ;;  %v12705_v42 = vpop.xlane.xlu0 %2555 }
 0x749   : > { %9514 = vmatprep.mubr.msk.bf16.mxu1 %vm1188_vm3, %v2608_v60  ;;  %v2611_v8 = vpack.c.bf16 %v2592_v35, %v2592_v35  ;;  %v10309_v35 = vld [vmem:[%s12657_s20 + $0x8] sm:$0xff]  }
 0x74a   : > { %v2526_v25 = vpop.xlane.xlu1 %2525  ;;  %9515 = vmatmul.mubr.msk.bf16.vlgmr.msra.gmra.mxu1 %vm1188_vm3, %v2609_v17 }
 0x74b   : > { %v10480_v55 = vpop.eup %10479  ;;  %10489 = vrcp.f32 %v2526_v25  ;;  %9519 = vmatpush3.bf16.msra.mxu1 %v2700_v22  ;;  %9522 = vmatprep.mubr.msk.bf16.mxu1 %vm1188_vm3, %v2610_v23 }
 0x74c   : > { %v10482_v38 = vpop.eup %10481  ;;  %9520 = vmatprep.subr.bf16.mxu1 %v12385_v40  ;;  %3399 = vrot.lane.b32.xlu1 %v11732_v21, %s11114_s21  ;;  %v2596_v60 = vmul.f32 %v10480_v55, %v12590_v29 }
 0x74d   : > { %3741 = vrot.lane.b32.xlu0 %v11826_v18, %s11114_s21  ;;  %v2597_v7 = vmul.f32 %v10482_v38, %v12593_v53  ;;  %v10484_v10 = vpop.eup %10483  ;;  %v2828_v53 = vsel %vm1454_vm2, %v12544_v52, 0 }
 0x74e   : > { %v2550_v51 = vpop.xlane.xlu1 %2549  ;;  %v2553_v28 = vpop.xlane.xlu0 %2552  ;;  %v2598_v13 = vmul.f32 %v10484_v10, %v12585_v30 }
 0x74f   : > { %10491 = vrcp.f32 %v2550_v51  ;;  %9521 = vmatpush3.bf16.msra.mxu1 %v12385_v40  ;;  %v2614_v29 = vpack.c.bf16 %v2597_v7, %v2596_v60  ;;  %v16184_v7 = vmov 0.0  }
 0x750   : > { %10493 = vrcp.f32 %v2553_v28  ;;  %10019 = vmatprep.subr.msk.bf16.mxu1 %vm1454_vm2, %v12544_v52  ;;  %3471 = vrot.lane.b32.xlu1 %v11760_v14, %s11113_s1  ;;  %v10486_v27 = vpop.eup %10485  ;;  %v2615_v26 = vpack.c.bf16 %v2598_v13, %v2598_v13 }
 0x751   : > { %3807 = vrot.lane.b32.xlu0 %v11836_v3, %s11114_s21  ;;  %v2595_v57 = vmul.f32 %v10486_v27, %v12600_v1  ;;  %10495 = vrcp.f32 %v12705_v42 }
 0x752   : > { %9523 = vmatmul.mubr.msk.bf16.vlgmr.msra.gmra.mxu1 %vm1188_vm3, %v2611_v8  ;;  %v2547_v40 = vpop.xlane.xlu0 %2546  ;;  %v2947_v2 = vpop.permute.xlu1 %2946 }
 0x753   : > { %9535 = vmatpush3.bf16.msra.mxu1 %v2828_v53  ;;  %9538 = vmatprep.mubr.msk.bf16.mxu1 %vm1188_vm3, %v2614_v29  ;;  %v2613_v25 = vpack.c.bf16 %v2595_v57, %v2595_v57  ;;  %10497 = vrcp.f32 %v2547_v40 }
 0x754   : > { %9536 = vmatprep.subr.bf16.mxu1 %v12547_v59  ;;  %3467 = vrot.lane.b32.xlu1 %v11760_v14, %s11114_s21  ;;  %v10488_v54 = vpop.eup %10487 }
 0x755   : > { %4164 = vrot.lane.b32.xlu0 %v11912_v47, %s11114_s21  ;;  %v2593_v30 = vmul.f32 %v10488_v54, %v12609_v46 }
 0x756   : > { %v2541_v33 = vpop.xlane.xlu0 %2540 }
 0x757   : > { %9537 = vmatpush3.bf16.msra.mxu1 %v12547_v59  ;;  %v2956_v59 = vsel %vm1454_vm2, %v2947_v2, 0  ;;  %10499 = vrcp.f32 %v2541_v33 }
 0x758   : > { %v10490_v52 = vpop.eup %10489  ;;  %10021 = vmatprep.subr.msk.bf16.mxu1 %vm1454_vm2, %v2947_v2  ;;  %3539 = vrot.lane.b32.xlu1 %v11768_v32, %s11113_s1 }
 0x759   : > { %4226 = vrot.lane.b32.xlu0 %v11899_v63, %s11114_s21  ;;  %v2594_v41 = vmul.f32 %v10490_v52, %v12611_v6  ;;  %v2892_v6 = vsel %vm1454_vm2, %v12602_v0, 0 }
 0x75a   : > { %9539 = vmatmul.mubr.msk.bf16.vlgmr.msra.gmra.mxu1 %vm1188_vm3, %v2615_v26  ;;  %v2881_v55 = vpop.permute.xlu0 %2880 }
 0x75b   : > { %9551 = vmatpush3.bf16.msra.mxu1 %v2956_v59  ;;  %v2612_v17 = vpack.c.bf16 %v2594_v41, %v2593_v30 }
 0x75c   : > { %v10492_v23 = vpop.eup %10491  ;;  %3535 = vrot.lane.b32.xlu1 %v11768_v32, %s11114_s21 }
 0x75d   : > { %v10494_v1 = vpop.eup %10493  ;;  %4224 = vrot.lane.b32.xlu0 %v11915_v56, %s11114_s21  ;;  %9530 = vmatprep.mubr.msk.bf16.mxu0 %vm1188_vm3, %v2612_v17  ;;  %v2602_v46 = vmul.f32 %v10492_v23, %v12621_v11 }
 0x75e   : > { %9531 = vmatmul.mubr.msk.bf16.vlgmr.msra.gmra.mxu0 %vm1188_vm3, %v2613_v25  ;;  %v2603_v22 = vmul.f32 %v10494_v1, %v12623_v9  ;;  %v10496_v0 = vpop.eup %10495  ;;  %v10310_v25 = vld [vmem:[%s12657_s20] sm:$0xff]  }
 0x75f   : > { %9543 = vmatpush3.bf16.msra.mxu0 %v2892_v6  ;;  %v2604_v9 = vmul.f32 %v10496_v0, %v12615_v49  ;;  %v16292_v0 = vld [vmem:[#allocation38_spill] sm:$0xff] }
 0x760   : > { %9544 = vmatprep.subr.bf16.mxu0 %v2881_v55  ;;  %3607 = vrot.lane.b32.xlu1 %v11785_v62, %s11113_s1  ;;  %v2618_v38 = vpack.c.bf16 %v2603_v22, %v2602_v46  ;;  %v10498_v28 = vpop.eup %10497 }
 0x761   : > { %v2619_v60 = vpack.c.bf16 %v2604_v9, %v2604_v9  ;;  %v2601_v29 = vmul.f32 %v10498_v28, %v12629_v44  ;;  %v16294_v9 = vld [vmem:[#allocation30_spill] sm:$0xff] }
 0x762   : > { %9554 = vmatprep.mubr.msk.bf16.mxu1 %vm1188_vm3, %v2618_v38  ;;  %v16291_v38 = vld [vmem:[#allocation29_spill] sm:$0xff] }
 0x763   : > { %9545 = vmatpush3.bf16.msra.mxu0 %v2881_v55  ;;  %v2617_v54 = vpack.c.bf16 %v2601_v29, %v2601_v29  ;;  %v16301_v29 = vld [vmem:[#allocation48_spill] sm:$0xff] }
 0x764   : > { %3603 = vrot.lane.b32.xlu1 %v11785_v62, %s11114_s21  ;;  %v10500_v8 = vpop.eup %10499 }
 0x765   : > { %v2599_v53 = vmul.f32 %v10500_v8, %v12633_v19  ;;  %v16298_v8 = vld [vmem:[#allocation44_spill] sm:$0xff] }
 0x768   : > { %3675 = vrot.lane.b32.xlu1 %v11802_v15, %s11113_s1 }
 0x76c   : > { %3671 = vrot.lane.b32.xlu1 %v11802_v15, %s11114_s21 }
 0x770   : > { %3743 = vrot.lane.b32.xlu1 %v11819_v24, %s11113_s1 }
 0x774   : > { %3739 = vrot.lane.b32.xlu1 %v11819_v24, %s11114_s21 }
 0x778   : > { %3811 = vrot.lane.b32.xlu1 %v11836_v3, %s11113_s1 }
 0x77c   : > { %3809 = vrot.lane.b32.xlu1 %v11845_v5, %s11114_s21 }
 0x780   : > { %4162 = vrot.lane.b32.xlu1 %v11935_v50, %s11114_s21 }
 0x783   : > { %v2544_v11 = vpop.xlane.xlu1 %2543 }
 0x784   : > { %10501 = vrcp.f32 %v2544_v11  ;;  %4288 = vrot.lane.b32.xlu1 %v11944_v48, %s11114_s21  ;;  %v16293_v11 = vpack.c.bf16 %v16291_v38, %v16292_v0  ;;  %v16338_v48 = vld [vmem:[#allocation41_spill] sm:$0xff] }
 0x787   : > { %v2945_v42 = vpop.permute.xlu1 %2944 }
 0x788   : > { %9552 = vmatprep.subr.bf16.mxu1 %v2945_v42 }
 0x789   : > { %9553 = vmatpush3.bf16.msra.mxu1 %v2945_v42  ;;  %v16295_v42 = vld [vmem:[#allocation28_spill] sm:$0xff] }
 0x78a   : > { %9566 = vmatprep.subr.bf16.mxu1 %v16184_v7 }
 0x78b   : > { %v2562_v51 = vpop.xlane.xlu0 %2561 }
 0x78c   : > { %9555 = vmatmul.mubr.msk.bf16.vlgmr.msra.gmra.mxu1 %vm1188_vm3, %v2619_v60  ;;  %v16296_v60 = vld [vmem:[#allocation31_spill] sm:$0xff] }
 0x78d   : > { %9567 = vmatpush3.bf16.msra.mxu1 %v10309_v35  ;;  %9568 = vmatprep.mubr.msk.bf16.mxu1 %vm11116_vm4, %v16184_v7  ;;  %v1850_v35 = vpack.c.bf16 %v16295_v42, %v16294_v9 }
 0x78f   : > { %v3011_v10 = vpop.permute.xlu0 %3010 }
 0x790   : > { %10022 = vmatprep.subr.msk.bf16.mxu0 %vm1454_vm2, %v3011_v10  ;;  %v3020_v2 = vsel %vm1454_vm2, %v3011_v10, 0  ;;  %v16299_v10 = vld [vmem:[#allocation32_spill] sm:$0xff] }
 0x791   : > { %v10502_v49 = vpop.eup %10501 }
 0x792   : > { %v2600_v40 = vmul.f32 %v10502_v49, %v12643_v4  ;;  %v16300_v49 = vpack.c.bf16 %v16298_v8, %v16299_v10 }
 0x793   : > { %v12789_v13 = vpop.permute.xlu0 %3405 }
 0x794   : > { %10023 = vmatprep.subr.msk.bf16.mxu1 %vm689_vm1, %v12789_v13  ;;  %v2616_v27 = vpack.c.bf16 %v2600_v40, %v2599_v53  ;;  %v16302_v53 = vld [vmem:[#allocation43_spill] sm:$0xff] }
 0x795   : > { %v1853_v40 = vpack.c.bf16 %v16302_v53, %v16301_v29 }
 0x796   : > { %9546 = vmatprep.mubr.msk.bf16.mxu0 %vm1188_vm3, %v2616_v27  ;;  %v16303_v27 = vld [vmem:[#allocation47_spill] sm:$0xff] }
 0x797   : > { %9547 = vmatmul.mubr.msk.bf16.vlgmr.msra.gmra.mxu0 %vm1188_vm3, %v2617_v54  ;;  %v3474_v57 = vpop.permute.xlu0 %3473  ;;  %v16304_v54 = vld [vmem:[#allocation49_spill] sm:$0xff] }
 0x798   : > { %9559 = vmatpush3.bf16.msra.mxu0 %v3020_v2  ;;  %v3485_v6 = vsel %vm689_vm1, %v3474_v57, 0  ;;  %v1854_v2 = vpack.c.bf16 %v16304_v54, %v16303_v27  ;;  %v16312_v54 = vld [vmem:[#allocation51_spill] sm:$0xff] }
 0x79b   : > { %v12803_v46 = vpop.permute.xlu0 %3401 }
 0x7b8   : > { %v2565_v52 = vpop.xlane.xlu1 %2564 }
 0x7b9   : > { %10503 = vrcp.f32 %v2565_v52 }
 0x7ba   : > { %10505 = vrcp.f32 %v2562_v51  ;;  %v16297_v51 = vld [vmem:[#allocation45_spill] sm:$0xff] }
 0x7bb   : > { %v1851_v28 = vpack.c.bf16 %v16297_v51, %v16296_v60  ;;  %v16310_v60 = vld [vmem:[#allocation53_spill] sm:$0xff]  ;;  %v16311_v51 = vld [vmem:[#allocation55_spill] sm:$0xff] }
 0x7bc   : > { %v2559_v44 = vpop.xlane.xlu1 %2558 }
 0x7bd   : > { %10507 = vrcp.f32 %v2559_v44 }
 0x7c0   : > { %v3009_v19 = vpop.permute.xlu1 %3008 }
 0x7c1   : > { %9560 = vmatprep.subr.bf16.mxu0 %v3009_v19 }
 0x7c2   : > { %9561 = vmatpush3.bf16.msra.mxu0 %v3009_v19 }
 0x7c3   : > { %9612 = vmatprep.subr.bf16.mxu0 %v16184_v7 }
 0x7c4   : > { %v12800_v17 = vpop.permute.xlu1 %3403 }
 0x7c5   : > { %v3414_v42 = vsel %vm689_vm1, %v12800_v17, 0 }
 0x7c6   : > { %v10504_v4 = vpop.eup %10503 }
 0x7c7   : > { %v10506_v26 = vpop.eup %10505  ;;  %v2607_v30 = vmul.f32 %v10504_v4, %v12671_v43 }
 0x7c8   : > { %v2606_v59 = vmul.f32 %v10506_v26, %v12647_v45  ;;  %v12810_v43 = vpop.permute.xlu1 %3399  ;;  %v12812_v45 = vpop.permute.xlu0 %3541 }
 0x7c9   : > { %v2621_v1 = vpack.c.bf16 %v2607_v30, %v2607_v30 }
 0x7ca   : > { %v10508_v33 = vpop.eup %10507 }
 0x7cb   : > { %v2605_v41 = vmul.f32 %v10508_v33, %v12677_v37  ;;  %v1848_v37 = vpack.c.bf16 %v12399_v36, %v12391_v20  ;;  %v16306_v33 = vld [vmem:[#allocation46_spill] sm:$0xff] }
 0x7cc   : > { %v3472_v22 = vpop.permute.xlu1 %3471  ;;  %v12821_v55 = vpop.permute.xlu0 %3469 }
 0x7cd   : > { %v2620_v23 = vpack.c.bf16 %v2606_v59, %v2605_v41  ;;  %v3482_v20 = vsel %vm689_vm1, %v3472_v22, 0 }
 0x7cf   : > { %9562 = vmatprep.mubr.msk.bf16.mxu0 %vm1188_vm3, %v2620_v23  ;;  %v3417_v23 = vsel %vm689_vm1, %v12789_v13, 0 }
 0x7d0   : > { %9563 = vmatmul.mubr.msk.bf16.vlgmr.msra.gmra.mxu0 %vm1188_vm3, %v2621_v1  ;;  %v12828_v36 = vpop.permute.xlu0 %3609  ;;  %v3468_v4 = vpop.permute.xlu1 %3467 }
 0x7d1   : > { %9613 = vmatpush3.bf16.msra.mxu0 %v10310_v25  ;;  %9614 = vmatprep.mubr.msk.bf16.mxu0 %vm11116_vm4, %v16184_v7 }
 0x7d2   : > { %10025 = vmatprep.subr.msk.bf16.mxu0 %vm689_vm1, %v3474_v57  ;;  %v16305_v57 = vld [vmem:[#allocation52_spill] sm:$0xff] }
 0x7d3   : > { %v16307_v30 = vpack.c.bf16 %v16305_v57, %v16306_v33  ;;  %v3621_v33 = vsel %vm689_vm1, %v12828_v36, 0 }
 0x7d4   : > { %v12871_v1 = vpop.permute.xlu1 %3539 }
 0x7d8   : > { %9615 = vmatmul.mubr.msk.bf16.vlgmr.msra.gmra.mxu0 %vm689_vm1, %v1848_v37  ;;  %v16308_v37 = vld [vmem:[#allocation54_spill] sm:$0xff]  ;;  %v12882_v9 = vpop.permute.xlu1 %3535 }
 0x7d9   : > { %9667 = vmatpush3.bf16.xpose.msra.mxu0 %v3485_v6  ;;  %9618 = vmatprep.mubr.msk.bf16.mxu0 %vm11116_vm4, %v16184_v7  ;;  %v16309_v6 = vld [vmem:[#allocation50_spill] sm:$0xff] }
 0x7da   : > { %10026 = vmatprep.subr.msk.bf16.mxu0 %vm689_vm1, %v3472_v22  ;;  %v1856_v22 = vpack.c.bf16 %v16309_v6, %v16308_v37 }
 0x7dc   : > { %v3608_v53 = vpop.permute.xlu1 %3607 }
 0x7e0   : > { %9619 = vmatmul.mubr.msk.bf16.gmra.mxu0 %vm689_vm1, %v16293_v11  ;;  %v12878_v11 = vpop.permute.xlu0 %3537 }
 0x7e1   : > { %9669 = vmatpush3.bf16.xpose.msra.mxu0 %v3482_v20  ;;  %9622 = vmatprep.mubr.msk.bf16.mxu0 %vm11116_vm4, %v16184_v7 }
 0x7e2   : > { %10029 = vmatprep.subr.msk.bf16.mxu0 %vm689_vm1, %v12828_v36  ;;  %v3618_v36 = vsel %vm689_vm1, %v3608_v53, 0 }
 0x7e8   : > { %9623 = vmatmul.mubr.msk.bf16.gmra.mxu0 %vm689_vm1, %v1850_v35 }
 0x7e9   : > { %9626 = vmatprep.mubr.msk.bf16.mxu0 %vm11116_vm4, %v16184_v7 }
 0x7f0   : > { %9627 = vmatmul.mubr.msk.bf16.gmra.mxu0 %vm689_vm1, %v1851_v28  ;;  %v1857_v28 = vpack.c.bf16 %v16311_v51, %v16310_v60 }
 0x7f1   : > { %9630 = vmatprep.mubr.msk.bf16.mxu0 %vm11116_vm4, %v16184_v7 }
 0x7f8   : > { %9631 = vmatmul.mubr.msk.bf16.gmra.mxu0 %vm689_vm1, %v16300_v49  ;;  %v12893_v49 = vpop.permute.xlu0 %3677 }
 0x7f9   : > { %9634 = vmatprep.mubr.msk.bf16.mxu0 %vm11116_vm4, %v16184_v7 }
 0x7fc   : > { %v3606_v27 = vpop.permute.xlu0 %3605 }
 0x800   : > { %9635 = vmatmul.mubr.msk.bf16.gmra.mxu0 %vm689_vm1, %v1853_v40 }
 0x801   : > { %9638 = vmatprep.mubr.msk.bf16.mxu0 %vm11116_vm4, %v16184_v7 }
 0x808   : > { %9639 = vmatmul.mubr.msk.bf16.gmra.mxu0 %vm689_vm1, %v1854_v2  ;;  %v1858_v2 = vpack.c.bf16 %v16312_v54, %v16312_v54 }
 0x809   : > { %9642 = vmatprep.mubr.msk.bf16.mxu0 %vm11116_vm4, %v16184_v7 }
 0x80a   : > { %v9516_v52 = vpop.f32.mrf.mxu1 }
 0x80c   : > { %v2672_v44 = vpop.f32.mrf.mxu1 }
 0x80e   : > { %v9517_v19 = vpop.f32.mrf.mxu1 }
 0x810   : > { %v2675_v26 = vpop.f32.mrf.mxu1  ;;  %9643 = vmatmul.mubr.msk.bf16.gmra.mxu0 %vm689_vm1, %v16307_v30 }
 0x811   : > { %v3070_v41 = vpack.c.bf16 %v2675_v26, %v2672_v44  ;;  %9646 = vmatprep.mubr.msk.bf16.mxu0 %vm11116_vm4, %v16184_v7  ;;  %v3604_v44 = vpop.permute.xlu1 %3603  ;;  %v3746_v26 = vpop.permute.xlu0 %3745 }
 0x812   : > { %v9524_v59 = vpop.f32.mrf.mxu1 }
 0x813   : > { %9569 = vmatmul.mubr.msk.bf16.vlgmr.msra.gmra.mxu1 %vm689_vm1, %v3070_v41 }
 0x814   : > { %9659 = vmatpush3.bf16.xpose.msra.mxu1 %v3417_v23  ;;  %v2736_v25 = vpop.f32.mrf.mxu1  ;;  %9572 = vmatprep.mubr.msk.bf16.mxu1 %vm11116_vm4, %v16184_v7 }
 0x815   : > { %10024 = vmatprep.subr.msk.bf16.mxu1 %vm689_vm1, %v12800_v17  ;;  %v3071_v13 = vpack.c.bf16 %v2736_v25, %v9516_v52  ;;  %v12908_v57 = vpop.permute.xlu1 %3675  ;;  %v12914_v30 = vpop.permute.xlu0 %3673 }
 0x816   : > { %v9525_v38 = vpop.f32.mrf.mxu1 }
 0x818   : > { %v2739_v0 = vpop.f32.mrf.mxu1  ;;  %9647 = vmatmul.mubr.msk.bf16.gmra.mxu0 %vm689_vm1, %v1856_v22  ;;  %v3757_v22 = vsel %vm689_vm1, %v3746_v26, 0 }
 0x819   : > { %9650 = vmatprep.mubr.msk.bf16.mxu0 %vm11116_vm4, %v16184_v7  ;;  %v3072_v17 = vpack.c.bf16 %v9524_v59, %v2739_v0 }
 0x81a   : > { %v9540_v20 = vpop.f32.mrf.mxu1 }
 0x81b   : > { %9573 = vmatmul.mubr.msk.bf16.gmra.mxu1 %vm689_vm1, %v3071_v13 }
 0x81c   : > { %9661 = vmatpush3.bf16.xpose.msra.mxu1 %v3414_v42  ;;  %v2864_v35 = vpop.f32.mrf.mxu1  ;;  %9576 = vmatprep.mubr.msk.bf16.mxu1 %vm11116_vm4, %v16184_v7 }
 0x81d   : > { %10027 = vmatprep.subr.msk.bf16.mxu1 %vm689_vm1, %v12812_v45 }
 0x81e   : > { %v9532_v8 = vpop.f32.mrf.mxu0  ;;  %v9541_v10 = vpop.f32.mrf.mxu1 }
 0x81f   : > { %v3074_v41 = vpack.c.bf16 %v2864_v35, %v9532_v8 }
 0x820   : > { %v2800_v29 = vpop.f32.mrf.mxu0  ;;  %9651 = vmatmul.mubr.msk.bf16.gmra.mxu0 %vm689_vm1, %v1857_v28  ;;  %v2867_v59 = vpop.f32.mrf.mxu1 }
 0x821   : > { %9654 = vmatprep.mubr.msk.bf16.mxu0 %vm11116_vm4, %v16184_v7  ;;  %v3075_v25 = vpack.c.bf16 %v9540_v20, %v2867_v59 }
 0x822   : > { %v9533_v40 = vpop.f32.mrf.mxu0 }
 0x823   : > { %9577 = vmatmul.mubr.msk.bf16.gmra.mxu1 %vm689_vm1, %v3072_v17 }
 0x824   : > { %9580 = vmatprep.mubr.msk.bf16.mxu1 %vm11116_vm4, %v16184_v7  ;;  %v2803_v52 = vpop.f32.mrf.mxu0 }
 0x825   : > { %v3073_v19 = vpack.c.bf16 %v2803_v52, %v2800_v29 }
 0x828   : > { %9655 = vmatmul.mubr.msk.bf16.gmra.mxu0 %vm689_vm1, %v1858_v2 }
 0x829   : > { %9670 = vmatprep.mubr.msk.bf16.mxu0 %vm689_vm1, %v3468_v4  ;;  %v12918_v4 = vpop.permute.xlu1 %3671 }
 0x82b   : > { %9581 = vmatmul.mubr.msk.bf16.gmra.mxu1 %vm689_vm1, %v3073_v19 }
 0x82c   : > { %9584 = vmatprep.mubr.msk.bf16.mxu1 %vm11116_vm4, %v16184_v7 }
 0x82d   : > { %v3744_v23 = vpop.permute.xlu1 %3743 }
 0x82e   : > { %v3754_v13 = vsel %vm689_vm1, %v3744_v23, 0 }
 0x830   : > { %9671 = vmatmul.mubr.msk.bf16.vlgmr.msra.gmra.mxu0 %vm689_vm1, %v12821_v55  ;;  %v12923_v55 = vpop.permute.xlu0 %3813 }
 0x831   : > { %9683 = vmatpush3.bf16.xpose.msra.mxu0 %v3621_v33  ;;  %9686 = vmatprep.mubr.msk.bf16.mxu0 %vm689_vm1, %v3604_v44  ;;  %v3740_v6 = vpop.permute.xlu1 %3739 }
 0x832   : > { %10030 = vmatprep.subr.msk.bf16.mxu0 %vm689_vm1, %v3608_v53 }
 0x833   : > { %9585 = vmatmul.mubr.msk.bf16.gmra.mxu1 %vm689_vm1, %v3074_v41 }
 0x834   : > { %9588 = vmatprep.mubr.msk.bf16.mxu1 %vm11116_vm4, %v16184_v7  ;;  %v3742_v37 = vpop.permute.xlu0 %3741 }
 0x835   : > { %v12936_v0 = vpop.permute.xlu1 %3811 }
 0x838   : > { %v12934_v38 = vpop.permute.xlu0 %3807 }
 0x839   : > { %9685 = vmatpush3.bf16.xpose.msra.mxu0 %v3618_v36  ;;  %v12940_v42 = vpop.permute.xlu1 %3809 }
 0x83a   : > { %10033 = vmatprep.subr.msk.bf16.mxu0 %vm689_vm1, %v3746_v26 }
 0x83b   : > { %9589 = vmatmul.mubr.msk.bf16.gmra.mxu1 %vm689_vm1, %v3075_v25 }
 0x83c   : > { %9592 = vmatprep.mubr.msk.bf16.mxu1 %vm11116_vm4, %v16184_v7  ;;  %v4165_v20 = vpop.permute.xlu0 %4164 }
 0x83d   : > { %v4174_v28 = vsel %vm1454_vm2, %v4165_v20, 0  ;;  %v4163_v8 = vpop.permute.xlu1 %4162 }
 0x840   : > { %9687 = vmatmul.mubr.msk.bf16.vlgmr.msra.gmra.mxu0 %vm689_vm1, %v3606_v27  ;;  %v12944_v10 = vpop.permute.xlu0 %4226 }
 0x841   : > { %9699 = vmatpush3.bf16.xpose.msra.mxu0 %v3757_v22  ;;  %9702 = vmatprep.mubr.msk.bf16.mxu0 %vm689_vm1, %v3740_v6 }
 0x842   : > { %10034 = vmatprep.subr.msk.bf16.mxu0 %vm689_vm1, %v3744_v23 }
 0x849   : > { %9701 = vmatpush3.bf16.xpose.msra.mxu0 %v3754_v13 }
 0x84a   : > { %10037 = vmatprep.subr.msk.bf16.mxu0 %vm1454_vm2, %v4165_v20 }
 0x84c   : > { %v9556_v35 = vpop.f32.mrf.mxu1 }
 0x84e   : > { %v2992_v60 = vpop.f32.mrf.mxu1 }
 0x850   : > { %9703 = vmatmul.mubr.msk.bf16.vlgmr.msra.gmra.mxu0 %vm689_vm1, %v3742_v37  ;;  %v9557_v51 = vpop.f32.mrf.mxu1 }
 0x851   : > { %9715 = vmatpush3.bf16.msra.mxu0 %v4174_v28 }
 0x852   : > { %9716 = vmatprep.subr.bf16.mxu0 %v4163_v8  ;;  %v2995_v2 = vpop.f32.mrf.mxu1 }
 0x853   : > { %v3078_v52 = vpack.c.bf16 %v9556_v35, %v2995_v2  ;;  %v3686_v2 = vsel %vm689_vm1, %v12908_v57, 0 }
 0x855   : > { %9717 = vmatpush3.bf16.msra.mxu0 %v4163_v8 }
 0x856   : > { %10038 = vmatprep.subr.msk.bf16.mxu0 %vm1454_vm2, %v12944_v10 }
 0x857   : > { %v9548_v29 = vpop.f32.mrf.mxu0 }
 0x858   : > { %v3077_v54 = vpack.c.bf16 %v2992_v60, %v9548_v29  ;;  %v3553_v60 = vsel %vm689_vm1, %v12812_v45, 0  ;;  %v3550_v29 = vsel %vm689_vm1, %v12871_v1, 0 }
 0x859   : > { %v2928_v53 = vpop.f32.mrf.mxu0 }
 0x85b   : > { %v9549_v17 = vpop.f32.mrf.mxu0 }
 0x85c   : > { %v3689_v17 = vsel %vm689_vm1, %v12893_v49, 0 }
 0x85d   : > { %v2931_v40 = vpop.f32.mrf.mxu0 }
 0x85e   : > { %v3076_v27 = vpack.c.bf16 %v2931_v40, %v2928_v53 }
 0x860   : > { %9593 = vmatmul.mubr.msk.bf16.gmra.mxu1 %vm689_vm1, %v3076_v27 }
 0x861   : > { %9596 = vmatprep.mubr.msk.bf16.mxu1 %vm11116_vm4, %v16184_v7 }
 0x868   : > { %9597 = vmatmul.mubr.msk.bf16.gmra.mxu1 %vm689_vm1, %v3077_v54 }
 0x869   : > { %9600 = vmatprep.mubr.msk.bf16.mxu1 %vm11116_vm4, %v16184_v7 }
 0x870   : > { %9601 = vmatmul.mubr.msk.bf16.gmra.mxu1 %vm689_vm1, %v3078_v52 }
 0x871   : > { %9604 = vmatprep.mubr.msk.bf16.mxu1 %vm11116_vm4, %v16184_v7 }
 0x890   : > { %v9564_v44 = vpop.f32.mrf.mxu0 }
 0x891   : > { %v3080_v37 = vpack.c.bf16 %v9564_v44, %v9564_v44  ;;  %v3825_v44 = vsel %vm689_vm1, %v12923_v55, 0 }
 0x892   : > { %v3056_v19 = vpop.f32.mrf.mxu0 }
 0x894   : > { %v9565_v26 = vpop.f32.mrf.mxu0 }
 0x896   : > { %v3059_v33 = vpop.f32.mrf.mxu0 }
 0x897   : > { %v3079_v41 = vpack.c.bf16 %v3059_v33, %v3056_v19 }
 0x898   : > { %v3313_v59 = vpop.f32.mrf.mxu0 }
 0x899   : > { %9605 = vmatmul.mubr.msk.bf16.gmra.mxu1 %vm689_vm1, %v3079_v41  ;;  %v3822_v41 = vsel %vm689_vm1, %v12936_v0, 0 }
 0x89a   : > { %v9616_v36 = vpop.f32.mrf.mxu0  ;;  %9608 = vmatprep.mubr.msk.bf16.mxu1 %vm11116_vm4, %v16184_v7 }
 0x89c   : > { %v3316_v23 = vpop.f32.mrf.mxu0 }
 0x89e   : > { %v9617_v25 = vpop.f32.mrf.mxu0 }
 0x8a0   : > { %v12960_v6 = vpop.f32.mrf.mxu0 }
 0x8a1   : > { %9609 = vmatmul.mubr.msk.bf16.gmra.mxu1 %vm689_vm1, %v3080_v37 }
 0x8a2   : > { %v9620_v22 = vpop.f32.mrf.mxu0  ;;  %9662 = vmatprep.mubr.msk.bf16.mxu1 %vm689_vm1, %v12810_v43 }
 0x8a4   : > { %v12965_v13 = vpop.f32.mrf.mxu0 }
 0x8a6   : > { %v9621_v20 = vpop.f32.mrf.mxu0 }
 0x8a8   : > { %v12967_v35 = vpop.f32.mrf.mxu0 }
 0x8a9   : > { %9663 = vmatmul.mubr.msk.bf16.vlgmr.msra.gmra.mxu1 %vm689_vm1, %v12803_v46 }
 0x8aa   : > { %9675 = vmatpush3.bf16.xpose.msra.mxu1 %v3553_v60  ;;  %v9624_v51 = vpop.f32.mrf.mxu0  ;;  %9678 = vmatprep.mubr.msk.bf16.mxu1 %vm689_vm1, %v12882_v9 }
 0x8ab   : > { %10028 = vmatprep.subr.msk.bf16.mxu1 %vm689_vm1, %v12871_v1 }
 0x8ac   : > { %v12977_v43 = vpop.f32.mrf.mxu0 }
 0x8ae   : > { %v9625_v28 = vpop.f32.mrf.mxu0 }
 0x8b0   : > { %v12979_v8 = vpop.f32.mrf.mxu0 }
 0x8b2   : > { %9677 = vmatpush3.bf16.xpose.msra.mxu1 %v3550_v29  ;;  %v9628_v46 = vpop.f32.mrf.mxu0 }
 0x8b3   : > { %10031 = vmatprep.subr.msk.bf16.mxu1 %vm689_vm1, %v12893_v49 }
 0x8b4   : > { %v12985_v45 = vpop.f32.mrf.mxu0 }
 0x8b6   : > { %v9629_v53 = vpop.f32.mrf.mxu0 }
 0x8b8   : > { %v12987_v9 = vpop.f32.mrf.mxu0 }
 0x8b9   : > { %9679 = vmatmul.mubr.msk.bf16.vlgmr.msra.gmra.mxu1 %vm689_vm1, %v12878_v11 }
 0x8ba   : > { %9691 = vmatpush3.bf16.xpose.msra.mxu1 %v3689_v17  ;;  %9694 = vmatprep.mubr.msk.bf16.mxu1 %vm689_vm1, %v12918_v4  ;;  %v9632_v1 = vpop.f32.mrf.mxu0 }
 0x8bb   : > { %10032 = vmatprep.subr.msk.bf16.mxu1 %vm689_vm1, %v12908_v57 }
 0x8bc   : > { %v12997_v40 = vpop.f32.mrf.mxu0 }
 0x8be   : > { %v9633_v27 = vpop.f32.mrf.mxu0 }
 0x8c0   : > { %v12999_v54 = vpop.f32.mrf.mxu0 }
 0x8c2   : > { %9693 = vmatpush3.bf16.xpose.msra.mxu1 %v3686_v2  ;;  %v9636_v11 = vpop.f32.mrf.mxu0 }
 0x8c3   : > { %10035 = vmatprep.subr.msk.bf16.mxu1 %vm689_vm1, %v12923_v55 }
 0x8c4   : > { %v13005_v49 = vpop.f32.mrf.mxu0 }
 0x8c6   : > { %v9637_v4 = vpop.f32.mrf.mxu0 }
 0x8c8   : > { %v13007_v52 = vpop.f32.mrf.mxu0 }
 0x8c9   : > { %16313 = vst [vmem:[#allocation29_spill] sm:$0xff] %v13007_v52  ;;  %9695 = vmatmul.mubr.msk.bf16.vlgmr.msra.gmra.mxu1 %vm689_vm1, %v12914_v30  ;;  %v4289_v30 = vpop.permute.xlu1 %4288 }
 0x8ca   : > { %9707 = vmatpush3.bf16.xpose.msra.mxu1 %v3825_v44  ;;  %9710 = vmatprep.mubr.msk.bf16.mxu1 %vm689_vm1, %v12934_v38  ;;  %v9640_v57 = vpop.f32.mrf.mxu0  ;;  %v4298_v28 = vsel %vm1454_vm2, %v4289_v30, 0 }
 0x8cb   : > { %10036 = vmatprep.subr.msk.bf16.mxu1 %vm689_vm1, %v12936_v0 }
 0x8cc   : > { %v13017_v19 = vpop.f32.mrf.mxu0 }
 0x8cd   : > { %16314 = vst [vmem:[#allocation38_spill] sm:$0xff] %v13017_v19 }
 0x8ce   : > { %v9641_v26 = vpop.f32.mrf.mxu0 }
 0x8d0   : > { %v13019_v33 = vpop.f32.mrf.mxu0 }
 0x8d1   : > { %16315 = vst [vmem:[#allocation30_spill] sm:$0xff] %v13019_v33 }
 0x8d2   : > { %9709 = vmatpush3.bf16.xpose.msra.mxu1 %v3822_v41  ;;  %v9644_v36 = vpop.f32.mrf.mxu0 }
 0x8d3   : > { %10039 = vmatprep.subr.msk.bf16.mxu1 %vm1454_vm2, %v4289_v30  ;;  %v3154_v55 = vpop.f32.mrf.mxu1 }
 0x8d4   : > { %v13024_v25 = vadd.f32 %v3313_v59, %v3154_v55  ;;  %v13026_v38 = vpop.f32.mrf.mxu0 }
 0x8d5   : > { %16316 = vst [vmem:[#allocation28_spill] sm:$0xff] %v13026_v38  ;;  %v9570_v37 = vpop.f32.mrf.mxu1 }
 0x8d6   : > { %v9645_v22 = vpop.f32.mrf.mxu0 }
 0x8d7   : > { %v3157_v20 = vpop.f32.mrf.mxu1 }
 0x8d8   : > { %v13028_v60 = vadd.f32 %v3316_v23, %v3157_v20  ;;  %v13030_v51 = vpop.f32.mrf.mxu0 }
 0x8d9   : > { %16317 = vst [vmem:[#allocation31_spill] sm:$0xff] %v13030_v51  ;;  %9711 = vmatmul.mubr.msk.bf16.vlgmr.msra.gmra.mxu1 %vm689_vm1, %v12940_v42  ;;  %v9571_v0 = vpop.f32.mrf.mxu1 }
 0x8da   : > { %9731 = vmatpush3.bf16.msra.mxu1 %v4298_v28  ;;  %v9648_v29 = vpop.f32.mrf.mxu0 }
 0x8db   : > { %v3162_v46 = vpop.f32.mrf.mxu1 }
 0x8dc   : > { %v13036_v59 = vadd.f32 %v12960_v6, %v3162_v46  ;;  %v13038_v53 = vpop.f32.mrf.mxu0 }
 0x8dd   : > { %16318 = vst [vmem:[#allocation45_spill] sm:$0xff] %v13038_v53  ;;  %v9574_v17 = vpop.f32.mrf.mxu1 }
 0x8de   : > { %v9649_v1 = vpop.f32.mrf.mxu0 }
 0x8df   : > { %v3165_v23 = vpop.f32.mrf.mxu1 }
 0x8e0   : > { %v13041_v27 = vadd.f32 %v12965_v13, %v3165_v23  ;;  %v13043_v2 = vpop.f32.mrf.mxu0  ;;  %v16327_v23 = vld [vmem:[#allocation2_spill] sm:$0xff] }
 0x8e1   : > { %16320 = vst [vmem:[#allocation32_spill] sm:$0xff] %v13043_v2  ;;  %v9575_v42 = vpop.f32.mrf.mxu1 }
 0x8e2   : > { %16319 = vst [vmem:[#allocation44_spill] sm:$0xff] %v13041_v27  ;;  %v9652_v11 = vpop.f32.mrf.mxu0 }
 0x8e3   : > { %v3170_v4 = vpop.f32.mrf.mxu1 }
 0x8e4   : > { %v13046_v44 = vadd.f32 %v12967_v35, %v3170_v4  ;;  %v13048_v57 = vpop.f32.mrf.mxu0 }
 0x8e5   : > { %16322 = vst [vmem:[#allocation43_spill] sm:$0xff] %v13048_v57  ;;  %v9578_v6 = vpop.f32.mrf.mxu1 }
 0x8e6   : > { %16321 = vst [vmem:[#allocation48_spill] sm:$0xff] %v13046_v44  ;;  %v9653_v26 = vpop.f32.mrf.mxu0 }
 0x8e7   : > { %v3173_v41 = vpop.f32.mrf.mxu1 }
 0x8e8   : > { %v13051_v30 = vadd.f32 %v12977_v43, %v3173_v41  ;;  %v13053_v36 = vpop.f32.mrf.mxu0 }
 0x8e9   : > { %16324 = vst [vmem:[#allocation49_spill] sm:$0xff] %v13053_v36  ;;  %v9579_v13 = vpop.f32.mrf.mxu1 }
 0x8ea   : > { %16323 = vst [vmem:[#allocation47_spill] sm:$0xff] %v13051_v30  ;;  %v9656_v55 = vpop.f32.mrf.mxu0 }
 0x8eb   : > { %v3178_v37 = vpop.f32.mrf.mxu1 }
 0x8ec   : > { %v13056_v22 = vadd.f32 %v12979_v8, %v3178_v37  ;;  %v3396_v20 = vpop.f32.mrf.mxu0 }
 0x8ed   : > { %v9582_v0 = vpop.f32.mrf.mxu1 }
 0x8ee   : > { %16325 = vst [vmem:[#allocation52_spill] sm:$0xff] %v13056_v22  ;;  %v9657_v35 = vpop.f32.mrf.mxu0 }
 0x8ef   : > { %v3181_v28 = vpop.f32.mrf.mxu1 }
 0x8f0   : > { %v13059_v29 = vadd.f32 %v12985_v45, %v3181_v28  ;;  %v9672_v46 = vpop.f32.mrf.mxu0 }
 0x8f1   : > { %v3880_v17 = vmul.f32 0.25, %v9672_v46  ;;  %v9583_v1 = vpop.f32.mrf.mxu1 }
 0x8f2   : > { %16326 = vst [vmem:[#allocation46_spill] sm:$0xff] %v13059_v29  ;;  %v3521_v43 = vpop.f32.mrf.mxu0 }
 0x8f3   : > { %v13062_v42 = vadd.f32 %v16327_v23, %v3880_v17  ;;  %v3878_v11 = vmul.f32 0.25, %v3521_v43  ;;  %v3186_v4 = vpop.f32.mrf.mxu1 }
 0x8f4   : > { %v13065_v6 = vadd.f32 %v12987_v9, %v3186_v4  ;;  %v9673_v8 = vpop.f32.mrf.mxu0 }
 0x8f5   : > { %v13068_v26 = vadd.f32 %v16327_v23, %v3878_v11  ;;  %v9586_v41 = vpop.f32.mrf.mxu1  ;;  %v3932_v45 = vsel %vm1188_vm3, %v13062_v42, -inf }
 0x8f6   : > { %16328 = vst [vmem:[#allocation54_spill] sm:$0xff] %v13065_v6  ;;  %3933 = vmax.xlane.f32.xlu0 %v3932_v45  ;;  %v3524_v13 = vpop.f32.mrf.mxu0 }
 0x8f7   : > { %v3879_v55 = vmul.f32 0.25, %v3524_v13  ;;  %v3189_v37 = vpop.f32.mrf.mxu1  ;;  %v3926_v35 = vsel %vm1188_vm3, %v13068_v26, -inf }
 0x8f8   : > { %v13073_v20 = vadd.f32 %v12997_v40, %v3189_v37 }
 0x8f9   : > { %v13076_v0 = vadd.f32 %v16327_v23, %v3879_v55  ;;  %v9587_v9 = vpop.f32.mrf.mxu1 }
 0x8fa   : > { %16329 = vst [vmem:[#allocation50_spill] sm:$0xff] %v13073_v20  ;;  %3927 = vmax.xlane.f32.xlu0 %v3926_v35 }
 0x8fb   : > { %v3194_v28 = vpop.f32.mrf.mxu1  ;;  %v3929_v46 = vsel %vm1188_vm3, %v13076_v0, -inf }
 0x8fc   : > { %v13083_v17 = vadd.f32 %v12999_v54, %v3194_v28  ;;  %3930 = vmax.xlane.f32.xlu1 %v3929_v46 }
 0x8fd   : > { %v9590_v1 = vpop.f32.mrf.mxu1 }
 0x8fe   : > { %16330 = vst [vmem:[#allocation53_spill] sm:$0xff] %v13083_v17 }
 0x8ff   : > { %v3197_v43 = vpop.f32.mrf.mxu1 }
 0x900   : > { %v13086_v40 = vadd.f32 %v13005_v49, %v3197_v43  ;;  %v9688_v11 = vpop.f32.mrf.mxu0 }
 0x901   : > { %v3886_v4 = vmul.f32 0.25, %v9688_v11  ;;  %v9591_v8 = vpop.f32.mrf.mxu1 }
 0x902   : > { %16331 = vst [vmem:[#allocation55_spill] sm:$0xff] %v13086_v40  ;;  %v3657_v41 = vpop.f32.mrf.mxu0 }
 0x903   : > { %v13089_v45 = vadd.f32 %v16327_v23, %v3886_v4  ;;  %v3884_v13 = vmul.f32 0.25, %v3657_v41 }
 0x904   : > { %v9689_v55 = vpop.f32.mrf.mxu0 }
 0x905   : > { %v13092_v37 = vadd.f32 %v16327_v23, %v3884_v13  ;;  %v3950_v54 = vsel %vm1188_vm3, %v13089_v45, -inf }
 0x906   : > { %3951 = vmax.xlane.f32.xlu0 %v3950_v54  ;;  %v3660_v9 = vpop.f32.mrf.mxu0 }
 0x907   : > { %v3885_v35 = vmul.f32 0.25, %v3660_v9  ;;  %v3944_v28 = vsel %vm1188_vm3, %v13092_v37, -inf }
 0x909   : > { %v13097_v49 = vadd.f32 %v16327_v23, %v3885_v35 }
 0x90a   : > { %3945 = vmax.xlane.f32.xlu0 %v3944_v28 }
 0x90b   : > { %v3947_v46 = vsel %vm1188_vm3, %v13097_v49, -inf }
 0x90c   : > { %3948 = vmax.xlane.f32.xlu1 %v3947_v46 }
 0x910   : > { %v9704_v1 = vpop.f32.mrf.mxu0 }
 0x911   : > { %v3892_v43 = vmul.f32 0.25, %v9704_v1 }
 0x912   : > { %v3793_v11 = vpop.f32.mrf.mxu0 }
 0x913   : > { %v13104_v4 = vadd.f32 %v16327_v23, %v3892_v43  ;;  %v3890_v8 = vmul.f32 0.25, %v3793_v11 }
 0x914   : > { %v9705_v41 = vpop.f32.mrf.mxu0 }
 0x915   : > { %v13107_v13 = vadd.f32 %v16327_v23, %v3890_v8  ;;  %v3968_v55 = vsel %vm1188_vm3, %v13104_v4, -inf }
 0x916   : > { %3969 = vmax.xlane.f32.xlu0 %v3968_v55  ;;  %v3796_v54 = vpop.f32.mrf.mxu0 }
 0x917   : > { %v3891_v9 = vmul.f32 0.25, %v3796_v54  ;;  %v3962_v28 = vsel %vm1188_vm3, %v13107_v13, -inf }
 0x919   : > { %v13112_v35 = vadd.f32 %v16327_v23, %v3891_v9  ;;  %v16336_v9 = vld [vmem:[#allocation34_spill] sm:$0xff] }
 0x91a   : > { %3963 = vmax.xlane.f32.xlu0 %v3962_v28 }
 0x91b   : > { %v3965_v46 = vsel %vm1188_vm3, %v13112_v35, -inf }
 0x91c   : > { %3966 = vmax.xlane.f32.xlu1 %v3965_v46 }
 0x920   : > { %v13118_v1 = vpop.f32.mrf.mxu1 }
 0x921   : > { %16332 = vst [vmem:[#allocation51_spill] sm:$0xff] %v13118_v1 }
 0x922   : > { %v9594_v43 = vpop.f32.mrf.mxu1 }
 0x924   : > { %v13120_v11 = vpop.f32.mrf.mxu1 }
 0x925   : > { %16333 = vst [vmem:[#allocation56_spill] sm:$0xff] %v13120_v11 }
 0x926   : > { %v9595_v8 = vpop.f32.mrf.mxu1 }
 0x928   : > { %v13122_v41 = vpop.f32.mrf.mxu1 }
 0x929   : > { %16334 = vst [vmem:[#allocation57_spill] sm:$0xff] %v13122_v41  ;;  %v16343_v41 = vld [vmem:[#allocation39_spill] sm:$0xff] }
 0x92a   : > { %v9598_v55 = vpop.f32.mrf.mxu1 }
 0x92c   : > { %v13124_v54 = vpop.f32.mrf.mxu1 }
 0x92d   : > { %16335 = vst [vmem:[#allocation58_spill] sm:$0xff] %v13124_v54  ;;  %4350 = vrot.lane.b32.xlu1 %v16336_v9, %s11114_s21 }
 0x92e   : > { %v9599_v7 = vpop.f32.mrf.mxu1 }
 0x930   : > { %v13128_v28 = vpop.f32.mrf.mxu1 }
 0x931   : > { %16337 = vst [vmem:[#allocation59_spill] sm:$0xff] %v13128_v28  ;;  %4348 = vrot.lane.b32.xlu1 %v16338_v48, %s11114_s21 }
 0x932   : > { %v9602_v46 = vpop.f32.mrf.mxu1 }
 0x934   : > { %v13132_v36 = vpop.f32.mrf.mxu1 }
 0x935   : > { %16339 = vst [vmem:[#allocation60_spill] sm:$0xff] %v13132_v36 }
 0x936   : > { %v9603_v43 = vpop.f32.mrf.mxu1 }
 0x959   : > { %v13134_v57 = vpop.f32.mrf.mxu1 }
 0x95a   : > { %16340 = vst [vmem:[#allocation61_spill] sm:$0xff] %v13134_v57 }
 0x95b   : > { %v9606_v8 = vpop.f32.mrf.mxu1 }
 0x95d   : > { %v13136_v2 = vpop.f32.mrf.mxu1 }
 0x95e   : > { %16341 = vst [vmem:[#allocation62_spill] sm:$0xff] %v13136_v2 }
 0x95f   : > { %v9607_v55 = vpop.f32.mrf.mxu1 }
 0x961   : > { %v13138_v53 = vpop.f32.mrf.mxu1 }
 0x962   : > { %16342 = vst [vmem:[#allocation63_spill] sm:$0xff] %v13138_v53 }
 0x963   : > { %v9610_v51 = vpop.f32.mrf.mxu1 }
 0x965   : > { %v3237_v9 = vpop.f32.mrf.mxu1 }
 0x966   : > { %v13155_v9 = vpop.permute.xlu0 %4224 }
 0x967   : > { %v9611_v7 = vpop.f32.mrf.mxu1 }
 0x969   : > { %v9664_v38 = vpop.f32.mrf.mxu1 }
 0x96a   : > { %v3877_v28 = vmul.f32 0.25, %v9664_v38 }
 0x96b   : > { %v3453_v54 = vpop.f32.mrf.mxu1 }
 0x96c   : > { %v13141_v48 = vadd.f32 %v16327_v23, %v3877_v28  ;;  %v3875_v46 = vmul.f32 0.25, %v3453_v54 }
 0x96d   : > { %v9665_v36 = vpop.f32.mrf.mxu1 }
 0x96e   : > { %v13144_v43 = vadd.f32 %v16327_v23, %v3875_v46  ;;  %v3923_v8 = vsel %vm1188_vm3, %v13141_v48, -inf }
 0x96f   : > { %v3456_v55 = vpop.f32.mrf.mxu1  ;;  %3924 = vmax.xlane.f32.xlu0 %v3923_v8 }
 0x970   : > { %v3876_v53 = vmul.f32 0.25, %v3456_v55  ;;  %v3917_v38 = vsel %vm1188_vm3, %v13144_v43, -inf }
 0x972   : > { %v13149_v51 = vadd.f32 %v16327_v23, %v3876_v53 }
 0x973   : > { %3918 = vmax.xlane.f32.xlu0 %v3917_v38 }
 0x974   : > { %v3920_v54 = vsel %vm1188_vm3, %v13149_v51, -inf }
 0x975   : > { %3921 = vmax.xlane.f32.xlu1 %v3920_v54 }
 0x979   : > { %v9680_v36 = vpop.f32.mrf.mxu1 }
 0x97b   : > { %v3589_v28 = vpop.f32.mrf.mxu1 }
 0x97d   : > { %v9681_v7 = vpop.f32.mrf.mxu1 }
 0x97f   : > { %v3934_v46 = vpop.xlane.xlu0 %3933  ;;  %v3592_v33 = vpop.f32.mrf.mxu1 }
 0x980   : > { %v3985_v8 = vsub.f32 %v13062_v42, %v3934_v46  ;;  %v3883_v42 = vmul.f32 0.25, %v9680_v36 }
 0x982   : > { %v4011_v55 = vmul.f32 1.442695, %v3985_v8 }
 0x983   : > { %v3928_v2 = vpop.xlane.xlu0 %3927 }
 0x984   : > { %10509 = vpow2.f32 %v4011_v55  ;;  %v3983_v53 = vsub.f32 %v13068_v26, %v3928_v2  ;;  %v13169_v55 = vadd.f32 %v16327_v23, %v3883_v42 }
 0x985   : > { %v3931_v19 = vpop.xlane.xlu1 %3930 }
 0x986   : > { %v4007_v57 = vmul.f32 1.442695, %v3983_v53  ;;  %v3984_v7 = vsub.f32 %v13076_v0, %v3931_v19  ;;  %v3881_v53 = vmul.f32 0.25, %v3589_v28  ;;  %v3941_v28 = vsel %vm1188_vm3, %v13169_v55, -inf }
 0x988   : > { %10511 = vpow2.f32 %v4007_v57  ;;  %v4009_v2 = vmul.f32 1.442695, %v3984_v7  ;;  %v13176_v1 = vadd.f32 %v16327_v23, %v3881_v53 }
 0x989   : > { %v9696_v38 = vpop.f32.mrf.mxu1  ;;  %4286 = vrot.lane.b32.xlu0 %v16343_v41, %s11114_s21 }
 0x98a   : > { %10513 = vpow2.f32 %v4009_v2  ;;  %v3889_v40 = vmul.f32 0.25, %v9696_v38 }
 0x98b   : > { %v3725_v54 = vpop.f32.mrf.mxu1 }
 0x98d   : > { %v9697_v11 = vpop.f32.mrf.mxu1 }
 0x98f   : > { %v3952_v46 = vpop.xlane.xlu0 %3951  ;;  %v3728_v0 = vpop.f32.mrf.mxu1 }
 0x990   : > { %v3991_v36 = vsub.f32 %v13089_v45, %v3952_v46  ;;  %v13182_v45 = vadd.f32 %v16327_v23, %v3889_v40  ;;  %v3887_v46 = vmul.f32 0.25, %v3725_v54 }
 0x991   : > { %v13162_v52 = vpop.eup %10509 }
 0x992   : > { %v4058_v8 = vsel %vm1188_vm3, %v13162_v52, 0.0 }
 0x993   : > { %4059 = vadd.xlane.f32.xlu1 %v4058_v8  ;;  %v3946_v41 = vpop.xlane.xlu0 %3945 }
 0x994   : > { %v3989_v42 = vsub.f32 %v13092_v37, %v3946_v41  ;;  %v3959_v37 = vsel %vm1188_vm3, %v13182_v45, -inf  ;;  %v3882_v41 = vmul.f32 0.25, %v3592_v33 }
 0x995   : > { %v13166_v26 = vpop.eup %10511  ;;  %v3949_v57 = vpop.xlane.xlu1 %3948 }
 0x996   : > { %v3990_v11 = vsub.f32 %v13097_v49, %v3949_v57  ;;  %v4052_v19 = vsel %vm1188_vm3, %v13166_v26, 0.0  ;;  %v4023_v49 = vmul.f32 1.442695, %v3991_v36  ;;  %v4019_v53 = vmul.f32 1.442695, %v3989_v42 }
 0x997   : > { %4053 = vadd.xlane.f32.xlu1 %v4052_v19  ;;  %v13187_v19 = vadd.f32 %v16327_v23, %v3887_v46  ;;  %v13192_v54 = vpop.eup %10513  ;;  %v13200_v46 = vadd.f32 %v16327_v23, %v3882_v41  ;;  %v3888_v41 = vmul.f32 0.25, %v3728_v0 }
 0x998   : > { %v4021_v7 = vmul.f32 1.442695, %v3990_v11  ;;  %v3935_v11 = vsel %vm1188_vm3, %v13176_v1, -inf }
 0x999   : > { %v9712_v8 = vpop.f32.mrf.mxu1  ;;  %v3953_v42 = vsel %vm1188_vm3, %v13187_v19, -inf }
 0x99a   : > { %10515 = vpow2.f32 %v4021_v7 }
 0x99b   : > { %v3861_v57 = vpop.f32.mrf.mxu1  ;;  %3942 = vmax.xlane.f32.xlu1 %v3941_v28  ;;  %10517 = vpow2.f32 %v4023_v49 }
 0x99c   : > { %10519 = vpow2.f32 %v4019_v53  ;;  %v3893_v0 = vmul.f32 0.25, %v3861_v57 }
 0x99d   : > { %v9713_v2 = vpop.f32.mrf.mxu1 }
 0x99f   : > { %v3970_v38 = vpop.xlane.xlu0 %3969  ;;  %3936 = vmax.xlane.f32.xlu1 %v3935_v11 }
 0x9a0   : > { %v3997_v36 = vsub.f32 %v13104_v4, %v3970_v38  ;;  %v4055_v4 = vsel %vm1188_vm3, %v13192_v54, 0.0  ;;  %v3938_v38 = vsel %vm1188_vm3, %v13200_v46, -inf }
 0x9a2   : > { %v4035_v33 = vmul.f32 1.442695, %v3997_v36 }
 0x9a3   : > { %v3964_v40 = vpop.xlane.xlu0 %3963  ;;  %3960 = vmax.xlane.f32.xlu1 %v3959_v37 }
 0x9a4   : > { %v3995_v7 = vsub.f32 %v13107_v13, %v3964_v40  ;;  %v3895_v40 = vmul.f32 0.25, %v9712_v8 }
 0x9a5   : > { %v3967_v28 = vpop.xlane.xlu1 %3966 }
 0x9a6   : > { %v4031_v49 = vmul.f32 1.442695, %v3995_v7  ;;  %v3996_v11 = vsub.f32 %v13112_v35, %v3967_v28  ;;  %v13216_v7 = vadd.f32 %v16327_v23, %v3888_v41 }
 0x9a7   : > { %v13197_v2 = vpop.eup %10515  ;;  %3954 = vmax.xlane.f32.xlu1 %v3953_v42  ;;  %v13223_v42 = vadd.f32 %v16327_v23, %v3895_v40 }
 0x9a8   : > { %10521 = vpow2.f32 %v4031_v49  ;;  %4056 = vadd.xlane.f32.xlu0 %v4055_v4  ;;  %v4073_v13 = vsel %vm1188_vm3, %v13197_v2, 0.0  ;;  %v4033_v53 = vmul.f32 1.442695, %v3996_v11  ;;  %v13209_v37 = vpop.eup %10517  ;;  %v3956_v8 = vsel %vm1188_vm3, %v13216_v7, -inf  ;;  %v3864_v4 = vpop.f32.mrf.mxu1 }
 0x9a9   : > { %10523 = vpow2.f32 %v4035_v33  ;;  %v4076_v35 = vsel %vm1188_vm3, %v13209_v37, 0.0  ;;  %v13213_v36 = vpop.eup %10519 }
 0x9aa   : > { %10525 = vpow2.f32 %v4033_v53  ;;  %v4070_v28 = vsel %vm1188_vm3, %v13213_v36, 0.0  ;;  %v3977_v53 = vsel %vm1188_vm3, %v13223_v42, -inf }
 0x9ab   : > { %4074 = vadd.xlane.f32.xlu1 %v4073_v13  ;;  %v13232_v13 = vadd.f32 %v16327_v23, %v3893_v0 }
 0x9ac   : > { %3939 = vmax.xlane.f32.xlu0 %v3938_v38  ;;  %v3894_v38 = vmul.f32 0.25, %v3864_v4 }
 0x9ae   : > { %v13243_v40 = vadd.f32 %v16327_v23, %v3894_v38 }
 0x9b0   : > { %4077 = vadd.xlane.f32.xlu0 %v4076_v35  ;;  %v3971_v35 = vsel %vm1188_vm3, %v13232_v13, -inf  ;;  %v3974_v0 = vsel %vm1188_vm3, %v13243_v40, -inf }
 0x9b4   : > { %4071 = vadd.xlane.f32.xlu0 %v4070_v28 }
 0x9b5   : > { %v13220_v49 = vpop.eup %10521 }
 0x9b6   : > { %v4088_v33 = vsel %vm1188_vm3, %v13220_v49, 0.0  ;;  %v13229_v11 = vpop.eup %10523 }
 0x9b7   : > { %4089 = vadd.xlane.f32.xlu1 %v4088_v33  ;;  %v4094_v57 = vsel %vm1188_vm3, %v13229_v11, 0.0  ;;  %v13238_v41 = vpop.eup %10525  ;;  %v13249_v33 = vpop.permute.xlu1 %4350 }
 0x9b8   : > { %3957 = vmax.xlane.f32.xlu0 %v3956_v8  ;;  %v4091_v28 = vsel %vm1188_vm3, %v13238_v41, 0.0 }
 0x9bb   : > { %3978 = vmax.xlane.f32.xlu1 %v3977_v53  ;;  %v13252_v53 = vpop.permute.xlu1 %4348 }
 0x9bc   : > { %4095 = vadd.xlane.f32.xlu0 %v4094_v57 }
 0x9bf   : > { %3972 = vmax.xlane.f32.xlu1 %v3971_v35 }
 0x9c0   : > { %4092 = vadd.xlane.f32.xlu0 %v4091_v28 }
 0x9c4   : > { %3975 = vmax.xlane.f32.xlu0 %v3974_v0 }
 0x9f8   : > { %v3925_v8 = vpop.xlane.xlu0 %3924 }
 0x9f9   : > { %v3982_v4 = vsub.f32 %v13141_v48, %v3925_v8 }
 0x9fb   : > { %v4005_v57 = vmul.f32 1.442695, %v3982_v4 }
 0x9fc   : > { %v3919_v17 = vpop.xlane.xlu0 %3918 }
 0x9fd   : > { %10527 = vpow2.f32 %v4005_v57  ;;  %v3980_v38 = vsub.f32 %v13144_v43, %v3919_v17  ;;  %v16344_v57 = vld [vmem:[#allocation40_spill] sm:$0xff] }
 0x9fe   : > { %v3922_v35 = vpop.xlane.xlu1 %3921 }
 0x9ff   : > { %v4001_v20 = vmul.f32 1.442695, %v3980_v38  ;;  %v3981_v28 = vsub.f32 %v13149_v51, %v3922_v35 }
 0xa00   : > { %v4287_v6 = vpop.permute.xlu0 %4286 }
 0xa01   : > { %10529 = vpow2.f32 %v4001_v20  ;;  %v4003_v29 = vmul.f32 1.442695, %v3981_v28  ;;  %9732 = vmatprep.subr.bf16.mxu1 %v4287_v6 }
 0xa02   : > { %9733 = vmatpush3.bf16.msra.mxu1 %v4287_v6 }
 0xa03   : > { %10531 = vpow2.f32 %v4003_v29 }
 0xa0a   : > { %v13256_v0 = vpop.eup %10527 }
 0xa0b   : > { %v4049_v48 = vsel %vm1188_vm3, %v13256_v0, 0.0 }
 0xa0c   : > { %4050 = vadd.xlane.f32.xlu0 %v4049_v48 }
 0xa0e   : > { %v13260_v8 = vpop.eup %10529 }
 0xa0f   : > { %v4043_v17 = vsel %vm1188_vm3, %v13260_v8, 0.0 }
 0xa10   : > { %v13264_v43 = vpop.eup %10531  ;;  %4044 = vadd.xlane.f32.xlu0 %v4043_v17 }
 0xa11   : > { %v4046_v20 = vsel %vm1188_vm3, %v13264_v43, 0.0 }
 0xa12   : > { %4047 = vadd.xlane.f32.xlu1 %v4046_v20 }
 0xa1c   : > { %v13268_v6 = vpop.xlane.xlu1 %4059 }
 0xa20   : > { %v13270_v29 = vpop.xlane.xlu1 %4053 }
 0xa24   : > { %v3943_v51 = vpop.xlane.xlu1 %3942 }
 0xa25   : > { %v3988_v4 = vsub.f32 %v13169_v55, %v3943_v51 }
 0xa26   : > { %4412 = vrot.lane.b32.xlu0 %v16344_v57, %s11114_s21 }
 0xa27   : > { %v4017_v38 = vmul.f32 1.442695, %v3988_v4 }
 0xa28   : > { %v3937_v35 = vpop.xlane.xlu1 %3936 }
 0xa29   : > { %10533 = vpow2.f32 %v4017_v38  ;;  %v3986_v28 = vsub.f32 %v13176_v1, %v3937_v35 }
 0xa2b   : > { %v4013_v48 = vmul.f32 1.442695, %v3986_v28 }
 0xa2c   : > { %v3961_v17 = vpop.xlane.xlu1 %3960 }
 0xa2d   : > { %10535 = vpow2.f32 %v4013_v48  ;;  %v3994_v20 = vsub.f32 %v13182_v45, %v3961_v17 }
 0xa2f   : > { %v4029_v22 = vmul.f32 1.442695, %v3994_v20 }
 0xa30   : > { %v3955_v30 = vpop.xlane.xlu1 %3954 }
 0xa31   : > { %v3992_v44 = vsub.f32 %v13187_v19, %v3955_v30  ;;  %v4057_v27 = vpop.xlane.xlu0 %4056  ;;  %10537 = vpow2.f32 %v4029_v22 }
 0xa33   : > { %v4025_v55 = vmul.f32 1.442695, %v3992_v44 }
 0xa35   : > { %v3940_v51 = vpop.xlane.xlu0 %3939  ;;  %10539 = vpow2.f32 %v4025_v55 }
 0xa36   : > { %v13278_v56 = vpop.eup %10533  ;;  %v3987_v4 = vsub.f32 %v13200_v46, %v3940_v51 }
 0xa37   : > { %v4067_v1 = vsel %vm1188_vm3, %v13278_v56, 0.0 }
 0xa38   : > { %v4015_v38 = vmul.f32 1.442695, %v3987_v4  ;;  %4068 = vadd.xlane.f32.xlu1 %v4067_v1 }
 0xa39   : > { %v13289_v44 = vpop.xlane.xlu0 %4077 }
 0xa3a   : > { %v13283_v35 = vpop.eup %10535  ;;  %10541 = vpow2.f32 %v4015_v38 }
 0xa3b   : > { %v4061_v30 = vsel %vm1188_vm3, %v13283_v35, 0.0 }
 0xa3c   : > { %4062 = vadd.xlane.f32.xlu1 %v4061_v30 }
 0xa3d   : > { %v4072_v17 = vpop.xlane.xlu0 %4071 }
 0xa3e   : > { %v13287_v22 = vpop.eup %10537 }
 0xa3f   : > { %v4085_v45 = vsel %vm1188_vm3, %v13287_v22, 0.0 }
 0xa41   : > { %v3958_v20 = vpop.xlane.xlu0 %3957 }
 0xa42   : > { %v13293_v19 = vpop.eup %10539  ;;  %v3993_v1 = vsub.f32 %v13216_v7, %v3958_v20 }
 0xa43   : > { %v4079_v28 = vsel %vm1188_vm3, %v13293_v19, 0.0 }
 0xa44   : > { %v4027_v30 = vmul.f32 1.442695, %v3993_v1 }
 0xa45   : > { %4086 = vadd.xlane.f32.xlu0 %v4085_v45  ;;  %v13301_v55 = vpop.xlane.xlu0 %4095 }
 0xa46   : > { %10543 = vpow2.f32 %v4027_v30 }
 0xa47   : > { %v13295_v46 = vpop.eup %10541 }
 0xa48   : > { %v4064_v48 = vsel %vm1188_vm3, %v13295_v46, 0.0 }
 0xa49   : > { %4080 = vadd.xlane.f32.xlu0 %v4079_v28  ;;  %4065 = vadd.xlane.f32.xlu1 %v4064_v48  ;;  %v4093_v51 = vpop.xlane.xlu0 %4092 }
 0xa4d   : > { %v3976_v4 = vpop.xlane.xlu0 %3975 }
 0xa4e   : > { %v3999_v38 = vsub.f32 %v13243_v40, %v3976_v4 }
 0xa50   : > { %v4039_v45 = vmul.f32 1.442695, %v3999_v38 }
 0xa52   : > { %10545 = vpow2.f32 %v4039_v45 }
 0xa53   : > { %v13309_v28 = vpop.eup %10543 }
 0xa5a   : > { %4474 = vrot.lane.b32.xlu1 %v12256_v39, %s11114_s21  ;;  %v4082_v39 = vsel %vm1188_vm3, %v13309_v28, 0.0 }
 0xa5f   : > { %4410 = vrot.lane.b32.xlu0 %v12281_v34, %s11114_s21  ;;  %v13311_v48 = vpop.eup %10545  ;;  %v4075_v34 = vpop.xlane.xlu1 %4074 }
 0xa60   : > { %v4100_v57 = vsel %vm1188_vm3, %v13311_v48, 0.0 }
 0xa63   : > { %v4090_v7 = vpop.xlane.xlu1 %4089 }
 0xa67   : > { %v3979_v40 = vpop.xlane.xlu1 %3978 }
 0xa6b   : > { %v3973_v4 = vpop.xlane.xlu1 %3972 }
 0xa6c   : > { %v3998_v45 = vsub.f32 %v13232_v13, %v3973_v4 }
 0xa7e   : > { %4083 = vadd.xlane.f32.xlu1 %v4082_v39  ;;  %4101 = vadd.xlane.f32.xlu0 %v4100_v57  ;;  %v4000_v39 = vsub.f32 %v13223_v42, %v3979_v40 }
 0xa80   : > { %v4041_v30 = vmul.f32 1.442695, %v4000_v39 }
 0xa8f   : > { %4472 = vrot.lane.b32.xlu1 %v12297_v16, %s11114_s21 }
 0xa94   : > { %4536 = vrot.lane.b32.xlu0 %v12299_v61, %s11114_s21 }
 0xa95   : > { %v4051_v20 = vpop.xlane.xlu0 %4050 }
 0xa96   : > { %10547 = vrcp.f32 %v4051_v20 }
 0xa98   : > { %4793 = vrot.lane.b32.xlu0 %v11739_v58, %s11117_s23 }
 0xa99   : > { %v4045_v1 = vpop.xlane.xlu0 %4044 }
 0xa9a   : > { %10549 = vrcp.f32 %v4045_v1 }
 0xa9b   : > { %10551 = vrcp.f32 %v4057_v27  ;;  %v4048_v57 = vpop.xlane.xlu1 %4047  ;;  %v4037_v27 = vmul.f32 1.442695, %v3998_v45 }
 0xa9c   : > { %10553 = vrcp.f32 %v4048_v57  ;;  %4787 = vrot.lane.b32.xlu0 %v11732_v21, %s11118_s24 }
 0xa9d   : > { %10555 = vrcp.f32 %v13270_v29  ;;  %v13327_v38 = vpop.permute.xlu0 %4412 }
 0xa9e   : > { %10041 = vmatprep.subr.msk.bf16.mxu1 %vm1454_vm2, %v13327_v38  ;;  %10557 = vrcp.f32 %v13268_v6 }
 0xa9f   : > { %10559 = vpow2.f32 %v4041_v30 }
 0xaa0   : > { %4789 = vrot.lane.b32.xlu0 %v11739_v58, %s11118_s24  ;;  %10561 = vrcp.f32 %v4072_v17 }
 0xaa1   : > { %10563 = vrcp.f32 %v4075_v34 }
 0xaa2   : > { %10565 = vpow2.f32 %v4037_v27 }
 0xaa3   : > { %v10548_v42 = vpop.eup %10547  ;;  %10567 = vrcp.f32 %v13289_v44  ;;  %v16345_v44 = vld [vmem:[#allocation26_spill] sm:$0xff] }
 0xaa4   : > { %4855 = vrot.lane.b32.xlu0 %v11760_v14, %s11118_s24  ;;  %v4129_v58 = vmul.f32 %v10548_v42, %v13256_v0  ;;  %10569 = vrcp.f32 %v4093_v51 }
 0xaa5   : > { %10571 = vrcp.f32 %v4090_v7 }
 0xaa6   : > { %v4149_v1 = vpack.c.bf16 %v4129_v58, %v4129_v58 }
 0xaa7   : > { %v10550_v29 = vpop.eup %10549 }
 0xaa8   : > { %v10552_v40 = vpop.eup %10551  ;;  %4857 = vrot.lane.b32.xlu0 %v11753_v12, %s11118_s24  ;;  %v4127_v17 = vmul.f32 %v10550_v29, %v13260_v8  ;;  %v4236_v8 = vsel %vm1454_vm2, %v12944_v10, 0 }
 0xaa9   : > { %v10554_v13 = vpop.eup %10553  ;;  %v4131_v34 = vmul.f32 %v10552_v40, %v13192_v54  ;;  %v16346_v40 = vld [vmem:[#allocation27_spill] sm:$0xff] }
 0xaaa   : > { %v10556_v6 = vpop.eup %10555  ;;  %v4128_v20 = vmul.f32 %v10554_v13, %v13264_v43 }
 0xaab   : > { %v4130_v39 = vmul.f32 %v10556_v6, %v13166_v26  ;;  %v10558_v57 = vpop.eup %10557 }
 0xaac   : > { %4923 = vrot.lane.b32.xlu0 %v11768_v32, %s11118_s24  ;;  %v4148_v4 = vpack.c.bf16 %v4128_v20, %v4127_v17  ;;  %v13348_v0 = vpop.eup %10559  ;;  %v4132_v51 = vmul.f32 %v10558_v57, %v13162_v52 }
 0xaad   : > { %v4150_v43 = vpack.c.bf16 %v4131_v34, %v4130_v39  ;;  %v10562_v54 = vpop.eup %10561  ;;  %v4103_v7 = vsel %vm1188_vm3, %v13348_v0, 0.0 }
 0xaae   : > { %9718 = vmatprep.mubr.msk.bf16.mxu0 %vm1188_vm3, %v4148_v4  ;;  %v10564_v26 = vpop.eup %10563  ;;  %v4136_v10 = vmul.f32 %v10562_v54, %v13213_v36  ;;  %v4151_v45 = vpack.c.bf16 %v4132_v51, %v4132_v51 }
 0xaaf   : > { %9719 = vmatmul.mubr.msk.bf16.vlgmr.msra.gmra.mxu0 %vm1188_vm3, %v4149_v1  ;;  %v13360_v30 = vpop.eup %10565  ;;  %v4137_v52 = vmul.f32 %v10564_v26, %v13197_v2 }
 0xab0   : > { %9723 = vmatpush3.bf16.msra.mxu0 %v4236_v8  ;;  %4925 = vrot.lane.b32.xlu0 %v16345_v44, %s11118_s24  ;;  %v10568_v27 = vpop.eup %10567  ;;  %v4097_v42 = vsel %vm1188_vm3, %v13360_v30, 0.0 }
 0xab1   : > { %9724 = vmatprep.subr.bf16.mxu0 %v13155_v9  ;;  %9726 = vmatprep.mubr.msk.bf16.mxu0 %vm1188_vm3, %v4150_v43  ;;  %v10570_v29 = vpop.eup %10569  ;;  %v4154_v36 = vpack.c.bf16 %v4137_v52, %v4136_v10  ;;  %v4138_v58 = vmul.f32 %v10568_v27, %v13209_v37 }
 0xab2   : > { %v10572_v13 = vpop.eup %10571  ;;  %v4143_v2 = vmul.f32 %v10570_v29, %v13238_v41  ;;  %v16347_v41 = vld [vmem:[#allocation37_spill] sm:$0xff] }
 0xab3   : > { %4104 = vadd.xlane.f32.xlu1 %v4103_v7  ;;  %v4155_v6 = vpack.c.bf16 %v4138_v58, %v4138_v58 }
 0xab4   : > { %9725 = vmatpush3.bf16.msra.mxu0 %v13155_v9  ;;  %4991 = vrot.lane.b32.xlu0 %v11785_v62, %s11118_s24  ;;  %v4360_v9 = vsel %vm1454_vm2, %v13249_v33, 0 }
 0xab5   : > { %10040 = vmatprep.subr.msk.bf16.mxu0 %vm1454_vm2, %v13249_v33  ;;  %v4142_v33 = vmul.f32 %v10572_v13, %v13220_v49 }
 0xab7   : > { %4098 = vadd.xlane.f32.xlu1 %v4097_v42  ;;  %9727 = vmatmul.mubr.msk.bf16.vlgmr.msra.gmra.mxu0 %vm1188_vm3, %v4151_v45  ;;  %v4158_v17 = vpack.c.bf16 %v4143_v2, %v4142_v33 }
 0xab8   : > { %9739 = vmatpush3.bf16.msra.mxu0 %v4360_v9  ;;  %4993 = vrot.lane.b32.xlu0 %v16346_v40, %s11118_s24 }
 0xab9   : > { %9740 = vmatprep.subr.bf16.mxu0 %v13252_v53  ;;  %9742 = vmatprep.mubr.msk.bf16.mxu0 %vm1188_vm3, %v4154_v36 }
 0xabc   : > { %9741 = vmatpush3.bf16.msra.mxu0 %v13252_v53  ;;  %5133 = vrot.lane.b32.xlu0 %v11826_v18, %s11117_s23 }
 0xabf   : > { %9743 = vmatmul.mubr.msk.bf16.vlgmr.msra.gmra.mxu0 %vm1188_vm3, %v4155_v6 }
 0xac0   : > { %5061 = vrot.lane.b32.xlu0 %v11809_v31, %s11118_s24  ;;  %9758 = vmatprep.mubr.msk.bf16.mxu0 %vm1188_vm3, %v4158_v17 }
 0xac1   : > { %v4069_v37 = vpop.xlane.xlu1 %4068 }
 0xac2   : > { %10573 = vrcp.f32 %v4069_v37 }
 0xac4   : > { %5201 = vrot.lane.b32.xlu0 %v11845_v5, %s11117_s23 }
 0xac5   : > { %v4063_v49 = vpop.xlane.xlu1 %4062 }
 0xac6   : > { %10575 = vrcp.f32 %v4063_v49 }
 0xac8   : > { %4534 = vrot.lane.b32.xlu1 %v16347_v41, %s11114_s21  ;;  %5129 = vrot.lane.b32.xlu0 %v11826_v18, %s11118_s24 }
 0xacc   : > { %4791 = vrot.lane.b32.xlu1 %v11732_v21, %s11117_s23  ;;  %5195 = vrot.lane.b32.xlu0 %v11836_v3, %s11118_s24 }
 0xad0   : > { %4861 = vrot.lane.b32.xlu1 %v11753_v12, %s11117_s23  ;;  %5552 = vrot.lane.b32.xlu0 %v11912_v47, %s11118_s24  ;;  %v4087_v12 = vpop.xlane.xlu0 %4086  ;;  %v10574_v47 = vpop.eup %10573 }
 0xad2   : > { %v4066_v53 = vpop.xlane.xlu1 %4065 }
 0xad3   : > { %10577 = vrcp.f32 %v4066_v53  ;;  %v10576_v20 = vpop.eup %10575 }
 0xad4   : > { %4859 = vrot.lane.b32.xlu1 %v11760_v14, %s11117_s23  ;;  %5614 = vrot.lane.b32.xlu0 %v11899_v63, %s11118_s24  ;;  %v4135_v14 = vmul.f32 %v10574_v47, %v13278_v56  ;;  %v4081_v63 = vpop.xlane.xlu0 %4080  ;;  %v4133_v4 = vmul.f32 %v10576_v20, %v13283_v35  ;;  %10579 = vrcp.f32 %v13301_v55 }
 0xad5   : > { %10581 = vrcp.f32 %v4087_v12 }
 0xad6   : > { %v4475_v21 = vpop.permute.xlu1 %4474  ;;  %v4153_v57 = vpack.c.bf16 %v4135_v14, %v4135_v14  ;;  %10583 = vrcp.f32 %v4081_v63 }
 0xad7   : > { %10042 = vmatprep.subr.msk.bf16.mxu0 %vm1454_vm2, %v4475_v21  ;;  %v4484_v18 = vsel %vm1454_vm2, %v4475_v21, 0 }
 0xad8   : > { %4929 = vrot.lane.b32.xlu1 %v16345_v44, %s11117_s23  ;;  %9755 = vmatpush3.bf16.msra.mxu0 %v4484_v18  ;;  %v4411_v56 = vpop.permute.xlu0 %4410 }
 0xadc   : > { %4927 = vrot.lane.b32.xlu1 %v11768_v32, %s11117_s23  ;;  %v4422_v32 = vsel %vm1454_vm2, %v13327_v38, 0 }
 0xae0   : > { %v10578_v34 = vpop.eup %10577  ;;  %4997 = vrot.lane.b32.xlu1 %v16346_v40, %s11117_s23 }
 0xae1   : > { %v4134_v1 = vmul.f32 %v10578_v34, %v13295_v46 }
 0xae3   : > { %v4152_v39 = vpack.c.bf16 %v4134_v1, %v4133_v4 }
 0xae4   : > { %4995 = vrot.lane.b32.xlu1 %v11785_v62, %s11117_s23  ;;  %v10580_v62 = vpop.eup %10579 }
 0xae5   : > { %9734 = vmatprep.mubr.msk.bf16.mxu1 %vm1188_vm3, %v4152_v39 }
 0xae6   : > { %9735 = vmatmul.mubr.msk.bf16.vlgmr.msra.gmra.mxu1 %vm1188_vm3, %v4153_v57 }
 0xae7   : > { %9747 = vmatpush3.bf16.msra.mxu1 %v4422_v32 }
 0xae8   : > { %9748 = vmatprep.subr.bf16.mxu1 %v4411_v56  ;;  %5065 = vrot.lane.b32.xlu1 %v11809_v31, %s11117_s23 }
 0xaeb   : > { %9749 = vmatpush3.bf16.msra.mxu1 %v4411_v56 }
 0xaec   : > { %5063 = vrot.lane.b32.xlu1 %v11802_v15, %s11117_s23 }
 0xaf0   : > { %5059 = vrot.lane.b32.xlu1 %v11802_v15, %s11118_s24 }
 0xaf4   : > { %5131 = vrot.lane.b32.xlu1 %v11819_v24, %s11117_s23 }
 0xaf8   : > { %5127 = vrot.lane.b32.xlu1 %v11819_v24, %s11118_s24  ;;  %v4144_v24 = vmul.f32 %v10580_v62, %v13229_v11 }
 0xafa   : > { %v4159_v55 = vpack.c.bf16 %v4144_v24, %v4144_v24 }
 0xafc   : > { %5199 = vrot.lane.b32.xlu1 %v11836_v3, %s11117_s23  ;;  %v10311_v3 = vld [vmem:[%s12657_s20 + $0x10] sm:$0xff]  }
 0xb00   : > { %5197 = vrot.lane.b32.xlu1 %v11845_v5, %s11118_s24  ;;  %v16348_v5 = vmov 0.0  }
 0xb04   : > { %5550 = vrot.lane.b32.xlu1 %v11935_v50, %s11118_s24  ;;  %v10582_v50 = vpop.eup %10581 }
 0xb05   : > { %v10584_v8 = vpop.eup %10583  ;;  %v4141_v54 = vmul.f32 %v10582_v50, %v13287_v22 }
 0xb06   : > { %v4139_v44 = vmul.f32 %v10584_v8, %v13293_v19 }
 0xb07   : > { %v4084_v15 = vpop.xlane.xlu1 %4083  ;;  %v4102_v31 = vpop.xlane.xlu0 %4101  ;;  %v4157_v10 = vpack.c.bf16 %v4141_v54, %v4141_v54 }
 0xb08   : > { %10585 = vrcp.f32 %v4084_v15 }
 0xb0b   : > { %v4473_v35 = vpop.permute.xlu1 %4472  ;;  %v4537_v46 = vpop.permute.xlu0 %4536 }
 0xb0c   : > { %9756 = vmatprep.subr.bf16.mxu0 %v4473_v35  ;;  %10043 = vmatprep.subr.msk.bf16.mxu1 %vm1454_vm2, %v4537_v46  ;;  %v4546_v45 = vsel %vm1454_vm2, %v4537_v46, 0 }
 0xb0d   : > { %9757 = vmatpush3.bf16.msra.mxu0 %v4473_v35 }
 0xb0e   : > { %9770 = vmatprep.subr.bf16.mxu0 %v16348_v5 }
 0xb0f   : > { %v4794_v38 = vpop.permute.xlu0 %4793 }
 0xb10   : > { %9759 = vmatmul.mubr.msk.bf16.vlgmr.msra.gmra.mxu0 %vm1188_vm3, %v4159_v55  ;;  %v4805_v47 = vsel %vm689_vm1, %v4794_v38, 0 }
 0xb11   : > { %9771 = vmatpush3.bf16.msra.mxu0 %v10311_v3  ;;  %9772 = vmatprep.mubr.msk.bf16.mxu0 %vm11116_vm4, %v16348_v5 }
 0xb13   : > { %v4788_v11 = vpop.permute.xlu0 %4787 }
 0xb15   : > { %v10586_v43 = vpop.eup %10585 }
 0xb16   : > { %v4140_v51 = vmul.f32 %v10586_v43, %v13309_v28 }
 0xb17   : > { %v4790_v26 = vpop.permute.xlu0 %4789 }
 0xb18   : > { %v4156_v7 = vpack.c.bf16 %v4140_v51, %v4139_v44 }
 0xb1a   : > { %9750 = vmatprep.mubr.msk.bf16.mxu1 %vm1188_vm3, %v4156_v7 }
 0xb1b   : > { %9751 = vmatmul.mubr.msk.bf16.vlgmr.msra.gmra.mxu1 %vm1188_vm3, %v4157_v10  ;;  %v4856_v52 = vpop.permute.xlu0 %4855 }
 0xb1c   : > { %9763 = vmatpush3.bf16.msra.mxu1 %v4546_v45 }
 0xb1f   : > { %v4858_v27 = vpop.permute.xlu0 %4857 }
 0xb23   : > { %v4924_v42 = vpop.permute.xlu0 %4923 }
 0xb27   : > { %v13453_v29 = vpop.permute.xlu0 %4925 }
 0xb2b   : > { %v13455_v22 = vpop.permute.xlu0 %4991 }
 0xb2f   : > { %v13457_v19 = vpop.permute.xlu0 %4993 }
 0xb33   : > { %v5134_v28 = vpop.permute.xlu0 %5133 }
 0xb34   : > { %10054 = vmatprep.subr.msk.bf16.mxu0 %vm689_vm1, %v5134_v28  ;;  %v5145_v3 = vsel %vm689_vm1, %v5134_v28, 0 }
 0xb37   : > { %v5062_v63 = vpop.permute.xlu0 %5061 }
 0xb3b   : > { %v5202_v39 = vpop.permute.xlu0 %5201 }
 0xb3c   : > { %v4105_v9 = vpop.xlane.xlu1 %4104  ;;  %v5213_v28 = vsel %vm689_vm1, %v5202_v39, 0 }
 0xb3d   : > { %10587 = vrcp.f32 %v4105_v9 }
 0xb3e   : > { %10589 = vrcp.f32 %v4102_v31 }
 0xb3f   : > { %v13479_v31 = vpop.permute.xlu0 %5129 }
 0xb40   : > { %v4099_v36 = vpop.xlane.xlu1 %4098 }
 0xb41   : > { %10591 = vrcp.f32 %v4099_v36 }
 0xb43   : > { %v5196_v50 = vpop.permute.xlu0 %5195 }
 0xb44   : > { %v4535_v40 = vpop.permute.xlu1 %4534 }
 0xb45   : > { %9764 = vmatprep.subr.bf16.mxu1 %v4535_v40 }
 0xb46   : > { %9765 = vmatpush3.bf16.msra.mxu1 %v4535_v40 }
 0xb47   : > { %10044 = vmatprep.subr.msk.bf16.mxu1 %vm689_vm1, %v4794_v38 }
 0xb48   : > { %v4792_v13 = vpop.permute.xlu1 %4791 }
 0xb4a   : > { %v10588_v58 = vpop.eup %10587 }
 0xb4b   : > { %v10590_v2 = vpop.eup %10589  ;;  %v4147_v17 = vmul.f32 %v10588_v58, %v13348_v0 }
 0xb4c   : > { %v4862_v33 = vpop.permute.xlu1 %4861  ;;  %v4146_v49 = vmul.f32 %v10590_v2, %v13311_v48 }
 0xb4d   : > { %v4161_v18 = vpack.c.bf16 %v4147_v17, %v4147_v17  ;;  %v4873_v34 = vsel %vm689_vm1, %v4862_v33, 0 }
 0xb4e   : > { %v10592_v6 = vpop.eup %10591 }
 0xb4f   : > { %v4145_v37 = vmul.f32 %v10592_v6, %v13360_v30  ;;  %v4802_v30 = vsel %vm689_vm1, %v4792_v13, 0 }
 0xb50   : > { %v4860_v53 = vpop.permute.xlu1 %4859 }
 0xb51   : > { %v4160_v21 = vpack.c.bf16 %v4146_v49, %v4145_v37  ;;  %v4870_v4 = vsel %vm689_vm1, %v4860_v53, 0 }
 0xb53   : > { %9766 = vmatprep.mubr.msk.bf16.mxu1 %vm1188_vm3, %v4160_v21 }
 0xb54   : > { %v4930_v12 = vpop.permute.xlu1 %4929  ;;  %9767 = vmatmul.mubr.msk.bf16.vlgmr.msra.gmra.mxu1 %vm1188_vm3, %v4161_v18 }
 0xb55   : > { %9817 = vmatpush3.bf16.xpose.msra.mxu1 %v4805_v47  ;;  %9820 = vmatprep.mubr.msk.bf16.mxu1 %vm689_vm1, %v4788_v11  ;;  %v4941_v15 = vsel %vm689_vm1, %v4930_v12, 0 }
 0xb56   : > { %10045 = vmatprep.subr.msk.bf16.mxu1 %vm689_vm1, %v4792_v13 }
 0xb58   : > { %v4928_v0 = vpop.permute.xlu1 %4927 }
 0xb59   : > { %v4938_v11 = vsel %vm689_vm1, %v4928_v0, 0 }
 0xb5c   : > { %v4998_v20 = vpop.permute.xlu1 %4997 }
 0xb5d   : > { %9819 = vmatpush3.bf16.xpose.msra.mxu1 %v4802_v30  ;;  %v5009_v45 = vsel %vm689_vm1, %v4998_v20, 0 }
 0xb5e   : > { %10046 = vmatprep.subr.msk.bf16.mxu1 %vm689_vm1, %v4862_v33 }
 0xb60   : > { %v4996_v48 = vpop.permute.xlu1 %4995 }
 0xb64   : > { %9821 = vmatmul.mubr.msk.bf16.vlgmr.msra.gmra.mxu1 %vm689_vm1, %v4790_v26  ;;  %v5066_v14 = vpop.permute.xlu1 %5065  ;;  %v13492_v26 = vpop.permute.xlu0 %5552 }
 0xb65   : > { %9825 = vmatpush3.bf16.xpose.msra.mxu1 %v4873_v34  ;;  %9828 = vmatprep.mubr.msk.bf16.mxu1 %vm689_vm1, %v4856_v52 }
 0xb66   : > { %10047 = vmatprep.subr.msk.bf16.mxu1 %vm689_vm1, %v4860_v53 }
 0xb68   : > { %v5064_v1 = vpop.permute.xlu1 %5063  ;;  %v5615_v2 = vpop.permute.xlu0 %5614 }
 0xb69   : > { %v5624_v17 = vsel %vm1454_vm2, %v5615_v2, 0 }
 0xb6c   : > { %v5060_v56 = vpop.permute.xlu1 %5059 }
 0xb6d   : > { %9827 = vmatpush3.bf16.xpose.msra.mxu1 %v4870_v4 }
 0xb6e   : > { %10048 = vmatprep.subr.msk.bf16.mxu1 %vm689_vm1, %v4930_v12 }
 0xb6f   : > { %v9720_v57 = vpop.f32.mrf.mxu0 }
 0xb70   : > { %v5132_v55 = vpop.permute.xlu1 %5131 }
 0xb71   : > { %v4210_v32 = vpop.f32.mrf.mxu0  ;;  %v5142_v51 = vsel %vm689_vm1, %v5132_v55, 0 }
 0xb73   : > { %v9721_v62 = vpop.f32.mrf.mxu0 }
 0xb74   : > { %9829 = vmatmul.mubr.msk.bf16.vlgmr.msra.gmra.mxu1 %vm689_vm1, %v4858_v27  ;;  %v5006_v27 = vsel %vm689_vm1, %v4996_v48, 0 }
 0xb75   : > { %9833 = vmatpush3.bf16.xpose.msra.mxu1 %v4941_v15  ;;  %9836 = vmatprep.mubr.msk.bf16.mxu1 %vm689_vm1, %v4924_v42  ;;  %v4213_v24 = vpop.f32.mrf.mxu0  ;;  %v5077_v42 = vsel %vm689_vm1, %v5066_v14, 0 }
 0xb76   : > { %v4596_v35 = vpack.c.bf16 %v4213_v24, %v4210_v32  ;;  %10049 = vmatprep.subr.msk.bf16.mxu1 %vm689_vm1, %v4928_v0 }
 0xb77   : > { %v9728_v46 = vpop.f32.mrf.mxu0 }
 0xb78   : > { %9773 = vmatmul.mubr.msk.bf16.vlgmr.msra.gmra.mxu0 %vm689_vm1, %v4596_v35 }
 0xb79   : > { %9857 = vmatpush3.bf16.xpose.msra.mxu0 %v5145_v3  ;;  %v4272_v38 = vpop.f32.mrf.mxu0  ;;  %9776 = vmatprep.mubr.msk.bf16.mxu0 %vm11116_vm4, %v16348_v5 }
 0xb7a   : > { %10055 = vmatprep.subr.msk.bf16.mxu0 %vm689_vm1, %v5132_v55  ;;  %v4597_v54 = vpack.c.bf16 %v4272_v38, %v9720_v57 }
 0xb7b   : > { %v9729_v8 = vpop.f32.mrf.mxu0 }
 0xb7d   : > { %9835 = vmatpush3.bf16.xpose.msra.mxu1 %v4938_v11  ;;  %v4275_v43 = vpop.f32.mrf.mxu0 }
 0xb7e   : > { %10050 = vmatprep.subr.msk.bf16.mxu1 %vm689_vm1, %v4998_v20  ;;  %v4598_v52 = vpack.c.bf16 %v9728_v46, %v4275_v43 }
 0xb7f   : > { %v9744_v44 = vpop.f32.mrf.mxu0 }
 0xb80   : > { %9777 = vmatmul.mubr.msk.bf16.gmra.mxu0 %vm689_vm1, %v4597_v54  ;;  %v5562_v54 = vsel %vm1454_vm2, %v13492_v26, 0 }
 0xb81   : > { %9859 = vmatpush3.bf16.xpose.msra.mxu0 %v5142_v51  ;;  %v4396_v7 = vpop.f32.mrf.mxu0  ;;  %9780 = vmatprep.mubr.msk.bf16.mxu0 %vm11116_vm4, %v16348_v5 }
 0xb82   : > { %10058 = vmatprep.subr.msk.bf16.mxu0 %vm1454_vm2, %v13492_v26 }
 0xb83   : > { %v9745_v10 = vpop.f32.mrf.mxu0 }
 0xb84   : > { %9837 = vmatmul.mubr.msk.bf16.vlgmr.msra.gmra.mxu1 %vm689_vm1, %v13453_v29  ;;  %v5074_v29 = vsel %vm689_vm1, %v5064_v1, 0 }
 0xb85   : > { %9841 = vmatpush3.bf16.xpose.msra.mxu1 %v5009_v45  ;;  %9844 = vmatprep.mubr.msk.bf16.mxu1 %vm689_vm1, %v13455_v22  ;;  %v5128_v22 = vpop.permute.xlu1 %5127  ;;  %v4399_v49 = vpop.f32.mrf.mxu0 }
 0xb86   : > { %10051 = vmatprep.subr.msk.bf16.mxu1 %vm689_vm1, %v4996_v48  ;;  %v4601_v53 = vpack.c.bf16 %v9744_v44, %v4399_v49 }
 0xb88   : > { %9781 = vmatmul.mubr.msk.bf16.gmra.mxu0 %vm689_vm1, %v4598_v52 }
 0xb89   : > { %9784 = vmatprep.mubr.msk.bf16.mxu0 %vm11116_vm4, %v16348_v5  ;;  %v5200_v9 = vpop.permute.xlu1 %5199 }
 0xb8a   : > { %v5210_v58 = vsel %vm689_vm1, %v5200_v9, 0 }
 0xb8d   : > { %9843 = vmatpush3.bf16.xpose.msra.mxu1 %v5006_v27  ;;  %v5198_v6 = vpop.permute.xlu1 %5197 }
 0xb8e   : > { %10052 = vmatprep.subr.msk.bf16.mxu1 %vm689_vm1, %v5066_v14 }
 0xb91   : > { %v5551_v44 = vpop.permute.xlu1 %5550 }
 0xb94   : > { %9845 = vmatmul.mubr.msk.bf16.vlgmr.msra.gmra.mxu1 %vm689_vm1, %v13457_v19 }
 0xb95   : > { %9849 = vmatpush3.bf16.xpose.msra.mxu1 %v5077_v42  ;;  %9852 = vmatprep.mubr.msk.bf16.mxu1 %vm689_vm1, %v5060_v56 }
 0xb96   : > { %10053 = vmatprep.subr.msk.bf16.mxu1 %vm689_vm1, %v5064_v1 }
 0xb9d   : > { %9851 = vmatpush3.bf16.xpose.msra.mxu1 %v5074_v29 }
 0xb9e   : > { %10056 = vmatprep.subr.msk.bf16.mxu1 %vm689_vm1, %v5202_v39 }
 0xba4   : > { %9853 = vmatmul.mubr.msk.bf16.vlgmr.msra.gmra.mxu1 %vm689_vm1, %v5062_v63 }
 0xba5   : > { %9865 = vmatpush3.bf16.xpose.msra.mxu1 %v5213_v28  ;;  %9868 = vmatprep.mubr.msk.bf16.mxu1 %vm689_vm1, %v5196_v50 }
 0xba6   : > { %10057 = vmatprep.subr.msk.bf16.mxu1 %vm689_vm1, %v5200_v9  ;;  %v9736_v19 = vpop.f32.mrf.mxu1 }
 0xba7   : > { %v4600_v37 = vpack.c.bf16 %v4396_v7, %v9736_v19 }
 0xba8   : > { %v4334_v36 = vpop.f32.mrf.mxu1 }
 0xbaa   : > { %v9737_v40 = vpop.f32.mrf.mxu1 }
 0xbac   : > { %v4337_v13 = vpop.f32.mrf.mxu1 }
 0xbad   : > { %v4599_v33 = vpack.c.bf16 %v4337_v13, %v4334_v36  ;;  %9867 = vmatpush3.bf16.xpose.msra.mxu1 %v5210_v58  ;;  %v16349_v13 = vld [vmem:[#allocation33_spill] sm:$0xff] }
 0xbae   : > { %10059 = vmatprep.subr.msk.bf16.mxu1 %vm1454_vm2, %v5615_v2 }
 0xbaf   : > { %9785 = vmatmul.mubr.msk.bf16.gmra.mxu0 %vm689_vm1, %v4599_v33 }
 0xbb0   : > { %9788 = vmatprep.mubr.msk.bf16.mxu0 %vm11116_vm4, %v16348_v5 }
 0xbb4   : > { %9869 = vmatmul.mubr.msk.bf16.vlgmr.msra.gmra.mxu1 %vm689_vm1, %v5198_v6  ;;  %v16350_v6 = vld [vmem:[#allocation44_spill] sm:$0xff] }
 0xbb5   : > { %9881 = vmatpush3.bf16.msra.mxu1 %v5624_v17 }
 0xbb7   : > { %9789 = vmatmul.mubr.msk.bf16.gmra.mxu0 %vm689_vm1, %v4600_v37 }
 0xbb8   : > { %9792 = vmatprep.mubr.msk.bf16.mxu0 %vm11116_vm4, %v16348_v5 }
 0xbbf   : > { %9793 = vmatmul.mubr.msk.bf16.gmra.mxu0 %vm689_vm1, %v4601_v53 }
 0xbc0   : > { %9796 = vmatprep.mubr.msk.bf16.mxu0 %vm11116_vm4, %v16348_v5 }
 0xbd0   : > { %v9760_v21 = vpop.f32.mrf.mxu0 }
 0xbd2   : > { %v4520_v18 = vpop.f32.mrf.mxu0 }
 0xbd4   : > { %v9761_v12 = vpop.f32.mrf.mxu0 }
 0xbd5   : > { %v16351_v12 = vld [vmem:[#allocation48_spill] sm:$0xff] }
 0xbd6   : > { %v4523_v14 = vpop.f32.mrf.mxu0 }
 0xbd7   : > { %v4604_v63 = vpack.c.bf16 %v9760_v21, %v4523_v14 }
 0xbdb   : > { %v9752_v47 = vpop.f32.mrf.mxu1 }
 0xbdc   : > { %v4603_v34 = vpack.c.bf16 %v4520_v18, %v9752_v47 }
 0xbdd   : > { %v4458_v0 = vpop.f32.mrf.mxu1 }
 0xbdf   : > { %v9753_v20 = vpop.f32.mrf.mxu1 }
 0xbe1   : > { %v4461_v30 = vpop.f32.mrf.mxu1 }
 0xbe2   : > { %v4602_v48 = vpack.c.bf16 %v4461_v30, %v4458_v0 }
 0xbe4   : > { %9797 = vmatmul.mubr.msk.bf16.gmra.mxu0 %vm689_vm1, %v4602_v48  ;;  %v16352_v48 = vld [vmem:[#allocation47_spill] sm:$0xff] }
 0xbe5   : > { %9800 = vmatprep.mubr.msk.bf16.mxu0 %vm11116_vm4, %v16348_v5 }
 0xbec   : > { %9801 = vmatmul.mubr.msk.bf16.gmra.mxu0 %vm689_vm1, %v4603_v34 }
 0xbed   : > { %9804 = vmatprep.mubr.msk.bf16.mxu0 %vm11116_vm4, %v16348_v5 }
 0xbf4   : > { %9805 = vmatmul.mubr.msk.bf16.gmra.mxu0 %vm689_vm1, %v4604_v63 }
 0xbf5   : > { %9808 = vmatprep.mubr.msk.bf16.mxu0 %vm11116_vm4, %v16348_v5 }
 0xc14   : > { %v9768_v4 = vpop.f32.mrf.mxu1 }
 0xc15   : > { %v4606_v56 = vpack.c.bf16 %v9768_v4, %v9768_v4 }
 0xc16   : > { %v4582_v1 = vpop.f32.mrf.mxu1 }
 0xc18   : > { %v9769_v39 = vpop.f32.mrf.mxu1 }
 0xc1a   : > { %v4585_v57 = vpop.f32.mrf.mxu1 }
 0xc1b   : > { %v4605_v32 = vpack.c.bf16 %v4585_v57, %v4582_v1 }
 0xc1d   : > { %9809 = vmatmul.mubr.msk.bf16.gmra.mxu0 %vm689_vm1, %v4605_v32 }
 0xc1e   : > { %9812 = vmatprep.mubr.msk.bf16.mxu0 %vm11116_vm4, %v16348_v5 }
 0xc24   : > { %v9822_v62 = vpop.f32.mrf.mxu1 }
 0xc25   : > { %v5265_v15 = vmul.f32 0.25, %v9822_v62  ;;  %9813 = vmatmul.mubr.msk.bf16.gmra.mxu0 %vm689_vm1, %v4606_v56 }
 0xc26   : > { %v4841_v24 = vpop.f32.mrf.mxu1  ;;  %9860 = vmatprep.mubr.msk.bf16.mxu0 %vm689_vm1, %v5128_v22 }
 0xc27   : > { %v13548_v35 = vadd.f32 %v16327_v23, %v5265_v15  ;;  %v5263_v46 = vmul.f32 0.25, %v4841_v24 }
 0xc28   : > { %v9823_v3 = vpop.f32.mrf.mxu1 }
 0xc29   : > { %v13551_v55 = vadd.f32 %v16327_v23, %v5263_v46  ;;  %v5311_v38 = vsel %vm1188_vm3, %v13548_v35, -inf }
 0xc2a   : > { %5312 = vmax.xlane.f32.xlu0 %v5311_v38  ;;  %v4844_v50 = vpop.f32.mrf.mxu1 }
 0xc2b   : > { %v5264_v8 = vmul.f32 0.25, %v4844_v50  ;;  %v5305_v43 = vsel %vm1188_vm3, %v13551_v55, -inf }
 0xc2d   : > { %v13556_v11 = vadd.f32 %v16327_v23, %v5264_v8  ;;  %9861 = vmatmul.mubr.msk.bf16.vlgmr.msra.gmra.mxu0 %vm689_vm1, %v13479_v31 }
 0xc2e   : > { %5306 = vmax.xlane.f32.xlu0 %v5305_v43  ;;  %9873 = vmatpush3.bf16.msra.mxu0 %v5562_v54 }
 0xc2f   : > { %9874 = vmatprep.subr.bf16.mxu0 %v5551_v44  ;;  %v5308_v51 = vsel %vm1188_vm3, %v13556_v11, -inf }
 0xc30   : > { %5309 = vmax.xlane.f32.xlu1 %v5308_v51 }
 0xc32   : > { %9875 = vmatpush3.bf16.msra.mxu0 %v5551_v44 }
 0xc34   : > { %v9830_v7 = vpop.f32.mrf.mxu1 }
 0xc35   : > { %v5268_v32 = vmul.f32 0.25, %v9830_v7 }
 0xc36   : > { %v4909_v10 = vpop.f32.mrf.mxu1 }
 0xc37   : > { %v13605_v24 = vadd.f32 %v16327_v23, %v5268_v32  ;;  %v5266_v46 = vmul.f32 0.25, %v4909_v10 }
 0xc38   : > { %v9831_v45 = vpop.f32.mrf.mxu1  ;;  %v4680_v52 = vpop.f32.mrf.mxu0 }
 0xc39   : > { %v13567_v27 = vadd.f32 %v4680_v52, %v13024_v25  ;;  %v13610_v38 = vadd.f32 %v16327_v23, %v5266_v46  ;;  %v5320_v8 = vsel %vm1188_vm3, %v13605_v24, -inf }
 0xc3a   : > { %v4912_v31 = vpop.f32.mrf.mxu1  ;;  %v9774_v42 = vpop.f32.mrf.mxu0 }
 0xc3b   : > { %v5267_v29 = vmul.f32 0.25, %v4912_v31  ;;  %v5314_v10 = vsel %vm1188_vm3, %v13610_v38, -inf }
 0xc3c   : > { %v4683_v26 = vpop.f32.mrf.mxu0 }
 0xc3d   : > { %v13570_v22 = vadd.f32 %v16327_v23, %v5267_v29  ;;  %v13573_v28 = vadd.f32 %v4683_v26, %v13028_v60 }
 0xc3e   : > { %v9775_v9 = vpop.f32.mrf.mxu0 }
 0xc3f   : > { %v5317_v19 = vsel %vm1188_vm3, %v13570_v22, -inf }
 0xc40   : > { %5318 = vmax.xlane.f32.xlu1 %v5317_v19  ;;  %v4688_v36 = vpop.f32.mrf.mxu0 }
 0xc41   : > { %v13578_v40 = vadd.f32 %v4688_v36, %v13036_v59 }
 0xc42   : > { %v9778_v25 = vpop.f32.mrf.mxu0 }
 0xc44   : > { %5612 = vrot.lane.b32.xlu0 %v16349_v13, %s11118_s24  ;;  %v9838_v58 = vpop.f32.mrf.mxu1  ;;  %v4691_v2 = vpop.f32.mrf.mxu0 }
 0xc45   : > { %v5271_v33 = vmul.f32 0.25, %v9838_v58  ;;  %v13583_v17 = vadd.f32 %v4691_v2, %v16350_v6  ;;  %v16353_v6 = vld [vmem:[#allocation52_spill] sm:$0xff] }
 0xc46   : > { %v4977_v60 = vpop.f32.mrf.mxu1  ;;  %v9779_v37 = vpop.f32.mrf.mxu0 }
 0xc47   : > { %v13586_v49 = vadd.f32 %v16327_v23, %v5271_v33  ;;  %v5269_v53 = vmul.f32 0.25, %v4977_v60 }
 0xc48   : > { %v9839_v21 = vpop.f32.mrf.mxu1  ;;  %v4696_v18 = vpop.f32.mrf.mxu0 }
 0xc49   : > { %v13589_v59 = vadd.f32 %v16327_v23, %v5269_v53  ;;  %v13592_v47 = vadd.f32 %v4696_v18, %v16351_v12  ;;  %v5329_v0 = vsel %vm1188_vm3, %v13586_v49, -inf  ;;  %v16354_v12 = vld [vmem:[#allocation46_spill] sm:$0xff] }
 0xc4a   : > { %5330 = vmax.xlane.f32.xlu1 %v5329_v0  ;;  %v9782_v20 = vpop.f32.mrf.mxu0  ;;  %v4980_v4 = vpop.f32.mrf.mxu1 }
 0xc4b   : > { %v5323_v14 = vsel %vm1188_vm3, %v13589_v59, -inf  ;;  %v5270_v50 = vmul.f32 0.25, %v4980_v4 }
 0xc4c   : > { %v4699_v30 = vpop.f32.mrf.mxu0 }
 0xc4d   : > { %v13597_v34 = vadd.f32 %v4699_v30, %v16352_v48  ;;  %v13615_v44 = vadd.f32 %v16327_v23, %v5270_v50 }
 0xc4e   : > { %5324 = vmax.xlane.f32.xlu1 %v5323_v14  ;;  %v9783_v63 = vpop.f32.mrf.mxu0 }
 0xc4f   : > { %v5326_v19 = vsel %vm1188_vm3, %v13615_v44, -inf }
 0xc54   : > { %v9846_v1 = vpop.f32.mrf.mxu1 }
 0xc55   : > { %v5274_v51 = vmul.f32 0.25, %v9846_v1 }
 0xc56   : > { %v5045_v39 = vpop.f32.mrf.mxu1 }
 0xc57   : > { %v13628_v26 = vadd.f32 %v16327_v23, %v5274_v51  ;;  %v5272_v9 = vmul.f32 0.25, %v5045_v39 }
 0xc58   : > { %v9847_v57 = vpop.f32.mrf.mxu1 }
 0xc59   : > { %v13635_v13 = vadd.f32 %v16327_v23, %v5272_v9  ;;  %v5338_v2 = vsel %vm1188_vm3, %v13628_v26, -inf  ;;  %v16355_v57 = vld [vmem:[#allocation54_spill] sm:$0xff]  ;;  %v16357_v9 = vld [vmem:[#allocation53_spill] sm:$0xff] }
 0xc5a   : > { %v5048_v56 = vpop.f32.mrf.mxu1 }
 0xc5b   : > { %v5273_v62 = vmul.f32 0.25, %v5048_v56  ;;  %v5332_v21 = vsel %vm1188_vm3, %v13635_v13, -inf }
 0xc5d   : > { %v13602_v15 = vadd.f32 %v16327_v23, %v5273_v62 }
 0xc5f   : > { %v5335_v3 = vsel %vm1188_vm3, %v13602_v15, -inf }
 0xc60   : > { %5336 = vmax.xlane.f32.xlu1 %v5335_v3 }
 0xc63   : > { %5321 = vmax.xlane.f32.xlu0 %v5320_v8 }
 0xc64   : > { %v9854_v43 = vpop.f32.mrf.mxu1 }
 0xc65   : > { %v5277_v54 = vmul.f32 0.25, %v9854_v43 }
 0xc66   : > { %v5113_v7 = vpop.f32.mrf.mxu1 }
 0xc67   : > { %v13620_v45 = vadd.f32 %v16327_v23, %v5277_v54  ;;  %v5275_v52 = vmul.f32 0.25, %v5113_v7  ;;  %5315 = vmax.xlane.f32.xlu0 %v5314_v10  ;;  %v16356_v54 = vld [vmem:[#allocation50_spill] sm:$0xff] }
 0xc68   : > { %v9855_v31 = vpop.f32.mrf.mxu1 }
 0xc69   : > { %v13623_v42 = vadd.f32 %v16327_v23, %v5275_v52  ;;  %v5347_v29 = vsel %vm1188_vm3, %v13620_v45, -inf }
 0xc6a   : > { %5348 = vmax.xlane.f32.xlu1 %v5347_v29  ;;  %v5116_v36 = vpop.f32.mrf.mxu1 }
 0xc6b   : > { %5327 = vmax.xlane.f32.xlu0 %v5326_v19  ;;  %v5341_v25 = vsel %vm1188_vm3, %v13623_v42, -inf  ;;  %v5276_v58 = vmul.f32 0.25, %v5116_v36 }
 0xc6d   : > { %v13643_v53 = vadd.f32 %v16327_v23, %v5276_v58  ;;  %v16358_v58 = vld [vmem:[#allocation55_spill] sm:$0xff] }
 0xc6e   : > { %5342 = vmax.xlane.f32.xlu1 %v5341_v25 }
 0xc6f   : > { %5339 = vmax.xlane.f32.xlu0 %v5338_v2  ;;  %v4704_v33 = vpop.f32.mrf.mxu0  ;;  %v5344_v63 = vsel %vm1188_vm3, %v13643_v53, -inf }
 0xc70   : > { %v13640_v60 = vadd.f32 %v4704_v33, %v16353_v6  ;;  %v16359_v6 = vld [vmem:[#allocation51_spill] sm:$0xff] }
 0xc71   : > { %v9786_v37 = vpop.f32.mrf.mxu0 }
 0xc72   : > { %v16360_v37 = vld [vmem:[#allocation29_spill] sm:$0xff] }
 0xc73   : > { %5333 = vmax.xlane.f32.xlu0 %v5332_v21  ;;  %v4707_v18 = vpop.f32.mrf.mxu0  ;;  %v3362_v21 = vadd.f32 %v16360_v37, %v16359_v6 }
 0xc74   : > { %v13648_v0 = vadd.f32 %v4707_v18, %v16354_v12  ;;  %v9870_v20 = vpop.f32.mrf.mxu1 }
 0xc75   : > { %v5283_v30 = vmul.f32 0.25, %v9870_v20  ;;  %v9787_v48 = vpop.f32.mrf.mxu0 }
 0xc76   : > { %v5249_v14 = vpop.f32.mrf.mxu1  ;;  %v16362_v48 = vld [vmem:[#allocation38_spill] sm:$0xff] }
 0xc77   : > { %v13653_v4 = vadd.f32 %v16327_v23, %v5283_v30  ;;  %v5281_v1 = vmul.f32 0.25, %v5249_v14  ;;  %5345 = vmax.xlane.f32.xlu0 %v5344_v63  ;;  %v4712_v39 = vpop.f32.mrf.mxu0  ;;  %v16361_v30 = vld [vmem:[#allocation56_spill] sm:$0xff] }
 0xc78   : > { %v13656_v32 = vadd.f32 %v4712_v39, %v16355_v57  ;;  %v9871_v56 = vpop.f32.mrf.mxu1  ;;  %v3365_v14 = vadd.f32 %v16362_v48, %v16361_v30  ;;  %v16363_v57 = vld [vmem:[#allocation57_spill] sm:$0xff] }
 0xc79   : > { %v13659_v62 = vadd.f32 %v16327_v23, %v5281_v1  ;;  %v9790_v46 = vpop.f32.mrf.mxu0  ;;  %v5365_v3 = vsel %vm1188_vm3, %v13653_v4, -inf  ;;  %v16364_v56 = vld [vmem:[#allocation30_spill] sm:$0xff]  ;;  %v16370_v30 = vld [vmem:[#allocation45_spill] sm:$0xff] }
 0xc7a   : > { %5366 = vmax.xlane.f32.xlu1 %v5365_v3  ;;  %v5252_v50 = vpop.f32.mrf.mxu1  ;;  %v3370_v46 = vadd.f32 %v16364_v56, %v16363_v57 }
 0xc7b   : > { %v5282_v8 = vmul.f32 0.25, %v5252_v50  ;;  %v4715_v43 = vpop.f32.mrf.mxu0  ;;  %v5359_v52 = vsel %vm1188_vm3, %v13659_v62, -inf }
 0xc7c   : > { %v13664_v51 = vadd.f32 %v4715_v43, %v16356_v54  ;;  %v16365_v43 = vld [vmem:[#allocation58_spill] sm:$0xff]  ;;  %v16366_v54 = vld [vmem:[#allocation28_spill] sm:$0xff] }
 0xc7d   : > { %v13667_v7 = vadd.f32 %v16327_v23, %v5282_v8  ;;  %v9791_v10 = vpop.f32.mrf.mxu0 }
 0xc7e   : > { %5360 = vmax.xlane.f32.xlu1 %v5359_v52  ;;  %v3373_v10 = vadd.f32 %v16366_v54, %v16365_v43 }
 0xc7f   : > { %v4720_v31 = vpop.f32.mrf.mxu0  ;;  %v5362_v29 = vsel %vm1188_vm3, %v13667_v7, -inf }
 0xc80   : > { %v13674_v19 = vadd.f32 %v4720_v31, %v16357_v9  ;;  %5363 = vmax.xlane.f32.xlu0 %v5362_v29  ;;  %v16367_v9 = vld [vmem:[#allocation59_spill] sm:$0xff] }
 0xc81   : > { %v9794_v36 = vpop.f32.mrf.mxu0 }
 0xc82   : > { %v16368_v36 = vld [vmem:[#allocation31_spill] sm:$0xff] }
 0xc83   : > { %v4723_v25 = vpop.f32.mrf.mxu0 }
 0xc84   : > { %v13677_v2 = vadd.f32 %v4723_v25, %v16358_v58  ;;  %v3378_v25 = vadd.f32 %v16368_v36, %v16367_v9 }
 0xc85   : > { %v9795_v33 = vpop.f32.mrf.mxu0 }
 0xca4   : > { %v4728_v18 = vpop.f32.mrf.mxu0 }
 0xca5   : > { %v13681_v12 = vadd.f32 %v4728_v18, %v3362_v21 }
 0xca6   : > { %v9798_v20 = vpop.f32.mrf.mxu0 }
 0xca7   : > { %v16369_v20 = vld [vmem:[#allocation60_spill] sm:$0xff] }
 0xca8   : > { %v4731_v63 = vpop.f32.mrf.mxu0  ;;  %v3381_v48 = vadd.f32 %v16370_v30, %v16369_v20 }
 0xca9   : > { %v13685_v1 = vadd.f32 %v4731_v63, %v3365_v14 }
 0xcaa   : > { %v9799_v39 = vpop.f32.mrf.mxu0 }
 0xcac   : > { %v4736_v3 = vpop.f32.mrf.mxu0 }
 0xcad   : > { %v13689_v50 = vadd.f32 %v4736_v3, %v3370_v46 }
 0xcae   : > { %v9802_v8 = vpop.f32.mrf.mxu0 }
 0xcb0   : > { %v4739_v52 = vpop.f32.mrf.mxu0 }
 0xcb1   : > { %v13693_v31 = vadd.f32 %v4739_v52, %v3373_v10 }
 0xcb2   : > { %v9803_v29 = vpop.f32.mrf.mxu0 }
 0xcb3   : > { %v5313_v58 = vpop.xlane.xlu0 %5312 }
 0xcb4   : > { %v5370_v33 = vsub.f32 %v13548_v35, %v5313_v58  ;;  %v4744_v6 = vpop.f32.mrf.mxu0 }
 0xcb5   : > { %v13698_v37 = vadd.f32 %v4744_v6, %v3378_v25  ;;  %v16372_v6 = vld [vmem:[#allocation32_spill] sm:$0xff] }
 0xcb6   : > { %v5393_v21 = vmul.f32 1.442695, %v5370_v33  ;;  %v9806_v18 = vpop.f32.mrf.mxu0  ;;  %v16371_v33 = vld [vmem:[#allocation61_spill] sm:$0xff] }
 0xcb7   : > { %v5307_v14 = vpop.xlane.xlu0 %5306 }
 0xcb8   : > { %10593 = vpow2.f32 %v5393_v21  ;;  %v5368_v63 = vsub.f32 %v13551_v55, %v5307_v14  ;;  %v4747_v39 = vpop.f32.mrf.mxu0  ;;  %v3386_v21 = vadd.f32 %v16372_v6, %v16371_v33  ;;  %v16374_v14 = vld [vmem:[#allocation43_spill] sm:$0xff] }
 0xcb9   : > { %v13703_v57 = vadd.f32 %v4747_v39, %v3381_v48  ;;  %v5310_v56 = vpop.xlane.xlu1 %5309  ;;  %v16373_v48 = vld [vmem:[#allocation62_spill] sm:$0xff] }
 0xcba   : > { %v5389_v46 = vmul.f32 1.442695, %v5368_v63  ;;  %v5369_v3 = vsub.f32 %v13556_v11, %v5310_v56  ;;  %v9807_v35 = vpop.f32.mrf.mxu0  ;;  %v3389_v63 = vadd.f32 %v16374_v14, %v16373_v48 }
 0xcbb   : > { %v5613_v8 = vpop.permute.xlu0 %5612  ;;  %v16376_v35 = vld [vmem:[#allocation49_spill] sm:$0xff] }
 0xcbc   : > { %10595 = vpow2.f32 %v5389_v46  ;;  %v5391_v43 = vmul.f32 1.442695, %v5369_v3  ;;  %9882 = vmatprep.subr.bf16.mxu1 %v5613_v8  ;;  %v16375_v3 = vld [vmem:[#allocation63_spill] sm:$0xff] }
 0xcbd   : > { %9883 = vmatpush3.bf16.msra.mxu1 %v5613_v8  ;;  %v3394_v8 = vadd.f32 %v16376_v35, %v16375_v3 }
 0xcbe   : > { %10597 = vpow2.f32 %v5391_v43 }
 0xcc5   : > { %v13706_v54 = vpop.eup %10593 }
 0xcc6   : > { %v5437_v10 = vsel %vm1188_vm3, %v13706_v54, 0.0 }
 0xcc7   : > { %5438 = vadd.xlane.f32.xlu0 %v5437_v10 }
 0xcc9   : > { %v13710_v55 = vpop.eup %10595  ;;  %v5319_v52 = vpop.xlane.xlu1 %5318 }
 0xcca   : > { %v5372_v29 = vsub.f32 %v13570_v22, %v5319_v52  ;;  %v5431_v11 = vsel %vm1188_vm3, %v13710_v55, 0.0 }
 0xccb   : > { %v13715_v9 = vpop.eup %10597  ;;  %5432 = vadd.xlane.f32.xlu0 %v5431_v11 }
 0xccc   : > { %v5397_v36 = vmul.f32 1.442695, %v5372_v29  ;;  %v5434_v25 = vsel %vm1188_vm3, %v13715_v9, 0.0 }
 0xccd   : > { %5435 = vadd.xlane.f32.xlu1 %v5434_v25 }
 0xcce   : > { %10599 = vpow2.f32 %v5397_v36 }
 0xcd3   : > { %v5331_v11 = vpop.xlane.xlu1 %5330 }
 0xcdb   : > { %v13719_v58 = vpop.eup %10599 }
 0xcdc   : > { %v5443_v22 = vsel %vm1188_vm3, %v13719_v58, 0.0 }
 0xcdd   : > { %5444 = vadd.xlane.f32.xlu0 %v5443_v22  ;;  %v4752_v18 = vpop.f32.mrf.mxu0 }
 0xcde   : > { %v13725_v20 = vadd.f32 %v4752_v18, %v3386_v21  ;;  %v5376_v21 = vsub.f32 %v13586_v49, %v5331_v11 }
 0xcdf   : > { %v9810_v30 = vpop.f32.mrf.mxu0 }
 0xce0   : > { %v5325_v30 = vpop.xlane.xlu1 %5324 }
 0xce1   : > { %v4755_v39 = vpop.f32.mrf.mxu0 }
 0xce2   : > { %v13729_v56 = vadd.f32 %v4755_v39, %v3389_v63  ;;  %v5405_v39 = vmul.f32 1.442695, %v5376_v21 }
 0xce3   : > { %v9811_v46 = vpop.f32.mrf.mxu0 }
 0xce4   : > { %v5374_v46 = vsub.f32 %v13589_v59, %v5325_v30 }
 0xce5   : > { %v4760_v43 = vpop.f32.mrf.mxu0 }
 0xce6   : > { %v13733_v10 = vadd.f32 %v4760_v43, %v3394_v8 }
 0xce7   : > { %v9814_v52 = vpop.f32.mrf.mxu0 }
 0xce9   : > { %v4763_v29 = vpop.f32.mrf.mxu0  ;;  %v5337_v8 = vpop.xlane.xlu1 %5336 }
 0xcea   : > { %v5378_v11 = vsub.f32 %v13602_v15, %v5337_v8 }
 0xceb   : > { %v9815_v36 = vpop.f32.mrf.mxu0 }
 0xcec   : > { %v5322_v25 = vpop.xlane.xlu0 %5321  ;;  %v5409_v21 = vmul.f32 1.442695, %v5378_v11 }
 0xced   : > { %v5373_v33 = vsub.f32 %v13605_v24, %v5322_v25  ;;  %v9862_v6 = vpop.f32.mrf.mxu0  ;;  %v5401_v24 = vmul.f32 1.442695, %v5374_v46 }
 0xcef   : > { %v5399_v22 = vmul.f32 1.442695, %v5373_v33  ;;  %v5181_v18 = vpop.f32.mrf.mxu0 }
 0xcf0   : > { %v5316_v48 = vpop.xlane.xlu0 %5315 }
 0xcf1   : > { %10601 = vpow2.f32 %v5399_v22  ;;  %v5371_v14 = vsub.f32 %v13610_v38, %v5316_v48  ;;  %v9863_v63 = vpop.f32.mrf.mxu0 }
 0xcf3   : > { %v5395_v3 = vmul.f32 1.442695, %v5371_v14  ;;  %v5349_v29 = vpop.xlane.xlu1 %5348 }
 0xcf4   : > { %v5328_v35 = vpop.xlane.xlu0 %5327  ;;  %v5382_v14 = vsub.f32 %v13620_v45, %v5349_v29  ;;  %v5184_v45 = vpop.f32.mrf.mxu0  ;;  %v5278_v29 = vmul.f32 0.25, %v5181_v18 }
 0xcf5   : > { %10603 = vpow2.f32 %v5395_v3  ;;  %v5375_v43 = vsub.f32 %v13615_v44, %v5328_v35  ;;  %v5280_v35 = vmul.f32 0.25, %v9862_v6  ;;  %v5279_v6 = vmul.f32 0.25, %v5184_v45 }
 0xcf6   : > { %10605 = vpow2.f32 %v5405_v39  ;;  %v5417_v8 = vmul.f32 1.442695, %v5382_v14  ;;  %v16377_v14 = vld [vmem:[#allocation35_spill] sm:$0xff] }
 0xcf7   : > { %10607 = vpow2.f32 %v5401_v24  ;;  %v5403_v38 = vmul.f32 1.442695, %v5375_v43  ;;  %v5343_v30 = vpop.xlane.xlu1 %5342 }
 0xcf8   : > { %v5340_v49 = vpop.xlane.xlu0 %5339  ;;  %v5380_v15 = vsub.f32 %v13623_v42, %v5343_v30 }
 0xcf9   : > { %v5379_v52 = vsub.f32 %v13628_v26, %v5340_v49 }
 0xcfa   : > { %v5413_v63 = vmul.f32 1.442695, %v5380_v15 }
 0xcfb   : > { %v5411_v36 = vmul.f32 1.442695, %v5379_v52  ;;  %v13770_v52 = vadd.f32 %v16327_v23, %v5280_v35  ;;  %v16378_v35 = vld [vmem:[#allocation39_spill] sm:$0xff] }
 0xcfc   : > { %v5334_v25 = vpop.xlane.xlu0 %5333 }
 0xcfd   : > { %10609 = vpow2.f32 %v5411_v36  ;;  %v5377_v59 = vsub.f32 %v13635_v13, %v5334_v25  ;;  %v13779_v25 = vadd.f32 %v16327_v23, %v5278_v29 }
 0xcfe   : > { %v13743_v33 = vpop.eup %10601  ;;  %10611 = vpow2.f32 %v5403_v38 }
 0xcff   : > { %v5407_v22 = vmul.f32 1.442695, %v5377_v59  ;;  %v5446_v44 = vsel %vm1188_vm3, %v13743_v33, 0.0  ;;  %v13782_v59 = vadd.f32 %v16327_v23, %v5279_v6 }
 0xd00   : > { %5447 = vadd.xlane.f32.xlu1 %v5446_v44  ;;  %v5350_v44 = vsel %vm1188_vm3, %v13779_v25, -inf }
 0xd01   : > { %10613 = vpow2.f32 %v5407_v22  ;;  %v5353_v22 = vsel %vm1188_vm3, %v13782_v59, -inf }
 0xd02   : > { %v13747_v26 = vpop.eup %10603  ;;  %10615 = vpow2.f32 %v5409_v21  ;;  %v5356_v21 = vsel %vm1188_vm3, %v13770_v52, -inf }
 0xd03   : > { %v5440_v48 = vsel %vm1188_vm3, %v13747_v26, 0.0  ;;  %v13752_v13 = vpop.eup %10605  ;;  %10617 = vpow2.f32 %v5413_v63  ;;  %v5346_v63 = vpop.xlane.xlu0 %5345 }
 0xd04   : > { %5441 = vadd.xlane.f32.xlu1 %v5440_v48  ;;  %v5455_v39 = vsel %vm1188_vm3, %v13752_v13, 0.0  ;;  %v13757_v46 = vpop.eup %10607  ;;  %10619 = vpow2.f32 %v5417_v8 }
 0xd05   : > { %v5449_v42 = vsel %vm1188_vm3, %v13757_v46, 0.0 }
 0xd08   : > { %5456 = vadd.xlane.f32.xlu1 %v5455_v39  ;;  %v5381_v39 = vsub.f32 %v13643_v53, %v5346_v63  ;;  %v16381_v63 = vld [vmem:[#allocation41_spill] sm:$0xff] }
 0xd0a   : > { %v13759_v3 = vpop.eup %10609  ;;  %v5415_v8 = vmul.f32 1.442695, %v5381_v39 }
 0xd0b   : > { %v5464_v24 = vsel %vm1188_vm3, %v13759_v3, 0.0  ;;  %v13765_v43 = vpop.eup %10611 }
 0xd0c   : > { %5450 = vadd.xlane.f32.xlu1 %v5449_v42  ;;  %5465 = vadd.xlane.f32.xlu0 %v5464_v24  ;;  %v5452_v11 = vsel %vm1188_vm3, %v13765_v43, 0.0  ;;  %v16379_v42 = vld [vmem:[#allocation40_spill] sm:$0xff]  ;;  %10621 = vpow2.f32 %v5415_v8  ;;  %v5364_v24 = vpop.xlane.xlu0 %5363 }
 0xd0d   : > { %v5387_v45 = vsub.f32 %v13667_v7, %v5364_v24 }
 0xd0e   : > { %v13767_v49 = vpop.eup %10613 }
 0xd0f   : > { %v5458_v38 = vsel %vm1188_vm3, %v13767_v49, 0.0  ;;  %v13776_v36 = vpop.eup %10615  ;;  %v5427_v29 = vmul.f32 1.442695, %v5387_v45 }
 0xd10   : > { %5453 = vadd.xlane.f32.xlu1 %v5452_v11  ;;  %5459 = vadd.xlane.f32.xlu0 %v5458_v38  ;;  %v5461_v18 = vsel %vm1188_vm3, %v13776_v36, 0.0  ;;  %v13792_v30 = vpop.eup %10617  ;;  %v5367_v11 = vpop.xlane.xlu1 %5366 }
 0xd11   : > { %v5467_v23 = vsel %vm1188_vm3, %v13792_v30, 0.0  ;;  %v13796_v15 = vpop.eup %10619  ;;  %10623 = vpow2.f32 %v5427_v29  ;;  %v5388_v29 = vsub.f32 %v13653_v4, %v5367_v11 }
 0xd12   : > { %v5473_v48 = vsel %vm1188_vm3, %v13796_v15, 0.0 }
 0xd14   : > { %5462 = vadd.xlane.f32.xlu1 %v5461_v18  ;;  %5357 = vmax.xlane.f32.xlu0 %v5356_v21  ;;  %v5361_v18 = vpop.xlane.xlu1 %5360 }
 0xd18   : > { %5354 = vmax.xlane.f32.xlu1 %v5353_v22  ;;  %5351 = vmax.xlane.f32.xlu0 %v5350_v44 }
 0xd19   : > { %v13808_v6 = vpop.eup %10621 }
 0xd1a   : > { %v5470_v38 = vsel %vm1188_vm3, %v13808_v6, 0.0 }
 0xd1c   : > { %5468 = vadd.xlane.f32.xlu0 %v5467_v23  ;;  %v16380_v23 = vld [vmem:[#allocation34_spill] sm:$0xff] }
 0xd1e   : > { %v13812_v22 = vpop.eup %10623 }
 0xd1f   : > { %v5488_v7 = vsel %vm1188_vm3, %v13812_v22, 0.0 }
 0xd20   : > { %5474 = vadd.xlane.f32.xlu0 %v5473_v48 }
 0xd29   : > { %5676 = vrot.lane.b32.xlu1 %v16377_v14, %s11118_s24 }
 0xd36   : > { %5674 = vrot.lane.b32.xlu0 %v16378_v35, %s11118_s24 }
 0xd3a   : > { %5800 = vrot.lane.b32.xlu0 %v16379_v42, %s11118_s24 }
 0xd4d   : > { %5471 = vadd.xlane.f32.xlu1 %v5470_v38  ;;  %v5429_v38 = vmul.f32 1.442695, %v5388_v29 }
 0xd50   : > { %v5439_v53 = vpop.xlane.xlu0 %5438 }
 0xd51   : > { %10625 = vrcp.f32 %v5439_v53  ;;  %v5386_v53 = vsub.f32 %v13659_v62, %v5361_v18 }
 0xd54   : > { %v5433_v21 = vpop.xlane.xlu0 %5432 }
 0xd55   : > { %10627 = vrcp.f32 %v5433_v21  ;;  %v5425_v21 = vmul.f32 1.442695, %v5386_v53 }
 0xd56   : > { %v5436_v44 = vpop.xlane.xlu1 %5435 }
 0xd57   : > { %10629 = vrcp.f32 %v5436_v44 }
 0xd58   : > { %10631 = vpow2.f32 %v5429_v38 }
 0xd59   : > { %5489 = vadd.xlane.f32.xlu0 %v5488_v7  ;;  %10633 = vpow2.f32 %v5425_v21 }
 0xd5e   : > { %5738 = vrot.lane.b32.xlu1 %v16380_v23, %s11118_s24  ;;  %v10626_v48 = vpop.eup %10625 }
 0xd5f   : > { %v5517_v35 = vmul.f32 %v10626_v48, %v13706_v54 }
 0xd61   : > { %v5537_v45 = vpack.c.bf16 %v5517_v35, %v5517_v35 }
 0xd62   : > { %v10628_v14 = vpop.eup %10627  ;;  %5736 = vrot.lane.b32.xlu1 %v16381_v63, %s11118_s24 }
 0xd63   : > { %v5515_v8 = vmul.f32 %v10628_v14, %v13710_v55 }
 0xd64   : > { %v10630_v39 = vpop.eup %10629 }
 0xd65   : > { %v5516_v42 = vmul.f32 %v10630_v39, %v13715_v9  ;;  %v13827_v44 = vpop.eup %10631 }
 0xd66   : > { %v5491_v54 = vsel %vm1188_vm3, %v13827_v44, 0.0  ;;  %v13831_v55 = vpop.eup %10633  ;;  %v5445_v9 = vpop.xlane.xlu0 %5444 }
 0xd67   : > { %v5536_v24 = vpack.c.bf16 %v5516_v42, %v5515_v8  ;;  %v5485_v23 = vsel %vm1188_vm3, %v13831_v55, 0.0 }
 0xd69   : > { %9876 = vmatprep.mubr.msk.bf16.mxu0 %vm1188_vm3, %v5536_v24 }
 0xd6a   : > { %9877 = vmatmul.mubr.msk.bf16.vlgmr.msra.gmra.mxu0 %vm1188_vm3, %v5537_v45 }
 0xd86   : > { %5492 = vadd.xlane.f32.xlu1 %v5491_v54 }
 0xd89   : > { %v5448_v7 = vpop.xlane.xlu1 %5447 }
 0xd8a   : > { %5486 = vadd.xlane.f32.xlu1 %v5485_v23  ;;  %10635 = vrcp.f32 %v5448_v7 }
 0xd8b   : > { %10637 = vrcp.f32 %v5445_v9 }
 0xd8d   : > { %v5442_v4 = vpop.xlane.xlu1 %5441 }
 0xd8e   : > { %10639 = vrcp.f32 %v5442_v4 }
 0xd91   : > { %v5457_v62 = vpop.xlane.xlu1 %5456 }
 0xd95   : > { %v5451_v11 = vpop.xlane.xlu1 %5450  ;;  %v13835_v18 = vpop.xlane.xlu0 %5465 }
 0xd96   : > { %10641 = vrcp.f32 %v5451_v11 }
 0xd97   : > { %v10636_v48 = vpop.eup %10635 }
 0xd98   : > { %v10638_v14 = vpop.eup %10637  ;;  %v5520_v8 = vmul.f32 %v10636_v48, %v13743_v33 }
 0xd99   : > { %v5454_v63 = vpop.xlane.xlu1 %5453  ;;  %v5460_v39 = vpop.xlane.xlu0 %5459  ;;  %v5519_v24 = vmul.f32 %v10638_v14, %v13719_v58 }
 0xd9a   : > { %10643 = vrcp.f32 %v5454_v63  ;;  %v5539_v21 = vpack.c.bf16 %v5520_v8, %v5520_v8 }
 0xd9b   : > { %v10640_v35 = vpop.eup %10639  ;;  %10645 = vrcp.f32 %v5457_v62 }
 0xd9c   : > { %10647 = vrcp.f32 %v5460_v39  ;;  %v5518_v42 = vmul.f32 %v10640_v35, %v13747_v26 }
 0xd9d   : > { %v5463_v45 = vpop.xlane.xlu1 %5462  ;;  %v5358_v29 = vpop.xlane.xlu0 %5357 }
 0xd9e   : > { %10649 = vrcp.f32 %v5463_v45  ;;  %v5385_v38 = vsub.f32 %v13770_v52, %v5358_v29  ;;  %v5538_v53 = vpack.c.bf16 %v5519_v24, %v5518_v42 }
 0xda0   : > { %v5423_v54 = vmul.f32 1.442695, %v5385_v38  ;;  %9884 = vmatprep.mubr.msk.bf16.mxu1 %vm1188_vm3, %v5538_v53 }
 0xda1   : > { %v5355_v9 = vpop.xlane.xlu1 %5354  ;;  %9885 = vmatmul.mubr.msk.bf16.vlgmr.msra.gmra.mxu1 %vm1188_vm3, %v5539_v21  ;;  %v5352_v33 = vpop.xlane.xlu0 %5351 }
 0xda2   : > { %10651 = vpow2.f32 %v5423_v54  ;;  %v5384_v7 = vsub.f32 %v13782_v59, %v5355_v9  ;;  %v5383_v26 = vsub.f32 %v13779_v25, %v5352_v33  ;;  %v16382_v33 = vld [vmem:[#allocation42_spill] sm:$0xff] }
 0xda3   : > { %v10642_v4 = vpop.eup %10641 }
 0xda4   : > { %v5421_v58 = vmul.f32 1.442695, %v5384_v7  ;;  %v5419_v23 = vmul.f32 1.442695, %v5383_v26  ;;  %v5521_v63 = vmul.f32 %v10642_v4, %v13757_v46  ;;  %v16383_v7 = vld [vmem:[#allocation36_spill] sm:$0xff] }
 0xda5   : > { %v5677_v62 = vpop.permute.xlu1 %5676  ;;  %v5469_v11 = vpop.xlane.xlu0 %5468 }
 0xda6   : > { %10653 = vpow2.f32 %v5421_v58  ;;  %10060 = vmatprep.subr.msk.bf16.mxu0 %vm1454_vm2, %v5677_v62  ;;  %v5686_v52 = vsel %vm1454_vm2, %v5677_v62, 0 }
 0xda7   : > { %v10644_v48 = vpop.eup %10643  ;;  %10655 = vpow2.f32 %v5419_v23  ;;  %9889 = vmatpush3.bf16.msra.mxu0 %v5686_v52 }
 0xda8   : > { %v10646_v14 = vpop.eup %10645  ;;  %v5522_v59 = vmul.f32 %v10644_v48, %v13765_v43  ;;  %10657 = vrcp.f32 %v13835_v18 }
 0xda9   : > { %v10648_v39 = vpop.eup %10647  ;;  %v5475_v25 = vpop.xlane.xlu0 %5474  ;;  %v5523_v42 = vmul.f32 %v10646_v14, %v13752_v13  ;;  %10659 = vrcp.f32 %v5469_v11 }
 0xdaa   : > { %v5540_v35 = vpack.c.bf16 %v5522_v59, %v5521_v63  ;;  %v5524_v24 = vmul.f32 %v10648_v39, %v13767_v49 }
 0xdab   : > { %v10650_v8 = vpop.eup %10649  ;;  %v5541_v46 = vpack.c.bf16 %v5523_v42, %v5523_v42 }
 0xdac   : > { %9892 = vmatprep.mubr.msk.bf16.mxu0 %vm1188_vm3, %v5540_v35  ;;  %v5525_v45 = vmul.f32 %v10650_v8, %v13776_v36 }
 0xdad   : > { %v5675_v29 = vpop.permute.xlu0 %5674 }
 0xdae   : > { %9890 = vmatprep.subr.bf16.mxu0 %v5675_v29  ;;  %v5542_v38 = vpack.c.bf16 %v5525_v45, %v5524_v24 }
 0xdaf   : > { %v13853_v53 = vpop.eup %10651  ;;  %9891 = vmatpush3.bf16.msra.mxu0 %v5675_v29 }
 0xdb0   : > { %9900 = vmatprep.mubr.msk.bf16.mxu1 %vm1188_vm3, %v5542_v38  ;;  %v5482_v43 = vsel %vm1188_vm3, %v13853_v53, 0.0 }
 0xdb1   : > { %5483 = vadd.xlane.f32.xlu0 %v5482_v43  ;;  %v5801_v13 = vpop.permute.xlu0 %5800 }
 0xdb2   : > { %v5810_v21 = vsel %vm1454_vm2, %v5801_v13, 0  ;;  %9893 = vmatmul.mubr.msk.bf16.vlgmr.msra.gmra.mxu0 %vm1188_vm3, %v5541_v46  ;;  %10062 = vmatprep.subr.msk.bf16.mxu0 %vm1454_vm2, %v5801_v13 }
 0xdb3   : > { %v13861_v49 = vpop.eup %10653  ;;  %9905 = vmatpush3.bf16.msra.mxu0 %v5810_v21 }
 0xdb4   : > { %v13863_v36 = vpop.eup %10655  ;;  %v5479_v54 = vsel %vm1188_vm3, %v13861_v49, 0.0 }
 0xdb5   : > { %5480 = vadd.xlane.f32.xlu0 %v5479_v54  ;;  %v5476_v9 = vsel %vm1188_vm3, %v13863_v36, 0.0  ;;  %v10658_v58 = vpop.eup %10657 }
 0xdb6   : > { %5477 = vadd.xlane.f32.xlu1 %v5476_v9 }
 0xdc7   : > { %5862 = vrot.lane.b32.xlu1 %v16382_v33, %s11118_s24 }
 0xdcb   : > { %5860 = vrot.lane.b32.xlu1 %v12297_v16, %s11118_s24  ;;  %5798 = vrot.lane.b32.xlu0 %v16383_v7, %s11118_s24  ;;  %v5526_v16 = vmul.f32 %v10658_v58, %v13759_v3 }
 0xdcd   : > { %v5543_v18 = vpack.c.bf16 %v5526_v16, %v5526_v16 }
 0xdcf   : > { %5922 = vrot.lane.b32.xlu1 %v16347_v41, %s11118_s24  ;;  %5924 = vrot.lane.b32.xlu0 %v12299_v61, %s11118_s24  ;;  %v10660_v41 = vpop.eup %10659 }
 0xdd0   : > { %v5527_v11 = vmul.f32 %v10660_v41, %v13792_v30 }
 0xdd6   : > { %v5472_v26 = vpop.xlane.xlu1 %5471 }
 0xdd7   : > { %10661 = vrcp.f32 %v5472_v26 }
 0xdd8   : > { %10663 = vrcp.f32 %v5475_v25 }
 0xdda   : > { %v5739_v23 = vpop.permute.xlu1 %5738 }
 0xddb   : > { %v5748_v4 = vsel %vm1454_vm2, %v5739_v23, 0  ;;  %10061 = vmatprep.subr.msk.bf16.mxu1 %vm1454_vm2, %v5739_v23 }
 0xddc   : > { %9897 = vmatpush3.bf16.msra.mxu1 %v5748_v4 }
 0xdde   : > { %v5737_v62 = vpop.permute.xlu1 %5736 }
 0xddf   : > { %9898 = vmatprep.subr.bf16.mxu1 %v5737_v62 }
 0xde0   : > { %9899 = vmatpush3.bf16.msra.mxu1 %v5737_v62  ;;  %v10312_v62 = vld [vmem:[%s12657_s20 + $0x18] sm:$0xff]  }
 0xde2   : > { %v5490_v35 = vpop.xlane.xlu0 %5489 }
 0xde3   : > { %9901 = vmatmul.mubr.msk.bf16.vlgmr.msra.gmra.mxu1 %vm1188_vm3, %v5543_v18 }
 0xde4   : > { %v10662_v61 = vpop.eup %10661 }
 0xde5   : > { %v5528_v52 = vmul.f32 %v10662_v61, %v13808_v6  ;;  %v10664_v30 = vpop.eup %10663 }
 0xde6   : > { %v5529_v45 = vmul.f32 %v10664_v30, %v13796_v15 }
 0xde7   : > { %v5544_v48 = vpack.c.bf16 %v5528_v52, %v5527_v11 }
 0xde8   : > { %v5545_v13 = vpack.c.bf16 %v5529_v45, %v5529_v45 }
 0xde9   : > { %9908 = vmatprep.mubr.msk.bf16.mxu0 %vm1188_vm3, %v5544_v48 }
 0xe0f   : > { %v5493_v14 = vpop.xlane.xlu1 %5492 }
 0xe13   : > { %v5487_v39 = vpop.xlane.xlu1 %5486 }
 0xe14   : > { %10665 = vrcp.f32 %v5487_v39 }
 0xe15   : > { %10667 = vrcp.f32 %v5490_v35 }
 0xe16   : > { %10669 = vrcp.f32 %v5493_v14 }
 0xe21   : > { %v10666_v24 = vpop.eup %10665 }
 0xe22   : > { %v10668_v29 = vpop.eup %10667  ;;  %v5533_v25 = vmul.f32 %v10666_v24, %v13831_v55 }
 0xe23   : > { %v5534_v21 = vmul.f32 %v10668_v29, %v13812_v22  ;;  %v10670_v9 = vpop.eup %10669  ;;  %v16384_v29 = vmov 0  }
 0xe24   : > { %v5535_v26 = vmul.f32 %v10670_v9, %v13827_v44 }
 0xe25   : > { %v5548_v55 = vpack.c.bf16 %v5534_v21, %v5533_v25 }
 0xe26   : > { %v5549_v18 = vpack.c.bf16 %v5535_v26, %v5535_v26 }
 0xe2a   : > { %v13887_v63 = vpop.f32.mrf.mxu0 }
 0xe2c   : > { %v13889_v59 = vpop.f32.mrf.mxu0 }
 0xe2e   : > { %v9879_v3 = vpop.f32.mrf.mxu0 }
 0xe3a   : > { %v5484_v8 = vpop.xlane.xlu0 %5483 }
 0xe3b   : > { %10671 = vrcp.f32 %v5484_v8 }
 0xe3e   : > { %v5481_v42 = vpop.xlane.xlu0 %5480 }
 0xe3f   : > { %v5478_v6 = vpop.xlane.xlu1 %5477  ;;  %10673 = vrcp.f32 %v5481_v42 }
 0xe40   : > { %10675 = vrcp.f32 %v5478_v6 }
 0xe42   : > { %v5799_v38 = vpop.permute.xlu0 %5798 }
 0xe43   : > { %v5863_v46 = vpop.permute.xlu1 %5862  ;;  %9906 = vmatprep.subr.bf16.mxu0 %v5799_v38 }
 0xe44   : > { %v5872_v43 = vsel %vm1454_vm2, %v5863_v46, 0  ;;  %10063 = vmatprep.subr.msk.bf16.mxu1 %vm1454_vm2, %v5863_v46  ;;  %9907 = vmatpush3.bf16.msra.mxu0 %v5799_v38 }
 0xe45   : > { %9913 = vmatpush3.bf16.msra.mxu1 %v5872_v43 }
 0xe46   : > { %v5925_v54 = vpop.permute.xlu0 %5924 }
 0xe47   : > { %v5861_v33 = vpop.permute.xlu1 %5860  ;;  %v5934_v15 = vsel %vm1454_vm2, %v5925_v54, 0  ;;  %9909 = vmatmul.mubr.msk.bf16.vlgmr.msra.gmra.mxu0 %vm1188_vm3, %v5545_v13  ;;  %10064 = vmatprep.subr.msk.bf16.mxu0 %vm1454_vm2, %v5925_v54 }
 0xe48   : > { %9914 = vmatprep.subr.bf16.mxu1 %v5861_v33  ;;  %9921 = vmatpush3.bf16.msra.mxu0 %v5934_v15  ;;  %v10672_v7 = vpop.eup %10671 }
 0xe49   : > { %9915 = vmatpush3.bf16.msra.mxu1 %v5861_v33  ;;  %9924 = vmatprep.mubr.msk.bf16.mxu0 %vm1188_vm3, %v5548_v55  ;;  %v5532_v4 = vmul.f32 %v10672_v7, %v13853_v53  ;;  %v5601_v53 = vpop.f32.mrf.mxu0 }
 0xe4a   : > { %9979 = vmatprep.subr.bf16.mxu1 %v16348_v5 }
 0xe4b   : > { %v5923_v22 = vpop.permute.xlu1 %5922  ;;  %v5547_v61 = vpack.c.bf16 %v5532_v4, %v5532_v4  ;;  %v13941_v4 = vld [vmem:[%s11720_s14] sm:$0xff] }
 0xe4c   : > { %v10674_v58 = vpop.eup %10673  ;;  %9922 = vmatprep.subr.bf16.mxu0 %v5923_v22 }
 0xe4d   : > { %v10676_v23 = vpop.eup %10675  ;;  %9923 = vmatpush3.bf16.msra.mxu0 %v5923_v22  ;;  %v5531_v16 = vmul.f32 %v10674_v58, %v13861_v49  ;;  %v5984_v49 = vpack.c.bf16 %v5601_v53, %v13889_v59 }
 0xe4e   : > { %v5530_v41 = vmul.f32 %v10676_v23, %v13863_v36  ;;  %9928 = vmatprep.subr.bf16.mxu0 %v16348_v5 }
 0xe50   : > { %9925 = vmatmul.mubr.msk.bf16.vlgmr.msra.gmra.mxu0 %vm1188_vm3, %v5549_v18  ;;  %v5546_v44 = vpack.c.bf16 %v5531_v16, %v5530_v41  ;;  %v16385_v16 = vld [vmem:[#allocation3_spill] sm:$0xff] }
 0xe51   : > { %9929 = vmatpush3.bf16.msra.mxu0 %v10312_v62  ;;  %9930 = vmatprep.mubr.msk.bf16.mxu0 %vm11116_vm4, %v16348_v5 }
 0xe52   : > { %9916 = vmatprep.mubr.msk.bf16.mxu1 %vm1188_vm3, %v5546_v44  ;;  %v16387_v44 = vld [vmem:[#allocation25_spill] sm:$0xff] }
 0xe53   : > { %9917 = vmatmul.mubr.msk.bf16.vlgmr.msra.gmra.mxu1 %vm1188_vm3, %v5547_v61 }
 0xe54   : > { %9980 = vmatpush3.bf16.msra.mxu1 %v10312_v62  ;;  %9950 = vmatprep.mubr.msk.bf16.mxu1 %vm11116_vm4, %v16348_v5  ;;  %v16386_v62 = vsub.s32 1, %v16385_v16 }
 0xe56   : > { %v13946_v18 = vrot.slane %v13941_v4, %v16386_v62 }
 0xe58   : > { %9931 = vmatmul.mubr.msk.bf16.vlgmr.msra.gmra.mxu0 %vm689_vm1, %v5984_v49 }
 0xe59   : > { %9934 = vmatprep.mubr.msk.bf16.mxu0 %vm11116_vm4, %v16348_v5 }
 0xe61   : > { %v9886_v36 = vpop.f32.mrf.mxu1 }
 0xe63   : > { %v5660_v11 = vpop.f32.mrf.mxu1 }
 0xe64   : > { %v5985_v52 = vpack.c.bf16 %v5660_v11, %v13887_v63 }
 0xe65   : > { %v9887_v48 = vpop.f32.mrf.mxu1 }
 0xe66   : > { %9935 = vmatmul.mubr.msk.bf16.gmra.mxu0 %vm689_vm1, %v5985_v52  ;;  %v16388_v48 = vld [vmem:[#allocation24_spill] sm:$0xff] }
 0xe67   : > { %9938 = vmatprep.mubr.msk.bf16.mxu0 %vm11116_vm4, %v16348_v5  ;;  %v5663_v14 = vpop.f32.mrf.mxu1 }
 0xe68   : > { %v5986_v3 = vpack.c.bf16 %v9886_v36, %v5663_v14 }
 0xe6e   : > { %9939 = vmatmul.mubr.msk.bf16.gmra.mxu0 %vm689_vm1, %v5986_v3 }
 0xe6f   : > { %9942 = vmatprep.mubr.msk.bf16.mxu0 %vm11116_vm4, %v16348_v5 }
 0xe72   : > { %v9894_v59 = vpop.f32.mrf.mxu0 }
 0xe74   : > { %v5722_v39 = vpop.f32.mrf.mxu0 }
 0xe76   : > { %v9895_v35 = vpop.f32.mrf.mxu0 }
 0xe78   : > { %v5725_v8 = vpop.f32.mrf.mxu0 }
 0xe79   : > { %v5987_v30 = vpack.c.bf16 %v5725_v8, %v5722_v39 }
 0xe7b   : > { %9943 = vmatmul.mubr.msk.bf16.gmra.mxu0 %vm689_vm1, %v5987_v30 }
 0xe7c   : > { %9946 = vmatprep.mubr.msk.bf16.mxu0 %vm11116_vm4, %v16348_v5 }
 0xea3   : > { %v9902_v63 = vpop.f32.mrf.mxu1 }
 0xea5   : > { %v5784_v42 = vpop.f32.mrf.mxu1 }
 0xea6   : > { %v5988_v6 = vpack.c.bf16 %v5784_v42, %v9894_v59 }
 0xea7   : > { %v9903_v24 = vpop.f32.mrf.mxu1 }
 0xea8   : > { %9947 = vmatmul.mubr.msk.bf16.gmra.mxu0 %vm689_vm1, %v5988_v6 }
 0xea9   : > { %v5787_v45 = vpop.f32.mrf.mxu1  ;;  %6678 = vmatprep.mubr.bf16.mxu0 %v16384_v29 }
 0xeaa   : > { %v5989_v38 = vpack.c.bf16 %v9902_v63, %v5787_v45  ;;  %v16389_v63 = vld [vmem:[#allocation23_spill] sm:$0xff] }
 0xeac   : > { %9951 = vmatmul.mubr.msk.bf16.vlgmr.msra.gmra.mxu1 %vm689_vm1, %v5989_v38 }
 0xead   : > { %9954 = vmatprep.mubr.msk.bf16.mxu1 %vm11116_vm4, %v16348_v5 }
 0xf07   : > { %v9910_v46 = vpop.f32.mrf.mxu0 }
 0xf09   : > { %v5846_v25 = vpop.f32.mrf.mxu0 }
 0xf0b   : > { %v9911_v43 = vpop.f32.mrf.mxu0 }
 0xf0d   : > { %v5849_v13 = vpop.f32.mrf.mxu0 }
 0xf0e   : > { %v5990_v21 = vpack.c.bf16 %v5849_v13, %v5846_v25 }
 0xf10   : > { %v9926_v54 = vpop.f32.mrf.mxu0  ;;  %9955 = vmatmul.mubr.msk.bf16.gmra.mxu1 %vm689_vm1, %v5990_v21 }
 0xf11   : > { %9958 = vmatprep.mubr.msk.bf16.mxu1 %vm11116_vm4, %v16348_v5  ;;  %v5994_v43 = vpack.c.bf16 %v9926_v54, %v9926_v54 }
 0xf12   : > { %v5970_v9 = vpop.f32.mrf.mxu0 }
 0xf13   : > { %v9918_v33 = vpop.f32.mrf.mxu1 }
 0xf14   : > { %v9927_v15 = vpop.f32.mrf.mxu0 }
 0xf15   : > { %v5908_v55 = vpop.f32.mrf.mxu1 }
 0xf16   : > { %v5991_v7 = vpack.c.bf16 %v5908_v55, %v9910_v46  ;;  %v5973_v26 = vpop.f32.mrf.mxu0  ;;  %v16390_v46 = vld [vmem:[#allocation22_spill] sm:$0xff] }
 0xf17   : > { %v9919_v22 = vpop.f32.mrf.mxu1  ;;  %v5993_v39 = vpack.c.bf16 %v5973_v26, %v5970_v9 }
 0xf18   : > { %v6068_v58 = vpop.f32.mrf.mxu0  ;;  %9959 = vmatmul.mubr.msk.bf16.gmra.mxu1 %vm689_vm1, %v5991_v7 }
 0xf19   : > { %v6154_v23 = vadd.f32 %v6068_v58, %v13567_v27  ;;  %9962 = vmatprep.mubr.msk.bf16.mxu1 %vm11116_vm4, %v16348_v5  ;;  %v5911_v53 = vpop.f32.mrf.mxu1 }
 0xf1a   : > { %v9932_v41 = vpop.f32.mrf.mxu0  ;;  %v5992_v27 = vpack.c.bf16 %v9918_v33, %v5911_v53 }
 0xf1b   : > { %v6175_v61 = vadd.f32 %v16387_v44, %v6154_v23 }
 0xf1c   : > { %v6071_v49 = vpop.f32.mrf.mxu0 }
 0xf1d   : > { %v6155_v36 = vadd.f32 %v6071_v49, %v13573_v28  ;;  %v13951_v11 = vadd.f32 %v13946_v18, %v6175_v61  ;;  %v16393_v61 = vld [vmem:[#allocation19_spill] sm:$0xff] }
 0xf1e   : > { %v9933_v52 = vpop.f32.mrf.mxu0 }
 0xf1f   : > { %v6176_v14 = vadd.f32 %v16388_v48, %v6155_v36  ;;  %v6221_v3 = vsel %vm50_vm0, %v13951_v11, 0.0  ;;  %v16394_v48 = vld [vmem:[#allocation18_spill] sm:$0xff] }
 0xf20   : > { %6222 = vadd.xlane.f32.xlu0 %v6221_v3  ;;  %9963 = vmatmul.mubr.msk.bf16.gmra.mxu1 %vm689_vm1, %v5992_v27 }
 0xf21   : > { %v13958_v59 = vadd.f32 %v13946_v18, %v6176_v14  ;;  %9966 = vmatprep.mubr.msk.bf16.mxu1 %vm11116_vm4, %v16348_v5 }
 0xf23   : > { %v6224_v28 = vsel %vm50_vm0, %v13958_v59, 0.0 }
 0xf24   : > { %6225 = vadd.xlane.f32.xlu1 %v6224_v28 }
 0xf26   : > { %v6076_v35 = vpop.f32.mrf.mxu0 }
 0xf27   : > { %v6156_v8 = vadd.f32 %v6076_v35, %v13578_v40 }
 0xf28   : > { %v9936_v30 = vpop.f32.mrf.mxu0  ;;  %9967 = vmatmul.mubr.msk.bf16.gmra.mxu1 %vm689_vm1, %v5993_v39 }
 0xf29   : > { %v6177_v42 = vadd.f32 %v16389_v63, %v6156_v8  ;;  %9970 = vmatprep.mubr.msk.bf16.mxu1 %vm11116_vm4, %v16348_v5  ;;  %v16395_v8 = vld [vmem:[#allocation17_spill] sm:$0xff] }
 0xf2a   : > { %v6079_v6 = vpop.f32.mrf.mxu0 }
 0xf2b   : > { %v6157_v24 = vadd.f32 %v6079_v6, %v13583_v17  ;;  %v13971_v45 = vadd.f32 %v13946_v18, %v6177_v42  ;;  %v16391_v17 = vld [vmem:[#allocation21_spill] sm:$0xff] }
 0xf2c   : > { %v9937_v38 = vpop.f32.mrf.mxu0 }
 0xf2d   : > { %v6178_v25 = vadd.f32 %v16390_v46, %v6157_v24  ;;  %v6227_v40 = vsel %vm50_vm0, %v13971_v45, 0.0 }
 0xf2e   : > { %6228 = vadd.xlane.f32.xlu0 %v6227_v40  ;;  %v6084_v13 = vpop.f32.mrf.mxu0  ;;  %v16396_v40 = vld [vmem:[#allocation16_spill] sm:$0xff] }
 0xf2f   : > { %v6158_v21 = vadd.f32 %v6084_v13, %v13592_v47  ;;  %v13978_v9 = vadd.f32 %v13946_v18, %v6178_v25  ;;  %v16392_v47 = vld [vmem:[#allocation20_spill] sm:$0xff]  ;;  %v16397_v13 = vld [vmem:[#allocation15_spill] sm:$0xff] }
 0xf30   : > { %v9940_v5 = vpop.f32.mrf.mxu0  ;;  %9971 = vmatmul.mubr.msk.bf16.gmra.mxu1 %vm689_vm1, %v5994_v43 }
 0xf31   : > { %v6179_v33 = vadd.f32 %v16391_v17, %v6158_v21  ;;  %v6230_v15 = vsel %vm50_vm0, %v13978_v9, 0.0 }
 0xf32   : > { %6231 = vadd.xlane.f32.xlu0 %v6230_v15  ;;  %v6087_v55 = vpop.f32.mrf.mxu0  ;;  %v16398_v15 = vld [vmem:[#allocation14_spill] sm:$0xff] }
 0xf33   : > { %v6159_v7 = vadd.f32 %v6087_v55, %v13597_v34  ;;  %v13986_v54 = vadd.f32 %v13946_v18, %v6179_v33 }
 0xf34   : > { %v9941_v26 = vpop.f32.mrf.mxu0 }
 0xf35   : > { %v6180_v22 = vadd.f32 %v16392_v47, %v6159_v7  ;;  %v6233_v58 = vsel %vm50_vm0, %v13986_v54, 0.0 }
 0xf36   : > { %6234 = vadd.xlane.f32.xlu1 %v6233_v58 }
 0xf37   : > { %v13992_v23 = vadd.f32 %v13946_v18, %v6180_v22 }
 0xf39   : > { %v6236_v62 = vsel %vm50_vm0, %v13992_v23, 0.0 }
 0xf3a   : > { %6237 = vadd.xlane.f32.xlu0 %v6236_v62 }
 0xf3b   : > { %v6092_v41 = vpop.f32.mrf.mxu0 }
 0xf3c   : > { %v6160_v34 = vadd.f32 %v6092_v41, %v13640_v60  ;;  %v16399_v41 = vld [vmem:[#allocation13_spill] sm:$0xff] }
 0xf3d   : > { %v9944_v44 = vpop.f32.mrf.mxu0 }
 0xf3e   : > { %v6181_v53 = vadd.f32 %v16393_v61, %v6160_v34 }
 0xf3f   : > { %v6095_v49 = vpop.f32.mrf.mxu0 }
 0xf40   : > { %v6161_v36 = vadd.f32 %v6095_v49, %v13648_v0  ;;  %v14000_v27 = vadd.f32 %v13946_v18, %v6181_v53 }
 0xf41   : > { %v9945_v52 = vpop.f32.mrf.mxu0 }
 0xf42   : > { %v6182_v14 = vadd.f32 %v16394_v48, %v6161_v36  ;;  %v6239_v3 = vsel %vm50_vm0, %v14000_v27, 0.0  ;;  %v16400_v36 = vld [vmem:[#allocation12_spill] sm:$0xff] }
 0xf43   : > { %6240 = vadd.xlane.f32.xlu1 %v6239_v3 }
 0xf44   : > { %v14006_v28 = vadd.f32 %v13946_v18, %v6182_v14 }
 0xf46   : > { %v6242_v60 = vsel %vm50_vm0, %v14006_v28, 0.0 }
 0xf47   : > { %6243 = vadd.xlane.f32.xlu0 %v6242_v60 }
 0xf68   : > { %v6100_v39 = vpop.f32.mrf.mxu0 }
 0xf69   : > { %v6162_v0 = vadd.f32 %v6100_v39, %v13656_v32  ;;  %v16401_v39 = vld [vmem:[#allocation11_spill] sm:$0xff] }
 0xf6a   : > { %v9948_v35 = vpop.f32.mrf.mxu0 }
 0xf6b   : > { %v6183_v30 = vadd.f32 %v16395_v8, %v6162_v0 }
 0xf6c   : > { %v6103_v63 = vpop.f32.mrf.mxu0  ;;  %v6108_v42 = vpop.f32.mrf.mxu1 }
 0xf6d   : > { %v6163_v6 = vadd.f32 %v6103_v63, %v13664_v51  ;;  %v6164_v24 = vadd.f32 %v6108_v42, %v13674_v19  ;;  %v14015_v38 = vadd.f32 %v13946_v18, %v6183_v30  ;;  %v16402_v42 = vld [vmem:[#allocation10_spill] sm:$0xff] }
 0xf6e   : > { %v9949_v46 = vpop.f32.mrf.mxu0  ;;  %v9952_v25 = vpop.f32.mrf.mxu1 }
 0xf6f   : > { %v6184_v43 = vadd.f32 %v16396_v40, %v6163_v6  ;;  %v6185_v21 = vadd.f32 %v16397_v13, %v6164_v24  ;;  %v6245_v32 = vsel %vm50_vm0, %v14015_v38, 0.0  ;;  %v16403_v13 = vld [vmem:[#allocation9_spill] sm:$0xff] }
 0xf70   : > { %v6111_v5 = vpop.f32.mrf.mxu1  ;;  %6246 = vadd.xlane.f32.xlu1 %v6245_v32 }
 0xf71   : > { %v6165_v17 = vadd.f32 %v6111_v5, %v13677_v2  ;;  %v14023_v51 = vadd.f32 %v13946_v18, %v6185_v21  ;;  %v14026_v19 = vadd.f32 %v13946_v18, %v6184_v43 }
 0xf72   : > { %v9953_v33 = vpop.f32.mrf.mxu1 }
 0xf73   : > { %v6186_v55 = vadd.f32 %v16398_v15, %v6165_v17  ;;  %v6251_v7 = vsel %vm50_vm0, %v14023_v51, 0.0  ;;  %v6248_v26 = vsel %vm50_vm0, %v14026_v19, 0.0 }
 0xf74   : > { %6252 = vadd.xlane.f32.xlu1 %v6251_v7  ;;  %6249 = vadd.xlane.f32.xlu0 %v6248_v26  ;;  %v16404_v7 = vld [vmem:[#allocation8_spill] sm:$0xff] }
 0xf75   : > { %v14034_v47 = vadd.f32 %v13946_v18, %v6186_v55 }
 0xf77   : > { %v6254_v2 = vsel %vm50_vm0, %v14034_v47, 0.0 }
 0xf78   : > { %6255 = vadd.xlane.f32.xlu0 %v6254_v2 }
 0xfa9   : > { %v6223_v40 = vpop.xlane.xlu0 %6222 }
 0xfaa   : > { %v6284_v33 = vmul.f32 0.015625, %v6223_v40 }
 0xfad   : > { %v6226_v55 = vpop.xlane.xlu1 %6225 }
 0xfb7   : > { %v6229_v15 = vpop.xlane.xlu0 %6228 }
 0xfd0   : > { %v6116_v22 = vpop.f32.mrf.mxu1 }
 0xfd1   : > { %v6166_v58 = vadd.f32 %v6116_v22, %v13681_v12 }
 0xfd2   : > { %v9956_v62 = vpop.f32.mrf.mxu1 }
 0xfd3   : > { %v6187_v34 = vadd.f32 %v16399_v41, %v6166_v58  ;;  %v6285_v41 = vmul.f32 0.015625, %v6226_v55 }
 0xfd4   : > { %v6119_v44 = vpop.f32.mrf.mxu1 }
 0xfd5   : > { %v6167_v61 = vadd.f32 %v6119_v44, %v13685_v1  ;;  %v14042_v53 = vadd.f32 %v13946_v18, %v6187_v34  ;;  %v16405_v44 = vld [vmem:[#allocation7_spill] sm:$0xff] }
 0xfd6   : > { %v9957_v49 = vpop.f32.mrf.mxu1 }
 0xfd7   : > { %v6188_v52 = vadd.f32 %v16400_v36, %v6167_v61  ;;  %v6257_v48 = vsel %vm50_vm0, %v14042_v53, 0.0  ;;  %v6232_v36 = vpop.xlane.xlu0 %6231 }
 0xfd8   : > { %v6124_v14 = vpop.f32.mrf.mxu1  ;;  %6258 = vadd.xlane.f32.xlu1 %v6257_v48 }
 0xfd9   : > { %v6168_v3 = vadd.f32 %v6124_v14, %v13689_v50  ;;  %v14049_v12 = vadd.f32 %v13946_v18, %v6188_v52  ;;  %v14090_v14 = vsub.f32 %v13958_v59, %v6285_v41 }
 0xfda   : > { %v9960_v60 = vpop.f32.mrf.mxu1 }
 0xfdb   : > { %v6189_v0 = vadd.f32 %v16401_v39, %v6168_v3  ;;  %v6260_v1 = vsel %vm50_vm0, %v14049_v12, 0.0  ;;  %v6287_v39 = vmul.f32 0.015625, %v6232_v36  ;;  %v6327_v40 = vmul.f32 %v14090_v14, %v14090_v14 }
 0xfdc   : > { %v6127_v35 = vpop.f32.mrf.mxu1  ;;  %6261 = vadd.xlane.f32.xlu0 %v6260_v1  ;;  %v16406_v1 = vld [vmem:[#allocation6_spill] sm:$0xff] }
 0xfdd   : > { %v6169_v8 = vadd.f32 %v6127_v35, %v13693_v31  ;;  %v14056_v30 = vadd.f32 %v13946_v18, %v6189_v0  ;;  %v6235_v0 = vpop.xlane.xlu1 %6234  ;;  %v6350_v55 = vsel %vm50_vm0, %v6327_v40, 0.0 }
 0xfde   : > { %v9961_v63 = vpop.f32.mrf.mxu1 }
 0xfdf   : > { %v6190_v6 = vadd.f32 %v16402_v42, %v6169_v8  ;;  %v6263_v50 = vsel %vm50_vm0, %v14056_v30, 0.0  ;;  %v6238_v63 = vpop.xlane.xlu0 %6237 }
 0xfe0   : > { %v6132_v24 = vpop.f32.mrf.mxu1  ;;  %6264 = vadd.xlane.f32.xlu1 %v6263_v50  ;;  %v6288_v50 = vmul.f32 0.015625, %v6235_v0 }
 0xfe1   : > { %v6170_v46 = vadd.f32 %v6132_v24, %v13698_v37  ;;  %v14063_v25 = vadd.f32 %v13946_v18, %v6190_v6 }
 0xfe2   : > { %v9964_v43 = vpop.f32.mrf.mxu1 }
 0xfe3   : > { %v6191_v31 = vadd.f32 %v16403_v13, %v6170_v46  ;;  %v6266_v21 = vsel %vm50_vm0, %v14063_v25, 0.0  ;;  %v14108_v43 = vsub.f32 %v13978_v9, %v6287_v39  ;;  %v6289_v13 = vmul.f32 0.015625, %v6238_v63 }
 0xfe4   : > { %v6135_v32 = vpop.f32.mrf.mxu1  ;;  %6267 = vadd.xlane.f32.xlu0 %v6266_v21  ;;  %v16407_v21 = vld [vmem:[#allocation5_spill] sm:$0xff] }
 0xfe5   : > { %v6171_v5 = vadd.f32 %v6135_v32, %v13703_v57  ;;  %v14070_v17 = vadd.f32 %v13946_v18, %v6191_v31  ;;  %v14080_v57 = vsub.f32 %v13951_v11, %v6284_v33  ;;  %v6286_v11 = vmul.f32 0.015625, %v6229_v15  ;;  %v6241_v31 = vpop.xlane.xlu1 %6240 }
 0xfe6   : > { %v9965_v37 = vpop.f32.mrf.mxu1  ;;  %v14117_v15 = vsub.f32 %v13986_v54, %v6288_v50 }
 0xfe7   : > { %v6192_v26 = vadd.f32 %v16404_v7, %v6171_v5  ;;  %v6269_v2 = vsel %vm50_vm0, %v14070_v17, 0.0  ;;  %v6326_v60 = vmul.f32 %v14080_v57, %v14080_v57  ;;  %v14102_v6 = vsub.f32 %v13971_v45, %v6286_v11  ;;  %v6244_v5 = vpop.xlane.xlu0 %6243 }
 0xfe8   : > { %6270 = vadd.xlane.f32.xlu1 %v6269_v2  ;;  %v6140_v22 = vpop.f32.mrf.mxu1  ;;  %v6290_v37 = vmul.f32 0.015625, %v6241_v31  ;;  %v6291_v2 = vmul.f32 0.015625, %v6244_v5  ;;  %v10313_v31 = vld [vmem:[%s11666_s30 + $0x30] ss:$8 sps:$4 sm:$0xff]  }
 0xfe9   : > { %v6172_v58 = vadd.f32 %v6140_v22, %v13725_v20  ;;  %v14077_v62 = vadd.f32 %v13946_v18, %v6192_v26  ;;  %v6347_v46 = vsel %vm50_vm0, %v6326_v60, 0.0  ;;  %v6328_v7 = vmul.f32 %v14102_v6, %v14102_v6  ;;  %v10319_v5 = vld [vmem:[%s11666_s30 + $0x10] ss:$8 sps:$4 sm:$0xff]  }
 0xfea   : > { %v9968_v34 = vpop.f32.mrf.mxu1  ;;  %v14123_v26 = vsub.f32 %v13992_v23, %v6289_v13  ;;  %v14136_v23 = vsub.f32 %v14006_v28, %v6291_v2  ;;  %v10315_v13 = vld [vmem:[%s11666_s30 + $0x34] ss:$8 sps:$4 sm:$0xff]  }
 0xfeb   : > { %v6193_v61 = vadd.f32 %v16405_v44, %v6172_v58  ;;  %v6272_v49 = vsel %vm50_vm0, %v14077_v62, 0.0  ;;  %v14130_v58 = vsub.f32 %v14000_v27, %v6290_v37  ;;  %v6353_v41 = vsel %vm50_vm0, %v6328_v7, 0.0  ;;  %6654 = vmatprep.subr.bf16.mxu0 %v10315_v13  ;;  %v10322_v37 = vld [vmem:[%s11666_s30] ss:$8 sps:$4 sm:$0xff]  }
 0xfec   : > { %6273 = vadd.xlane.f32.xlu0 %v6272_v49  ;;  %v6143_v52 = vpop.f32.mrf.mxu1  ;;  %v6330_v34 = vmul.f32 %v14117_v15, %v14117_v15  ;;  %v6331_v49 = vmul.f32 %v14123_v26, %v14123_v26  ;;  %v6333_v39 = vmul.f32 %v14136_v23, %v14136_v23  ;;  %6655 = vmatpush1.bf16.msra.mxu0 %v10313_v31 }
 0xfed   : > { %v6173_v48 = vadd.f32 %v6143_v52, %v13729_v56  ;;  %v14087_v20 = vadd.f32 %v13946_v18, %v6193_v61  ;;  %v6332_v11 = vmul.f32 %v14130_v58, %v14130_v58 }
 0xfee   : > { %v9969_v3 = vpop.f32.mrf.mxu1  ;;  %v6362_v60 = vsel %vm50_vm0, %v6331_v49, 0.0 }
 0xfef   : > { %v6194_v35 = vadd.f32 %v16406_v1, %v6173_v48  ;;  %v6275_v8 = vsel %vm50_vm0, %v14087_v20, 0.0  ;;  %v6359_v48 = vsel %vm50_vm0, %v6330_v34, 0.0 }
 0xff0   : > { %6276 = vadd.xlane.f32.xlu1 %v6275_v8  ;;  %v6148_v56 = vpop.f32.mrf.mxu1  ;;  %v6365_v8 = vsel %vm50_vm0, %v6332_v11, 0.0 }
 0xff1   : > { %v6174_v42 = vadd.f32 %v6148_v56, %v13733_v10  ;;  %v14099_v59 = vadd.f32 %v13946_v18, %v6194_v35 }
 0xff2   : > { %v9972_v24 = vpop.f32.mrf.mxu1 }
 0xff3   : > { %v6195_v10 = vadd.f32 %v16407_v21, %v6174_v42  ;;  %v6278_v32 = vsel %vm50_vm0, %v14099_v59, 0.0  ;;  %v10318_v21 = vld [vmem:[%s11666_s30 + $0x24] ss:$8 sps:$4 sm:$0xff]  }
 0xff4   : > { %6348 = vadd.xlane.f32.xlu1 %v6347_v46  ;;  %6279 = vadd.xlane.f32.xlu0 %v6278_v32  ;;  %v6151_v45 = vpop.f32.mrf.mxu1  ;;  %v10321_v32 = vld [vmem:[%s11666_s30 + $0x14] ss:$8 sps:$4 sm:$0xff]  }
 0xff5   : > { %v14114_v33 = vadd.f32 %v13946_v18, %v6195_v10  ;;  %v6329_v18 = vmul.f32 %v14108_v43, %v14108_v43  ;;  %v10316_v10 = vld [vmem:[%s11666_s30 + $0x20] ss:$8 sps:$4 sm:$0xff]   ;;  %6656 = vmatprep.subr.bf16.mxu0 %v10318_v21  ;;  %v10324_v45 = vld [vmem:[%s11666_s30 + $0x4] ss:$8 sps:$4 sm:$0xff]  }
 0xff6   : > { %v9973_v9 = vpop.f32.mrf.mxu1  ;;  %6657 = vmatpush1.bf16.msra.mxu0 %v10316_v10 }
 0xff7   : > { %v6281_v22 = vsel %vm50_vm0, %v14114_v33, 0.0  ;;  %v6356_v61 = vsel %vm50_vm0, %v6329_v18, 0.0  ;;  %6658 = vmatprep.subr.bf16.mxu0 %v10321_v32 }
 0xff8   : > { %6351 = vadd.xlane.f32.xlu0 %v6350_v55  ;;  %6282 = vadd.xlane.f32.xlu1 %v6281_v22 }
 0xff9   : > { %v6247_v54 = vpop.xlane.xlu1 %6246 }
 0xffa   : > { %v6292_v44 = vmul.f32 0.015625, %v6247_v54  ;;  %6659 = vmatpush1.bf16.msra.mxu0 %v10319_v5 }
 0xffb   : > { %6660 = vmatprep.subr.bf16.mxu0 %v10324_v45 }
 0xffc   : > { %6354 = vadd.xlane.f32.xlu0 %v6353_v41  ;;  %6357 = vadd.xlane.f32.xlu1 %v6356_v61  ;;  %v14145_v3 = vsub.f32 %v14015_v38, %v6292_v44  ;;  %v6368_v38 = vsel %vm50_vm0, %v6333_v39, 0.0 }
 0xffd   : > { %v6253_v36 = vpop.xlane.xlu1 %6252  ;;  %v6250_v52 = vpop.xlane.xlu0 %6249 }
 0xffe   : > { %v6293_v27 = vmul.f32 0.015625, %v6250_v52  ;;  %v6294_v28 = vmul.f32 0.015625, %v6253_v36  ;;  %v6334_v56 = vmul.f32 %v14145_v3, %v14145_v3  ;;  %6661 = vmatpush1.bf16.msra.mxu0 %v10322_v37 }
0x1000   : > { %v14151_v0 = vsub.f32 %v14026_v19, %v6293_v27  ;;  %6360 = vadd.xlane.f32.xlu0 %v6359_v48  ;;  %6363 = vadd.xlane.f32.xlu1 %v6362_v60  ;;  %v14155_v63 = vsub.f32 %v14023_v51, %v6294_v28  ;;  %v6371_v51 = vsel %vm50_vm0, %v6334_v56, 0.0 }
0x1001   : > { %v6256_v1 = vpop.xlane.xlu0 %6255 }
0x1002   : > { %v6295_v35 = vmul.f32 0.015625, %v6256_v1  ;;  %v6335_v19 = vmul.f32 %v14151_v0, %v14151_v0  ;;  %v6336_v24 = vmul.f32 %v14155_v63, %v14155_v63 }
0x1004   : > { %v14163_v42 = vsub.f32 %v14034_v47, %v6295_v35  ;;  %6366 = vadd.xlane.f32.xlu0 %v6365_v8  ;;  %6369 = vadd.xlane.f32.xlu1 %v6368_v38  ;;  %v6374_v50 = vsel %vm50_vm0, %v6335_v19, 0.0  ;;  %v6377_v47 = vsel %vm50_vm0, %v6336_v24, 0.0 }
0x1006   : > { %v6337_v46 = vmul.f32 %v14163_v42, %v14163_v42 }
0x1008   : > { %6372 = vadd.xlane.f32.xlu0 %v6371_v51  ;;  %6375 = vadd.xlane.f32.xlu1 %v6374_v50  ;;  %v6380_v40 = vsel %vm50_vm0, %v6337_v46, 0.0 }
0x100c   : > { %6378 = vadd.xlane.f32.xlu0 %v6377_v47  ;;  %6381 = vadd.xlane.f32.xlu1 %v6380_v40 }
0x1061   : > { %v6259_v9 = vpop.xlane.xlu1 %6258 }
0x1062   : > { %v6296_v55 = vmul.f32 0.015625, %v6259_v9 }
0x1064   : > { %v14182_v7 = vsub.f32 %v14042_v53, %v6296_v55 }
0x1065   : > { %v6262_v2 = vpop.xlane.xlu0 %6261 }
0x1066   : > { %v6297_v22 = vmul.f32 0.015625, %v6262_v2  ;;  %v6338_v18 = vmul.f32 %v14182_v7, %v14182_v7 }
0x1068   : > { %v14187_v54 = vsub.f32 %v14049_v12, %v6297_v22  ;;  %v6383_v41 = vsel %vm50_vm0, %v6338_v18, 0.0 }
0x1069   : > { %v6265_v34 = vpop.xlane.xlu1 %6264  ;;  %6384 = vadd.xlane.f32.xlu0 %v6383_v41 }
0x106a   : > { %v6298_v44 = vmul.f32 0.015625, %v6265_v34  ;;  %v6339_v61 = vmul.f32 %v14187_v54, %v14187_v54 }
0x106c   : > { %v14193_v49 = vsub.f32 %v14056_v30, %v6298_v44  ;;  %v6386_v53 = vsel %vm50_vm0, %v6339_v61, 0.0 }
0x106d   : > { %v6268_v36 = vpop.xlane.xlu0 %6267  ;;  %6387 = vadd.xlane.f32.xlu1 %v6386_v53 }
0x106e   : > { %v6299_v52 = vmul.f32 0.015625, %v6268_v36  ;;  %v6340_v12 = vmul.f32 %v14193_v49, %v14193_v49 }
0x1070   : > { %v14199_v27 = vsub.f32 %v14063_v25, %v6299_v52  ;;  %v6389_v48 = vsel %vm50_vm0, %v6340_v12, 0.0  ;;  %v6496_v12 = vsub.s32 4, %v16385_v16 }
0x1071   : > { %v6271_v11 = vpop.xlane.xlu1 %6270  ;;  %6390 = vadd.xlane.f32.xlu0 %v6389_v48 }
0x1072   : > { %v6300_v28 = vmul.f32 0.015625, %v6271_v11  ;;  %v6341_v30 = vmul.f32 %v14199_v27, %v14199_v27 }
0x1074   : > { %v14205_v60 = vsub.f32 %v14070_v17, %v6300_v28  ;;  %v6392_v39 = vsel %vm50_vm0, %v6341_v30, 0.0 }
0x1075   : > { %v6274_v1 = vpop.xlane.xlu0 %6273  ;;  %6393 = vadd.xlane.f32.xlu1 %v6392_v39 }
0x1076   : > { %v6301_v35 = vmul.f32 0.015625, %v6274_v1  ;;  %v6342_v25 = vmul.f32 %v14205_v60, %v14205_v60 }
0x1078   : > { %v14211_v8 = vsub.f32 %v14077_v62, %v6301_v35  ;;  %v6395_v38 = vsel %vm50_vm0, %v6342_v25, 0.0  ;;  %v14237_v25 = vrot.slane %v13941_v4, %v6496_v12 }
0x1079   : > { %v6277_v56 = vpop.xlane.xlu1 %6276  ;;  %6396 = vadd.xlane.f32.xlu0 %v6395_v38 }
0x107a   : > { %v6302_v19 = vmul.f32 0.015625, %v6277_v56  ;;  %v6343_v17 = vmul.f32 %v14211_v8, %v14211_v8  ;;  %v6521_v56 = vsub.s32 5, %v16385_v16 }
0x107c   : > { %v14217_v51 = vsub.f32 %v14087_v20, %v6302_v19  ;;  %v6398_v50 = vsel %vm50_vm0, %v6343_v17, 0.0 }
0x107d   : > { %v6349_v24 = vpop.xlane.xlu1 %6348  ;;  %v6280_v46 = vpop.xlane.xlu0 %6279  ;;  %6399 = vadd.xlane.f32.xlu1 %v6398_v50 }
0x107e   : > { %v6410_v47 = vmul.f32 0.015625, %v6349_v24  ;;  %v6303_v40 = vmul.f32 0.015625, %v6280_v46  ;;  %v6344_v62 = vmul.f32 %v14217_v51, %v14217_v51 }
0x1080   : > { %v6431_v13 = vadd.f32 1e-12, %v6410_v47  ;;  %v14223_v31 = vsub.f32 %v14099_v59, %v6303_v40  ;;  %v6401_v21 = vsel %vm50_vm0, %v6344_v62, 0.0 }
0x1081   : > { %6402 = vadd.xlane.f32.xlu0 %v6401_v21  ;;  %v6352_v10 = vpop.xlane.xlu0 %6351  ;;  %v6283_v20 = vpop.xlane.xlu1 %6282 }
0x1082   : > { %10677 = vrsqrt.f32 %v6431_v13  ;;  %v6411_v32 = vmul.f32 0.015625, %v6352_v10  ;;  %v6304_v5 = vmul.f32 0.015625, %v6283_v20  ;;  %v6345_v45 = vmul.f32 %v14223_v31, %v14223_v31 }
0x1083   : > { %v14244_v13 = vrot.slane %v13941_v4, %v6521_v56 }
0x1084   : > { %v6432_v37 = vadd.f32 1e-12, %v6411_v32  ;;  %v14229_v9 = vsub.f32 %v14114_v33, %v6304_v5  ;;  %v6404_v55 = vsel %vm50_vm0, %v6345_v45, 0.0 }
0x1085   : > { %v6355_v2 = vpop.xlane.xlu0 %6354  ;;  %6405 = vadd.xlane.f32.xlu1 %v6404_v55  ;;  %v6358_v59 = vpop.xlane.xlu1 %6357 }
0x1086   : > { %10679 = vrsqrt.f32 %v6432_v37  ;;  %v6412_v22 = vmul.f32 0.015625, %v6355_v2  ;;  %v6413_v18 = vmul.f32 0.015625, %v6358_v59  ;;  %v6346_v41 = vmul.f32 %v14229_v9, %v14229_v9 }
0x1088   : > { %v6433_v34 = vadd.f32 1e-12, %v6412_v22  ;;  %v6434_v44 = vadd.f32 1e-12, %v6413_v18  ;;  %v6407_v61 = vsel %vm50_vm0, %v6346_v41, 0.0 }
0x1089   : > { %v6361_v53 = vpop.xlane.xlu0 %6360  ;;  %6408 = vadd.xlane.f32.xlu0 %v6407_v61  ;;  %v6364_v36 = vpop.xlane.xlu1 %6363 }
0x108a   : > { %10681 = vrsqrt.f32 %v6433_v34  ;;  %v6414_v33 = vmul.f32 0.015625, %v6361_v53  ;;  %v6415_v52 = vmul.f32 0.015625, %v6364_v36 }
0x108b   : > { %10683 = vrsqrt.f32 %v6434_v44 }
0x108c   : > { %v6435_v48 = vadd.f32 1e-12, %v6414_v33  ;;  %v6436_v11 = vadd.f32 1e-12, %v6415_v52 }
0x108d   : > { %v6367_v28 = vpop.xlane.xlu0 %6366  ;;  %v6370_v30 = vpop.xlane.xlu1 %6369 }
0x108e   : > { %10685 = vrsqrt.f32 %v6435_v48  ;;  %v6416_v39 = vmul.f32 0.015625, %v6367_v28  ;;  %v6417_v1 = vmul.f32 0.015625, %v6370_v30 }
0x108f   : > { %v10678_v35 = vpop.eup %10677  ;;  %10687 = vrsqrt.f32 %v6436_v11 }
0x1090   : > { %v6473_v38 = vmul.f32 %v10678_v35, %v14080_v57  ;;  %v6437_v19 = vadd.f32 1e-12, %v6416_v39  ;;  %v6438_v50 = vadd.f32 1e-12, %v6417_v1 }
0x1091   : > { %v6373_v17 = vpop.xlane.xlu0 %6372  ;;  %v6376_v24 = vpop.xlane.xlu1 %6375 }
0x1092   : > { %v6498_v47 = vmul.f32 %v14237_v25, %v6473_v38  ;;  %v6418_v62 = vmul.f32 0.015625, %v6373_v17  ;;  %10689 = vrsqrt.f32 %v6437_v19  ;;  %v6419_v21 = vmul.f32 0.015625, %v6376_v24 }
0x1093   : > { %v10680_v46 = vpop.eup %10679  ;;  %10691 = vrsqrt.f32 %v6438_v50 }
0x1094   : > { %v6474_v40 = vmul.f32 %v10680_v46, %v14090_v14  ;;  %v6439_v32 = vadd.f32 1e-12, %v6418_v62  ;;  %v14248_v5 = vadd.f32 %v14244_v13, %v6498_v47  ;;  %v6440_v37 = vadd.f32 1e-12, %v6419_v21 }
0x1095   : > { %v6379_v55 = vpop.xlane.xlu0 %6378  ;;  %v6382_v2 = vpop.xlane.xlu1 %6381 }
0x1096   : > { %v6499_v10 = vmul.f32 %v14237_v25, %v6474_v40  ;;  %16408 = vst [vmem:[#allocation26_spill] sm:$0xff] %v14248_v5  ;;  %10693 = vrsqrt.f32 %v6439_v32  ;;  %v6420_v44 = vmul.f32 0.015625, %v6379_v55 }
0x1097   : > { %v10682_v57 = vpop.eup %10681  ;;  %10695 = vrsqrt.f32 %v6440_v37 }
0x1098   : > { %v10684_v20 = vpop.eup %10683  ;;  %v14251_v45 = vadd.f32 %v14244_v13, %v6499_v10  ;;  %v6475_v14 = vmul.f32 %v10682_v57, %v14102_v6  ;;  %v6421_v6 = vmul.f32 0.015625, %v6382_v2  ;;  %v6441_v33 = vadd.f32 1e-12, %v6420_v44 }
0x1099   : > { %v6476_v4 = vmul.f32 %v10684_v20, %v14108_v43 }
0x109a   : > { %16409 = vst [vmem:[#allocation27_spill] sm:$0xff] %v14251_v45  ;;  %v6544_v59 = vpack.c.bf16 %v14251_v45, %v14248_v5  ;;  %v6500_v22 = vmul.f32 %v14237_v25, %v6475_v14  ;;  %v6442_v52 = vadd.f32 1e-12, %v6421_v6  ;;  %10697 = vrsqrt.f32 %v6441_v33 }
0x109b   : > { %v10686_v18 = vpop.eup %10685  ;;  %v6501_v41 = vmul.f32 %v14237_v25, %v6476_v4 }
0x109c   : > { %v10688_v34 = vpop.eup %10687  ;;  %8950 = vmatmul.mubr.msk.bf16.vlgmr.msra.gmra.mxu0 %vm50_vm0, %v6544_v59  ;;  %v14262_v43 = vadd.f32 %v14244_v13, %v6500_v22  ;;  %v6477_v53 = vmul.f32 %v10686_v18, %v14117_v15  ;;  %10699 = vrsqrt.f32 %v6442_v52 }
0x109d   : > { %6688 = vmatprep.mubr.bf16.mxu0 %v16384_v29  ;;  %v14265_v61 = vadd.f32 %v14244_v13, %v6501_v41  ;;  %v6478_v36 = vmul.f32 %v10688_v34, %v14123_v26 }
0x109e   : > { %16410 = vst [vmem:[#allocation37_spill] sm:$0xff] %v14262_v43  ;;  %v6502_v11 = vmul.f32 %v14237_v25, %v6477_v53 }
0x109f   : > { %16411 = vst [vmem:[#allocation33_spill] sm:$0xff] %v14265_v61  ;;  %v10690_v12 = vpop.eup %10689  ;;  %v6545_v48 = vpack.c.bf16 %v14265_v61, %v14262_v43  ;;  %v6503_v28 = vmul.f32 %v14237_v25, %v6478_v36 }
0x10a0   : > { %v10692_v30 = vpop.eup %10691  ;;  %v14276_v15 = vadd.f32 %v14244_v13, %v6502_v11  ;;  %v6479_v39 = vmul.f32 %v10690_v12, %v14130_v58 }
0x10a1   : > { %v14279_v26 = vadd.f32 %v14244_v13, %v6503_v28  ;;  %v6480_v1 = vmul.f32 %v10692_v30, %v14136_v23 }
0x10a2   : > { %16412 = vst [vmem:[#allocation44_spill] sm:$0xff] %v14276_v15  ;;  %v6504_v19 = vmul.f32 %v14237_v25, %v6479_v39 }
0x10a3   : > { %16413 = vst [vmem:[#allocation48_spill] sm:$0xff] %v14279_v26  ;;  %v10694_v35 = vpop.eup %10693  ;;  %v6546_v56 = vpack.c.bf16 %v14279_v26, %v14276_v15  ;;  %v6505_v17 = vmul.f32 %v14237_v25, %v6480_v1 }
0x10a4   : > { %8951 = vmatmul.mubr.msk.bf16.gmra.mxu0 %vm50_vm0, %v6545_v48  ;;  %v10696_v38 = vpop.eup %10695  ;;  %v14290_v50 = vadd.f32 %v14244_v13, %v6504_v19  ;;  %v6481_v23 = vmul.f32 %v10694_v35, %v14145_v3 }
0x10a5   : > { %6698 = vmatprep.mubr.bf16.mxu0 %v16384_v29  ;;  %v14293_v58 = vadd.f32 %v14244_v13, %v6505_v17  ;;  %v6482_v24 = vmul.f32 %v10696_v38, %v14151_v0 }
0x10a6   : > { %16414 = vst [vmem:[#allocation47_spill] sm:$0xff] %v14290_v50  ;;  %v6506_v62 = vmul.f32 %v14237_v25, %v6481_v23 }
0x10a7   : > { %16415 = vst [vmem:[#allocation52_spill] sm:$0xff] %v14293_v58  ;;  %v10698_v46 = vpop.eup %10697  ;;  %v6547_v40 = vpack.c.bf16 %v14293_v58, %v14290_v50  ;;  %v6507_v21 = vmul.f32 %v14237_v25, %v6482_v24 }
0x10a8   : > { %v14304_v10 = vadd.f32 %v14244_v13, %v6506_v62  ;;  %v6483_v0 = vmul.f32 %v10698_v46, %v14155_v63 }
0x10a9   : > { %v10700_v47 = vpop.eup %10699  ;;  %v14307_v3 = vadd.f32 %v14244_v13, %v6507_v21 }
0x10aa   : > { %16416 = vst [vmem:[#allocation46_spill] sm:$0xff] %v14304_v10  ;;  %v6484_v57 = vmul.f32 %v10700_v47, %v14163_v42  ;;  %v6508_v32 = vmul.f32 %v14237_v25, %v6483_v0 }
0x10ab   : > { %16417 = vst [vmem:[#allocation54_spill] sm:$0xff] %v14307_v3  ;;  %v6548_v20 = vpack.c.bf16 %v14307_v3, %v14304_v10 }
0x10ac   : > { %8952 = vmatmul.mubr.msk.bf16.gmra.mxu0 %vm50_vm0, %v6546_v56  ;;  %v6509_v14 = vmul.f32 %v14237_v25, %v6484_v57  ;;  %v14318_v37 = vadd.f32 %v14244_v13, %v6508_v32 }
0x10ad   : > { %6708 = vmatprep.mubr.bf16.mxu0 %v16384_v29 }
0x10ae   : > { %16418 = vst [vmem:[#allocation50_spill] sm:$0xff] %v14318_v37  ;;  %v14321_v55 = vadd.f32 %v14244_v13, %v6509_v14 }
0x10b0   : > { %16419 = vst [vmem:[#allocation53_spill] sm:$0xff] %v14321_v55  ;;  %v6549_v63 = vpack.c.bf16 %v14321_v55, %v14318_v37 }
0x10b4   : > { %8953 = vmatmul.mubr.msk.bf16.gmra.mxu0 %vm50_vm0, %v6547_v40 }
0x10b5   : > { %6718 = vmatprep.mubr.bf16.mxu0 %v16384_v29 }
0x10bc   : > { %8954 = vmatmul.mubr.msk.bf16.gmra.mxu0 %vm50_vm0, %v6548_v20 }
0x10bd   : > { %6728 = vmatprep.mubr.bf16.mxu0 %v16384_v29 }
0x10c4   : > { %8955 = vmatmul.mubr.msk.bf16.gmra.mxu0 %vm50_vm0, %v6549_v63 }
0x10c5   : > { %6738 = vmatprep.mubr.bf16.mxu0 %v16384_v29 }
0x10f2   : > { %v6385_v42 = vpop.xlane.xlu0 %6384 }
0x10f3   : > { %v6422_v4 = vmul.f32 0.015625, %v6385_v42 }
0x10f5   : > { %v6443_v2 = vadd.f32 1e-12, %v6422_v4 }
0x10f6   : > { %v6388_v59 = vpop.xlane.xlu1 %6387 }
0x10f7   : > { %10701 = vrsqrt.f32 %v6443_v2  ;;  %v6423_v22 = vmul.f32 0.015625, %v6388_v59 }
0x10f9   : > { %v6444_v18 = vadd.f32 1e-12, %v6423_v22 }
0x10fa   : > { %v6391_v41 = vpop.xlane.xlu0 %6390 }
0x10fb   : > { %10703 = vrsqrt.f32 %v6444_v18  ;;  %v6424_v34 = vmul.f32 0.015625, %v6391_v41 }
0x10fd   : > { %v6445_v44 = vadd.f32 1e-12, %v6424_v34 }
0x10fe   : > { %v6394_v6 = vpop.xlane.xlu1 %6393 }
0x10ff   : > { %10705 = vrsqrt.f32 %v6445_v44  ;;  %v6425_v53 = vmul.f32 0.015625, %v6394_v6 }
0x1101   : > { %v6446_v36 = vadd.f32 1e-12, %v6425_v53 }
0x1102   : > { %v6397_v33 = vpop.xlane.xlu0 %6396 }
0x1103   : > { %10707 = vrsqrt.f32 %v6446_v36  ;;  %v6426_v52 = vmul.f32 0.015625, %v6397_v33 }
0x1104   : > { %v10702_v12 = vpop.eup %10701 }
0x1105   : > { %v6447_v48 = vadd.f32 1e-12, %v6426_v52  ;;  %v6485_v11 = vmul.f32 %v10702_v12, %v14182_v7 }
0x1106   : > { %v6400_v28 = vpop.xlane.xlu1 %6399 }
0x1107   : > { %10709 = vrsqrt.f32 %v6447_v48  ;;  %v6427_v30 = vmul.f32 0.015625, %v6400_v28  ;;  %v6510_v38 = vmul.f32 %v14237_v25, %v6485_v11 }
0x1108   : > { %v10704_v39 = vpop.eup %10703 }
0x1109   : > { %v6448_v1 = vadd.f32 1e-12, %v6427_v30  ;;  %v6486_v35 = vmul.f32 %v10704_v39, %v14187_v54  ;;  %v14332_v46 = vadd.f32 %v14244_v13, %v6510_v38  ;;  %v10328_v38 = vld [vmem:[%s11671_s10 + $0x30] sm:$0xff]  }
0x110a   : > { %v6403_v56 = vpop.xlane.xlu0 %6402 }
0x110b   : > { %10711 = vrsqrt.f32 %v6448_v1  ;;  %v6428_v19 = vmul.f32 0.015625, %v6403_v56  ;;  %v6511_v17 = vmul.f32 %v14237_v25, %v6486_v35  ;;  %16420 = vst [vmem:[#allocation55_spill] sm:$0xff] %v14332_v46  ;;  %v10325_v1 = vld [vmem:[%s11671_s10 + $0x78] sm:$0xff]   ;;  %v6567_v56 = vsub.s32 2, %v16385_v16 }
0x110c   : > { %v10706_v23 = vpop.eup %10705  ;;  %v10326_v35 = vld [vmem:[%s11671_s10 + $0x38] sm:$0xff]   ;;  %9258 = vmatprep.subr.bf16.mxu1 %v10325_v1  ;;  %v10335_v1 = vld [vmem:[%s11671_s10 + $0x50] sm:$0xff]  }
0x110d   : > { %v6449_v24 = vadd.f32 1e-12, %v6428_v19  ;;  %v14335_v7 = vadd.f32 %v14244_v13, %v6511_v17  ;;  %v6487_v47 = vmul.f32 %v10706_v23, %v14193_v49  ;;  %9259 = vmatpush3.bf16.msra.mxu1 %v10326_v35  ;;  %v10930_v19 = vld [vmem:[%s11720_s14] sm:$0xff]  ;;  %v10931_v23 = vld [vmem:[%s11720_s14 + $0x8] sm:$0xff] }
0x110e   : > { %v6406_v40 = vpop.xlane.xlu1 %6405  ;;  %v14399_v17 = vrot.slane %v10930_v19, %v6567_v56 }
0x110f   : > { %16421 = vst [vmem:[#allocation51_spill] sm:$0xff] %v14335_v7  ;;  %10713 = vrsqrt.f32 %v6449_v24  ;;  %v6429_v54 = vmul.f32 0.015625, %v6406_v40  ;;  %v6550_v62 = vpack.c.bf16 %v14335_v7, %v14332_v46  ;;  %v6512_v20 = vmul.f32 %v14237_v25, %v6487_v47 }
0x1110   : > { %v10708_v21 = vpop.eup %10707  ;;  %v14402_v24 = vrot.slane %v10931_v23, %v6567_v56 }
0x1111   : > { %v6450_v0 = vadd.f32 1e-12, %v6429_v54  ;;  %8956 = vmatmul.mubr.msk.bf16.gmra.mxu0 %vm50_vm0, %v6550_v62  ;;  %v6488_v57 = vmul.f32 %v10708_v21, %v14199_v27  ;;  %v14346_v4 = vadd.f32 %v14244_v13, %v6512_v20  ;;  %v10331_v54 = vld [vmem:[%s11671_s10 + $0x60] sm:$0xff]  }
0x1112   : > { %v6409_v32 = vpop.xlane.xlu0 %6408  ;;  %6748 = vmatprep.mubr.bf16.mxu0 %v16384_v29  ;;  %v10332_v21 = vld [vmem:[%s11671_s10 + $0x20] sm:$0xff]  }
0x1113   : > { %10715 = vrsqrt.f32 %v6450_v0  ;;  %v6430_v14 = vmul.f32 0.015625, %v6409_v32  ;;  %v6513_v49 = vmul.f32 %v14237_v25, %v6488_v57  ;;  %16422 = vst [vmem:[#allocation29_spill] sm:$0xff] %v14346_v4 }
0x1114   : > { %v10710_v63 = vpop.eup %10709 }
0x1115   : > { %v6451_v42 = vadd.f32 1e-12, %v6430_v14  ;;  %v14349_v2 = vadd.f32 %v14244_v13, %v6513_v49  ;;  %v6489_v59 = vmul.f32 %v10710_v63, %v14205_v60 }
0x1117   : > { %16423 = vst [vmem:[#allocation56_spill] sm:$0xff] %v14349_v2  ;;  %10717 = vrsqrt.f32 %v6451_v42  ;;  %v6551_v27 = vpack.c.bf16 %v14349_v2, %v14346_v4  ;;  %v6514_v41 = vmul.f32 %v14237_v25, %v6489_v59 }
0x1118   : > { %v10712_v22 = vpop.eup %10711 }
0x1119   : > { %8957 = vmatmul.mubr.msk.bf16.gmra.mxu0 %vm50_vm0, %v6551_v27  ;;  %v6490_v18 = vmul.f32 %v10712_v22, %v14211_v8  ;;  %v14360_v6 = vadd.f32 %v14244_v13, %v6514_v41 }
0x111a   : > { %6758 = vmatprep.mubr.bf16.mxu0 %v16384_v29 }
0x111b   : > { %v6515_v34 = vmul.f32 %v14237_v25, %v6490_v18  ;;  %16424 = vst [vmem:[#allocation38_spill] sm:$0xff] %v14360_v6 }
0x111c   : > { %v10714_v44 = vpop.eup %10713 }
0x111d   : > { %v14363_v60 = vadd.f32 %v14244_v13, %v6515_v34  ;;  %v6491_v53 = vmul.f32 %v10714_v44, %v14217_v51 }
0x111f   : > { %16425 = vst [vmem:[#allocation57_spill] sm:$0xff] %v14363_v60  ;;  %v6552_v36 = vpack.c.bf16 %v14363_v60, %v14360_v6  ;;  %v6516_v52 = vmul.f32 %v14237_v25, %v6491_v53 }
0x1120   : > { %v10716_v8 = vpop.eup %10715 }
0x1121   : > { %8958 = vmatmul.mubr.msk.bf16.gmra.mxu0 %vm50_vm0, %v6552_v36  ;;  %v6492_v33 = vmul.f32 %v10716_v8, %v14223_v31  ;;  %v14374_v51 = vadd.f32 %v14244_v13, %v6516_v52  ;;  %v10334_v52 = vld [vmem:[%s11671_s10 + $0x18] sm:$0xff]  }
0x1122   : > { %6768 = vmatprep.mubr.bf16.mxu0 %v16384_v29 }
0x1123   : > { %v6517_v12 = vmul.f32 %v14237_v25, %v6492_v33  ;;  %16426 = vst [vmem:[#allocation30_spill] sm:$0xff] %v14374_v51  ;;  %v10333_v33 = vld [vmem:[%s11671_s10 + $0x58] sm:$0xff]  }
0x1124   : > { %v10718_v48 = vpop.eup %10717 }
0x1125   : > { %v14377_v11 = vadd.f32 %v14244_v13, %v6517_v12  ;;  %v6493_v28 = vmul.f32 %v10718_v48, %v14229_v9 }
0x1127   : > { %16427 = vst [vmem:[#allocation58_spill] sm:$0xff] %v14377_v11  ;;  %v6553_v31 = vpack.c.bf16 %v14377_v11, %v14374_v51  ;;  %v6518_v30 = vmul.f32 %v14237_v25, %v6493_v28  ;;  %v10327_v25 = vld [vmem:[%s11671_s10 + $0x70] sm:$0xff]   ;;  %v16429_v51 = vmov -1.0  }
0x1128   : > { %9260 = vmatprep.subr.bf16.mxu1 %v10327_v25  ;;  %v10336_v25 = vld [vmem:[%s11671_s10 + $0x10] sm:$0xff]  }
0x1129   : > { %8959 = vmatmul.mubr.msk.bf16.gmra.mxu0 %vm50_vm0, %v6553_v31  ;;  %v14386_v39 = vadd.f32 %v14244_v13, %v6518_v30  ;;  %9261 = vmatpush3.bf16.msra.mxu1 %v10328_v38  ;;  %v10330_v13 = vld [vmem:[%s11671_s10 + $0x28] sm:$0xff]  }
0x112a   : > { %6778 = vmatprep.mubr.bf16.mxu0 %v16384_v29  ;;  %v10329_v29 = vld [vmem:[%s11671_s10 + $0x68] sm:$0xff]  }
0x112b   : > { %16428 = vst [vmem:[#allocation28_spill] sm:$0xff] %v14386_v39  ;;  %v6554_v9 = vpack.c.bf16 %v14386_v39, %v14386_v39  ;;  %9262 = vmatprep.subr.bf16.mxu1 %v10329_v29 }
0x112d   : > { %9263 = vmatpush3.bf16.msra.mxu1 %v10330_v13 }
0x112e   : > { %9264 = vmatprep.subr.bf16.mxu1 %v10331_v54  ;;  %v10337_v54 = vld [vmem:[%s11671_s10 + $0x48] sm:$0xff]  }
0x1131   : > { %8960 = vmatmul.mubr.msk.bf16.gmra.mxu0 %vm50_vm0, %v6554_v9  ;;  %9265 = vmatpush3.bf16.msra.mxu1 %v10332_v21 }
0x1132   : > { %9266 = vmatprep.subr.bf16.mxu1 %v10333_v33 }
0x1135   : > { %9267 = vmatpush3.bf16.msra.mxu1 %v10334_v52 }
0x1136   : > { %9268 = vmatprep.subr.bf16.mxu1 %v10335_v1 }
0x1139   : > { %9269 = vmatpush3.bf16.msra.mxu1 %v10336_v25 }
0x113a   : > { %9270 = vmatprep.subr.bf16.mxu1 %v10337_v54 }
0x115c   : > { %v6680_v47 = vpop.f32.mrf.mxu0 }
0x115d   : > { %v14405_v40 = vadd.f32 %v6680_v47, %v14399_v17 }
0x115e   : > { %v6682_v62 = vpop.f32.mrf.mxu0 }
0x115f   : > { %v14410_v0 = vmul.f32 0.70710677, %v14405_v40  ;;  %v6683_v57 = vadd.f32 %v6682_v62, %v14402_v24  ;;  %v10338_v62 = vld [vmem:[%s11671_s10 + $0x8] sm:$0xff]   ;;  %v14480_v33 = vmul.f32 0.5, %v14405_v40 }
0x1160   : > { %v6684_v20 = vpop.f32.mrf.mxu0  ;;  %9271 = vmatpush3.bf16.msra.mxu1 %v10338_v62 }
0x1161   : > { %v6955_v32 = vand.u32 2147483647, %v14410_v0  ;;  %v14414_v14 = vmul.f32 0.70710677, %v6683_v57  ;;  %v14417_v49 = vadd.f32 %v6684_v20, %v14399_v17  ;;  %vm6871_vm5 = vcmp.ge.f32.partialorder %v14410_v0, 0.0 }
0x1162   : > { %v6686_v63 = vpop.f32.mrf.mxu0  ;;  %v14482_v52 = vmul.f32 0.5, %v6683_v57 }
0x1163   : > { %v6997_v42 = vmul.f32 0.3275911, %v6955_v32  ;;  %v14420_v59 = vand.u32 2147483647, %v14414_v14  ;;  %v14423_v27 = vmul.f32 0.70710677, %v14417_v49  ;;  %v14426_v22 = vadd.f32 %v6686_v63, %v14402_v24 }
0x1164   : > { %v6690_v18 = vpop.f32.mrf.mxu0  ;;  %v7543_v56 = vsub.f32 0.0, %v6955_v32  ;;  %vm6872_vm6 = vcmp.ge.f32.partialorder %v14414_v14, 0.0  ;;  %v14508_v54 = vmul.f32 0.5, %v14417_v49 }
0x1165   : > { %v7039_v41 = vadd.f32 1.0, %v6997_v42  ;;  %v6998_v34 = vmul.f32 0.3275911, %v14420_v59  ;;  %v14430_v44 = vand.u32 2147483647, %v14423_v27  ;;  %v14442_v31 = vadd.f32 %v6690_v18, %v14399_v17 }
0x1166   : > { %v14433_v53 = vmul.f32 0.70710677, %v14426_v22  ;;  %v6692_v36 = vpop.f32.mrf.mxu0  ;;  %v7544_v63 = vsub.f32 0.0, %v14420_v59  ;;  %vm6873_vm7 = vcmp.ge.f32.partialorder %v14423_v27, 0.0 }
0x1167   : > { %10719 = vrcp.f32 %v7039_v41  ;;  %v7040_v8 = vadd.f32 1.0, %v6998_v34  ;;  %v6999_v12 = vmul.f32 0.3275911, %v14430_v44  ;;  %v14447_v9 = vadd.f32 %v6692_v36, %v14402_v24 }
0x1168   : > { %v14439_v48 = vand.u32 2147483647, %v14433_v53  ;;  %v6694_v30 = vpop.f32.mrf.mxu0  ;;  %v14451_v38 = vmul.f32 0.70710677, %v14442_v31  ;;  %v7585_v41 = vmul.f32 %v7543_v56, %v6955_v32  ;;  %v16190_v32 = vmov -1.0  }
0x1169   : > { %10721 = vrcp.f32 %v7040_v8  ;;  %v7041_v28 = vadd.f32 1.0, %v6999_v12  ;;  %v14454_v13 = vmul.f32 0.70710677, %v14447_v9  ;;  %v14460_v23 = vadd.f32 %v6694_v30, %v14399_v17  ;;  %v10339_v8 = vld [vmem:[%s11671_s10 + $0x40] sm:$0xff]  }
0x116a   : > { %v7000_v35 = vmul.f32 0.3275911, %v14439_v48  ;;  %v14457_v19 = vand.u32 2147483647, %v14451_v38  ;;  %v6696_v47 = vpop.f32.mrf.mxu0  ;;  %v14495_v1 = vsel %vm6871_vm5, 1.0, %v16190_v32  ;;  %v14500_v40 = vsel %vm6872_vm6, 1.0, %v16190_v32  ;;  %9272 = vmatprep.subr.bf16.mxu1 %v10339_v8 }
0x116b   : > { %10723 = vrcp.f32 %v7041_v28  ;;  %v14467_v20 = vand.u32 2147483647, %v14454_v13  ;;  %v14472_v42 = vmul.f32 0.70710677, %v14460_v23  ;;  %v14475_v18 = vadd.f32 %v6696_v47, %v14402_v24 }
0x116c   : > { %v7042_v29 = vadd.f32 1.0, %v7000_v35  ;;  %v7001_v21 = vmul.f32 0.3275911, %v14457_v19  ;;  %v10340_v35 = vld [vmem:[%s11671_s10] sm:$0xff]   ;;  %v7545_v56 = vsub.f32 0.0, %v14430_v44  ;;  %vm6874_vm8 = vcmp.ge.f32.partialorder %v14433_v53, 0.0 }
0x116d   : > { %v7002_v36 = vmul.f32 0.3275911, %v14467_v20  ;;  %v14485_v12 = vand.u32 2147483647, %v14472_v42  ;;  %v14488_v28 = vmul.f32 0.70710677, %v14475_v18  ;;  %9273 = vmatpush3.bf16.msra.mxu1 %v10340_v35 }
0x116e   : > { %10725 = vrcp.f32 %v7042_v29  ;;  %v7043_v34 = vadd.f32 1.0, %v7001_v21  ;;  %v7586_v29 = vmul.f32 %v7544_v63, %v14420_v59  ;;  %v7627_v0 = vmul.f32 1.442695, %v7585_v41  ;;  %v6700_v63 = vpop.f32.mrf.mxu0 }
0x116f   : > { %v7044_v57 = vadd.f32 1.0, %v7002_v36  ;;  %v7003_v47 = vmul.f32 0.3275911, %v14485_v12  ;;  %v14512_v14 = vand.u32 2147483647, %v14488_v28  ;;  %v14519_v41 = vmul.f32 0.5, %v14426_v22 }
0x1170   : > { %10727 = vrcp.f32 %v7043_v34  ;;  %v7546_v34 = vsub.f32 0.0, %v14439_v48  ;;  %v7629_v32 = vmul.f32 1.442695, %v7586_v29  ;;  %v14529_v11 = vadd.f32 %v6700_v63, %v14399_v17 }
0x1171   : > { %10729 = vrcp.f32 %v7044_v57  ;;  %v7045_v59 = vadd.f32 1.0, %v7003_v47  ;;  %v7004_v49 = vmul.f32 0.3275911, %v14512_v14  ;;  %v14534_v60 = vsel %vm6873_vm7, 1.0, %v16429_v51 }
0x1172   : > { %v14547_v27 = vmul.f32 0.70710677, %v14529_v11  ;;  %vm6875_vm9 = vcmp.ge.f32.partialorder %v14451_v38, 0.0  ;;  %vm6876_vm10 = vcmp.ge.f32.partialorder %v14454_v13, 0.0  ;;  %v7550_v58 = vsub.f32 0.0, %v14512_v14 }
0x1173   : > { %10731 = vrcp.f32 %v7045_v59  ;;  %v7046_v39 = vadd.f32 1.0, %v7004_v49  ;;  %v14543_v59 = vsel %vm6874_vm8, 1.0, %v16429_v51  ;;  %v14567_v38 = vsel %vm6875_vm9, 1.0, %v16429_v51 }
0x1174   : > { %v14490_v30 = vpop.eup %10719  ;;  %10733 = vpow2.f32 %v7627_v0  ;;  %v7592_v61 = vmul.f32 %v7550_v58, %v14512_v14  ;;  %vm6877_vm11 = vcmp.ge.f32.partialorder %v14472_v42, 0.0  ;;  %v14622_v14 = vmul.f32 0.5, %v14475_v18 }
0x1175   : > { %v7165_v25 = vmul.f32 1.0614054, %v14490_v30  ;;  %10735 = vrcp.f32 %v7046_v39  ;;  %v14556_v39 = vmul.f32 0.5, %v14447_v9  ;;  %v7549_v9 = vsub.f32 0.0, %v14485_v12 }
0x1176   : > { %v14514_v62 = vpop.eup %10721  ;;  %10737 = vpow2.f32 %v7629_v32  ;;  %vm6878_vm12 = vcmp.ge.f32.partialorder %v14488_v28, 0.0  ;;  %vm6879_vm13 = vcmp.ge.f32.partialorder %v14547_v27, 0.0 }
0x1177   : > { %v7207_v21 = vadd.f32 -1.4531521, %v7165_v25  ;;  %v7166_v36 = vmul.f32 1.0614054, %v14514_v62  ;;  %v7587_v25 = vmul.f32 %v7545_v56, %v14430_v44 }
0x1178   : > { %v14523_v8 = vpop.eup %10723 }
0x1179   : > { %v7249_v35 = vmul.f32 %v14490_v30, %v7207_v21  ;;  %v7208_v57 = vadd.f32 -1.4531521, %v7166_v36  ;;  %v7167_v47 = vmul.f32 1.0614054, %v14523_v8  ;;  %v7588_v21 = vmul.f32 %v7546_v34, %v14439_v48 }
0x117a   : > { %v7631_v0 = vmul.f32 1.442695, %v7587_v25  ;;  %v14551_v34 = vmul.f32 0.5, %v14442_v31 }
0x117b   : > { %v7291_v22 = vadd.f32 1.4214138, %v7249_v35  ;;  %v14537_v29 = vpop.eup %10725  ;;  %v7250_v44 = vmul.f32 %v14514_v62, %v7208_v57  ;;  %v7209_v56 = vadd.f32 -1.4531521, %v7167_v47  ;;  %v7633_v35 = vmul.f32 1.442695, %v7588_v21 }
0x117c   : > { %v7168_v63 = vmul.f32 1.0614054, %v14537_v29  ;;  %v7547_v57 = vsub.f32 0.0, %v14457_v19  ;;  %v14561_v47 = vand.u32 2147483647, %v14547_v27  ;;  %10739 = vpow2.f32 %v7631_v0 }
0x117d   : > { %v7292_v36 = vadd.f32 1.4214138, %v7250_v44  ;;  %v7251_v48 = vmul.f32 %v14523_v8, %v7209_v56  ;;  %v7333_v53 = vmul.f32 %v14490_v30, %v7291_v22  ;;  %v14563_v44 = vpop.eup %10727  ;;  %v7548_v22 = vsub.f32 0.0, %v14467_v20 }
0x117e   : > { %v7210_v49 = vadd.f32 -1.4531521, %v7168_v63  ;;  %v7169_v56 = vmul.f32 1.0614054, %v14563_v44  ;;  %v7005_v63 = vmul.f32 0.3275911, %v14561_v47  ;;  %v14575_v2 = vpop.eup %10729  ;;  %v7589_v46 = vmul.f32 %v7547_v57, %v14457_v19 }
0x117f   : > { %v7334_v32 = vmul.f32 %v14514_v62, %v7292_v36  ;;  %v7293_v25 = vadd.f32 1.4214138, %v7251_v48  ;;  %v7375_v36 = vadd.f32 -0.28449672, %v7333_v53  ;;  %v7170_v37 = vmul.f32 1.0614054, %v14575_v2 }
0x1180   : > { %v7252_v31 = vmul.f32 %v14537_v29, %v7210_v49  ;;  %v6702_v49 = vpop.f32.mrf.mxu0  ;;  %v7211_v7 = vadd.f32 -1.4531521, %v7169_v56  ;;  %v7047_v55 = vadd.f32 1.0, %v7005_v63  ;;  %v7590_v13 = vmul.f32 %v7548_v22, %v14467_v20 }
0x1181   : > { %v7335_v21 = vmul.f32 %v14523_v8, %v7293_v25  ;;  %v7376_v48 = vadd.f32 -0.28449672, %v7334_v32  ;;  %v14579_v25 = vsel %vm6876_vm10, 1.0, %v16429_v51  ;;  %v7591_v53 = vmul.f32 %v7549_v9, %v14485_v12  ;;  %v14584_v32 = vpop.eup %10731 }
0x1182   : > { %v7294_v6 = vadd.f32 1.4214138, %v7252_v31  ;;  %v7253_v0 = vmul.f32 %v14563_v44, %v7211_v7  ;;  %v14588_v31 = vmul.f32 0.5, %v14460_v23  ;;  %10741 = vrcp.f32 %v7047_v55  ;;  %v10734_v22 = vpop.eup %10733 }
0x1183   : > { %v7377_v4 = vadd.f32 -0.28449672, %v7335_v21  ;;  %v14591_v19 = vadd.f32 %v6702_v49, %v14402_v24  ;;  %v7417_v57 = vmul.f32 %v14490_v30, %v7375_v36  ;;  %v7418_v21 = vmul.f32 %v14514_v62, %v7376_v48  ;;  %v14598_v23 = vpop.eup %10735 }
0x1184   : > { %v7212_v56 = vadd.f32 -1.4531521, %v7170_v37  ;;  %v7171_v20 = vmul.f32 1.0614054, %v14584_v32  ;;  %v7336_v9 = vmul.f32 %v14537_v29, %v7294_v6  ;;  %v7295_v7 = vadd.f32 1.4214138, %v7253_v0  ;;  %v10738_v36 = vpop.eup %10737 }
0x1185   : > { %v7419_v12 = vmul.f32 %v14523_v8, %v7377_v4  ;;  %v7635_v63 = vmul.f32 1.442695, %v7589_v46  ;;  %v7637_v49 = vmul.f32 1.442695, %v7590_v13  ;;  %v7639_v10 = vmul.f32 1.442695, %v7591_v53 }
0x1186   : > { %v7254_v55 = vmul.f32 %v14575_v2, %v7212_v56  ;;  %v7213_v3 = vadd.f32 -1.4531521, %v7171_v20  ;;  %v7337_v48 = vmul.f32 %v14563_v44, %v7295_v7  ;;  %v7172_v37 = vmul.f32 1.0614054, %v14598_v23 }
0x1187   : > { %v14605_v4 = vmul.f32 0.70710677, %v14591_v19  ;;  %v7459_v6 = vadd.f32 0.2548296, %v7417_v57  ;;  %v7460_v0 = vadd.f32 0.2548296, %v7418_v21  ;;  %10743 = vpow2.f32 %v7633_v35 }
0x1188   : > { %v7296_v46 = vadd.f32 1.4214138, %v7254_v55  ;;  %v7255_v50 = vmul.f32 %v14584_v32, %v7213_v3  ;;  %v7461_v26 = vadd.f32 0.2548296, %v7419_v12  ;;  %v7378_v56 = vadd.f32 -0.28449672, %v7336_v9 }
0x1189   : > { %v7214_v13 = vadd.f32 -1.4531521, %v7172_v37  ;;  %v7379_v53 = vadd.f32 -0.28449672, %v7337_v48  ;;  %10745 = vpow2.f32 %v7635_v63  ;;  %v14612_v57 = vand.u32 2147483647, %v14605_v4  ;;  %v10740_v9 = vpop.eup %10739 }
0x118a   : > { %v7338_v20 = vmul.f32 %v14575_v2, %v7296_v46  ;;  %v7297_v7 = vadd.f32 1.4214138, %v7255_v50  ;;  %10747 = vpow2.f32 %v7637_v49  ;;  %v7501_v21 = vmul.f32 %v14490_v30, %v7459_v6 }
0x118b   : > { %v7256_v15 = vmul.f32 %v14598_v23, %v7214_v13  ;;  %v7502_v3 = vmul.f32 %v14514_v62, %v7460_v0  ;;  %v7503_v63 = vmul.f32 %v14523_v8, %v7461_v26  ;;  %v7420_v50 = vmul.f32 %v14537_v29, %v7378_v56  ;;  %v6704_v56 = vpop.f32.mrf.mxu0 }
0x118c   : > { %v7380_v12 = vadd.f32 -0.28449672, %v7338_v20  ;;  %v7339_v35 = vmul.f32 %v14584_v32, %v7297_v7  ;;  %10749 = vpow2.f32 %v7639_v10  ;;  %v7421_v49 = vmul.f32 %v14563_v44, %v7379_v53 }
0x118d   : > { %v7298_v55 = vadd.f32 1.4214138, %v7256_v15  ;;  %v7641_v48 = vmul.f32 1.442695, %v7592_v61  ;;  %v7711_v8 = vmul.f32 %v10734_v22, %v7501_v21  ;;  %v7712_v10 = vmul.f32 %v10738_v36, %v7502_v3 }
0x118e   : > { %v7381_v58 = vadd.f32 -0.28449672, %v7339_v35  ;;  %v7422_v30 = vmul.f32 %v14575_v2, %v7380_v12  ;;  %v7006_v37 = vmul.f32 0.3275911, %v14612_v57  ;;  %v7713_v6 = vmul.f32 %v10740_v9, %v7503_v63 }
0x118f   : > { %v7340_v62 = vmul.f32 %v14598_v23, %v7298_v55  ;;  %v14627_v26 = vpop.eup %10741  ;;  %v7462_v0 = vadd.f32 0.2548296, %v7420_v50  ;;  %v7463_v13 = vadd.f32 0.2548296, %v7421_v49  ;;  %v14635_v53 = vsel %vm6877_vm11, 1.0, %v16429_v51  ;;  %v6706_v50 = vpop.f32.mrf.mxu0 }
0x1190   : > { %v7423_v15 = vmul.f32 %v14584_v32, %v7381_v58  ;;  %v7173_v18 = vmul.f32 1.0614054, %v14627_v26  ;;  %v7551_v61 = vsub.f32 0.0, %v14561_v47  ;;  %v7048_v22 = vadd.f32 1.0, %v7006_v37 }
0x1191   : > { %v7382_v46 = vadd.f32 -0.28449672, %v7340_v62  ;;  %v7464_v36 = vadd.f32 0.2548296, %v7422_v30  ;;  %10751 = vpow2.f32 %v7641_v48  ;;  %v7753_v21 = vsub.f32 1.0, %v7711_v8 }
0x1192   : > { %v7465_v20 = vadd.f32 0.2548296, %v7423_v15  ;;  %v7215_v7 = vadd.f32 -1.4531521, %v7173_v18  ;;  %v7754_v3 = vsub.f32 1.0, %v7712_v10  ;;  %v14641_v12 = vsel %vm6878_vm12, 1.0, %v16429_v51 }
0x1193   : > { %10753 = vrcp.f32 %v7048_v22  ;;  %v7755_v35 = vsub.f32 1.0, %v7713_v6  ;;  %v7504_v42 = vmul.f32 %v14537_v29, %v7462_v0  ;;  %v7424_v9 = vmul.f32 %v14598_v23, %v7382_v46 }
0x1194   : > { %v7257_v63 = vmul.f32 %v14627_v26, %v7215_v7  ;;  %v10744_v55 = vpop.eup %10743  ;;  %v7505_v49 = vmul.f32 %v14563_v44, %v7463_v13  ;;  %v14648_v58 = vmul.f32 0.5, %v14529_v11  ;;  %v14652_v28 = vadd.f32 %v6704_v56, %v14399_v17 }
0x1195   : > { %v7506_v62 = vmul.f32 %v14575_v2, %v7464_v36  ;;  %v7507_v29 = vmul.f32 %v14584_v32, %v7465_v20  ;;  %v7593_v48 = vmul.f32 %v7551_v61, %v14561_v47  ;;  %vm6880_vm14 = vcmp.ge.f32.partialorder %v14605_v4, 0.0  ;;  %v6710_v32 = vpop.f32.mrf.mxu0 }
0x1196   : > { %v10746_v30 = vpop.eup %10745  ;;  %v7795_v44 = vmul.f32 %v7753_v21, %v14495_v1  ;;  %v7796_v11 = vmul.f32 %v7754_v3, %v14500_v40  ;;  %v7299_v10 = vadd.f32 1.4214138, %v7257_v63  ;;  %v14661_v15 = vmul.f32 0.70710677, %v14652_v28 }
0x1197   : > { %v10748_v8 = vpop.eup %10747  ;;  %v7797_v37 = vmul.f32 %v7755_v35, %v14534_v60  ;;  %v7714_v6 = vmul.f32 %v10744_v55, %v7504_v42  ;;  %v7466_v0 = vadd.f32 0.2548296, %v7424_v9  ;;  %v14665_v2 = vadd.f32 %v6706_v50, %v14402_v24  ;;  %v6712_v35 = vpop.f32.mrf.mxu0 }
0x1198   : > { %v7715_v46 = vmul.f32 %v10746_v30, %v7505_v49  ;;  %v14670_v1 = vsel %vm6879_vm13, 1.0, %v16429_v51  ;;  %v14673_v40 = vmul.f32 0.5, %v14591_v19  ;;  %v14676_v18 = vand.u32 2147483647, %v14661_v15 }
0x1199   : > { %v10750_v47 = vpop.eup %10749  ;;  %v7716_v60 = vmul.f32 %v10748_v8, %v7506_v62  ;;  %v7643_v13 = vmul.f32 1.442695, %v7593_v48  ;;  %v14681_v61 = vsel %vm6880_vm14, 1.0, %v16429_v51  ;;  %v7837_v22 = vadd.f32 1.0, %v7795_v44 }
0x119a   : > { %v7717_v56 = vmul.f32 %v10750_v47, %v7507_v29  ;;  %v7838_v36 = vadd.f32 1.0, %v7796_v11  ;;  %v7341_v27 = vmul.f32 %v14627_v26, %v7299_v10  ;;  %v7007_v20 = vmul.f32 0.3275911, %v14676_v18 }
0x119b   : > { %v7839_v7 = vadd.f32 1.0, %v7797_v37  ;;  %v7756_v19 = vsub.f32 1.0, %v7714_v6  ;;  %v7508_v21 = vmul.f32 %v14598_v23, %v7466_v0  ;;  %v14687_v3 = vmul.f32 0.70710677, %v14665_v2  ;;  %v6714_v37 = vpop.f32.mrf.mxu0 }
0x119c   : > { %v7757_v42 = vsub.f32 1.0, %v7715_v46  ;;  %v7552_v9 = vsub.f32 0.0, %v14612_v57  ;;  %v7049_v4 = vadd.f32 1.0, %v7007_v20  ;;  %v14691_v63 = vadd.f32 %v6710_v32, %v14399_v17 }
0x119d   : > { %v7758_v50 = vsub.f32 1.0, %v7716_v60  ;;  %v7759_v55 = vsub.f32 1.0, %v7717_v56  ;;  %10755 = vpow2.f32 %v7643_v13  ;;  %v14694_v49 = vand.u32 2147483647, %v14687_v3  ;;  %v6716_v20 = vpop.f32.mrf.mxu0 }
0x119e   : > { %v10752_v30 = vpop.eup %10751  ;;  %v14697_v23 = vmul.f32 %v7837_v22, %v14480_v33  ;;  %v14700_v62 = vmul.f32 %v7838_v36, %v14482_v52  ;;  %v7383_v29 = vadd.f32 -0.28449672, %v7341_v27  ;;  %10757 = vrcp.f32 %v7049_v4 }
0x119f   : > { %v14705_v8 = vmul.f32 %v7839_v7, %v14508_v54  ;;  %v7798_v44 = vmul.f32 %v7756_v19, %v14543_v59  ;;  %v7718_v11 = vmul.f32 %v10752_v30, %v7508_v21  ;;  %v7008_v10 = vmul.f32 0.3275911, %v14694_v49 }
0x11a0   : > { %16430 = vst [vmem:[#allocation59_spill] sm:$0xff] %v14697_v23  ;;  %v14702_v48 = vpop.eup %10753  ;;  %v7799_v6 = vmul.f32 %v7757_v42, %v14567_v38  ;;  %v7594_v52 = vmul.f32 %v7552_v9, %v14612_v57  ;;  %v14713_v0 = vmul.f32 0.70710677, %v14691_v63  ;;  %v7800_v32 = vmul.f32 %v7758_v50, %v14579_v25 }
0x11a1   : > { %16431 = vst [vmem:[#allocation31_spill] sm:$0xff] %v14705_v8  ;;  %v7174_v33 = vmul.f32 1.0614054, %v14702_v48  ;;  %v7801_v54 = vmul.f32 %v7759_v55, %v14635_v53  ;;  %v7050_v47 = vadd.f32 1.0, %v7008_v10  ;;  %v14718_v59 = vadd.f32 %v6712_v35, %v14402_v24 }
0x11a2   : > { %v7425_v46 = vmul.f32 %v14627_v26, %v7383_v29  ;;  %v14722_v38 = vand.u32 2147483647, %v14713_v0  ;;  %v14725_v56 = vadd.f32 %v6714_v37, %v14399_v17  ;;  %v7840_v13 = vadd.f32 1.0, %v7798_v44 }
0x11a3   : > { %v7216_v60 = vadd.f32 -1.4531521, %v7174_v33  ;;  %v7760_v25 = vsub.f32 1.0, %v7718_v11  ;;  %10759 = vrcp.f32 %v7050_v47  ;;  %v7841_v53 = vadd.f32 1.0, %v7799_v6 }
0x11a4   : > { %v7645_v36 = vmul.f32 1.442695, %v7594_v52  ;;  %v7009_v27 = vmul.f32 0.3275911, %v14722_v38  ;;  %v7842_v7 = vadd.f32 1.0, %v7800_v32  ;;  %vm6881_vm15 = vcmp.ge.f32.partialorder %v14661_v15, 0.0 }
0x11a5   : > { %v7258_v22 = vmul.f32 %v14702_v48, %v7216_v60  ;;  %v7553_v19 = vsub.f32 0.0, %v14676_v18  ;;  %v14734_v21 = vmul.f32 0.70710677, %v14718_v59  ;;  %v7843_v35 = vadd.f32 1.0, %v7801_v54 }
0x11a6   : > { %v7467_v42 = vadd.f32 0.2548296, %v7425_v46  ;;  %v7051_v9 = vadd.f32 1.0, %v7009_v27  ;;  %v14737_v4 = vmul.f32 0.70710677, %v14725_v56  ;;  %v14740_v50 = vmul.f32 %v7840_v13, %v14519_v41  ;;  %v6720_v46 = vpop.f32.mrf.mxu0 }
0x11a7   : > { %v7802_v55 = vmul.f32 %v7760_v25, %v14641_v12  ;;  %v14744_v30 = vand.u32 2147483647, %v14734_v21  ;;  %v14747_v29 = vadd.f32 %v6716_v20, %v14402_v24  ;;  %v14750_v44 = vmul.f32 %v7841_v53, %v14551_v34 }
0x11a8   : > { %v7300_v11 = vadd.f32 1.4214138, %v7258_v22  ;;  %v14753_v10 = vmul.f32 0.5, %v14652_v28  ;;  %10761 = vrcp.f32 %v7051_v9  ;;  %v14758_v41 = vsel %vm6881_vm15, 1.0, %v16429_v51 }
0x11a9   : > { %16432 = vst [vmem:[#allocation60_spill] sm:$0xff] %v14750_v44  ;;  %10763 = vpow2.f32 %v7645_v36  ;;  %v7595_v12 = vmul.f32 %v7553_v19, %v14676_v18  ;;  %v7010_v37 = vmul.f32 0.3275911, %v14744_v30  ;;  %v14763_v33 = vmul.f32 %v7842_v7, %v14556_v39  ;;  %v6722_v19 = vpop.f32.mrf.mxu0 }
0x11aa   : > { %v10756_v6 = vpop.eup %10755  ;;  %v14766_v34 = vmul.f32 %v7843_v35, %v14588_v31  ;;  %v7509_v28 = vmul.f32 %v14627_v26, %v7467_v42  ;;  %v14770_v52 = vand.u32 2147483647, %v14737_v4  ;;  %v7844_v15 = vadd.f32 1.0, %v7802_v55 }
0x11ab   : > { %v14772_v32 = vpop.eup %10757  ;;  %v7554_v54 = vsub.f32 0.0, %v14694_v49  ;;  %v7052_v18 = vadd.f32 1.0, %v7010_v37  ;;  %v14776_v47 = vmul.f32 0.70710677, %v14747_v29  ;;  %v7342_v39 = vmul.f32 %v14702_v48, %v7300_v11 }
0x11ac   : > { %16433 = vst [vmem:[#allocation45_spill] sm:$0xff] %v14766_v34  ;;  %v7175_v31 = vmul.f32 1.0614054, %v14772_v32  ;;  %vm6882_vm1 = vcmp.ge.f32.partialorder %v14687_v3, 0.0  ;;  %v7011_v26 = vmul.f32 0.3275911, %v14770_v52  ;;  %v7719_v22 = vmul.f32 %v10756_v6, %v7509_v28 }
0x11ad   : > { %v7647_v60 = vmul.f32 1.442695, %v7595_v12  ;;  %v14783_v13 = vmul.f32 0.5, %v14665_v2  ;;  %10765 = vrcp.f32 %v7052_v18  ;;  %v14786_v25 = vand.u32 2147483647, %v14776_v47 }
0x11ae   : > { %v7217_v36 = vadd.f32 -1.4531521, %v7175_v31  ;;  %v7053_v27 = vadd.f32 1.0, %v7011_v26  ;;  %v14791_v20 = vsel %vm6882_vm1, 1.0, %v16429_v51  ;;  %v7596_v3 = vmul.f32 %v7554_v54, %v14694_v49 }
0x11af   : > { %v7555_v7 = vsub.f32 0.0, %v14722_v38  ;;  %v7012_v2 = vmul.f32 0.3275911, %v14786_v25  ;;  %v14799_v42 = vmul.f32 %v7844_v15, %v14622_v14  ;;  %v7384_v9 = vadd.f32 -0.28449672, %v7342_v39 }
0x11b0   : > { %v14796_v35 = vpop.eup %10759  ;;  %v7259_v55 = vmul.f32 %v14772_v32, %v7217_v36  ;;  %10767 = vrcp.f32 %v7053_v27  ;;  %v14804_v49 = vadd.f32 %v6720_v46, %v14399_v17  ;;  %v7761_v37 = vsub.f32 1.0, %v7719_v22 }
0x11b1   : > { %10769 = vpow2.f32 %v7647_v60  ;;  %v7176_v11 = vmul.f32 1.0614054, %v14796_v35  ;;  %v7054_v12 = vadd.f32 1.0, %v7012_v2  ;;  %vm6883_vm2 = vcmp.ge.f32.partialorder %v14713_v0, 0.0 }
0x11b2   : > { %v7301_v6 = vadd.f32 1.4214138, %v7259_v55  ;;  %v14808_v28 = vadd.f32 %v6722_v19, %v14402_v24  ;;  %v7649_v15 = vmul.f32 1.442695, %v7596_v3  ;;  %v7597_v54 = vmul.f32 %v7555_v7, %v14722_v38  ;;  %v6724_v7 = vpop.f32.mrf.mxu0 }
0x11b3   : > { %v7218_v14 = vadd.f32 -1.4531521, %v7176_v11  ;;  %10771 = vrcp.f32 %v7054_v12  ;;  %v7426_v18 = vmul.f32 %v14702_v48, %v7384_v9  ;;  %v14814_v31 = vmul.f32 0.5, %v14691_v63 }
0x11b4   : > { %v7343_v39 = vmul.f32 %v14772_v32, %v7301_v6  ;;  %v14817_v46 = vmul.f32 0.70710677, %v14804_v49  ;;  %v14823_v60 = vsel %vm6883_vm2, 1.0, %v16429_v51  ;;  %v14826_v38 = vmul.f32 0.5, %v14718_v59 }
0x11b5   : > { %v14819_v26 = vpop.eup %10761  ;;  %v7260_v0 = vmul.f32 %v14796_v35, %v7218_v14  ;;  %v14829_v22 = vmul.f32 0.70710677, %v14808_v28  ;;  %v7803_v63 = vmul.f32 %v7761_v37, %v14670_v1  ;;  %vm6884_vm3 = vcmp.ge.f32.partialorder %v14734_v21, 0.0 }
0x11b6   : > { %v10764_v36 = vpop.eup %10763  ;;  %v7385_v27 = vadd.f32 -0.28449672, %v7343_v39  ;;  %v7177_v3 = vmul.f32 1.0614054, %v14819_v26  ;;  %10773 = vpow2.f32 %v7649_v15  ;;  %v7651_v19 = vmul.f32 1.442695, %v7597_v54  ;;  %v14858_v39 = vpop.f32.mrf.mxu0 }
0x11b7   : > { %v7302_v2 = vadd.f32 1.4214138, %v7260_v0  ;;  %v14835_v9 = vand.u32 2147483647, %v14817_v46  ;;  %v7468_v59 = vadd.f32 0.2548296, %v7426_v18 }
0x11b8   : > { %v7219_v55 = vadd.f32 -1.4531521, %v7177_v3  ;;  %v7556_v11 = vsub.f32 0.0, %v14744_v30  ;;  %v14839_v12 = vmul.f32 0.5, %v14725_v56  ;;  %v7427_v1 = vmul.f32 %v14772_v32, %v7385_v27 }
0x11b9   : > { %v7344_v37 = vmul.f32 %v14796_v35, %v7302_v2  ;;  %v7013_v6 = vmul.f32 0.3275911, %v14835_v9  ;;  %v14845_v14 = vand.u32 2147483647, %v14829_v22  ;;  %v14849_v54 = vadd.f32 1.0, %v7803_v63 }
0x11ba   : > { %v14847_v15 = vpop.eup %10765  ;;  %v7261_v18 = vmul.f32 %v14819_v26, %v7219_v55  ;;  %v14855_v56 = vsel %vm6884_vm3, 1.0, %v16429_v51  ;;  %vm6885_vm4 = vcmp.ge.f32.partialorder %v14737_v4, 0.0  ;;  %10775 = vpow2.f32 %v7651_v19 }
0x11bb   : > { %v7178_v0 = vmul.f32 1.0614054, %v14847_v15  ;;  %v7557_v27 = vsub.f32 0.0, %v14770_v52  ;;  %v7055_v3 = vadd.f32 1.0, %v7013_v6  ;;  %v7386_v2 = vadd.f32 -0.28449672, %v7344_v37  ;;  %v14872_v6 = vpop.f32.mrf.mxu0 }
0x11bc   : > { %v7303_v63 = vadd.f32 1.4214138, %v7261_v18  ;;  %v7598_v53 = vmul.f32 %v7556_v11, %v14744_v30  ;;  %v7014_v55 = vmul.f32 0.3275911, %v14845_v14  ;;  %v7510_v21 = vmul.f32 %v14702_v48, %v7468_v59 }
0x11bd   : > { %v14864_v57 = vpop.eup %10767  ;;  %v7469_v43 = vadd.f32 0.2548296, %v7427_v1  ;;  %v7220_v45 = vadd.f32 -1.4531521, %v7178_v0  ;;  %10777 = vrcp.f32 %v7055_v3  ;;  %v14870_v37 = vadd.f32 %v6724_v7, %v14399_v17 }
0x11be   : > { %v10770_v5 = vpop.eup %10769  ;;  %v7345_v19 = vmul.f32 %v14819_v26, %v7303_v63  ;;  %v7179_v16 = vmul.f32 1.0614054, %v14864_v57  ;;  %v7056_v44 = vadd.f32 1.0, %v7014_v55  ;;  %v14878_v48 = vsel %vm6885_vm4, 1.0, %v16429_v51 }
0x11bf   : > { %v7262_v30 = vmul.f32 %v14847_v15, %v7220_v45  ;;  %v7599_v59 = vmul.f32 %v7557_v27, %v14770_v52  ;;  %v7558_v11 = vsub.f32 0.0, %v14786_v25  ;;  %v7428_v18 = vmul.f32 %v14796_v35, %v7386_v2  ;;  %v14892_v27 = vpop.f32.mrf.mxu0 }
0x11c0   : > { %v14882_v1 = vpop.eup %10771  ;;  %v7653_v0 = vmul.f32 1.442695, %v7598_v53  ;;  %v7221_v7 = vadd.f32 -1.4531521, %v7179_v16  ;;  %10779 = vrcp.f32 %v7056_v44  ;;  %v7511_v3 = vmul.f32 %v14772_v32, %v7469_v43 }
0x11c1   : > { %v7387_v63 = vadd.f32 -0.28449672, %v7345_v19  ;;  %v7304_v45 = vadd.f32 1.4214138, %v7262_v30  ;;  %v7180_v55 = vmul.f32 1.0614054, %v14882_v1  ;;  %v7720_v4 = vmul.f32 %v10764_v36, %v7510_v21 }
0x11c2   : > { %v7263_v34 = vmul.f32 %v14864_v57, %v7221_v7  ;;  %vm6886_vm5 = vcmp.ge.f32.partialorder %v14776_v47, 0.0  ;;  %v14890_v52 = vmul.f32 0.70710677, %v14870_v37  ;;  %v7655_v16 = vmul.f32 1.442695, %v7599_v59 }
0x11c3   : > { %v7346_v53 = vmul.f32 %v14847_v15, %v7304_v45  ;;  %v7222_v44 = vadd.f32 -1.4531521, %v7180_v55  ;;  %v7600_v43 = vmul.f32 %v7558_v11, %v14786_v25  ;;  %v10774_v32 = vpop.eup %10773  ;;  %v7470_v2 = vadd.f32 0.2548296, %v7428_v18 }
0x11c4   : > { %10781 = vpow2.f32 %v7653_v0  ;;  %v7305_v19 = vadd.f32 1.4214138, %v7263_v34  ;;  %v14897_v36 = vmul.f32 0.5, %v14747_v29  ;;  %v7721_v21 = vmul.f32 %v10770_v5, %v7511_v3  ;;  %v14910_v34 = vpop.f32.mrf.mxu0 }
0x11c5   : > { %v7429_v30 = vmul.f32 %v14819_v26, %v7387_v63  ;;  %v7388_v7 = vadd.f32 -0.28449672, %v7346_v53  ;;  %v7264_v23 = vmul.f32 %v14882_v1, %v7222_v44  ;;  %v7762_v8 = vsub.f32 1.0, %v7720_v4 }
0x11c6   : > { %v7347_v45 = vmul.f32 %v14864_v57, %v7305_v19  ;;  %v14905_v25 = vsel %vm6886_vm5, 1.0, %v16429_v51  ;;  %v14908_v59 = vand.u32 2147483647, %v14890_v52  ;;  %10783 = vpow2.f32 %v7655_v16 }
0x11c7   : > { %v7306_v5 = vadd.f32 1.4214138, %v7264_v23  ;;  %v7657_v29 = vmul.f32 1.442695, %v7600_v43  ;;  %v14913_v11 = vmul.f32 0.5, %v14804_v49  ;;  %v10776_v18 = vpop.eup %10775  ;;  %v7512_v0 = vmul.f32 %v14796_v35, %v7470_v2  ;;  %v14930_v2 = vpop.f32.mrf.mxu0 }
0x11c8   : > { %v7389_v3 = vadd.f32 -0.28449672, %v7347_v45  ;;  %v7559_v63 = vsub.f32 0.0, %v14835_v9  ;;  %v7015_v47 = vmul.f32 0.3275911, %v14908_v59  ;;  %v7763_v55 = vsub.f32 1.0, %v7721_v21 }
0x11c9   : > { %16434 = vst [vmem:[#allocation61_spill] sm:$0xff] %v14913_v11  ;;  %v7471_v4 = vadd.f32 0.2548296, %v7429_v30  ;;  %v7430_v53 = vmul.f32 %v14847_v15, %v7388_v7  ;;  %v14920_v44 = vmul.f32 0.5, %v14808_v28  ;;  %v7804_v49 = vmul.f32 %v7762_v8, %v14681_v61 }
0x11ca   : > { %v14922_v23 = vpop.eup %10777  ;;  %v7348_v16 = vmul.f32 %v14882_v1, %v7306_v5  ;;  %v7057_v43 = vadd.f32 1.0, %v7015_v47  ;;  %v14928_v35 = vadd.f32 %v14858_v39, %v14402_v24  ;;  %v7431_v19 = vmul.f32 %v14864_v57, %v7389_v3 }
0x11cb   : > { %16435 = vst [vmem:[#allocation32_spill] sm:$0xff] %v14920_v44  ;;  %vm6887_vm6 = vcmp.ge.f32.partialorder %v14817_v46, 0.0  ;;  %v7181_v28 = vmul.f32 1.0614054, %v14922_v23  ;;  %v7560_v21 = vsub.f32 0.0, %v14845_v14  ;;  %v7722_v30 = vmul.f32 %v10774_v32, %v7512_v0 }
0x11cc   : > { %v7601_v61 = vmul.f32 %v7559_v63, %v14835_v9  ;;  %vm6888_vm7 = vcmp.ge.f32.partialorder %v14829_v22, 0.0  ;;  %10785 = vrcp.f32 %v7057_v43  ;;  %v7805_v7 = vmul.f32 %v7763_v55, %v14758_v41 }
0x11cd   : > { %v14940_v39 = vpop.eup %10779  ;;  %v7513_v45 = vmul.f32 %v14819_v26, %v7471_v4  ;;  %v7472_v5 = vadd.f32 0.2548296, %v7430_v53  ;;  %v7223_v3 = vadd.f32 -1.4531521, %v7181_v28  ;;  %v14946_v47 = vmul.f32 %v14849_v54, %v14648_v58 }
0x11ce   : > { %v7390_v32 = vadd.f32 -0.28449672, %v7348_v16  ;;  %v7182_v9 = vmul.f32 1.0614054, %v14940_v39  ;;  %v14950_v0 = vmul.f32 0.70710677, %v14928_v35  ;;  %10787 = vpow2.f32 %v7657_v29 }
0x11cf   : > { %v7846_v43 = vadd.f32 1.0, %v7804_v49  ;;  %v7473_v11 = vadd.f32 0.2548296, %v7431_v19  ;;  %v7602_v41 = vmul.f32 %v7560_v21, %v14845_v14  ;;  %v7764_v26 = vsub.f32 1.0, %v7722_v30 }
0x11d0   : > { %v14958_v55 = vsel %vm6887_vm6, 1.0, %v16429_v51  ;;  %v7265_v58 = vmul.f32 %v14922_v23, %v7223_v3  ;;  %v7224_v54 = vadd.f32 -1.4531521, %v7182_v9  ;;  %v7847_v16 = vadd.f32 1.0, %v7805_v7 }
0x11d1   : > { %v14938_v8 = vpop.f32.mrf.mxu0  ;;  %v10782_v53 = vpop.eup %10781  ;;  %v7723_v28 = vmul.f32 %v10776_v18, %v7513_v45  ;;  %v7659_v44 = vmul.f32 1.442695, %v7601_v61  ;;  %v14966_v29 = vsel %vm6888_vm7, 1.0, %v16429_v51  ;;  %v7514_v14 = vmul.f32 %v14847_v15, %v7472_v5 }
0x11d2   : > { %v7432_v46 = vmul.f32 %v14882_v1, %v7390_v32  ;;  %v7266_v49 = vmul.f32 %v14940_v39, %v7224_v54  ;;  %v14972_v19 = vand.u32 2147483647, %v14950_v0  ;;  %v14977_v30 = vmul.f32 %v7846_v43, %v14673_v40 }
0x11d3   : > { %v14952_v63 = vpop.f32.mrf.mxu0  ;;  %v7515_v18 = vmul.f32 %v14864_v57, %v7473_v11  ;;  %v7661_v61 = vmul.f32 1.442695, %v7602_v41  ;;  %v14982_v22 = vadd.f32 %v14872_v6, %v14399_v17  ;;  %v10784_v15 = vpop.eup %10783  ;;  %v7806_v7 = vmul.f32 %v7764_v26, %v14791_v20 }
0x11d4   : > { %v7307_v45 = vadd.f32 1.4214138, %v7265_v58  ;;  %v7308_v5 = vadd.f32 1.4214138, %v7266_v49  ;;  %v7016_v3 = vmul.f32 0.3275911, %v14972_v19  ;;  %v14989_v9 = vmul.f32 %v7847_v16, %v14753_v10 }
0x11d5   : > { %v14961_v4 = vpop.f32.mrf.mxu0  ;;  %10789 = vpow2.f32 %v7659_v44  ;;  %v14992_v40 = vmul.f32 0.5, %v14870_v37  ;;  %vm6889_vm8 = vcmp.ge.f32.partialorder %v14890_v52, 0.0  ;;  %v7765_v57 = vsub.f32 1.0, %v7723_v28 }
0x11d6   : > { %v7724_v6 = vmul.f32 %v10782_v53, %v7514_v14  ;;  %v7474_v11 = vadd.f32 0.2548296, %v7432_v46  ;;  %v7058_v43 = vadd.f32 1.0, %v7016_v3  ;;  %v7725_v41 = vmul.f32 %v10784_v15, %v7515_v18 }
0x11d7   : > { %v14974_v21 = vpop.f32.mrf.mxu0  ;;  %v7350_v26 = vmul.f32 %v14940_v39, %v7308_v5  ;;  %10791 = vpow2.f32 %v7661_v61  ;;  %v14999_v58 = vmul.f32 0.70710677, %v14982_v22  ;;  %v7848_v10 = vadd.f32 1.0, %v7806_v7 }
0x11d8   : > { %v7349_v44 = vmul.f32 %v14922_v23, %v7307_v45  ;;  %v7561_v37 = vsub.f32 0.0, %v14908_v59  ;;  %10793 = vrcp.f32 %v7058_v43  ;;  %v15012_v28 = vsel %vm6889_vm8, 1.0, %v16429_v51 }
0x11d9   : > { %v14986_v32 = vpop.f32.mrf.mxu0  ;;  %v15005_v53 = vpop.eup %10785  ;;  %v15015_v14 = vand.u32 2147483647, %v14999_v58  ;;  %v15019_v46 = vadd.f32 %v14892_v27, %v14402_v24  ;;  %v7807_v49 = vmul.f32 %v7765_v57, %v14823_v60  ;;  %v7766_v18 = vsub.f32 1.0, %v7724_v6 }
0x11da   : > { %v7516_v61 = vmul.f32 %v14882_v1, %v7474_v11  ;;  %v7183_v15 = vmul.f32 1.0614054, %v15005_v53  ;;  %v7767_v45 = vsub.f32 1.0, %v7725_v41  ;;  %v7392_v52 = vadd.f32 -0.28449672, %v7350_v26 }
0x11db   : > { %v14995_v20 = vpop.f32.mrf.mxu0  ;;  %v15027_v5 = vmul.f32 0.5, %v14928_v35  ;;  %v7017_v3 = vmul.f32 0.3275911, %v15015_v14  ;;  %v10788_v43 = vpop.eup %10787  ;;  %v15031_v27 = vmul.f32 %v7848_v10, %v14783_v13  ;;  %v7391_v16 = vadd.f32 -0.28449672, %v7349_v44 }
0x11dc   : > { %v7225_v60 = vadd.f32 -1.4531521, %v7183_v15  ;;  %v7603_v57 = vmul.f32 %v7561_v37, %v14908_v59  ;;  %v7562_v6 = vsub.f32 0.0, %v14972_v19  ;;  %v15038_v41 = vmul.f32 0.70710677, %v15019_v46 }
0x11dd   : > { %v15003_v54 = vpop.f32.mrf.mxu0  ;;  %v7059_v11 = vadd.f32 1.0, %v7017_v3  ;;  %v15042_v35 = vadd.f32 %v14910_v34, %v14399_v17  ;;  %v7849_v26 = vadd.f32 1.0, %v7807_v49  ;;  %v7808_v13 = vmul.f32 %v7766_v18, %v14855_v56 }
0x11de   : > { %v7726_v10 = vmul.f32 %v10788_v43, %v7516_v61  ;;  %v7267_v44 = vmul.f32 %v15005_v53, %v7225_v60  ;;  %v7809_v59 = vmul.f32 %v7767_v45, %v14878_v48  ;;  %v7434_v37 = vmul.f32 %v14940_v39, %v7392_v52 }
0x11df   : > { %v15024_v7 = vpop.f32.mrf.mxu0  ;;  %10795 = vrcp.f32 %v7059_v11  ;;  %v15051_v3 = vand.u32 2147483647, %v15038_v41  ;;  %vm6890_vm9 = vcmp.ge.f32.partialorder %v14950_v0, 0.0  ;;  %v7604_v49 = vmul.f32 %v7562_v6, %v14972_v19 }
0x11e0   : > { %16436 = vst [vmem:[#allocation62_spill] sm:$0xff] %v15024_v7  ;;  %v7309_v34 = vadd.f32 1.4214138, %v7267_v44  ;;  %v7663_v7 = vmul.f32 1.442695, %v7603_v57  ;;  %v15064_v61 = vadd.f32 %v14930_v2, %v14402_v24  ;;  %v7850_v52 = vadd.f32 1.0, %v7808_v13 }
0x11e1   : > { %v15034_v1 = vpop.f32.mrf.mxu0  ;;  %v7018_v18 = vmul.f32 0.3275911, %v15051_v3  ;;  %v15060_v48 = vmul.f32 0.70710677, %v15042_v35  ;;  %v7768_v43 = vsub.f32 1.0, %v7726_v10  ;;  %v7851_v19 = vadd.f32 1.0, %v7809_v59 }
0x11e2   : > { %16437 = vst [vmem:[#allocation43_spill] sm:$0xff] %v15034_v1  ;;  %v7433_v1 = vmul.f32 %v14922_v23, %v7391_v16  ;;  %v10790_v45 = vpop.eup %10789  ;;  %v15067_v16 = vmul.f32 %v7849_v26, %v14814_v31  ;;  %v7351_v0 = vmul.f32 %v15005_v53, %v7309_v34  ;;  %v7476_v57 = vadd.f32 0.2548296, %v7434_v37 }
0x11e3   : > { %v15046_v15 = vpop.f32.mrf.mxu0  ;;  %v15073_v6 = vsel %vm6890_vm9, 1.0, %v16429_v51  ;;  %v7060_v11 = vadd.f32 1.0, %v7018_v18  ;;  %10797 = vpow2.f32 %v7663_v7  ;;  %v7665_v13 = vmul.f32 1.442695, %v7604_v49 }
0x11e4   : > { %16438 = vst [vmem:[#allocation63_spill] sm:$0xff] %v15046_v15  ;;  %v10792_v44 = vpop.eup %10791  ;;  %v7393_v2 = vadd.f32 -0.28449672, %v7351_v0  ;;  %v15076_v15 = vand.u32 2147483647, %v15060_v48  ;;  %v7563_v10 = vsub.f32 0.0, %v15015_v14  ;;  %v15087_v37 = vmul.f32 %v7850_v52, %v14826_v38 }
0x11e5   : > { %v15055_v56 = vpop.f32.mrf.mxu0  ;;  %v15080_v26 = vpop.eup %10793  ;;  %10799 = vrcp.f32 %v7060_v11  ;;  %v15084_v59 = vmul.f32 0.70710677, %v15064_v61  ;;  %v15095_v0 = vmul.f32 %v7851_v19, %v14839_v12  ;;  %v7518_v49 = vmul.f32 %v14940_v39, %v7476_v57 }
0x11e6   : > { %16439 = vst [vmem:[#allocation49_spill] sm:$0xff] %v15055_v56  ;;  %v7475_v56 = vadd.f32 0.2548296, %v7433_v1  ;;  %v7810_v1 = vmul.f32 %v7768_v43, %v14905_v25  ;;  %v7184_v7 = vmul.f32 1.0614054, %v15080_v26  ;;  %v15099_v11 = vmul.f32 0.5, %v15019_v46 }
0x11e7   : > { %v15070_v60 = vpop.f32.mrf.mxu0  ;;  %v7019_v34 = vmul.f32 0.3275911, %v15076_v15  ;;  %v7435_v25 = vmul.f32 %v15005_v53, %v7393_v2  ;;  %10801 = vpow2.f32 %v7665_v13  ;;  %v7605_v12 = vmul.f32 %v7563_v10, %v15015_v14 }
0x11e8   : > { %16440 = vst [vmem:[#allocation35_spill] sm:$0xff] %v15070_v60  ;;  %v7517_v38 = vmul.f32 %v14922_v23, %v7475_v56  ;;  %v7226_v52 = vadd.f32 -1.4531521, %v7184_v7  ;;  %v7564_v19 = vsub.f32 0.0, %v15051_v3  ;;  %v7852_v46 = vadd.f32 1.0, %v7810_v1 }
0x11e9   : > { %v15078_v31 = vpop.f32.mrf.mxu0  ;;  %v7061_v43 = vadd.f32 1.0, %v7019_v34  ;;  %v7922_v23 = vpack.c.bf16 %v14740_v50, %v14700_v62  ;;  %v7728_v2 = vmul.f32 %v10792_v44, %v7518_v49  ;;  %vm6891_vm10 = vcmp.ge.f32.partialorder %v14999_v58, 0.0  ;;  %v16443_v49 = vld [vmem:[#allocation31_spill] sm:$0xff] }
0x11ea   : > { %16441 = vst [vmem:[#allocation39_spill] sm:$0xff] %v15078_v31  ;;  %v15102_v31 = vand.u32 2147483647, %v15084_v59  ;;  %v7268_v57 = vmul.f32 %v15080_v26, %v7226_v52  ;;  %v7924_v14 = vpack.c.bf16 %v14799_v42, %v14763_v33  ;;  %v7727_v1 = vmul.f32 %v10790_v45, %v7517_v38 }
0x11eb   : > { %v15092_v18 = vpop.f32.mrf.mxu0  ;;  %10803 = vrcp.f32 %v7061_v43  ;;  %v7477_v34 = vadd.f32 0.2548296, %v7435_v25  ;;  %8110 = vmatprep.mubr.bf16.mxu1 %v7922_v23  ;;  %v7667_v50 = vmul.f32 1.442695, %v7605_v12  ;;  %v7606_v44 = vmul.f32 %v7564_v19, %v15051_v3 }
0x11ec   : > { %v7020_v39 = vmul.f32 0.3275911, %v15102_v31  ;;  %v15119_v13 = vpop.eup %10795  ;;  %v7310_v52 = vadd.f32 1.4214138, %v7268_v57  ;;  %v15132_v33 = vadd.f32 %v14938_v8, %v14399_v17  ;;  %v7565_v45 = vsub.f32 0.0, %v15076_v15 }
0x11ed   : > { %v15106_v60 = vpop.f32.mrf.mxu0  ;;  %v7185_v62 = vmul.f32 1.0614054, %v15119_v13  ;;  %v15138_v38 = vadd.f32 %v14952_v63, %v14402_v24  ;;  %v15143_v3 = vmul.f32 %v7852_v46, %v14897_v36  ;;  %v7770_v12 = vsub.f32 1.0, %v7728_v2 }
0x11ee   : > { %v7062_v7 = vadd.f32 1.0, %v7020_v39  ;;  %v16444_v39 = vld [vmem:[#allocation59_spill] sm:$0xff]  ;;  %v7352_v42 = vmul.f32 %v15080_v26, %v7310_v52  ;;  %v15146_v8 = vmul.f32 0.70710677, %v15132_v33  ;;  %v7769_v57 = vsub.f32 1.0, %v7727_v1 }
0x11ef   : > { %v15114_v56 = vpop.f32.mrf.mxu0  ;;  %v7227_v19 = vadd.f32 -1.4531521, %v7185_v62  ;;  %v7519_v23 = vmul.f32 %v15005_v53, %v7477_v34  ;;  %v15159_v46 = vmul.f32 0.70710677, %v15138_v38  ;;  %v7669_v1 = vmul.f32 1.442695, %v7606_v44 }
0x11f0   : > { %16442 = vst [vmem:[#allocation40_spill] sm:$0xff] %v15114_v56  ;;  %v16445_v56 = vpack.c.bf16 %v16443_v49, %v16444_v39  ;;  %10805 = vrcp.f32 %v7062_v7  ;;  %v15152_v7 = vsel %vm6891_vm10, 1.0, %v16429_v51  ;;  %v15156_v36 = vand.u32 2147483647, %v15146_v8 }
0x11f1   : > { %v15123_v43 = vpop.f32.mrf.mxu0  ;;  %v7269_v52 = vmul.f32 %v15119_v13, %v7227_v19  ;;  %10807 = vpow2.f32 %v7667_v50  ;;  %v7607_v58 = vmul.f32 %v7565_v45, %v15076_v15  ;;  %v7926_v34 = vpack.c.bf16 %v15031_v27, %v14977_v30  ;;  %v16446_v30 = vld [vmem:[#allocation45_spill] sm:$0xff]  ;;  %v16447_v27 = vld [vmem:[#allocation60_spill] sm:$0xff] }
0x11f2   : > { %8111 = vmatmul.mubr.bf16.vlgmr.msra.gmra.mxu1 %v16445_v56  ;;  %v7394_v56 = vadd.f32 -0.28449672, %v7352_v42  ;;  %v7812_v49 = vmul.f32 %v7770_v12, %v14966_v29  ;;  %v7021_v42 = vmul.f32 0.3275911, %v15156_v36  ;;  %v7566_v10 = vsub.f32 0.0, %v15102_v31 }
0x11f3   : > { %8118 = vmatprep.mubr.bf16.mxu1 %v7924_v14  ;;  %v15140_v25 = vpop.f32.mrf.mxu0  ;;  %v10798_v14 = vpop.eup %10797  ;;  %v7311_v50 = vadd.f32 1.4214138, %v7269_v52  ;;  %v15173_v44 = vadd.f32 %v14961_v4, %v14399_v17  ;;  %v15180_v12 = vand.u32 2147483647, %v15159_v46  ;;  %10809 = vpow2.f32 %v7669_v1 }
0x11f4   : > { %v15161_v2 = vpop.eup %10799  ;;  %v7436_v53 = vmul.f32 %v15080_v26, %v7394_v56  ;;  %v7729_v19 = vmul.f32 %v10798_v14, %v7519_v23  ;;  %v16448_v56 = vpack.c.bf16 %v16446_v30, %v16447_v27  ;;  %v7063_v29 = vadd.f32 1.0, %v7021_v42 }
0x11f5   : > { %v6784_v63 = vpop.f32.mrf.mxu0  ;;  %v7186_v39 = vmul.f32 1.0614054, %v15161_v2  ;;  %v7353_v15 = vmul.f32 %v15119_v13, %v7311_v50  ;;  %v10802_v52 = vpop.eup %10801  ;;  %v7811_v23 = vmul.f32 %v7769_v57, %v14958_v55  ;;  %v7854_v42 = vadd.f32 1.0, %v7812_v49 }
0x11f6   : > { %v7478_v63 = vadd.f32 0.2548296, %v7436_v53  ;;  %v7671_v53 = vmul.f32 1.442695, %v7607_v58  ;;  %10811 = vrcp.f32 %v7063_v29  ;;  %v7771_v55 = vsub.f32 1.0, %v7729_v19 }
0x11f7   : > { %v6785_v62 = vpop.f32.mrf.mxu0  ;;  %v7228_v45 = vadd.f32 -1.4531521, %v7186_v39  ;;  %v7022_v39 = vmul.f32 0.3275911, %v15180_v12  ;;  %vm6892_vm11 = vcmp.ge.f32.partialorder %v15038_v41, 0.0  ;;  %vm6893_vm12 = vcmp.ge.f32.partialorder %v15060_v48, 0.0 }
0x11f8   : > { %v7520_v14 = vmul.f32 %v15080_v26, %v7478_v63  ;;  %v15184_v4 = vpop.eup %10803  ;;  %v7395_v62 = vadd.f32 -0.28449672, %v7353_v15  ;;  %v15192_v1 = vmul.f32 0.70710677, %v15173_v44  ;;  %10813 = vpow2.f32 %v7671_v53 }
0x11f9   : > { %v7270_v50 = vmul.f32 %v15161_v2, %v7228_v45  ;;  %v7187_v27 = vmul.f32 1.0614054, %v15184_v4  ;;  %v7064_v57 = vadd.f32 1.0, %v7022_v39  ;;  %v7928_v63 = vpack.c.bf16 %v15143_v3, %v15087_v37 }
0x11fa   : > { %8119 = vmatmul.mubr.bf16.gmra.mxu1 %v16448_v56  ;;  %v7730_v30 = vmul.f32 %v10802_v52, %v7520_v14  ;;  %v7608_v56 = vmul.f32 %v7566_v10, %v15102_v31  ;;  %v7853_v15 = vadd.f32 1.0, %v7811_v23  ;;  %v7437_v45 = vmul.f32 %v15119_v13, %v7395_v62  ;;  %v16449_v14 = vld [vmem:[#allocation32_spill] sm:$0xff] }
0x11fb   : > { %8126 = vmatprep.mubr.bf16.mxu1 %v7926_v34  ;;  %v7312_v26 = vadd.f32 1.4214138, %v7270_v50  ;;  %v7229_v34 = vadd.f32 -1.4531521, %v7187_v27  ;;  %10815 = vrcp.f32 %v7064_v57  ;;  %v7896_v53 = vmul.f32 %v7854_v42, %v16449_v14 }
0x11fc   : > { %v7772_v58 = vsub.f32 1.0, %v7730_v30  ;;  %v7673_v52 = vmul.f32 1.442695, %v7608_v56  ;;  %v7813_v50 = vmul.f32 %v7771_v55, %v15012_v28  ;;  %v16450_v3 = vpack.c.bf16 %v14989_v9, %v14946_v47 }
0x11fd   : > { %v15196_v49 = vpop.eup %10805  ;;  %v7354_v31 = vmul.f32 %v15161_v2, %v7312_v26  ;;  %v7271_v19 = vmul.f32 %v15184_v4, %v7229_v34  ;;  %v15209_v23 = vand.u32 2147483647, %v15192_v1  ;;  %v15213_v27 = vadd.f32 %v14974_v21, %v14402_v24 }
0x11fe   : > { %v7814_v10 = vmul.f32 %v7772_v58, %v15073_v6  ;;  %v7188_v29 = vmul.f32 1.0614054, %v15196_v49  ;;  %v10808_v62 = vpop.eup %10807  ;;  %v7479_v42 = vadd.f32 0.2548296, %v7437_v45  ;;  %v7567_v56 = vsub.f32 0.0, %v15156_v36 }
0x11ff   : > { %v7396_v37 = vadd.f32 -0.28449672, %v7354_v31  ;;  %v7313_v6 = vadd.f32 1.4214138, %v7271_v19  ;;  %v7023_v47 = vmul.f32 0.3275911, %v15209_v23  ;;  %10817 = vpow2.f32 %v7673_v52 }
0x1200   : > { %v7856_v39 = vadd.f32 1.0, %v7814_v10  ;;  %v7230_v30 = vadd.f32 -1.4531521, %v7188_v29  ;;  %v7855_v57 = vadd.f32 1.0, %v7813_v50  ;;  %v15223_v31 = vmul.f32 0.70710677, %v15213_v27  ;;  %v10810_v10 = vpop.eup %10809 }
0x1201   : > { %v7438_v28 = vmul.f32 %v15161_v2, %v7396_v37  ;;  %v7355_v55 = vmul.f32 %v15184_v4, %v7313_v6  ;;  %v7065_v21 = vadd.f32 1.0, %v7023_v47  ;;  %v7521_v19 = vmul.f32 %v15119_v13, %v7479_v42 }
0x1202   : > { %8127 = vmatmul.mubr.bf16.gmra.mxu1 %v16450_v3  ;;  %v7898_v9 = vmul.f32 %v7856_v39, %v15027_v5  ;;  %v7272_v26 = vmul.f32 %v15196_v49, %v7230_v30  ;;  %v7609_v29 = vmul.f32 %v7567_v56, %v15156_v36  ;;  %v6934_v14 = vsel %vm6892_vm11, 1.0, %v16429_v51  ;;  %v16451_v3 = vld [vmem:[#allocation61_spill] sm:$0xff] }
0x1203   : > { %8134 = vmatprep.mubr.bf16.mxu1 %v7928_v63  ;;  %v7480_v58 = vadd.f32 0.2548296, %v7438_v28  ;;  %v7397_v34 = vadd.f32 -0.28449672, %v7355_v55  ;;  %10819 = vrcp.f32 %v7065_v21  ;;  %v15228_v52 = vpop.eup %10811  ;;  %v15236_v37 = vand.u32 2147483647, %v15223_v31 }
0x1204   : > { %v7314_v63 = vadd.f32 1.4214138, %v7272_v26  ;;  %v7930_v45 = vpack.c.bf16 %v7898_v9, %v7896_v53  ;;  %v7895_v13 = vmul.f32 %v7853_v15, %v16451_v3  ;;  %v6935_v36 = vsel %vm6893_vm12, 1.0, %v16429_v51 }
0x1205   : > { %v7522_v5 = vmul.f32 %v15161_v2, %v7480_v58  ;;  %v7439_v50 = vmul.f32 %v15184_v4, %v7397_v34  ;;  %v16452_v2 = vpack.c.bf16 %v15095_v0, %v15067_v16  ;;  %v7189_v41 = vmul.f32 1.0614054, %v15228_v52  ;;  %v10814_v28 = vpop.eup %10813 }
0x1206   : > { %v7356_v53 = vmul.f32 %v15196_v49, %v7314_v63  ;;  %v7897_v6 = vmul.f32 %v7855_v57, %v14992_v40  ;;  %vm6894_vm13 = vcmp.ge.f32.partialorder %v15084_v59, 0.0  ;;  %v7731_v15 = vmul.f32 %v10808_v62, %v7521_v19 }
0x1207   : > { %v7732_v39 = vmul.f32 %v10810_v10, %v7522_v5  ;;  %v7481_v30 = vadd.f32 0.2548296, %v7439_v50  ;;  %v7231_v56 = vadd.f32 -1.4531521, %v7189_v41  ;;  %v7675_v47 = vmul.f32 1.442695, %v7609_v29 }
0x1208   : > { %v7398_v42 = vadd.f32 -0.28449672, %v7356_v53  ;;  %v7024_v48 = vmul.f32 0.3275911, %v15236_v37  ;;  %v15249_v9 = vpop.eup %10815  ;;  %v7569_v55 = vsub.f32 0.0, %v15209_v23  ;;  %v15256_v40 = vadd.f32 %v14986_v32, %v14399_v17 }
0x1209   : > { %v7523_v16 = vmul.f32 %v15184_v4, %v7481_v30  ;;  %v7774_v26 = vsub.f32 1.0, %v7732_v39  ;;  %v7273_v57 = vmul.f32 %v15228_v52, %v7231_v56  ;;  %v7190_v62 = vmul.f32 1.0614054, %v15249_v9 }
0x120a   : > { %8135 = vmatmul.mubr.bf16.gmra.mxu1 %v16452_v2  ;;  %v7440_v0 = vmul.f32 %v15196_v49, %v7398_v42  ;;  %v7066_v58 = vadd.f32 1.0, %v7024_v48  ;;  %v7929_v21 = vpack.c.bf16 %v7897_v6, %v7895_v13  ;;  %v7773_v4 = vsub.f32 1.0, %v7731_v15 }
0x120b   : > { %8142 = vmatprep.mubr.bf16.mxu1 %v7930_v45  ;;  %v7733_v34 = vmul.f32 %v10814_v28, %v7523_v16  ;;  %v7568_v45 = vsub.f32 0.0, %v15180_v12  ;;  %v7315_v10 = vadd.f32 1.4214138, %v7273_v57  ;;  %10821 = vpow2.f32 %v7675_v47 }
0x120c   : > { %v7482_v63 = vadd.f32 0.2548296, %v7440_v0  ;;  %v7232_v19 = vadd.f32 -1.4531521, %v7190_v62  ;;  %v7611_v32 = vmul.f32 %v7569_v55, %v15209_v23  ;;  %v15264_v50 = vmul.f32 0.70710677, %v15256_v40  ;;  %v10818_v53 = vpop.eup %10817 }
0x120d   : > { %v7775_v5 = vsub.f32 1.0, %v7733_v34  ;;  %v7816_v3 = vmul.f32 %v7774_v26, %v6934_v14  ;;  %v7357_v13 = vmul.f32 %v15228_v52, %v7315_v10  ;;  %10823 = vrcp.f32 %v7066_v58 }
0x120e   : > { %v7524_v29 = vmul.f32 %v15196_v49, %v7482_v63  ;;  %v7274_v39 = vmul.f32 %v15249_v9, %v7232_v19  ;;  %v15269_v6 = vand.u32 2147483647, %v15264_v50  ;;  %v15273_v49 = vadd.f32 %v14995_v20, %v14402_v24 }
0x120f   : > { %v7817_v2 = vmul.f32 %v7775_v5, %v6935_v36  ;;  %v7815_v23 = vmul.f32 %v7773_v4, %v15152_v7  ;;  %v6809_v30 = vmul.f32 0.5, %v15042_v35  ;;  %v6936_v14 = vsel %vm6894_vm13, 1.0, %v16429_v51 }
0x1210   : > { %v7734_v41 = vmul.f32 %v10818_v53, %v7524_v29  ;;  %v7399_v42 = vadd.f32 -0.28449672, %v7357_v13  ;;  %v15280_v28 = vpop.eup %10819  ;;  %v7316_v15 = vadd.f32 1.4214138, %v7274_v39  ;;  %v7610_v56 = vmul.f32 %v7568_v45, %v15180_v12 }
0x1211   : > { %v7025_v47 = vmul.f32 0.3275911, %v15269_v6  ;;  %v7859_v48 = vadd.f32 1.0, %v7817_v2  ;;  %v7191_v7 = vmul.f32 1.0614054, %v15280_v28  ;;  %v7858_v35 = vadd.f32 1.0, %v7816_v3 }
0x1212   : > { %8143 = vmatmul.mubr.bf16.gmra.mxu1 %v7929_v21  ;;  %v7776_v36 = vsub.f32 1.0, %v7734_v41  ;;  %v7441_v20 = vmul.f32 %v15228_v52, %v7399_v42  ;;  %v7679_v16 = vmul.f32 1.442695, %v7611_v32  ;;  %v15287_v59 = vmul.f32 0.70710677, %v15273_v49 }
0x1213   : > { %v7067_v55 = vadd.f32 1.0, %v7025_v47  ;;  %v7857_v26 = vadd.f32 1.0, %v7815_v23  ;;  %v6810_v57 = vmul.f32 0.5, %v15064_v61  ;;  %v7233_v58 = vadd.f32 -1.4531521, %v7191_v7 }
0x1214   : > { %v7818_v0 = vmul.f32 %v7776_v36, %v6936_v14  ;;  %v7483_v62 = vadd.f32 0.2548296, %v7441_v20  ;;  %v7358_v21 = vmul.f32 %v15249_v9, %v7316_v15  ;;  %v15293_v34 = vadd.f32 %v15003_v54, %v14399_v17 }
0x1215   : > { %10825 = vrcp.f32 %v7067_v55  ;;  %v6807_v63 = vmul.f32 0.5, %v14982_v22  ;;  %v7901_v45 = vmul.f32 %v7859_v48, %v6809_v30  ;;  %v7275_v4 = vmul.f32 %v15280_v28, %v7233_v58 }
0x1216   : > { %v7860_v12 = vadd.f32 1.0, %v7818_v0  ;;  %10827 = vpow2.f32 %v7679_v16  ;;  %v7900_v10 = vmul.f32 %v7858_v35, %v15099_v11  ;;  %v7677_v61 = vmul.f32 1.442695, %v7610_v56  ;;  %v16453_v16 = vld [vmem:[#allocation62_spill] sm:$0xff] }
0x1217   : > { %v15299_v5 = vand.u32 2147483647, %v15287_v59  ;;  %v7899_v29 = vmul.f32 %v7857_v26, %v6807_v63  ;;  %v7525_v32 = vmul.f32 %v15228_v52, %v7483_v62  ;;  %v7317_v53 = vadd.f32 1.4214138, %v7275_v4 }
0x1218   : > { %v7902_v19 = vmul.f32 %v7860_v12, %v6810_v57  ;;  %v10822_v3 = vpop.eup %10821  ;;  %v7400_v13 = vadd.f32 -0.28449672, %v7358_v21  ;;  %v15304_v39 = vmul.f32 0.70710677, %v15293_v34  ;;  %10829 = vpow2.f32 %v7677_v61  ;;  %v16454_v21 = vld [vmem:[#allocation43_spill] sm:$0xff] }
0x1219   : > { %v7026_v22 = vmul.f32 0.3275911, %v15299_v5  ;;  %v7931_v2 = vpack.c.bf16 %v7901_v45, %v7899_v29  ;;  %v7359_v11 = vmul.f32 %v15280_v28, %v7317_v53  ;;  %vm6895_vm14 = vcmp.ge.f32.partialorder %v15146_v8, 0.0 }
0x121a   : > { %v7932_v54 = vpack.c.bf16 %v7902_v19, %v7900_v10  ;;  %v15307_v41 = vpop.eup %10823  ;;  %v15310_v30 = vand.u32 2147483647, %v15304_v39  ;;  %v7735_v52 = vmul.f32 %v10822_v3, %v7525_v32  ;;  %v7442_v42 = vmul.f32 %v15249_v9, %v7400_v13 }
0x121b   : > { %v7068_v23 = vadd.f32 1.0, %v7026_v22  ;;  %v7401_v14 = vadd.f32 -0.28449672, %v7359_v11  ;;  %v7571_v36 = vsub.f32 0.0, %v15269_v6  ;;  %v6811_v56 = vmul.f32 0.5, %v15132_v33 }
0x121c   : > { %8150 = vmatprep.mubr.bf16.mxu1 %v7932_v54  ;;  %v7027_v15 = vmul.f32 0.3275911, %v15310_v30  ;;  %v15318_v47 = vmul.f32 0.5, %v15138_v38  ;;  %v7192_v20 = vmul.f32 1.0614054, %v15307_v41  ;;  %vm6896_vm15 = vcmp.ge.f32.partialorder %v15159_v46, 0.0 }
0x121d   : > { %8151 = vmatmul.mubr.bf16.gmra.mxu1 %v7931_v2  ;;  %10831 = vrcp.f32 %v7068_v23  ;;  %v7443_v48 = vmul.f32 %v15280_v28, %v7401_v14  ;;  %v7570_v8 = vsub.f32 0.0, %v15236_v37  ;;  %v15326_v35 = vadd.f32 %v16453_v16, %v14402_v24  ;;  %v16455_v14 = vld [vmem:[#allocation63_spill] sm:$0xff] }
0x121e   : > { %v7069_v7 = vadd.f32 1.0, %v7027_v15  ;;  %v6937_v0 = vsel %vm6895_vm14, 1.0, %v16429_v51  ;;  %v7777_v55 = vsub.f32 1.0, %v7735_v52  ;;  %vm6897_vm1 = vcmp.ge.f32.partialorder %v15192_v1, 0.0 }
0x121f   : > { %v7485_v33 = vadd.f32 0.2548296, %v7443_v48  ;;  %v7484_v38 = vadd.f32 0.2548296, %v7442_v42  ;;  %v7613_v26 = vmul.f32 %v7571_v36, %v15269_v6  ;;  %v15332_v57 = vmul.f32 0.70710677, %v15326_v35 }
0x1220   : > { %10833 = vrcp.f32 %v7069_v7  ;;  %v15337_v62 = vsel %vm6896_vm15, 1.0, %v16429_v51  ;;  %v7234_v12 = vadd.f32 -1.4531521, %v7192_v20  ;;  %v15342_v63 = vadd.f32 %v16454_v21, %v14399_v17 }
0x1221   : > { %v7527_v58 = vmul.f32 %v15280_v28, %v7485_v33  ;;  %v6813_v45 = vmul.f32 0.5, %v15173_v44  ;;  %v6939_v6 = vsel %vm6897_vm1, 1.0, %v16429_v51  ;;  %v7612_v4 = vmul.f32 %v7570_v8, %v15236_v37 }
0x1222   : > { %v15334_v46 = vpop.eup %10825  ;;  %v7819_v19 = vmul.f32 %v7777_v55, %v6937_v0  ;;  %v15349_v29 = vmul.f32 0.5, %v15213_v27  ;;  %vm6898_vm2 = vcmp.ge.f32.partialorder %v15223_v31, 0.0  ;;  %v7526_v28 = vmul.f32 %v15249_v9, %v7484_v38 }
0x1223   : > { %v10828_v1 = vpop.eup %10827  ;;  %v7193_v10 = vmul.f32 1.0614054, %v15334_v46  ;;  %v7683_v53 = vmul.f32 1.442695, %v7613_v26  ;;  %v15354_v3 = vand.u32 2147483647, %v15332_v57  ;;  %v7276_v54 = vmul.f32 %v15307_v41, %v7234_v12 }
0x1224   : > { %v7737_v61 = vmul.f32 %v10828_v1, %v7527_v58  ;;  %v7573_v37 = vsub.f32 0.0, %v15310_v30  ;;  %v15359_v13 = vmul.f32 0.70710677, %v15342_v63  ;;  %v15362_v27 = vsel %vm6898_vm2, 1.0, %v16429_v51 }
0x1225   : > { %v7235_v32 = vadd.f32 -1.4531521, %v7193_v10  ;;  %v7681_v22 = vmul.f32 1.442695, %v7612_v4  ;;  %v7028_v9 = vmul.f32 0.3275911, %v15354_v3  ;;  %v10830_v2 = vpop.eup %10829  ;;  %v15371_v42 = vadd.f32 %v16455_v14, %v14402_v24 }
0x1226   : > { %v7779_v44 = vsub.f32 1.0, %v7737_v61  ;;  %v7861_v11 = vadd.f32 1.0, %v7819_v19  ;;  %v15367_v52 = vand.u32 2147483647, %v15359_v13  ;;  %v7736_v36 = vmul.f32 %v10830_v2, %v7526_v28  ;;  %v16457_v14 = vld [vmem:[#allocation35_spill] sm:$0xff] }
0x1227   : > { %v7277_v31 = vmul.f32 %v15334_v46, %v7235_v32  ;;  %10835 = vpow2.f32 %v7683_v53  ;;  %v7070_v48 = vadd.f32 1.0, %v7028_v9  ;;  %v7318_v7 = vadd.f32 1.4214138, %v7276_v54  ;;  %v16456_v53 = vld [vmem:[#allocation49_spill] sm:$0xff] }
0x1228   : > { %v7821_v23 = vmul.f32 %v7779_v44, %v6939_v6  ;;  %v7615_v16 = vmul.f32 %v7573_v37, %v15310_v30  ;;  %v7029_v0 = vmul.f32 0.3275911, %v15367_v52  ;;  %v7572_v38 = vsub.f32 0.0, %v15299_v5 }
0x1229   : > { %v7319_v15 = vadd.f32 1.4214138, %v7277_v31  ;;  %10837 = vrcp.f32 %v7070_v48  ;;  %v15380_v26 = vmul.f32 %v7861_v11, %v6811_v56  ;;  %v15385_v21 = vmul.f32 0.70710677, %v15371_v42 }
0x122a   : > { %v15373_v20 = vpop.eup %10831  ;;  %v7863_v8 = vadd.f32 1.0, %v7821_v23  ;;  %v7071_v12 = vadd.f32 1.0, %v7029_v0  ;;  %v7778_v1 = vsub.f32 1.0, %v7736_v36  ;;  %v15388_v30 = vmul.f32 0.5, %v15256_v40 }
0x122b   : > { %v7361_v55 = vmul.f32 %v15334_v46, %v7319_v15  ;;  %v7194_v33 = vmul.f32 1.0614054, %v15373_v20  ;;  %vm6899_vm3 = vcmp.ge.f32.partialorder %v15264_v50, 0.0  ;;  %v7360_v56 = vmul.f32 %v15307_v41, %v7318_v7 }
0x122c   : > { %v15382_v58 = vmul.f32 %v7863_v8, %v6813_v45  ;;  %v7687_v45 = vmul.f32 1.442695, %v7615_v16  ;;  %10839 = vrcp.f32 %v7071_v12  ;;  %v15399_v40 = vsel %vm6899_vm3, 1.0, %v16429_v51 }
0x122d   : > { %v7403_v6 = vadd.f32 -0.28449672, %v7361_v55  ;;  %v15391_v4 = vpop.eup %10833  ;;  %10841 = vpow2.f32 %v7681_v22  ;;  %v7236_v61 = vadd.f32 -1.4531521, %v7194_v33  ;;  %v7614_v50 = vmul.f32 %v7572_v38, %v15299_v5 }
0x122e   : > { %v7933_v10 = vpack.c.bf16 %v15382_v58, %v15380_v26  ;;  %v7195_v28 = vmul.f32 1.0614054, %v15391_v4  ;;  %v15403_v32 = vand.u32 2147483647, %v15385_v21  ;;  %v15407_v44 = vadd.f32 %v16456_v53, %v14399_v17 }
0x122f   : > { %v7445_v19 = vmul.f32 %v15334_v46, %v7403_v6  ;;  %v15410_v37 = vmul.f32 0.5, %v15273_v49  ;;  %vm6900_vm4 = vcmp.ge.f32.partialorder %v15287_v59, 0.0  ;;  %v7820_v31 = vmul.f32 %v7778_v1, %v15337_v62 }
0x1230   : > { %v7237_v22 = vadd.f32 -1.4531521, %v7195_v28  ;;  %v7402_v9 = vadd.f32 -0.28449672, %v7360_v56  ;;  %10843 = vpow2.f32 %v7687_v45  ;;  %v7030_v5 = vmul.f32 0.3275911, %v15403_v32 }
0x1231   : > { %v7487_v54 = vadd.f32 0.2548296, %v7445_v19  ;;  %v7278_v2 = vmul.f32 %v15373_v20, %v7236_v61  ;;  %v15418_v23 = vmul.f32 0.70710677, %v15407_v44  ;;  %v15422_v49 = vadd.f32 %v16457_v14, %v14402_v24 }
0x1232   : > { %v7279_v11 = vmul.f32 %v15391_v4, %v7237_v22  ;;  %v15425_v59 = vsel %vm6900_vm4, 1.0, %v16429_v51  ;;  %v7685_v36 = vmul.f32 1.442695, %v7614_v50  ;;  %vm6901_vm5 = vcmp.ge.f32.partialorder %v15304_v39, 0.0 }
0x1233   : > { %v7072_v62 = vadd.f32 1.0, %v7030_v5  ;;  %v7529_v15 = vmul.f32 %v15334_v46, %v7487_v54  ;;  %v15430_v48 = vmul.f32 0.5, %v15293_v34  ;;  %v7574_v7 = vsub.f32 0.0, %v15354_v3 }
0x1234   : > { %v7321_v8 = vadd.f32 1.4214138, %v7279_v11  ;;  %v10836_v16 = vpop.eup %10835  ;;  %v7862_v0 = vadd.f32 1.0, %v7820_v31  ;;  %v7444_v55 = vmul.f32 %v15307_v41, %v7402_v9  ;;  %v15435_v33 = vand.u32 2147483647, %v15418_v23 }
0x1235   : > { %10845 = vrcp.f32 %v7072_v62  ;;  %v7320_v38 = vadd.f32 1.4214138, %v7278_v2  ;;  %v6943_v39 = vsel %vm6901_vm5, 1.0, %v16429_v51  ;;  %v15440_v46 = vmul.f32 0.70710677, %v15422_v49  ;;  %v16458_v2 = vld [vmem:[#allocation39_spill] sm:$0xff] }
0x1236   : > { %v7363_v12 = vmul.f32 %v15391_v4, %v7321_v8  ;;  %v15442_v34 = vpop.eup %10837  ;;  %10847 = vpow2.f32 %v7685_v36  ;;  %v15445_v1 = vmul.f32 0.5, %v15326_v35  ;;  %vm6902_vm6 = vcmp.ge.f32.partialorder %v15332_v57, 0.0 }
0x1237   : > { %v7031_v6 = vmul.f32 0.3275911, %v15435_v33  ;;  %v7739_v56 = vmul.f32 %v10836_v16, %v7529_v15  ;;  %v7196_v19 = vmul.f32 1.0614054, %v15442_v34  ;;  %v7616_v61 = vmul.f32 %v7574_v7, %v15354_v3 }
0x1238   : > { %v7405_v45 = vadd.f32 -0.28449672, %v7363_v12  ;;  %v15452_v28 = vmul.f32 %v7862_v0, %v15318_v47  ;;  %v7486_v50 = vadd.f32 0.2548296, %v7444_v55  ;;  %v15455_v54 = vand.u32 2147483647, %v15440_v46 }
0x1239   : > { %v7073_v53 = vadd.f32 1.0, %v7031_v6  ;;  %v15457_v35 = vpop.eup %10839  ;;  %v7362_v57 = vmul.f32 %v15373_v20, %v7320_v38  ;;  %v15462_v31 = vsel %vm6902_vm6, 1.0, %v16429_v51  ;;  %v7238_v9 = vadd.f32 -1.4531521, %v7196_v19 }
0x123a   : > { %v7447_v22 = vmul.f32 %v15391_v4, %v7405_v45  ;;  %v10842_v5 = vpop.eup %10841  ;;  %v7197_v3 = vmul.f32 1.0614054, %v15457_v35  ;;  %v7575_v47 = vsub.f32 0.0, %v15367_v52  ;;  %v15468_v11 = vadd.f32 %v16458_v2, %v14399_v17 }
0x123b   : > { %10849 = vrcp.f32 %v7073_v53  ;;  %v7781_v14 = vsub.f32 1.0, %v7739_v56  ;;  %v7280_v62 = vmul.f32 %v15442_v34, %v7238_v9  ;;  %v7689_v15 = vmul.f32 1.442695, %v7616_v61 }
0x123c   : > { %v7489_v36 = vadd.f32 0.2548296, %v7447_v22  ;;  %v7528_v8 = vmul.f32 %v15307_v41, %v7486_v50  ;;  %vm6903_vm7 = vcmp.ge.f32.partialorder %v15359_v13, 0.0  ;;  %v7239_v7 = vadd.f32 -1.4531521, %v7197_v3 }
0x123d   : > { %v7032_v16 = vmul.f32 0.3275911, %v15455_v54  ;;  %v10844_v0 = vpop.eup %10843  ;;  %v7404_v55 = vadd.f32 -0.28449672, %v7362_v57  ;;  %v7322_v12 = vadd.f32 1.4214138, %v7280_v62  ;;  %v7617_v45 = vmul.f32 %v7575_v47, %v15367_v52 }
0x123e   : > { %v7531_v38 = vmul.f32 %v15391_v4, %v7489_v36  ;;  %v7576_v6 = vsub.f32 0.0, %v15403_v32  ;;  %v7281_v56 = vmul.f32 %v15457_v35, %v7239_v7  ;;  %v15479_v61 = vmul.f32 0.70710677, %v15468_v11 }
0x123f   : > { %v7074_v19 = vadd.f32 1.0, %v7032_v16  ;;  %v7823_v41 = vmul.f32 %v7781_v14, %v15399_v40  ;;  %v7364_v53 = vmul.f32 %v15442_v34, %v7322_v12  ;;  %10851 = vpow2.f32 %v7689_v15 }
0x1240   : > { %v7741_v50 = vmul.f32 %v10844_v0, %v7531_v38  ;;  %v7738_v57 = vmul.f32 %v10842_v5, %v7528_v8  ;;  %v15486_v4 = vsel %vm6903_vm7, 1.0, %v16429_v51  ;;  %v15489_v22 = vmul.f32 0.5, %v15371_v42 }
0x1241   : > { %10853 = vrcp.f32 %v7074_v19  ;;  %v7446_v9 = vmul.f32 %v15373_v20, %v7404_v55  ;;  %v7406_v40 = vadd.f32 -0.28449672, %v7364_v53  ;;  %v7618_v47 = vmul.f32 %v7576_v6, %v15403_v32 }
0x1242   : > { %v15491_v52 = vpop.eup %10845  ;;  %v7783_v3 = vsub.f32 1.0, %v7741_v50  ;;  %v7323_v2 = vadd.f32 1.4214138, %v7281_v56  ;;  %v15497_v14 = vand.u32 2147483647, %v15479_v61  ;;  %v15501_v13 = vadd.f32 %v15092_v18, %v14402_v24 }
0x1243   : > { %v7198_v5 = vmul.f32 1.0614054, %v15491_v52  ;;  %v10848_v42 = vpop.eup %10847  ;;  %v7865_v36 = vadd.f32 1.0, %v7823_v41  ;;  %v7448_v15 = vmul.f32 %v15442_v34, %v7406_v40  ;;  %v7691_v8 = vmul.f32 1.442695, %v7617_v45 }
0x1244   : > { %v7825_v62 = vmul.f32 %v7783_v3, %v6943_v39  ;;  %v7780_v7 = vsub.f32 1.0, %v7738_v57  ;;  %v7577_v32 = vsub.f32 0.0, %v15435_v33  ;;  %v7033_v0 = vmul.f32 0.3275911, %v15497_v14 }
0x1245   : > { %v7240_v16 = vadd.f32 -1.4531521, %v7198_v5  ;;  %v7488_v55 = vadd.f32 0.2548296, %v7446_v9  ;;  %v7693_v12 = vmul.f32 1.442695, %v7618_v47  ;;  %v7365_v18 = vmul.f32 %v15457_v35, %v7323_v2 }
0x1246   : > { %v7867_v38 = vadd.f32 1.0, %v7825_v62  ;;  %v7578_v6 = vsub.f32 0.0, %v15455_v54  ;;  %v7075_v19 = vadd.f32 1.0, %v7033_v0  ;;  %v15510_v39 = vmul.f32 0.70710677, %v15501_v13 }
0x1247   : > { %v7282_v56 = vmul.f32 %v15491_v52, %v7240_v16  ;;  %v15515_v41 = vmul.f32 %v7865_v36, %v15388_v30  ;;  %v7490_v53 = vadd.f32 0.2548296, %v7448_v15  ;;  %v15522_v57 = vadd.f32 %v15106_v60, %v14399_v17 }
0x1248   : > { %v15512_v45 = vpop.eup %10849  ;;  %v15518_v50 = vmul.f32 %v7867_v38, %v15430_v48  ;;  %v7619_v40 = vmul.f32 %v7577_v32, %v15435_v33  ;;  %10855 = vrcp.f32 %v7075_v19  ;;  %v7530_v47 = vmul.f32 %v15373_v20, %v7488_v55 }
0x1249   : > { %v7324_v9 = vadd.f32 1.4214138, %v7282_v56  ;;  %v7199_v3 = vmul.f32 1.0614054, %v15512_v45  ;;  %10857 = vpow2.f32 %v7693_v12  ;;  %v7620_v48 = vmul.f32 %v7578_v6, %v15455_v54 }
0x124a   : > { %v7935_v30 = vpack.c.bf16 %v15518_v50, %v15515_v41  ;;  %v7407_v2 = vadd.f32 -0.28449672, %v7365_v18  ;;  %v15532_v60 = vand.u32 2147483647, %v15510_v39  ;;  %v7822_v62 = vmul.f32 %v7780_v7, %v15362_v27 }
0x124b   : > { %v7366_v5 = vmul.f32 %v15491_v52, %v7324_v9  ;;  %v7241_v36 = vadd.f32 -1.4531521, %v7199_v3  ;;  %v7532_v33 = vmul.f32 %v15442_v34, %v7490_v53  ;;  %vm6904_vm8 = vcmp.ge.f32.partialorder %v15385_v21, 0.0 }
0x124c   : > { %v15538_v20 = vmul.f32 0.70710677, %v15522_v57  ;;  %v10852_v15 = vpop.eup %10851  ;;  %v7695_v32 = vmul.f32 1.442695, %v7619_v40  ;;  %v7034_v0 = vmul.f32 0.3275911, %v15532_v60  ;;  %v7740_v38 = vmul.f32 %v10848_v42, %v7530_v47 }
0x124d   : > { %v7408_v16 = vadd.f32 -0.28449672, %v7366_v5  ;;  %v7283_v54 = vmul.f32 %v15512_v45, %v7241_v36  ;;  %10859 = vpow2.f32 %v7691_v8  ;;  %v7697_v12 = vmul.f32 1.442695, %v7620_v48  ;;  %v16459_v48 = vld [vmem:[#allocation40_spill] sm:$0xff] }
0x124e   : > { %v15542_v55 = vpop.eup %10853  ;;  %v15545_v27 = vand.u32 2147483647, %v15538_v20  ;;  %v7449_v34 = vmul.f32 %v15457_v35, %v7407_v2  ;;  %v7864_v56 = vadd.f32 1.0, %v7822_v62  ;;  %v7742_v19 = vmul.f32 %v10852_v15, %v7532_v33 }
0x124f   : > { %v7450_v7 = vmul.f32 %v15491_v52, %v7408_v16  ;;  %v7325_v6 = vadd.f32 1.4214138, %v7283_v54  ;;  %v7200_v18 = vmul.f32 1.0614054, %v15542_v55  ;;  %v15553_v53 = vsel %vm6904_vm8, 1.0, %v16429_v51 }
0x1250   : > { %v7076_v42 = vadd.f32 1.0, %v7034_v0  ;;  %10861 = vpow2.f32 %v7695_v32  ;;  %v7782_v40 = vsub.f32 1.0, %v7740_v38  ;;  %v7035_v47 = vmul.f32 0.3275911, %v15545_v27 }
0x1251   : > { %v7492_v8 = vadd.f32 0.2548296, %v7450_v7  ;;  %v7367_v9 = vmul.f32 %v15512_v45, %v7325_v6  ;;  %v7242_v3 = vadd.f32 -1.4531521, %v7200_v18  ;;  %v15559_v2 = vadd.f32 %v16459_v48, %v14402_v24 }
0x1252   : > { %10863 = vrcp.f32 %v7076_v42  ;;  %v7491_v5 = vadd.f32 0.2548296, %v7449_v34  ;;  %v15563_v62 = vmul.f32 %v7864_v56, %v15349_v29  ;;  %v7784_v33 = vsub.f32 1.0, %v7742_v19 }
0x1253   : > { %v7409_v36 = vadd.f32 -0.28449672, %v7367_v9  ;;  %v7284_v21 = vmul.f32 %v15542_v55, %v7242_v3  ;;  %10865 = vpow2.f32 %v7697_v12  ;;  %v15566_v15 = vmul.f32 0.5, %v15422_v49 }
0x1254   : > { %v7077_v16 = vadd.f32 1.0, %v7035_v47  ;;  %v7534_v54 = vmul.f32 %v15491_v52, %v7492_v8  ;;  %vm6905_vm9 = vcmp.ge.f32.partialorder %v15418_v23, 0.0  ;;  %v7824_v34 = vmul.f32 %v7782_v40, %v15425_v59 }
0x1255   : > { %v7451_v32 = vmul.f32 %v15512_v45, %v7409_v36  ;;  %v7326_v0 = vadd.f32 1.4214138, %v7284_v21  ;;  %v15571_v38 = vpop.eup %10855  ;;  %vm6906_vm10 = vcmp.ge.f32.partialorder %v15440_v46, 0.0  ;;  %v15576_v29 = vmul.f32 0.70710677, %v15559_v2 }
0x1256   : > { %10867 = vrcp.f32 %v7077_v16  ;;  %v10858_v49 = vpop.eup %10857  ;;  %v7533_v12 = vmul.f32 %v15457_v35, %v7491_v5  ;;  %v7201_v7 = vmul.f32 1.0614054, %v15571_v38  ;;  %v7579_v6 = vsub.f32 0.0, %v15497_v14 }
0x1257   : > { %v7368_v52 = vmul.f32 %v15542_v55, %v7326_v0  ;;  %v7826_v18 = vmul.f32 %v7784_v33, %v15462_v31  ;;  %v7493_v56 = vadd.f32 0.2548296, %v7451_v32  ;;  %v15584_v59 = vand.u32 2147483647, %v15576_v29 }
0x1258   : > { %v15588_v19 = vadd.f32 %v15123_v43, %v14399_v17  ;;  %v7744_v42 = vmul.f32 %v10858_v49, %v7534_v54  ;;  %v7243_v9 = vadd.f32 -1.4531521, %v7201_v7  ;;  %v7580_v35 = vsub.f32 0.0, %v15532_v60 }
0x1259   : > { %v7410_v8 = vadd.f32 -0.28449672, %v7368_v52  ;;  %v7866_v3 = vadd.f32 1.0, %v7824_v34  ;;  %v6947_v40 = vsel %vm6905_vm9, 1.0, %v16429_v51  ;;  %v7581_v31 = vsub.f32 0.0, %v15545_v27 }
0x125a   : > { %v7036_v47 = vmul.f32 0.3275911, %v15584_v59  ;;  %v10860_v48 = vpop.eup %10859  ;;  %v6948_v17 = vsel %vm6906_vm10, 1.0, %v16429_v51  ;;  %v7285_v5 = vmul.f32 %v15571_v38, %v7243_v9  ;;  %v7621_v36 = vmul.f32 %v7579_v6, %v15497_v14 }
0x125b   : > { %v7452_v43 = vmul.f32 %v15542_v55, %v7410_v8  ;;  %v7743_v21 = vmul.f32 %v10860_v48, %v7533_v12  ;;  %v7535_v33 = vmul.f32 %v15512_v45, %v7493_v56  ;;  %v15604_v16 = vmul.f32 0.70710677, %v15588_v19 }
0x125c   : > { %v7078_v23 = vadd.f32 1.0, %v7036_v47  ;;  %v7868_v54 = vadd.f32 1.0, %v7826_v18  ;;  %v7786_v32 = vsub.f32 1.0, %v7744_v42  ;;  %v7622_v34 = vmul.f32 %v7580_v35, %v15532_v60 }
0x125d   : > { %v7494_v0 = vadd.f32 0.2548296, %v7452_v43  ;;  %v10862_v46 = vpop.eup %10861  ;;  %v7908_v49 = vmul.f32 %v7866_v3, %v15410_v37  ;;  %v7623_v52 = vmul.f32 %v7581_v31, %v15545_v27  ;;  %v15610_v14 = vand.u32 2147483647, %v15604_v16 }
0x125e   : > { %10869 = vrcp.f32 %v7078_v23  ;;  %v7327_v7 = vadd.f32 1.4214138, %v7285_v5  ;;  %v7699_v6 = vmul.f32 1.442695, %v7621_v36  ;;  %v15617_v18 = vadd.f32 %v15140_v25, %v14402_v24 }
0x125f   : > { %v15612_v12 = vpop.eup %10863  ;;  %v7536_v45 = vmul.f32 %v15542_v55, %v7494_v0  ;;  %v7785_v56 = vsub.f32 1.0, %v7743_v21  ;;  %v7745_v42 = vmul.f32 %v10862_v46, %v7535_v33  ;;  %v7037_v27 = vmul.f32 0.3275911, %v15610_v14 }
0x1260   : > { %v10866_v60 = vpop.eup %10865  ;;  %v7202_v37 = vmul.f32 1.0614054, %v15612_v12  ;;  %v7910_v8 = vmul.f32 %v7868_v54, %v15445_v1  ;;  %v7828_v9 = vmul.f32 %v7786_v32, %v15553_v53  ;;  %v7701_v3 = vmul.f32 1.442695, %v7622_v34 }
0x1261   : > { %v7746_v35 = vmul.f32 %v10866_v60, %v7536_v45  ;;  %v7703_v31 = vmul.f32 1.442695, %v7623_v52  ;;  %v7582_v47 = vsub.f32 0.0, %v15584_v59  ;;  %v7079_v48 = vadd.f32 1.0, %v7037_v27 }
0x1262   : > { %v7244_v55 = vadd.f32 -1.4531521, %v7202_v37  ;;  %v7369_v43 = vmul.f32 %v15571_v38, %v7327_v7  ;;  %v15628_v5 = vmul.f32 0.70710677, %v15617_v18  ;;  %v7934_v1 = vpack.c.bf16 %v15563_v62, %v15452_v28 }
0x1263   : > { %v15624_v24 = vpop.eup %10867  ;;  %v7788_v25 = vsub.f32 1.0, %v7746_v35  ;;  %v7787_v36 = vsub.f32 1.0, %v7745_v42  ;;  %10871 = vrcp.f32 %v7079_v48  ;;  %v7827_v33 = vmul.f32 %v7785_v56, %v15486_v4 }
0x1264   : > { %v7286_v53 = vmul.f32 %v15612_v12, %v7244_v55  ;;  %v7203_v21 = vmul.f32 1.0614054, %v15624_v24  ;;  %v7870_v23 = vadd.f32 1.0, %v7828_v9  ;;  %10873 = vpow2.f32 %v7699_v6  ;;  %8158 = vmatprep.mubr.bf16.mxu1 %v7934_v1 }
0x1265   : > { %v7830_v54 = vmul.f32 %v7788_v25, %v6948_v17  ;;  %10875 = vpow2.f32 %v7701_v3  ;;  %v7624_v34 = vmul.f32 %v7582_v47, %v15584_v59  ;;  %8159 = vmatmul.mubr.bf16.gmra.mxu1 %v7933_v10  ;;  %v7411_v62 = vadd.f32 -0.28449672, %v7369_v43 }
0x1266   : > { %v7328_v32 = vadd.f32 1.4214138, %v7286_v53  ;;  %v7245_v0 = vadd.f32 -1.4531521, %v7203_v21  ;;  %v6996_v46 = vand.u32 2147483647, %v15628_v5  ;;  %v7936_v52 = vpack.c.bf16 %v7910_v8, %v7908_v49 }
0x1267   : > { %v7872_v28 = vadd.f32 1.0, %v7830_v54  ;;  %v7829_v45 = vmul.f32 %v7787_v36, %v6947_v40  ;;  %10877 = vpow2.f32 %v7703_v31  ;;  %v7912_v7 = vmul.f32 %v7870_v23, %v15489_v22 }
0x1268   : > { %v7370_v4 = vmul.f32 %v15612_v12, %v7328_v32  ;;  %v7287_v17 = vmul.f32 %v15624_v24, %v7245_v0  ;;  %v7583_v59 = vsub.f32 0.0, %v15610_v14  ;;  %v7038_v60 = vmul.f32 0.3275911, %v6996_v46  ;;  %8166 = vmatprep.mubr.bf16.mxu1 %v7936_v52 }
0x1269   : > { %v7914_v6 = vmul.f32 %v7872_v28, %v15566_v15  ;;  %v7453_v56 = vmul.f32 %v15571_v38, %v7411_v62  ;;  %v7705_v49 = vmul.f32 1.442695, %v7624_v34  ;;  %v7871_v37 = vadd.f32 1.0, %v7829_v45 }
0x126a   : > { %v7412_v26 = vadd.f32 -0.28449672, %v7370_v4  ;;  %v7329_v58 = vadd.f32 1.4214138, %v7287_v17  ;;  %v7080_v40 = vadd.f32 1.0, %v7038_v60  ;;  %v7869_v9 = vadd.f32 1.0, %v7827_v33 }
0x126b   : > { %v10870_v10 = vpop.eup %10869  ;;  %v7938_v42 = vpack.c.bf16 %v7914_v6, %v7912_v7  ;;  %v6821_v15 = vmul.f32 0.5, %v15407_v44  ;;  %v7625_v35 = vmul.f32 %v7583_v59, %v15610_v14  ;;  %v6819_v47 = vmul.f32 0.5, %v15342_v63 }
0x126c   : > { %v7454_v27 = vmul.f32 %v15612_v12, %v7412_v26  ;;  %v7371_v8 = vmul.f32 %v15624_v24, %v7329_v58  ;;  %v7204_v22 = vmul.f32 1.0614054, %v10870_v10  ;;  %10879 = vrcp.f32 %v7080_v40 }
0x126d   : > { %8167 = vmatmul.mubr.bf16.gmra.mxu1 %v7935_v30  ;;  %v7495_v48 = vadd.f32 0.2548296, %v7453_v56  ;;  %v7913_v25 = vmul.f32 %v7871_v37, %v6821_v15  ;;  %10881 = vpow2.f32 %v7705_v49  ;;  %v7911_v36 = vmul.f32 %v7869_v9, %v6819_v47 }
0x126e   : > { %v7496_v3 = vadd.f32 0.2548296, %v7454_v27  ;;  %v7413_v55 = vadd.f32 -0.28449672, %v7371_v8  ;;  %v7246_v31 = vadd.f32 -1.4531521, %v7204_v22  ;;  %8174 = vmatprep.mubr.bf16.mxu1 %v7938_v42 }
0x126f   : > { %v7707_v14 = vmul.f32 1.442695, %v7625_v35  ;;  %v7537_v50 = vmul.f32 %v15571_v38, %v7495_v48  ;;  %v7584_v63 = vsub.f32 0.0, %v6996_v46  ;;  %v7937_v30 = vpack.c.bf16 %v7913_v25, %v7911_v36 }
0x1270   : > { %v7455_v43 = vmul.f32 %v15624_v24, %v7413_v55  ;;  %v7288_v1 = vmul.f32 %v10870_v10, %v7246_v31  ;;  %v10872_v44 = vpop.eup %10871  ;;  %v7538_v21 = vmul.f32 %v15612_v12, %v7496_v3  ;;  %vm6907_vm11 = vcmp.ge.f32.partialorder %v15479_v61, 0.0 }
0x1271   : > { %v10874_v53 = vpop.eup %10873  ;;  %v7205_v54 = vmul.f32 1.0614054, %v10872_v44  ;;  %10883 = vpow2.f32 %v7707_v14  ;;  %v7626_v17 = vmul.f32 %v7584_v63, %v6996_v46  ;;  %vm6909_vm12 = vcmp.ge.f32.partialorder %v15538_v20, 0.0 }
0x1272   : > { %v7497_v33 = vadd.f32 0.2548296, %v7455_v43  ;;  %v7330_v23 = vadd.f32 1.4214138, %v7288_v1  ;;  %v10876_v41 = vpop.eup %10875  ;;  %v7747_v12 = vmul.f32 %v10874_v53, %v7537_v50  ;;  %vm6908_vm13 = vcmp.ge.f32.partialorder %v15510_v39, 0.0 }
0x1273   : > { %v7247_v34 = vadd.f32 -1.4531521, %v7205_v54  ;;  %v7748_v62 = vmul.f32 %v10876_v41, %v7538_v21  ;;  %v7709_v49 = vmul.f32 1.442695, %v7626_v17  ;;  %v6951_v40 = vsel %vm6909_vm12, 1.0, %v16429_v51 }
0x1274   : > { %v7539_v32 = vmul.f32 %v15624_v24, %v7497_v33  ;;  %v7372_v0 = vmul.f32 %v10870_v10, %v7330_v23  ;;  %v10878_v28 = vpop.eup %10877  ;;  %v7789_v58 = vsub.f32 1.0, %v7747_v12  ;;  %v6949_v27 = vsel %vm6907_vm11, 1.0, %v16429_v51 }
0x1275   : > { %v7289_v4 = vmul.f32 %v10872_v44, %v7247_v34  ;;  %8175 = vmatmul.mubr.bf16.gmra.mxu1 %v7937_v30  ;;  %v7790_v24 = vsub.f32 1.0, %v7748_v62  ;;  %v6950_v61 = vsel %vm6908_vm13, 1.0, %v16429_v51  ;;  %vm6910_vm14 = vcmp.ge.f32.partialorder %v15576_v29, 0.0 }
0x1276   : > { %v7749_v52 = vmul.f32 %v10878_v28, %v7539_v32  ;;  %v7414_v45 = vadd.f32 -0.28449672, %v7372_v0  ;;  %v7831_v15 = vmul.f32 %v7789_v58, %v6949_v27  ;;  %10885 = vpow2.f32 %v7709_v49 }
0x1277   : > { %v7331_v6 = vadd.f32 1.4214138, %v7289_v4  ;;  %v7832_v22 = vmul.f32 %v7790_v24, %v6950_v61  ;;  %v6825_v14 = vmul.f32 0.5, %v15522_v57  ;;  %v6824_v29 = vmul.f32 0.5, %v15501_v13 }
0x1278   : > { %v7456_v7 = vmul.f32 %v10870_v10, %v7414_v45  ;;  %v7791_v38 = vsub.f32 1.0, %v7749_v52  ;;  %v7873_v36 = vadd.f32 1.0, %v7831_v15  ;;  %v6826_v21 = vmul.f32 0.5, %v15559_v2 }
0x1279   : > { %v10880_v59 = vpop.eup %10879  ;;  %v7373_v26 = vmul.f32 %v10872_v44, %v7331_v6  ;;  %v7874_v25 = vadd.f32 1.0, %v7832_v22  ;;  %v6823_v54 = vmul.f32 0.5, %v15468_v11  ;;  %vm6911_vm15 = vcmp.ge.f32.partialorder %v15604_v16, 0.0 }
0x127a   : > { %v7498_v60 = vadd.f32 0.2548296, %v7456_v7  ;;  %v7206_v56 = vmul.f32 1.0614054, %v10880_v59  ;;  %v10882_v37 = vpop.eup %10881  ;;  %v7833_v20 = vmul.f32 %v7791_v38, %v6951_v40  ;;  %v6953_v13 = vsel %vm6911_vm15, 1.0, %v16429_v51 }
0x127b   : > { %v7415_v46 = vadd.f32 -0.28449672, %v7373_v26  ;;  %v7916_v63 = vmul.f32 %v7874_v25, %v6824_v29  ;;  %v7915_v32 = vmul.f32 %v7873_v36, %v6823_v54  ;;  %vm6912_vm1 = vcmp.ge.f32.partialorder %v15628_v5, 0.0  ;;  %v16460_v26 = vld [vmem:[#allocation3_spill] sm:$0xff] }
0x127c   : > { %v7540_v42 = vmul.f32 %v10870_v10, %v7498_v60  ;;  %v7248_v8 = vadd.f32 -1.4531521, %v7206_v56  ;;  %v7875_v31 = vadd.f32 1.0, %v7833_v20  ;;  %v6952_v10 = vsel %vm6910_vm14, 1.0, %v16429_v51  ;;  %v15678_v56 = vld [vmem:[%s11720_s14] sm:$0xff] }
0x127d   : > { %v7457_v9 = vmul.f32 %v10872_v44, %v7415_v46  ;;  %v6954_v12 = vsel %vm6912_vm1, 1.0, %v16429_v51  ;;  %v6827_v17 = vmul.f32 0.5, %v15588_v19  ;;  %v6828_v7 = vmul.f32 0.5, %v15617_v18 }
0x127e   : > { %v7750_v39 = vmul.f32 %v10882_v37, %v7540_v42  ;;  %v7290_v35 = vmul.f32 %v10880_v59, %v7248_v8  ;;  %v10884_v48 = vpop.eup %10883  ;;  %v7917_v41 = vmul.f32 %v7875_v31, %v6825_v14  ;;  %v7980_v5 = vsub.s32 3, %v16460_v26  ;;  %v16461_v37 = vld [vmem:[#allocation26_spill] sm:$0xff] }
0x127f   : > { %v7499_v55 = vadd.f32 0.2548296, %v7457_v9  ;;  %v16462_v9 = vld [vmem:[#allocation27_spill] sm:$0xff]  ;;  %vm8578_vm2 = vcmask (%p16039_p0), 1041409   ;;  %vm8581_vm3 = vcmask (%p16039_p0), 1042434   ;;  %vm8584_vm4 = vcmask (%p16039_p0), 1043459  }
0x1280   : > { %v7792_v3 = vsub.f32 1.0, %v7750_v39  ;;  %v7332_v47 = vadd.f32 1.4214138, %v7290_v35  ;;  %v7939_v57 = vpack.c.bf16 %v7917_v41, %v7915_v32  ;;  %v15681_v49 = vrot.slane %v15678_v56, %v7980_v5 }
0x1281   : > { %v7541_v1 = vmul.f32 %v10872_v44, %v7499_v55  ;;  %vm8587_vm5 = vcmask (%p16039_p0), 1044484   ;;  %vm8590_vm6 = vcmask (%p16039_p0), 1045509   ;;  %vm8593_vm7 = vcmask (%p16039_p0), 1046534  }
0x1282   : > { %v7834_v43 = vmul.f32 %v7792_v3, %v6952_v10  ;;  %v7374_v53 = vmul.f32 %v10880_v59, %v7332_v47  ;;  %v16463_v47 = vld [vmem:[#allocation37_spill] sm:$0xff]  ;;  %vm11121_vm8 = vmmov (%p16039_p0), 0   ;;  %vm8670_vm9 = vcmask (%p16039_p0), 49152  }
0x1283   : > { %v7751_v23 = vmul.f32 %v10884_v48, %v7541_v1  ;;  %v10886_v62 = vpop.eup %10885 }
0x1284   : > { %v7876_v33 = vadd.f32 1.0, %v7834_v43  ;;  %v7416_v50 = vadd.f32 -0.28449672, %v7374_v53  ;;  %v16464_v53 = vld [vmem:[#allocation33_spill] sm:$0xff] }
0x1285   : > { %v7793_v44 = vsub.f32 1.0, %v7751_v23 }
0x1286   : > { %v7918_v30 = vmul.f32 %v7876_v33, %v6826_v21  ;;  %v7458_v0 = vmul.f32 %v10880_v59, %v7416_v50  ;;  %v16465_v50 = vld [vmem:[#allocation44_spill] sm:$0xff] }
0x1287   : > { %v7835_v52 = vmul.f32 %v7793_v44, %v6953_v13 }
0x1288   : > { %v7940_v34 = vpack.c.bf16 %v7918_v30, %v7916_v63  ;;  %v7500_v28 = vadd.f32 0.2548296, %v7458_v0 }
0x1289   : > { %v7877_v4 = vadd.f32 1.0, %v7835_v52 }
0x128a   : > { %8182 = vmatprep.mubr.bf16.mxu1 %v7940_v34  ;;  %v7542_v2 = vmul.f32 %v10880_v59, %v7500_v28 }
0x128b   : > { %8183 = vmatmul.mubr.bf16.gmra.mxu1 %v7939_v57  ;;  %v7919_v38 = vmul.f32 %v7877_v4, %v6827_v17  ;;  %v16466_v57 = vld [vmem:[#allocation48_spill] sm:$0xff] }
0x128c   : > { %v7752_v11 = vmul.f32 %v10886_v62, %v7542_v2 }
0x128d   : > { %v7941_v60 = vpack.c.bf16 %v7919_v38, %v7919_v38  ;;  %v16468_v38 = vld [vmem:[#allocation52_spill] sm:$0xff] }
0x128e   : > { %v7794_v45 = vsub.f32 1.0, %v7752_v11 }
0x1290   : > { %v7836_v16 = vmul.f32 %v7794_v45, %v6954_v12  ;;  %v16467_v45 = vld [vmem:[#allocation47_spill] sm:$0xff] }
0x1292   : > { %v7878_v6 = vadd.f32 1.0, %v7836_v16 }
0x1294   : > { %v7920_v24 = vmul.f32 %v7878_v6, %v6828_v7 }
0x1296   : > { %v7942_v59 = vpack.c.bf16 %v7920_v24, %v7920_v24 }
0x1298   : > { %8190 = vmatprep.mubr.bf16.mxu1 %v7942_v59 }
0x1299   : > { %8191 = vmatmul.mubr.bf16.gmra.mxu1 %v7941_v60 }
0x12b2   : > { %v9274_v58 = vpop.f32.mrf.mxu1 }
0x12b4   : > { %v9275_v51 = vpop.f32.mrf.mxu1 }
0x12b5   : > { %v9276_v40 = vadd.f32 %v9275_v51, %v9274_v58 }
0x12b6   : > { %v9277_v19 = vpop.f32.mrf.mxu1 }
0x12b7   : > { %v8113_v18 = vadd.f32 %v9276_v40, %v15681_v49  ;;  %v16469_v40 = vld [vmem:[#allocation46_spill] sm:$0xff] }
0x12b8   : > { %v9278_v42 = vpop.f32.mrf.mxu1 }
0x12b9   : > { %v9279_v46 = vadd.f32 %v9278_v42, %v9277_v19  ;;  %v15685_v27 = vadd.f32 %v8113_v18, %v16461_v37 }
0x12ba   : > { %v9280_v61 = vpop.f32.mrf.mxu1 }
0x12bb   : > { %v8116_v20 = vadd.f32 %v9279_v46, %v15681_v49  ;;  %v8219_v8 = vsel %vm50_vm0, %v15685_v27, 0.0  ;;  %v16470_v46 = vld [vmem:[#allocation54_spill] sm:$0xff] }
0x12bc   : > { %v9281_v22 = vpop.f32.mrf.mxu1  ;;  %8220 = vadd.xlane.f32.xlu1 %v8219_v8 }
0x12bd   : > { %v9282_v39 = vadd.f32 %v9281_v22, %v9280_v61  ;;  %v15691_v15 = vadd.f32 %v8116_v20, %v16462_v9 }
0x12be   : > { %v9283_v35 = vpop.f32.mrf.mxu1 }
0x12bf   : > { %v8121_v3 = vadd.f32 %v9282_v39, %v15681_v49  ;;  %v8222_v55 = vsel %vm50_vm0, %v15691_v15, 0.0 }
0x12c0   : > { %v9284_v31 = vpop.f32.mrf.mxu1  ;;  %8223 = vadd.xlane.f32.xlu0 %v8222_v55  ;;  %v16471_v55 = vld [vmem:[#allocation50_spill] sm:$0xff] }
0x12c1   : > { %v9285_v10 = vadd.f32 %v9284_v31, %v9283_v35  ;;  %v15697_v48 = vadd.f32 %v8121_v3, %v16463_v47 }
0x12c2   : > { %v9286_v25 = vpop.f32.mrf.mxu1 }
0x12c3   : > { %v8124_v43 = vadd.f32 %v9285_v10, %v15681_v49  ;;  %v8225_v1 = vsel %vm50_vm0, %v15697_v48, 0.0 }
0x12c4   : > { %v9287_v36 = vpop.f32.mrf.mxu1  ;;  %8226 = vadd.xlane.f32.xlu1 %v8225_v1 }
0x12c5   : > { %v9288_v14 = vadd.f32 %v9287_v36, %v9286_v25  ;;  %v15703_v29 = vadd.f32 %v8124_v43, %v16464_v53  ;;  %v16472_v25 = vld [vmem:[#allocation53_spill] sm:$0xff] }
0x12c6   : > { %v9289_v21 = vpop.f32.mrf.mxu1 }
0x12c7   : > { %v8129_v33 = vadd.f32 %v9288_v14, %v15681_v49  ;;  %v8228_v23 = vsel %vm50_vm0, %v15703_v29, 0.0 }
0x12c8   : > { %v9290_v54 = vpop.f32.mrf.mxu1  ;;  %8229 = vadd.xlane.f32.xlu0 %v8228_v23 }
0x12c9   : > { %v9291_v41 = vadd.f32 %v9290_v54, %v9289_v21  ;;  %v15709_v63 = vadd.f32 %v8129_v33, %v16465_v50 }
0x12ca   : > { %v9292_v30 = vpop.f32.mrf.mxu1 }
0x12cb   : > { %v8132_v32 = vadd.f32 %v9291_v41, %v15681_v49  ;;  %v8231_v0 = vsel %vm50_vm0, %v15709_v63, 0.0  ;;  %v16473_v41 = vld [vmem:[#allocation55_spill] sm:$0xff] }
0x12cc   : > { %v9293_v44 = vpop.f32.mrf.mxu1  ;;  %8232 = vadd.xlane.f32.xlu1 %v8231_v0 }
0x12cd   : > { %v9294_v34 = vadd.f32 %v9293_v44, %v9292_v30  ;;  %v15715_v28 = vadd.f32 %v8132_v32, %v16466_v57  ;;  %v16474_v57 = vld [vmem:[#allocation51_spill] sm:$0xff] }
0x12ce   : > { %v9295_v13 = vpop.f32.mrf.mxu1 }
0x12cf   : > { %v8137_v2 = vadd.f32 %v9294_v34, %v15681_v49  ;;  %v8234_v62 = vsel %vm50_vm0, %v15715_v28, 0.0 }
0x12d0   : > { %v9296_v52 = vpop.f32.mrf.mxu1  ;;  %8235 = vadd.xlane.f32.xlu0 %v8234_v62 }
0x12d1   : > { %v9297_v11 = vadd.f32 %v9296_v52, %v9295_v13  ;;  %v15721_v4 = vadd.f32 %v8137_v2, %v16467_v45 }
0x12d2   : > { %v9298_v12 = vpop.f32.mrf.mxu1 }
0x12d3   : > { %v8140_v16 = vadd.f32 %v9297_v11, %v15681_v49  ;;  %v8237_v17 = vsel %vm50_vm0, %v15721_v4, 0.0 }
0x12d4   : > { %v9299_v7 = vpop.f32.mrf.mxu1  ;;  %8238 = vadd.xlane.f32.xlu1 %v8237_v17 }
0x12d5   : > { %v9300_v6 = vadd.f32 %v9299_v7, %v9298_v12  ;;  %v15727_v24 = vadd.f32 %v8140_v16, %v16468_v38  ;;  %v16475_v12 = vld [vmem:[#allocation29_spill] sm:$0xff] }
0x12d6   : > { %v9301_v59 = vpop.f32.mrf.mxu1 }
0x12d7   : > { %v8145_v60 = vadd.f32 %v9300_v6, %v15681_v49  ;;  %v8240_v5 = vsel %vm50_vm0, %v15727_v24, 0.0 }
0x12d8   : > { %v9302_v58 = vpop.f32.mrf.mxu1  ;;  %8241 = vadd.xlane.f32.xlu0 %v8240_v5 }
0x12d9   : > { %v9303_v51 = vadd.f32 %v9302_v58, %v9301_v59  ;;  %v15733_v19 = vadd.f32 %v8145_v60, %v16469_v40  ;;  %v16476_v60 = vld [vmem:[#allocation56_spill] sm:$0xff] }
0x12db   : > { %v8148_v18 = vadd.f32 %v9303_v51, %v15681_v49  ;;  %v8243_v42 = vsel %vm50_vm0, %v15733_v19, 0.0 }
0x12dc   : > { %8244 = vadd.xlane.f32.xlu1 %v8243_v42 }
0x12dd   : > { %v15739_v37 = vadd.f32 %v8148_v18, %v16470_v46  ;;  %v9304_v20 = vpop.f32.mrf.mxu1  ;;  %v16477_v46 = vld [vmem:[#allocation38_spill] sm:$0xff] }
0x12df   : > { %v8246_v61 = vsel %vm50_vm0, %v15739_v37, 0.0  ;;  %v9305_v8 = vpop.f32.mrf.mxu1 }
0x12e0   : > { %8247 = vadd.xlane.f32.xlu0 %v8246_v61  ;;  %v9306_v22 = vadd.f32 %v9305_v8, %v9304_v20 }
0x12e1   : > { %v9307_v39 = vpop.f32.mrf.mxu1 }
0x12e2   : > { %v8153_v9 = vadd.f32 %v9306_v22, %v15681_v49  ;;  %v16478_v22 = vld [vmem:[#allocation57_spill] sm:$0xff] }
0x12e3   : > { %v9308_v35 = vpop.f32.mrf.mxu1 }
0x12e4   : > { %v9309_v3 = vadd.f32 %v9308_v35, %v9307_v39  ;;  %v15745_v31 = vadd.f32 %v8153_v9, %v16471_v55 }
0x12e6   : > { %v8156_v10 = vadd.f32 %v9309_v3, %v15681_v49  ;;  %v8249_v47 = vsel %vm50_vm0, %v15745_v31, 0.0 }
0x12e7   : > { %8250 = vadd.xlane.f32.xlu1 %v8249_v47 }
0x12e8   : > { %v15751_v43 = vadd.f32 %v8156_v10, %v16472_v25 }
0x12ea   : > { %v8252_v1 = vsel %vm50_vm0, %v15751_v43, 0.0 }
0x12eb   : > { %8253 = vadd.xlane.f32.xlu0 %v8252_v1 }
0x1325   : > { %v9310_v36 = vpop.f32.mrf.mxu1 }
0x1327   : > { %v9311_v14 = vpop.f32.mrf.mxu1 }
0x1328   : > { %v9312_v53 = vadd.f32 %v9311_v14, %v9310_v36 }
0x1329   : > { %v9313_v21 = vpop.f32.mrf.mxu1 }
0x132a   : > { %v8161_v33 = vadd.f32 %v9312_v53, %v15681_v49 }
0x132b   : > { %v9314_v23 = vpop.f32.mrf.mxu1 }
0x132c   : > { %v9315_v54 = vadd.f32 %v9314_v23, %v9313_v21  ;;  %v15757_v50 = vadd.f32 %v8161_v33, %v16473_v41  ;;  %v16479_v21 = vld [vmem:[#allocation30_spill] sm:$0xff] }
0x132d   : > { %v9316_v30 = vpop.f32.mrf.mxu1 }
0x132e   : > { %v8164_v32 = vadd.f32 %v9315_v54, %v15681_v49  ;;  %v8255_v0 = vsel %vm50_vm0, %v15757_v50, 0.0 }
0x132f   : > { %v9317_v44 = vpop.f32.mrf.mxu1  ;;  %8256 = vadd.xlane.f32.xlu1 %v8255_v0 }
0x1330   : > { %v9318_v34 = vadd.f32 %v9317_v44, %v9316_v30  ;;  %v15763_v13 = vadd.f32 %v8164_v32, %v16474_v57  ;;  %v16480_v44 = vld [vmem:[#allocation58_spill] sm:$0xff] }
0x1331   : > { %v9319_v2 = vpop.f32.mrf.mxu1 }
0x1332   : > { %v8169_v62 = vadd.f32 %v9318_v34, %v15681_v49  ;;  %v8258_v52 = vsel %vm50_vm0, %v15763_v13, 0.0 }
0x1333   : > { %v9320_v11 = vpop.f32.mrf.mxu1  ;;  %8259 = vadd.xlane.f32.xlu0 %v8258_v52 }
0x1334   : > { %v9321_v45 = vadd.f32 %v9320_v11, %v9319_v2  ;;  %v15769_v16 = vadd.f32 %v8169_v62, %v16475_v12 }
0x1335   : > { %v9322_v17 = vpop.f32.mrf.mxu1 }
0x1336   : > { %v8172_v7 = vadd.f32 %v9321_v45, %v15681_v49  ;;  %v8261_v6 = vsel %vm50_vm0, %v15769_v16, 0.0 }
0x1337   : > { %v9323_v38 = vpop.f32.mrf.mxu1  ;;  %8262 = vadd.xlane.f32.xlu1 %v8261_v6 }
0x1338   : > { %v9324_v59 = vadd.f32 %v9323_v38, %v9322_v17  ;;  %v15775_v5 = vadd.f32 %v8172_v7, %v16476_v60 }
0x1339   : > { %v9325_v58 = vpop.f32.mrf.mxu1 }
0x133a   : > { %v8177_v51 = vadd.f32 %v9324_v59, %v15681_v49  ;;  %v8264_v40 = vsel %vm50_vm0, %v15775_v5, 0.0 }
0x133b   : > { %v9326_v18 = vpop.f32.mrf.mxu1  ;;  %8265 = vadd.xlane.f32.xlu0 %v8264_v40 }
0x133c   : > { %v9327_v42 = vadd.f32 %v9326_v18, %v9325_v58  ;;  %v15781_v61 = vadd.f32 %v8177_v51, %v16477_v46 }
0x133e   : > { %v8180_v20 = vadd.f32 %v9327_v42, %v15681_v49  ;;  %v8267_v8 = vsel %vm50_vm0, %v15781_v61, 0.0 }
0x133f   : > { %8268 = vadd.xlane.f32.xlu1 %v8267_v8 }
0x1340   : > { %v15787_v39 = vadd.f32 %v8180_v20, %v16478_v22 }
0x1342   : > { %v8270_v9 = vsel %vm50_vm0, %v15787_v39, 0.0 }
0x1343   : > { %8271 = vadd.xlane.f32.xlu0 %v8270_v9  ;;  %v16481_v9 = vld [vmem:[#allocation28_spill] sm:$0xff] }
0x1345   : > { %v8221_v3 = vpop.xlane.xlu1 %8220 }
0x1346   : > { %v8282_v36 = vmul.f32 0.015625, %v8221_v3 }
0x1348   : > { %v15797_v30 = vsub.f32 %v15685_v27, %v8282_v36 }
0x1349   : > { %v8224_v0 = vpop.xlane.xlu0 %8223 }
0x134a   : > { %v8324_v52 = vmul.f32 %v15797_v30, %v15797_v30 }
0x134b   : > { %v9328_v35 = vpop.f32.mrf.mxu1 }
0x134c   : > { %v8345_v38 = vsel %vm50_vm0, %v8324_v52, 0.0 }
0x134d   : > { %v9329_v55 = vpop.f32.mrf.mxu1  ;;  %v8227_v25 = vpop.xlane.xlu1 %8226 }
0x134e   : > { %v9330_v10 = vadd.f32 %v9329_v55, %v9328_v35  ;;  %v8284_v23 = vmul.f32 0.015625, %v8227_v25 }
0x134f   : > { %v9331_v47 = vpop.f32.mrf.mxu1 }
0x1350   : > { %v8185_v1 = vadd.f32 %v9330_v10, %v15681_v49  ;;  %v15805_v57 = vsub.f32 %v15697_v48, %v8284_v23  ;;  %v8283_v48 = vmul.f32 0.015625, %v8224_v0 }
0x1351   : > { %v9332_v14 = vpop.f32.mrf.mxu1  ;;  %v8230_v45 = vpop.xlane.xlu0 %8229 }
0x1352   : > { %v9333_v53 = vadd.f32 %v9332_v14, %v9331_v47  ;;  %v15793_v33 = vadd.f32 %v8185_v1, %v16479_v21  ;;  %v8326_v12 = vmul.f32 %v15805_v57, %v15805_v57  ;;  %v8285_v60 = vmul.f32 0.015625, %v8230_v45 }
0x1353   : > { %v15825_v46 = vsub.f32 %v15691_v15, %v8283_v48 }
0x1354   : > { %v8188_v41 = vadd.f32 %v9333_v53, %v15681_v49  ;;  %v8273_v32 = vsel %vm50_vm0, %v15793_v33, 0.0  ;;  %v8351_v51 = vsel %vm50_vm0, %v8326_v12, 0.0  ;;  %v15828_v22 = vsub.f32 %v15703_v29, %v8285_v60 }
0x1355   : > { %v8233_v54 = vpop.xlane.xlu1 %8232  ;;  %8274 = vadd.xlane.f32.xlu1 %v8273_v32  ;;  %v8325_v47 = vmul.f32 %v15825_v46, %v15825_v46 }
0x1356   : > { %v15802_v34 = vadd.f32 %v8188_v41, %v16480_v44  ;;  %v8286_v2 = vmul.f32 0.015625, %v8233_v54  ;;  %v8327_v1 = vmul.f32 %v15828_v22, %v15828_v22 }
0x1357   : > { %v8348_v23 = vsel %vm50_vm0, %v8325_v47, 0.0 }
0x1358   : > { %v8276_v62 = vsel %vm50_vm0, %v15802_v34, 0.0  ;;  %v15814_v17 = vsub.f32 %v15709_v63, %v8286_v2 }
0x1359   : > { %8277 = vadd.xlane.f32.xlu0 %v8276_v62  ;;  %v9334_v11 = vpop.f32.mrf.mxu1  ;;  %v8236_v40 = vpop.xlane.xlu0 %8235 }
0x135a   : > { %v8328_v18 = vmul.f32 %v15814_v17, %v15814_v17  ;;  %v8287_v3 = vmul.f32 0.015625, %v8236_v40 }
0x135b   : > { %v9335_v6 = vpop.f32.mrf.mxu1 }
0x135c   : > { %v9336_v59 = vadd.f32 %v9335_v6, %v9334_v11  ;;  %v8357_v10 = vsel %vm50_vm0, %v8328_v18, 0.0  ;;  %v15844_v25 = vsub.f32 %v15715_v28, %v8287_v3 }
0x135d   : > { %v8239_v27 = vpop.xlane.xlu1 %8238  ;;  %8346 = vadd.xlane.f32.xlu0 %v8345_v38  ;;  %v9337_v58 = vpop.f32.mrf.mxu1 }
0x135e   : > { %v8288_v7 = vmul.f32 0.015625, %v8239_v27  ;;  %v8193_v63 = vadd.f32 %v9336_v59, %v15681_v49  ;;  %v8329_v28 = vmul.f32 %v15844_v25, %v15844_v25 }
0x135f   : > { %v9338_v20 = vpop.f32.mrf.mxu1 }
0x1360   : > { %v15821_v42 = vsub.f32 %v15721_v4, %v8288_v7  ;;  %v15831_v35 = vadd.f32 %v8193_v63, %v16481_v9  ;;  %v8360_v0 = vsel %vm50_vm0, %v8329_v28, 0.0 }
0x1361   : > { %8352 = vadd.xlane.f32.xlu0 %v8351_v51  ;;  %v8242_v4 = vpop.xlane.xlu0 %8241 }
0x1362   : > { %v8330_v49 = vmul.f32 %v15821_v42, %v15821_v42  ;;  %v8279_v15 = vsel %vm50_vm0, %v15831_v35, 0.0  ;;  %v8289_v36 = vmul.f32 0.015625, %v8242_v4 }
0x1363   : > { %8280 = vadd.xlane.f32.xlu1 %v8279_v15 }
0x1364   : > { %v8363_v14 = vsel %vm50_vm0, %v8330_v49, 0.0  ;;  %v15854_v54 = vsub.f32 %v15727_v24, %v8289_v36 }
0x1365   : > { %v8245_v8 = vpop.xlane.xlu1 %8244  ;;  %8358 = vadd.xlane.f32.xlu0 %v8357_v10 }
0x1366   : > { %v8290_v55 = vmul.f32 0.015625, %v8245_v8  ;;  %v8331_v2 = vmul.f32 %v15854_v54, %v15854_v54 }
0x1367   : > { %8349 = vadd.xlane.f32.xlu1 %v8348_v23 }
0x1368   : > { %v15841_v29 = vsub.f32 %v15733_v19, %v8290_v55  ;;  %v8354_v19 = vsel %vm50_vm0, %v8327_v1, 0.0  ;;  %v8366_v52 = vsel %vm50_vm0, %v8331_v2, 0.0 }
0x1369   : > { %v8248_v53 = vpop.xlane.xlu0 %8247  ;;  %8364 = vadd.xlane.f32.xlu0 %v8363_v14 }
0x136a   : > { %v8332_v21 = vmul.f32 %v15841_v29, %v15841_v29  ;;  %v8291_v41 = vmul.f32 0.015625, %v8248_v53 }
0x136b   : > { %8355 = vadd.xlane.f32.xlu1 %v8354_v19 }
0x136c   : > { %v8369_v32 = vsel %vm50_vm0, %v8332_v21, 0.0  ;;  %v15861_v44 = vsub.f32 %v15739_v37, %v8291_v41 }
0x136d   : > { %8370 = vadd.xlane.f32.xlu0 %v8369_v32 }
0x136e   : > { %v8333_v11 = vmul.f32 %v15861_v44, %v15861_v44 }
0x136f   : > { %8361 = vadd.xlane.f32.xlu1 %v8360_v0 }
0x1370   : > { %v8251_v62 = vpop.xlane.xlu1 %8250  ;;  %v8372_v48 = vsel %vm50_vm0, %v8333_v11, 0.0 }
0x1371   : > { %v8292_v24 = vmul.f32 0.015625, %v8251_v62 }
0x1373   : > { %v15867_v27 = vsub.f32 %v15745_v31, %v8292_v24  ;;  %8367 = vadd.xlane.f32.xlu1 %v8366_v52 }
0x1374   : > { %v8254_v45 = vpop.xlane.xlu0 %8253 }
0x1375   : > { %v8293_v12 = vmul.f32 0.015625, %v8254_v45  ;;  %v8334_v37 = vmul.f32 %v15867_v27, %v15867_v27 }
0x1377   : > { %v15874_v7 = vsub.f32 %v15751_v43, %v8293_v12  ;;  %v8375_v6 = vsel %vm50_vm0, %v8334_v37, 0.0  ;;  %8373 = vadd.xlane.f32.xlu1 %v8372_v48 }
0x1378   : > { %8376 = vadd.xlane.f32.xlu0 %v8375_v6 }
0x1379   : > { %v8335_v31 = vmul.f32 %v15874_v7, %v15874_v7 }
0x137b   : > { %v8378_v38 = vsel %vm50_vm0, %v8335_v31, 0.0 }
0x137c   : > { %8379 = vadd.xlane.f32.xlu1 %v8378_v38 }
0x13b8   : > { %v8257_v59 = vpop.xlane.xlu1 %8256 }
0x13b9   : > { %v8294_v60 = vmul.f32 0.015625, %v8257_v59 }
0x13bb   : > { %v15882_v58 = vsub.f32 %v15757_v50, %v8294_v60 }
0x13bc   : > { %v8260_v51 = vpop.xlane.xlu0 %8259 }
0x13bd   : > { %v8295_v43 = vmul.f32 0.015625, %v8260_v51  ;;  %v8336_v40 = vmul.f32 %v15882_v58, %v15882_v58 }
0x13bf   : > { %v15887_v18 = vsub.f32 %v15763_v13, %v8295_v43  ;;  %v8381_v63 = vsel %vm50_vm0, %v8336_v40, 0.0 }
0x13c0   : > { %8382 = vadd.xlane.f32.xlu0 %v8381_v63  ;;  %v8263_v20 = vpop.xlane.xlu1 %8262 }
0x13c1   : > { %v8296_v8 = vmul.f32 0.015625, %v8263_v20  ;;  %v8337_v9 = vmul.f32 %v15887_v18, %v15887_v18 }
0x13c3   : > { %v15893_v3 = vsub.f32 %v15769_v16, %v8296_v8  ;;  %v8384_v50 = vsel %vm50_vm0, %v8337_v9, 0.0  ;;  %v8494_v8 = vsub.s32 6, %v16460_v26 }
0x13c4   : > { %v8266_v55 = vpop.xlane.xlu0 %8265  ;;  %8385 = vadd.xlane.f32.xlu1 %v8384_v50 }
0x13c5   : > { %v8297_v10 = vmul.f32 0.015625, %v8266_v55  ;;  %v8338_v13 = vmul.f32 %v15893_v3, %v15893_v3 }
0x13c7   : > { %v15899_v4 = vsub.f32 %v15775_v5, %v8297_v10  ;;  %v8387_v49 = vsel %vm50_vm0, %v8338_v13, 0.0  ;;  %v8519_v10 = vsub.s32 7, %v16460_v26 }
0x13c8   : > { %8388 = vadd.xlane.f32.xlu0 %v8387_v49  ;;  %v8269_v15 = vpop.xlane.xlu1 %8268 }
0x13c9   : > { %v8298_v47 = vmul.f32 0.015625, %v8269_v15  ;;  %v8339_v16 = vmul.f32 %v15899_v4, %v15899_v4 }
0x13cb   : > { %v15905_v1 = vsub.f32 %v15781_v61, %v8298_v47  ;;  %v8390_v36 = vsel %vm50_vm0, %v8339_v16, 0.0  ;;  %v15938_v47 = vrot.slane %v15678_v56, %v8494_v8 }
0x13cc   : > { %v8272_v14 = vpop.xlane.xlu0 %8271  ;;  %8391 = vadd.xlane.f32.xlu1 %v8390_v36 }
0x13cd   : > { %v8299_v53 = vmul.f32 0.015625, %v8272_v14  ;;  %v8340_v5 = vmul.f32 %v15905_v1, %v15905_v1 }
0x13cf   : > { %v15911_v21 = vsub.f32 %v15787_v39, %v8299_v53  ;;  %v8393_v23 = vsel %vm50_vm0, %v8340_v5, 0.0  ;;  %v15941_v53 = vrot.slane %v15678_v56, %v8519_v10 }
0x13d0   : > { %8394 = vadd.xlane.f32.xlu0 %v8393_v23 }
0x13d1   : > { %v8341_v19 = vmul.f32 %v15911_v21, %v15911_v21 }
0x13d3   : > { %v8396_v61 = vsel %vm50_vm0, %v8341_v19, 0.0 }
0x13d4   : > { %8397 = vadd.xlane.f32.xlu1 %v8396_v61 }
0x13de   : > { %v8275_v28 = vpop.xlane.xlu1 %8274 }
0x13df   : > { %v8300_v41 = vmul.f32 0.015625, %v8275_v28 }
0x13e1   : > { %v15918_v32 = vsub.f32 %v15793_v33, %v8300_v41 }
0x13e2   : > { %v8278_v0 = vpop.xlane.xlu0 %8277 }
0x13e3   : > { %v8301_v2 = vmul.f32 0.015625, %v8278_v0  ;;  %v8342_v39 = vmul.f32 %v15918_v32, %v15918_v32 }
0x13e5   : > { %v15923_v62 = vsub.f32 %v15802_v34, %v8301_v2  ;;  %v8399_v24 = vsel %vm50_vm0, %v8342_v39, 0.0 }
0x13e6   : > { %v8347_v52 = vpop.xlane.xlu0 %8346  ;;  %8400 = vadd.xlane.f32.xlu0 %v8399_v24 }
0x13e7   : > { %v8408_v11 = vmul.f32 0.015625, %v8347_v52  ;;  %v8343_v45 = vmul.f32 %v15923_v62, %v15923_v62 }
0x13e9   : > { %v8429_v12 = vadd.f32 1e-12, %v8408_v11  ;;  %v8402_v33 = vsel %vm50_vm0, %v8343_v45, 0.0 }
0x13ea   : > { %8403 = vadd.xlane.f32.xlu1 %v8402_v33  ;;  %v8353_v37 = vpop.xlane.xlu0 %8352 }
0x13eb   : > { %10887 = vrsqrt.f32 %v8429_v12  ;;  %v8410_v48 = vmul.f32 0.015625, %v8353_v37 }
0x13ec   : > { %v8281_v6 = vpop.xlane.xlu1 %8280 }
0x13ed   : > { %v8431_v31 = vadd.f32 1e-12, %v8410_v48  ;;  %v8302_v38 = vmul.f32 0.015625, %v8281_v6 }
0x13ee   : > { %v8359_v34 = vpop.xlane.xlu0 %8358 }
0x13ef   : > { %10889 = vrsqrt.f32 %v8431_v31  ;;  %v8412_v59 = vmul.f32 0.015625, %v8359_v34  ;;  %v15930_v60 = vsub.f32 %v15831_v35, %v8302_v38 }
0x13f0   : > { %v8350_v51 = vpop.xlane.xlu1 %8349 }
0x13f1   : > { %v8433_v43 = vadd.f32 1e-12, %v8412_v59  ;;  %v8409_v40 = vmul.f32 0.015625, %v8350_v51  ;;  %v8344_v63 = vmul.f32 %v15930_v60, %v15930_v60 }
0x13f2   : > { %v8365_v20 = vpop.xlane.xlu0 %8364 }
0x13f3   : > { %10891 = vrsqrt.f32 %v8433_v43  ;;  %v8414_v9 = vmul.f32 0.015625, %v8365_v20  ;;  %v8430_v50 = vadd.f32 1e-12, %v8409_v40  ;;  %v8405_v55 = vsel %vm50_vm0, %v8344_v63, 0.0 }
0x13f4   : > { %8406 = vadd.xlane.f32.xlu0 %v8405_v55  ;;  %v8356_v13 = vpop.xlane.xlu1 %8355 }
0x13f5   : > { %v8435_v35 = vadd.f32 1e-12, %v8414_v9  ;;  %10893 = vrsqrt.f32 %v8430_v50  ;;  %v8411_v49 = vmul.f32 0.015625, %v8356_v13 }
0x13f6   : > { %v8371_v15 = vpop.xlane.xlu0 %8370 }
0x13f7   : > { %10895 = vrsqrt.f32 %v8435_v35  ;;  %v8416_v16 = vmul.f32 0.015625, %v8371_v15  ;;  %v8432_v14 = vadd.f32 1e-12, %v8411_v49 }
0x13f8   : > { %v10888_v36 = vpop.eup %10887  ;;  %v8362_v23 = vpop.xlane.xlu1 %8361 }
0x13f9   : > { %v8471_v5 = vmul.f32 %v10888_v36, %v15797_v30  ;;  %v8437_v19 = vadd.f32 1e-12, %v8416_v16  ;;  %10897 = vrsqrt.f32 %v8432_v14  ;;  %v8413_v61 = vmul.f32 0.015625, %v8362_v23 }
0x13fb   : > { %v8496_v28 = vmul.f32 %v15938_v47, %v8471_v5  ;;  %10899 = vrsqrt.f32 %v8437_v19  ;;  %v8434_v0 = vadd.f32 1e-12, %v8413_v61 }
0x13fc   : > { %v10890_v41 = vpop.eup %10889  ;;  %v8368_v24 = vpop.xlane.xlu1 %8367 }
0x13fd   : > { %v15946_v2 = vadd.f32 %v15941_v53, %v8496_v28   ;;  %v8473_v39 = vmul.f32 %v10890_v41, %v15805_v57  ;;  %10901 = vrsqrt.f32 %v8434_v0  ;;  %v8415_v56 = vmul.f32 0.015625, %v8368_v24 }
0x13ff   : > { %v8498_v52 = vmul.f32 %v15938_v47, %v8473_v39  ;;  %v8436_v45 = vadd.f32 1e-12, %v8415_v56 }
0x1400   : > { %v10892_v11 = vpop.eup %10891  ;;  %v8374_v37 = vpop.xlane.xlu1 %8373 }
0x1401   : > { %v8377_v30 = vpop.xlane.xlu0 %8376  ;;  %v15951_v61 = vadd.f32 %v15941_v53, %v8498_v52   ;;  %v8475_v33 = vmul.f32 %v10892_v11, %v15814_v17  ;;  %10903 = vrsqrt.f32 %v8436_v45  ;;  %v8417_v48 = vmul.f32 0.015625, %v8374_v37 }
0x1402   : > { %v8418_v12 = vmul.f32 0.015625, %v8377_v30  ;;  %v10894_v31 = vpop.eup %10893 }
0x1403   : > { %v8500_v57 = vmul.f32 %v15938_v47, %v8475_v33  ;;  %v8472_v34 = vmul.f32 %v10894_v31, %v15825_v46  ;;  %v8438_v59 = vadd.f32 1e-12, %v8417_v48 }
0x1404   : > { %v8439_v6 = vadd.f32 1e-12, %v8418_v12  ;;  %v10896_v38 = vpop.eup %10895 }
0x1405   : > { %v15957_v0 = vadd.f32 %v15941_v53, %v8500_v57   ;;  %v8477_v43 = vmul.f32 %v10896_v38, %v15821_v42  ;;  %v8380_v40 = vpop.xlane.xlu1 %8379  ;;  %v8497_v17 = vmul.f32 %v15938_v47, %v8472_v34 }
0x1406   : > { %10905 = vrsqrt.f32 %v8439_v6  ;;  %v8419_v63 = vmul.f32 0.015625, %v8380_v40  ;;  %v10898_v20 = vpop.eup %10897 }
0x1407   : > { %v16482_v51 = vmov %v15957_v0  ;;  %10907 = vrsqrt.f32 %v8438_v59  ;;  %v8502_v8 = vmul.f32 %v15938_v47, %v8477_v43  ;;  %v15963_v50 = vadd.f32 %v15941_v53, %v8497_v17  }
0x1408   : > { %v10900_v9 = vpop.eup %10899  ;;  %v8474_v46 = vmul.f32 %v10898_v20, %v15828_v22  ;;  %v8440_v55 = vadd.f32 1e-12, %v8419_v63 }
0x1409   : > { %v15967_v11 = vadd.f32 %v15941_v53, %v8502_v8   ;;  %v8479_v42 = vmul.f32 %v10900_v9, %v15841_v29 }
0x140a   : > { %v8499_v13 = vmul.f32 %v15938_v47, %v8474_v46  ;;  %10909 = vrsqrt.f32 %v8440_v55  ;;  %v10902_v35 = vpop.eup %10901 }
0x140b   : > { %v16483_v10 = vmov %v15967_v11  ;;  %v8504_v49 = vmul.f32 %v15938_v47, %v8479_v42  ;;  %v8476_v16 = vmul.f32 %v10902_v35, %v15844_v25 }
0x140c   : > { %v15973_v55 = vadd.f32 %v15941_v53, %v8499_v13  }
0x140d   : > { %v15977_v36 = vadd.f32 %v15941_v53, %v8504_v49   ;;  %v8501_v22 = vmul.f32 %v15938_v47, %v8476_v16 }
0x140e   : > { %v16484_v15 = vmov %v15973_v55  ;;  %v10904_v14 = vpop.eup %10903 }
0x140f   : > { %v15981_v5 = vadd.f32 %v15941_v53, %v8501_v22   ;;  %v8478_v29 = vmul.f32 %v10904_v14, %v15854_v54 }
0x1411   : > { %v16485_v23 = vmov %v15981_v5  ;;  %v8503_v28 = vmul.f32 %v15938_v47, %v8478_v29 }
0x1413   : > { %v10906_v19 = vpop.eup %10905  ;;  %v15987_v9 = vadd.f32 %v15941_v53, %v8503_v28  }
0x1414   : > { %v8481_v41 = vmul.f32 %v10906_v19, %v15867_v27  ;;  %v10908_v0 = vpop.eup %10907 }
0x1415   : > { %v16486_v25 = vmov %v15987_v9  ;;  %v8480_v39 = vmul.f32 %v10908_v0, %v15861_v44 }
0x1416   : > { %v8506_v24 = vmul.f32 %v15938_v47, %v8481_v41 }
0x1417   : > { %v8505_v56 = vmul.f32 %v15938_v47, %v8480_v39  ;;  %v10910_v52 = vpop.eup %10909 }
0x1418   : > { %v15993_v42 = vadd.f32 %v15941_v53, %v8506_v24   ;;  %v8482_v54 = vmul.f32 %v10910_v52, %v15874_v7 }
0x1419   : > { %v15996_v13 = vadd.f32 %v15941_v53, %v8505_v56  }
0x141a   : > { %v16487_v30 = vmov %v15993_v42  ;;  %v8507_v27 = vmul.f32 %v15938_v47, %v8482_v54 }
0x141b   : > { %v16488_v12 = vmov %v15996_v13 }
0x141c   : > { %v16001_v52 = vadd.f32 %v15941_v53, %v8507_v27  }
0x1449   : > { %v8383_v11 = vpop.xlane.xlu0 %8382 }
0x144a   : > { %v8420_v44 = vmul.f32 0.015625, %v8383_v11 }
0x144c   : > { %v8441_v45 = vadd.f32 1e-12, %v8420_v44 }
0x144d   : > { %v8386_v33 = vpop.xlane.xlu1 %8385 }
0x144e   : > { %10911 = vrsqrt.f32 %v8441_v45  ;;  %v8421_v37 = vmul.f32 0.015625, %v8386_v33 }
0x1450   : > { %v8442_v48 = vadd.f32 1e-12, %v8421_v37 }
0x1451   : > { %v8389_v6 = vpop.xlane.xlu0 %8388 }
0x1452   : > { %10913 = vrsqrt.f32 %v8442_v48  ;;  %v8422_v31 = vmul.f32 0.015625, %v8389_v6 }
0x1454   : > { %v8443_v57 = vadd.f32 1e-12, %v8422_v31 }
0x1455   : > { %v8392_v38 = vpop.xlane.xlu1 %8391 }
0x1456   : > { %10915 = vrsqrt.f32 %v8443_v57  ;;  %v8423_v34 = vmul.f32 0.015625, %v8392_v38 }
0x1458   : > { %v8444_v7 = vadd.f32 1e-12, %v8423_v34 }
0x1459   : > { %v8395_v59 = vpop.xlane.xlu0 %8394 }
0x145a   : > { %10917 = vrsqrt.f32 %v8444_v7  ;;  %v8424_v43 = vmul.f32 0.015625, %v8395_v59 }
0x145b   : > { %v10912_v40 = vpop.eup %10911 }
0x145c   : > { %v8483_v17 = vmul.f32 %v10912_v40, %v15882_v58  ;;  %v8445_v63 = vadd.f32 1e-12, %v8424_v43 }
0x145d   : > { %v8398_v20 = vpop.xlane.xlu1 %8397 }
0x145e   : > { %v8508_v8 = vmul.f32 %v15938_v47, %v8483_v17  ;;  %10919 = vrsqrt.f32 %v8445_v63  ;;  %v8425_v9 = vmul.f32 0.015625, %v8398_v20 }
0x145f   : > { %v10914_v46 = vpop.eup %10913 }
0x1460   : > { %v16006_v38 = vadd.f32 %v15941_v53, %v8508_v8   ;;  %v8484_v55 = vmul.f32 %v10914_v46, %v15887_v18  ;;  %v8446_v42 = vadd.f32 1e-12, %v8425_v9  ;;  %v16502_v9 = vmov %v16486_v25 }
0x1462   : > { %v16489_v35 = vmov %v16006_v38  ;;  %v8509_v13 = vmul.f32 %v15938_v47, %v8484_v55  ;;  %10921 = vrsqrt.f32 %v8446_v42  ;;  %v16499_v42 = vmov %v16487_v30 }
0x1463   : > { %v10916_v49 = vpop.eup %10915  ;;  %v16506_v55 = vmov %v16484_v15 }
0x1464   : > { %v16011_v16 = vadd.f32 %v15941_v53, %v8509_v13   ;;  %v8485_v58 = vmul.f32 %v10916_v49, %v15893_v3  ;;  %v16500_v13 = vmov %v16488_v12  ;;  %v11122_v55 = vmov (%p16039_p0), 1.0  }
0x1466   : > { %v8510_v22 = vmul.f32 %v15938_v47, %v8485_v58  ;;  %v16497_v49 = vmov %v16011_v16 }
0x1467   : > { %v10918_v14 = vpop.eup %10917 }
0x1468   : > { %v8535_v45 = vadd.f32 %v15941_v53, %v8510_v22   ;;  %v8486_v5 = vmul.f32 %v10918_v14, %v15899_v4 }
0x146a   : > { %v8511_v29 = vmul.f32 %v15938_v47, %v8486_v5 }
0x146b   : > { %v10920_v18 = vpop.eup %10919 }
0x146c   : > { %v16019_v56 = vadd.f32 %v15941_v53, %v8511_v29   ;;  %v8487_v28 = vmul.f32 %v10920_v18, %v15905_v1 }
0x146e   : > { %v16490_v19 = vmov %v16019_v56  ;;  %v8512_v41 = vmul.f32 %v15938_v47, %v8487_v28 }
0x146f   : > { %v8401_v0 = vpop.xlane.xlu0 %8400  ;;  %v10922_v39 = vpop.eup %10921 }
0x1470   : > { %v8426_v3 = vmul.f32 0.015625, %v8401_v0  ;;  %v16024_v20 = vadd.f32 %v15941_v53, %v8512_v41   ;;  %v8488_v54 = vmul.f32 %v10922_v39, %v15911_v21  ;;  %v16505_v0 = vmov %v16482_v51 }
0x1472   : > { %v16491_v24 = vmov %v16024_v20  ;;  %v8447_v27 = vadd.f32 1e-12, %v8426_v3  ;;  %v8513_v4 = vmul.f32 %v15938_v47, %v8488_v54  ;;  %v16507_v54 = vmov %v15963_v50 }
0x1473   : > { %v8404_v11 = vpop.xlane.xlu1 %8403  ;;  %v16495_v20 = vmov %v16491_v24  ;;  %v8554_v17 = vrot.slane (%p16039_p0), %v16491_v24, 2 }
0x1474   : > { %10923 = vrsqrt.f32 %v8447_v27  ;;  %v8427_v44 = vmul.f32 0.015625, %v8404_v11  ;;  %v8538_v63 = vadd.f32 %v15941_v53, %v8513_v4   ;;  %v16501_v27 = vmov %v15977_v36 }
0x1475   : > { %v16503_v11 = vmov %v16483_v10  ;;  %v8552_v36 = vrot.slane (%p16039_p0), %v16487_v30, 2 }
0x1476   : > { %v8448_v56 = vadd.f32 1e-12, %v8427_v44  ;;  %v16508_v44 = vmov %v15946_v2 }
0x1478   : > { %10925 = vrsqrt.f32 %v8448_v56  ;;  %v16496_v56 = vmov %v16490_v19 }
0x147d   : > { %v8407_v1 = vpop.xlane.xlu0 %8406 }
0x147e   : > { %v8428_v33 = vmul.f32 0.015625, %v8407_v1  ;;  %v16504_v1 = vmov %v16485_v23  ;;  %v8553_v23 = vrot.slane (%p16039_p0), %v16011_v16, 2 }
0x1480   : > { %v8449_v48 = vadd.f32 1e-12, %v8428_v33  ;;  %v8567_v61 = vmul.f32 (%p16039_p0), %v8553_v23, %v16489_v35 }
0x1481   : > { %v10924_v37 = vpop.eup %10923 }
0x1482   : > { %v8489_v6 = vmul.f32 %v10924_v37, %v15918_v32  ;;  %10927 = vrsqrt.f32 %v8449_v48  ;;  %v8549_v32 = vrot.slane (%p16039_p0), %v15963_v50, 2  ;;  %v8586_v45 = vrot.slane (%p16039_p0), %v8567_v61, 4 }
0x1484   : > { %v8514_v31 = vmul.f32 %v15938_v47, %v8489_v6  ;;  %v8563_v46 = vmul.f32 (%p16039_p0), %v8549_v32, %v15946_v2 }
0x1485   : > { %v10926_v21 = vpop.eup %10925 }
0x1486   : > { %v8539_v57 = vadd.f32 %v15941_v53, %v8514_v31   ;;  %v8490_v38 = vmul.f32 %v10926_v21, %v15923_v62  ;;  %v8550_v62 = vrot.slane (%p16039_p0), %v16482_v51, 2  ;;  %v8568_v51 = vmul.f32 (%p16039_p0), %v8554_v17, %v16490_v19 }
0x1488   : > { %v8515_v34 = vmul.f32 %v15938_v47, %v8490_v38  ;;  %v16498_v38 = vmov %v16489_v35  ;;  %v8564_v58 = vmul.f32 (%p16039_p0), %v8550_v62, %v16484_v15  ;;  %v8589_v2 = vrot.slane (%p16039_p0), %v8568_v51, 3 }
0x148a   : > { %v8540_v7 = vadd.f32 %v15941_v53, %v8515_v34  }
0x148c   : > { %v16493_v5 = vmov %v8540_v7  ;;  %v8555_v8 = vrot.slane (%p16039_p0), %v8540_v7, 2 }
0x148e   :  { %v8569_v50 = vmul.f32 (%p16039_p0), %v8555_v8, %v8539_v57 }
0x148f   : > { %v10928_v59 = vpop.eup %10927 }
0x1490   : > { %v8491_v43 = vmul.f32 %v10928_v59, %v15930_v60  ;;  %386 = sbr.rel (!%p16039_p0) target bundleno = 350 (0x15e), region = 61  ;;  %v8551_v60 = vrot.slane (%p16039_p0), %v16486_v25, 2  ;;  %v8577_v25 = vrot.slane (%p16039_p0), %v8564_v58, 7 }
0x1492   : > { %v8516_v40 = vmul.f32 %v15938_v47, %v8491_v43  ;;  %v16494_v47 = vmov %v8539_v57  ;;  %v8565_v26 = vmul.f32 (%p16039_p0), %v8551_v60, %v16483_v10  ;;  %v8579_v63 = vsel (%p16039_p0), %vm8578_vm2, %v8577_v25, %v8563_v46 }
0x1493   :  { %v8566_v47 = vmul.f32 (%p16039_p0), %v8552_v36, %v16488_v12  ;;  %v8592_v10 = vrot.slane (%p16039_p0), %v8569_v50, 2 }
0x1494   : > { %v8541_v29 = vadd.f32 %v15941_v53, %v8516_v40   ;;  %v11120_v53 = vmov (%p16039_p0), 0.0   ;;  %v8580_v30 = vrot.slane (%p16039_p0), %v8565_v26, 6 }
0x1495   :  { %9974 = vmatprep.subr.mxu0 %v11120_v53  ;;  %v8583_v52 = vrot.slane %v8566_v47, 5  ;;  %9976 = vmatprep.mubr.msk.f32.mxu0 %vm11121_vm8, %v11120_v53 }
0x1496   :  { %v8582_v15 = vsel %vm8581_vm3, %v8580_v30, %v8579_v63 }
0x1497   :  { %v8585_v20 = vsel %vm8584_vm4, %v8583_v52, %v8582_v15 }
0x1498   :  { %v8588_v12 = vsel %vm8587_vm5, %v8586_v45, %v8585_v20 }
0x1499   :  { %v8591_v9 = vsel %vm8590_vm6, %v8589_v2, %v8588_v12 }
0x149a   :  { %v8594_v35 = vsel %vm8593_vm7, %v8592_v10, %v8591_v9 }
0x149b   :  { %9975 = vmatpush3.xpose.msk.msra.mxu0 %vm50_vm0, %v8594_v35 }
0x149e   :  { %9977 = vmatmul.mubr.msk.f32.vlgmr.msra.gmra.mxu0 %vm50_vm0, %v11122_v55 }
0x155e   :  { %v8666_v42 = vpop.f32.mrf.mxu0 }
0x155f   :  { %8671 = vst.msk [vmem:[%s16128_s7] sm:$0x1] %vm8670_vm9, %v8666_v42 }
0x1560   :  { %v9978_v13 = vpop.f32.mrf.mxu0 }

</bundles_post_ra>
